<compile_context>
chip_gen: v6e
topology: v6e:2x2x1
jax: 0.10.0
libtpu: 0.0.40
codegen_flags: <defaults>
</compile_context>

<pallas_src>
import functools

import jax
import jax.numpy as jnp
from jax import lax
from jax.experimental import pallas as pl
from jax.experimental.pallas import tpu as pltpu

TB_MAX = 128      # max batch tile per grid step (fills the MXU M dimension)
NPAD = 128        # lane-dense width for pooled activations / fc outputs


def _round_up(n, m):
    return ((n + m - 1) // m) * m


# ------------------------------ fused kernel -------------------------------

def _lenet_kernel(x_ref, w1_ref, b1_ref, w2_ref, b2_ref, w3_ref, b3_ref,
                  w4_ref, b4_ref, w5_ref, b5_ref, o_ref, *, tb):
    f32, bf16 = jnp.float32, jnp.bfloat16

    x = x_ref[...]                                           # (tb, 28, 28) bf16

    # ---- conv1: 5 banded MXU matmuls (one per kernel row ki). ----
    # Output column layout: [even-ow half | odd-ow half], each half = ow'*8+c.
    acc1 = jnp.zeros((tb * 24, 2 * NPAD), f32)
    for ki in range(5):
        lhs = x[:, ki:ki + 24, :].reshape(tb * 24, 28)
        acc1 = acc1 + jnp.dot(lhs, w1_ref[ki], preferred_element_type=f32)
    y1 = jnp.maximum(acc1 + b1_ref[...], 0.0)                # (tb*24, 256)

    # 2x2 maxpool: W-pool = max of the two 128-lane halves (vreg-aligned),
    # H-pool = max over adjacent row pairs.
    m1 = jnp.maximum(y1[:, :NPAD], y1[:, NPAD:])             # (tb*24, 128)
    p1 = jnp.max(m1.reshape(tb, 12, 2, NPAD), axis=2).astype(bf16)  # (tb,12,128)

    # ---- conv2: 5 banded MXU matmuls, K=128 (pooled-W x in-ch), N=256. ----
    acc2 = jnp.zeros((tb * 8, 2 * NPAD), f32)
    for ki in range(5):
        lhs = p1[:, ki:ki + 8, :].reshape(tb * 8, NPAD)
        acc2 = acc2 + jnp.dot(lhs, w2_ref[ki], preferred_element_type=f32)
    y2 = jnp.maximum(acc2 + b2_ref[...], 0.0)                # (tb*8, 256)

    m2 = jnp.maximum(y2[:, :NPAD], y2[:, NPAD:])             # (tb*8, 128)
    p2 = jnp.max(m2.reshape(tb, 4, 2, NPAD), axis=2).astype(bf16)   # (tb,4,128)

    # ---- fc1 (torch NCHW flatten folded into the weight): 4 K=128 matmuls. ----
    acc3 = jnp.zeros((tb, NPAD), f32)
    for oh3 in range(4):
        acc3 = acc3 + jnp.dot(p2[:, oh3, :], w3_ref[oh3],
                              preferred_element_type=f32)
    a3 = jnp.maximum(acc3 + b3_ref[...], 0.0)

    # ---- fc2 + ReLU, fc3 ----
    a4 = jnp.dot(a3.astype(bf16), w4_ref[...], preferred_element_type=f32)
    a4 = jnp.maximum(a4 + b4_ref[...], 0.0)
    a5 = jnp.dot(a4.astype(bf16), w5_ref[...], preferred_element_type=f32)
    o_ref[...] = (a5 + b5_ref[...]).astype(o_ref.dtype)


# --------------------------- parameter packing -----------------------------

def _pack_params(params):
    bf16, f32 = jnp.bfloat16, jnp.float32
    half = jnp.arange(2)

    # conv1 (6,1,5,5) -> banded (5 ki, 28 iw, 256).  Column half*128 + ow'*8 + c
    # holds w1[c, ki, iw - (2*ow' + half)] (zero outside the band / padding).
    w1r = params["conv1_w"].reshape(6, 5, 5)                 # (c, ki, kj)
    owp = jnp.arange(12)
    iw = jnp.arange(28)
    kj = iw[None, :, None] - (2 * owp[None, None, :] + half[:, None, None])
    valid = (kj >= 0) & (kj < 5)                              # (2, 28, 12)
    g = w1r[:, :, jnp.clip(kj, 0, 4)]                         # (6,5,2,28,12)
    g = jnp.where(valid[None, None], g, 0.0)
    g = jnp.transpose(g, (1, 3, 2, 4, 0))                     # (ki, iw, half, ow', c)
    g = jnp.pad(g, ((0, 0), (0, 0), (0, 0), (0, 4), (0, 2)))  # ow'->16, c->8
    w1 = g.reshape(5, 28, 2 * NPAD).astype(bf16)

    b1h = jnp.pad(jnp.tile(jnp.pad(params["conv1_b"], (0, 2)), 12), (0, 32))
    b1 = jnp.concatenate([b1h, b1h]).reshape(1, 2 * NPAD).astype(f32)

    # conv2 (16,6,5,5) -> banded (5 ki, 128, 256).  Row iw'*8 + ci, column
    # half*128 + co*4 + ow3 holds w2[co, ci, ki, iw' - (2*ow3 + half)].
    w2r = params["conv2_w"]                                   # (co, ci, ki, kj)
    ow3 = jnp.arange(4)
    iwp = jnp.arange(12)
    kj2 = iwp[None, :, None] - (2 * ow3[None, None, :] + half[:, None, None])
    valid2 = (kj2 >= 0) & (kj2 < 5)                           # (2, 12, 4)
    g2 = w2r[:, :, :, jnp.clip(kj2, 0, 4)]                    # (16,6,5,2,12,4)
    g2 = jnp.where(valid2[None, None, None], g2, 0.0)
    g2 = jnp.transpose(g2, (2, 4, 1, 3, 0, 5))                # (ki, iw', ci, half, co, ow3)
    g2 = jnp.pad(g2, ((0, 0), (0, 4), (0, 2), (0, 0), (0, 16), (0, 0)))
    w2 = g2.reshape(5, NPAD, 2 * NPAD).astype(bf16)

    b2h = jnp.pad(jnp.repeat(params["conv2_b"], 4), (0, 64))
    b2 = jnp.concatenate([b2h, b2h]).reshape(1, 2 * NPAD).astype(f32)

    # fc1 (256,120): fold torch flatten index c*16 + h*4 + w and the kernel's
    # pooled layout (row oh3, lane co*4 + ow3) into a (4, 128, 128) weight.
    fcr = params["fc1_w"].reshape(16, 4, 4, 120)              # (co, oh3, ow3, j)
    w3 = jnp.transpose(fcr, (1, 0, 2, 3)).reshape(4, 64, 120)
    w3 = jnp.pad(w3, ((0, 0), (0, 64), (0, NPAD - 120))).astype(bf16)
    b3 = jnp.pad(params["fc1_b"], (0, NPAD - 120)).reshape(1, NPAD).astype(f32)

    w4 = jnp.pad(params["fc2_w"], ((0, NPAD - 120), (0, NPAD - 84))).astype(bf16)
    b4 = jnp.pad(params["fc2_b"], (0, NPAD - 84)).reshape(1, NPAD).astype(f32)
    w5 = jnp.pad(params["fc3_w"], ((0, NPAD - 84), (0, NPAD - 10))).astype(bf16)
    b5 = jnp.pad(params["fc3_b"], (0, NPAD - 10)).reshape(1, NPAD).astype(f32)
    return (w1, b1, w2, b2, w3, b3, w4, b4, w5, b5)


# -------------------------------- forward ----------------------------------

def lenet1c_forward(params, x):
    """x: (B, 1, 28, 28) float32 NCHW (PyTorch layout). Returns (B, 10) f32."""
    B = x.shape[0]
    packed = _pack_params(params)

    tb = min(TB_MAX, _round_up(B, 8))     # large MXU-filling tile; shrink for tiny B
    bp = _round_up(B, tb)
    xb = x.reshape(B, 28, 28).astype(jnp.bfloat16)
    if bp != B:
        xb = jnp.pad(xb, ((0, bp - B), (0, 0), (0, 0)))
    grid = (bp // tb,)

    def _full(shape):
        n = len(shape)
        return pl.BlockSpec(shape, lambda i, _n=n: (0,) * _n)

    in_specs = [pl.BlockSpec((tb, 28, 28), lambda i: (i, 0, 0))]
    in_specs += [_full(p.shape) for p in packed]

    flops = 2 * bp * (24 * 24 * 25 * 6 + 8 * 8 * 25 * 6 * 16
                      + 256 * 120 + 120 * 84 + 84 * 10)
    bytes_accessed = (int(xb.size) * xb.dtype.itemsize + bp * NPAD * 4
                      + sum(int(p.size) * p.dtype.itemsize for p in packed))

    out = pl.pallas_call(
        functools.partial(_lenet_kernel, tb=tb),
        out_shape=jax.ShapeDtypeStruct((bp, NPAD), jnp.float32),
        grid=grid,
        in_specs=in_specs,
        out_specs=pl.BlockSpec((tb, NPAD), lambda i: (i, 0)),
        compiler_params=pltpu.CompilerParams(
            dimension_semantics=("parallel",),
            vmem_limit_bytes=48 * 1024 * 1024),
        cost_estimate=pl.CostEstimate(flops=flops, transcendentals=0,
                                      bytes_accessed=bytes_accessed),
    )(xb, *packed)
    return out[:B, :10]


# --------------------------- params / reference ----------------------------

def init_params(key):
    """Deterministic, PyTorch-default-style uniform(-1/sqrt(fan_in)) init."""
    ks = jax.random.split(key, 10)

    def u(k, shape, fan_in):
        bound = 1.0 / jnp.sqrt(float(fan_in))
        return jax.random.uniform(k, shape, jnp.float32, -bound, bound)

    return {
        "conv1_w": u(ks[0], (6, 1, 5, 5), 25),
        "conv1_b": u(ks[1], (6,), 25),
        "conv2_w": u(ks[2], (16, 6, 5, 5), 150),
        "conv2_b": u(ks[3], (16,), 150),
        "fc1_w": u(ks[4], (256, 120), 256),
        "fc1_b": u(ks[5], (120,), 256),
        "fc2_w": u(ks[6], (120, 84), 120),
        "fc2_b": u(ks[7], (84,), 120),
        "fc3_w": u(ks[8], (84, 10), 84),
        "fc3_b": u(ks[9], (10,), 84),
    }


def _reference_forward(params, x):
    """Pure-XLA f32 reference matching the PyTorch module (validation only)."""
    dn = lax.conv_dimension_numbers(x.shape, params["conv1_w"].shape,
                                    ("NCHW", "OIHW", "NCHW"))

    def conv(inp, w, b):
        y = lax.conv_general_dilated(inp, w, (1, 1), "VALID",
                                     dimension_numbers=dn)
        return jax.nn.relu(y + b[None, :, None, None])

    def pool(inp):
        b, c, h, w = inp.shape
        return inp.reshape(b, c, h // 2, 2, w // 2, 2).max(axis=(3, 5))

    out = pool(conv(x, params["conv1_w"], params["conv1_b"]))
    out = pool(conv(out, params["conv2_w"], params["conv2_b"]))
    out = out.reshape(out.shape[0], -1)
    out = jax.nn.relu(out @ params["fc1_w"] + params["fc1_b"])
    out = jax.nn.relu(out @ params["fc2_w"] + params["fc2_b"])
    return out @ params["fc3_w"] + params["fc3_b"]


if __name__ == "__main__":
    key = jax.random.PRNGKey(0)
    pkey, xkey = jax.random.split(key)
    params = init_params(pkey)

    # Small-shape correctness check (B=2, same as the module's natural input).
    x = jax.random.normal(xkey, (2, 1, 28, 28), jnp.float32)
    logits = jax.jit(lenet1c_forward)(params, x)
    jax.block_until_ready(logits)
    assert logits.shape == (2, 10) and logits.dtype == jnp.float32
    ref = _reference_forward(params, x)
    err = float(jnp.max(jnp.abs(logits - ref)))
    assert err < 5e-2, f"max |pallas - reference| = {err}"

    # Larger batch exercising the TB=128 tiled path (grid=2, batch padding).
    xb = jax.random.normal(jax.random.PRNGKey(1), (200, 1, 28, 28), jnp.float32)
    logits_b = jax.jit(lenet1c_forward)(params, xb)
    jax.block_until_ready(logits_b)
    assert logits_b.shape == (200, 10)
    ref_b = _reference_forward(params, xb)
    err_b = float(jnp.max(jnp.abs(logits_b - ref_b)))
    assert err_b < 1e-1, f"max |pallas - reference| (B=200) = {err_b}"

    print("KERNEL_OK")
</pallas_src>

<mosaic_0001>
module attributes {stable_mosaic.version = 11 : i64} {
  func.func @_lenet_kernel(%arg0: i32, %arg1: memref<8x28x28xbf16, #tpu.memory_space<vmem>>, %arg2: memref<5x28x256xbf16, #tpu.memory_space<vmem>>, %arg3: memref<1x256xf32, #tpu.memory_space<vmem>>, %arg4: memref<5x128x256xbf16, #tpu.memory_space<vmem>>, %arg5: memref<1x256xf32, #tpu.memory_space<vmem>>, %arg6: memref<4x128x128xbf16, #tpu.memory_space<vmem>>, %arg7: memref<1x128xf32, #tpu.memory_space<vmem>>, %arg8: memref<128x128xbf16, #tpu.memory_space<vmem>>, %arg9: memref<1x128xf32, #tpu.memory_space<vmem>>, %arg10: memref<128x128xbf16, #tpu.memory_space<vmem>>, %arg11: memref<1x128xf32, #tpu.memory_space<vmem>>, %arg12: memref<8x128xf32, #tpu.memory_space<vmem>>) attributes {dimension_semantics = [#tpu.dimension_semantics<parallel>], iteration_bounds = array<i64: 1>, scalar_prefetch = 0 : i64, scratch_operands = 0 : i64, tpu.core_type = #tpu.core_type<tc>, window_params = [{transform_indices = @transform_0, window_bounds = array<i64: 8, 28, 28>}, {pipeline_mode = #tpu.pipeline_mode<synchronous>, transform_indices = @transform_1, window_bounds = array<i64: 5, 28, 256>}, {pipeline_mode = #tpu.pipeline_mode<synchronous>, transform_indices = @transform_2, window_bounds = array<i64: 1, 256>}, {pipeline_mode = #tpu.pipeline_mode<synchronous>, transform_indices = @transform_3, window_bounds = array<i64: 5, 128, 256>}, {pipeline_mode = #tpu.pipeline_mode<synchronous>, transform_indices = @transform_4, window_bounds = array<i64: 1, 256>}, {pipeline_mode = #tpu.pipeline_mode<synchronous>, transform_indices = @transform_5, window_bounds = array<i64: 4, 128, 128>}, {pipeline_mode = #tpu.pipeline_mode<synchronous>, transform_indices = @transform_6, window_bounds = array<i64: 1, 128>}, {pipeline_mode = #tpu.pipeline_mode<synchronous>, transform_indices = @transform_7, window_bounds = array<i64: 128, 128>}, {pipeline_mode = #tpu.pipeline_mode<synchronous>, transform_indices = @transform_8, window_bounds = array<i64: 1, 128>}, {pipeline_mode = #tpu.pipeline_mode<synchronous>, transform_indices = @transform_9, window_bounds = array<i64: 128, 128>}, {pipeline_mode = #tpu.pipeline_mode<synchronous>, transform_indices = @transform_10, window_bounds = array<i64: 1, 128>}, {transform_indices = @transform_11, window_bounds = array<i64: 8, 128>}]} {
    %c0 = arith.constant 0 : index
    %c0_0 = arith.constant 0 : index
    %c0_1 = arith.constant 0 : index
    %0 = vector.load %arg1[%c0, %c0_0, %c0_1] : memref<8x28x28xbf16, #tpu.memory_space<vmem>>, vector<8x28x28xbf16>
    %cst = arith.constant 0.000000e+00 : f32
    %1 = vector.broadcast %cst : f32 to vector<192x256xf32>
    %2 = vector.extract_strided_slice %0 {offsets = [0, 0, 0], sizes = [8, 24, 28], strides = [1, 1, 1]} : vector<8x28x28xbf16> to vector<8x24x28xbf16>
    %3 = vector.shape_cast %2 : vector<8x24x28xbf16> to vector<192x28xbf16>
    %c0_2 = arith.constant 0 : index
    %c0_3 = arith.constant 0 : index
    %c0_4 = arith.constant 0 : index
    %4 = vector.load %arg2[%c0_2, %c0_3, %c0_4] : memref<5x28x256xbf16, #tpu.memory_space<vmem>>, vector<1x28x256xbf16>
    %5 = vector.shape_cast %4 : vector<1x28x256xbf16> to vector<28x256xbf16>
    %cst_5 = arith.constant dense<0.000000e+00> : vector<192x256xf32>
    %6 = tpu.matmul %3, %5, %cst_5 {dimension_numbers = #tpu.dot_dimension_numbers<[1], [0], [0], [1], [0, 0, 1, 1], [], []>} : vector<192x28xbf16>, vector<28x256xbf16>, vector<192x256xf32> -> vector<192x256xf32>
    %7 = arith.addf %1, %6 : vector<192x256xf32>
    %8 = vector.extract_strided_slice %0 {offsets = [0, 1, 0], sizes = [8, 24, 28], strides = [1, 1, 1]} : vector<8x28x28xbf16> to vector<8x24x28xbf16>
    %9 = vector.shape_cast %8 : vector<8x24x28xbf16> to vector<192x28xbf16>
    %c1 = arith.constant 1 : index
    %c0_6 = arith.constant 0 : index
    %c0_7 = arith.constant 0 : index
    %10 = vector.load %arg2[%c1, %c0_6, %c0_7] : memref<5x28x256xbf16, #tpu.memory_space<vmem>>, vector<1x28x256xbf16>
    %11 = vector.shape_cast %10 : vector<1x28x256xbf16> to vector<28x256xbf16>
    %cst_8 = arith.constant dense<0.000000e+00> : vector<192x256xf32>
    %12 = tpu.matmul %9, %11, %cst_8 {dimension_numbers = #tpu.dot_dimension_numbers<[1], [0], [0], [1], [0, 0, 1, 1], [], []>} : vector<192x28xbf16>, vector<28x256xbf16>, vector<192x256xf32> -> vector<192x256xf32>
    %13 = arith.addf %7, %12 : vector<192x256xf32>
    %14 = vector.extract_strided_slice %0 {offsets = [0, 2, 0], sizes = [8, 24, 28], strides = [1, 1, 1]} : vector<8x28x28xbf16> to vector<8x24x28xbf16>
    %15 = vector.shape_cast %14 : vector<8x24x28xbf16> to vector<192x28xbf16>
    %c2 = arith.constant 2 : index
    %c0_9 = arith.constant 0 : index
    %c0_10 = arith.constant 0 : index
    %16 = vector.load %arg2[%c2, %c0_9, %c0_10] : memref<5x28x256xbf16, #tpu.memory_space<vmem>>, vector<1x28x256xbf16>
    %17 = vector.shape_cast %16 : vector<1x28x256xbf16> to vector<28x256xbf16>
    %cst_11 = arith.constant dense<0.000000e+00> : vector<192x256xf32>
    %18 = tpu.matmul %15, %17, %cst_11 {dimension_numbers = #tpu.dot_dimension_numbers<[1], [0], [0], [1], [0, 0, 1, 1], [], []>} : vector<192x28xbf16>, vector<28x256xbf16>, vector<192x256xf32> -> vector<192x256xf32>
    %19 = arith.addf %13, %18 : vector<192x256xf32>
    %20 = vector.extract_strided_slice %0 {offsets = [0, 3, 0], sizes = [8, 24, 28], strides = [1, 1, 1]} : vector<8x28x28xbf16> to vector<8x24x28xbf16>
    %21 = vector.shape_cast %20 : vector<8x24x28xbf16> to vector<192x28xbf16>
    %c3 = arith.constant 3 : index
    %c0_12 = arith.constant 0 : index
    %c0_13 = arith.constant 0 : index
    %22 = vector.load %arg2[%c3, %c0_12, %c0_13] : memref<5x28x256xbf16, #tpu.memory_space<vmem>>, vector<1x28x256xbf16>
    %23 = vector.shape_cast %22 : vector<1x28x256xbf16> to vector<28x256xbf16>
    %cst_14 = arith.constant dense<0.000000e+00> : vector<192x256xf32>
    %24 = tpu.matmul %21, %23, %cst_14 {dimension_numbers = #tpu.dot_dimension_numbers<[1], [0], [0], [1], [0, 0, 1, 1], [], []>} : vector<192x28xbf16>, vector<28x256xbf16>, vector<192x256xf32> -> vector<192x256xf32>
    %25 = arith.addf %19, %24 : vector<192x256xf32>
    %26 = vector.extract_strided_slice %0 {offsets = [0, 4, 0], sizes = [8, 24, 28], strides = [1, 1, 1]} : vector<8x28x28xbf16> to vector<8x24x28xbf16>
    %27 = vector.shape_cast %26 : vector<8x24x28xbf16> to vector<192x28xbf16>
    %c4 = arith.constant 4 : index
    %c0_15 = arith.constant 0 : index
    %c0_16 = arith.constant 0 : index
    %28 = vector.load %arg2[%c4, %c0_15, %c0_16] : memref<5x28x256xbf16, #tpu.memory_space<vmem>>, vector<1x28x256xbf16>
    %29 = vector.shape_cast %28 : vector<1x28x256xbf16> to vector<28x256xbf16>
    %cst_17 = arith.constant dense<0.000000e+00> : vector<192x256xf32>
    %30 = tpu.matmul %27, %29, %cst_17 {dimension_numbers = #tpu.dot_dimension_numbers<[1], [0], [0], [1], [0, 0, 1, 1], [], []>} : vector<192x28xbf16>, vector<28x256xbf16>, vector<192x256xf32> -> vector<192x256xf32>
    %31 = arith.addf %25, %30 : vector<192x256xf32>
    %c0_18 = arith.constant 0 : index
    %c0_19 = arith.constant 0 : index
    %32 = vector.load %arg3[%c0_18, %c0_19] : memref<1x256xf32, #tpu.memory_space<vmem>>, vector<1x256xf32>
    %33 = vector.broadcast %32 : vector<1x256xf32> to vector<192x256xf32>
    %34 = arith.addf %31, %33 : vector<192x256xf32>
    %cst_20 = arith.constant 0.000000e+00 : f32
    %35 = vector.broadcast %cst_20 : f32 to vector<192x256xf32>
    %36 = arith.maximumf %34, %35 : vector<192x256xf32>
    %37 = vector.extract_strided_slice %36 {offsets = [0, 0], sizes = [192, 128], strides = [1, 1]} : vector<192x256xf32> to vector<192x128xf32>
    %38 = vector.extract_strided_slice %36 {offsets = [0, 128], sizes = [192, 128], strides = [1, 1]} : vector<192x256xf32> to vector<192x128xf32>
    %39 = arith.maximumf %37, %38 : vector<192x128xf32>
    %40 = vector.shape_cast %39 : vector<192x128xf32> to vector<8x12x2x128xf32>
    %cst_21 = arith.constant dense<0xFF800000> : vector<8x12x128xf32>
    %41 = vector.multi_reduction <maximumf>, %40, %cst_21 [2] : vector<8x12x2x128xf32> to vector<8x12x128xf32>
    %42 = arith.truncf %41 : vector<8x12x128xf32> to vector<8x12x128xbf16>
    %cst_22 = arith.constant 0.000000e+00 : f32
    %43 = vector.broadcast %cst_22 : f32 to vector<64x256xf32>
    %44 = vector.extract_strided_slice %42 {offsets = [0, 0, 0], sizes = [8, 8, 128], strides = [1, 1, 1]} : vector<8x12x128xbf16> to vector<8x8x128xbf16>
    %45 = vector.shape_cast %44 : vector<8x8x128xbf16> to vector<64x128xbf16>
    %c0_23 = arith.constant 0 : index
    %c0_24 = arith.constant 0 : index
    %c0_25 = arith.constant 0 : index
    %46 = vector.load %arg4[%c0_23, %c0_24, %c0_25] : memref<5x128x256xbf16, #tpu.memory_space<vmem>>, vector<1x128x256xbf16>
    %47 = vector.shape_cast %46 : vector<1x128x256xbf16> to vector<128x256xbf16>
    %cst_26 = arith.constant dense<0.000000e+00> : vector<64x256xf32>
    %48 = tpu.matmul %45, %47, %cst_26 {dimension_numbers = #tpu.dot_dimension_numbers<[1], [0], [0], [1], [0, 0, 1, 1], [], []>} : vector<64x128xbf16>, vector<128x256xbf16>, vector<64x256xf32> -> vector<64x256xf32>
    %49 = arith.addf %43, %48 : vector<64x256xf32>
    %50 = vector.extract_strided_slice %42 {offsets = [0, 1, 0], sizes = [8, 8, 128], strides = [1, 1, 1]} : vector<8x12x128xbf16> to vector<8x8x128xbf16>
    %51 = vector.shape_cast %50 : vector<8x8x128xbf16> to vector<64x128xbf16>
    %c1_27 = arith.constant 1 : index
    %c0_28 = arith.constant 0 : index
    %c0_29 = arith.constant 0 : index
    %52 = vector.load %arg4[%c1_27, %c0_28, %c0_29] : memref<5x128x256xbf16, #tpu.memory_space<vmem>>, vector<1x128x256xbf16>
    %53 = vector.shape_cast %52 : vector<1x128x256xbf16> to vector<128x256xbf16>
    %cst_30 = arith.constant dense<0.000000e+00> : vector<64x256xf32>
    %54 = tpu.matmul %51, %53, %cst_30 {dimension_numbers = #tpu.dot_dimension_numbers<[1], [0], [0], [1], [0, 0, 1, 1], [], []>} : vector<64x128xbf16>, vector<128x256xbf16>, vector<64x256xf32> -> vector<64x256xf32>
    %55 = arith.addf %49, %54 : vector<64x256xf32>
    %56 = vector.extract_strided_slice %42 {offsets = [0, 2, 0], sizes = [8, 8, 128], strides = [1, 1, 1]} : vector<8x12x128xbf16> to vector<8x8x128xbf16>
    %57 = vector.shape_cast %56 : vector<8x8x128xbf16> to vector<64x128xbf16>
    %c2_31 = arith.constant 2 : index
    %c0_32 = arith.constant 0 : index
    %c0_33 = arith.constant 0 : index
    %58 = vector.load %arg4[%c2_31, %c0_32, %c0_33] : memref<5x128x256xbf16, #tpu.memory_space<vmem>>, vector<1x128x256xbf16>
    %59 = vector.shape_cast %58 : vector<1x128x256xbf16> to vector<128x256xbf16>
    %cst_34 = arith.constant dense<0.000000e+00> : vector<64x256xf32>
    %60 = tpu.matmul %57, %59, %cst_34 {dimension_numbers = #tpu.dot_dimension_numbers<[1], [0], [0], [1], [0, 0, 1, 1], [], []>} : vector<64x128xbf16>, vector<128x256xbf16>, vector<64x256xf32> -> vector<64x256xf32>
    %61 = arith.addf %55, %60 : vector<64x256xf32>
    %62 = vector.extract_strided_slice %42 {offsets = [0, 3, 0], sizes = [8, 8, 128], strides = [1, 1, 1]} : vector<8x12x128xbf16> to vector<8x8x128xbf16>
    %63 = vector.shape_cast %62 : vector<8x8x128xbf16> to vector<64x128xbf16>
    %c3_35 = arith.constant 3 : index
    %c0_36 = arith.constant 0 : index
    %c0_37 = arith.constant 0 : index
    %64 = vector.load %arg4[%c3_35, %c0_36, %c0_37] : memref<5x128x256xbf16, #tpu.memory_space<vmem>>, vector<1x128x256xbf16>
    %65 = vector.shape_cast %64 : vector<1x128x256xbf16> to vector<128x256xbf16>
    %cst_38 = arith.constant dense<0.000000e+00> : vector<64x256xf32>
    %66 = tpu.matmul %63, %65, %cst_38 {dimension_numbers = #tpu.dot_dimension_numbers<[1], [0], [0], [1], [0, 0, 1, 1], [], []>} : vector<64x128xbf16>, vector<128x256xbf16>, vector<64x256xf32> -> vector<64x256xf32>
    %67 = arith.addf %61, %66 : vector<64x256xf32>
    %68 = vector.extract_strided_slice %42 {offsets = [0, 4, 0], sizes = [8, 8, 128], strides = [1, 1, 1]} : vector<8x12x128xbf16> to vector<8x8x128xbf16>
    %69 = vector.shape_cast %68 : vector<8x8x128xbf16> to vector<64x128xbf16>
    %c4_39 = arith.constant 4 : index
    %c0_40 = arith.constant 0 : index
    %c0_41 = arith.constant 0 : index
    %70 = vector.load %arg4[%c4_39, %c0_40, %c0_41] : memref<5x128x256xbf16, #tpu.memory_space<vmem>>, vector<1x128x256xbf16>
    %71 = vector.shape_cast %70 : vector<1x128x256xbf16> to vector<128x256xbf16>
    %cst_42 = arith.constant dense<0.000000e+00> : vector<64x256xf32>
    %72 = tpu.matmul %69, %71, %cst_42 {dimension_numbers = #tpu.dot_dimension_numbers<[1], [0], [0], [1], [0, 0, 1, 1], [], []>} : vector<64x128xbf16>, vector<128x256xbf16>, vector<64x256xf32> -> vector<64x256xf32>
    %73 = arith.addf %67, %72 : vector<64x256xf32>
    %c0_43 = arith.constant 0 : index
    %c0_44 = arith.constant 0 : index
    %74 = vector.load %arg5[%c0_43, %c0_44] : memref<1x256xf32, #tpu.memory_space<vmem>>, vector<1x256xf32>
    %75 = vector.broadcast %74 : vector<1x256xf32> to vector<64x256xf32>
    %76 = arith.addf %73, %75 : vector<64x256xf32>
    %cst_45 = arith.constant 0.000000e+00 : f32
    %77 = vector.broadcast %cst_45 : f32 to vector<64x256xf32>
    %78 = arith.maximumf %76, %77 : vector<64x256xf32>
    %79 = vector.extract_strided_slice %78 {offsets = [0, 0], sizes = [64, 128], strides = [1, 1]} : vector<64x256xf32> to vector<64x128xf32>
    %80 = vector.extract_strided_slice %78 {offsets = [0, 128], sizes = [64, 128], strides = [1, 1]} : vector<64x256xf32> to vector<64x128xf32>
    %81 = arith.maximumf %79, %80 : vector<64x128xf32>
    %82 = vector.shape_cast %81 : vector<64x128xf32> to vector<8x4x2x128xf32>
    %cst_46 = arith.constant dense<0xFF800000> : vector<8x4x128xf32>
    %83 = vector.multi_reduction <maximumf>, %82, %cst_46 [2] : vector<8x4x2x128xf32> to vector<8x4x128xf32>
    %84 = arith.truncf %83 : vector<8x4x128xf32> to vector<8x4x128xbf16>
    %cst_47 = arith.constant 0.000000e+00 : f32
    %85 = vector.broadcast %cst_47 : f32 to vector<8x128xf32>
    %86 = vector.extract_strided_slice %84 {offsets = [0, 0, 0], sizes = [8, 1, 128], strides = [1, 1, 1]} : vector<8x4x128xbf16> to vector<8x1x128xbf16>
    %87 = vector.shape_cast %86 : vector<8x1x128xbf16> to vector<8x128xbf16>
    %c0_48 = arith.constant 0 : index
    %c0_49 = arith.constant 0 : index
    %c0_50 = arith.constant 0 : index
    %88 = vector.load %arg6[%c0_48, %c0_49, %c0_50] : memref<4x128x128xbf16, #tpu.memory_space<vmem>>, vector<1x128x128xbf16>
    %89 = vector.shape_cast %88 : vector<1x128x128xbf16> to vector<128x128xbf16>
    %cst_51 = arith.constant dense<0.000000e+00> : vector<8x128xf32>
    %90 = tpu.matmul %87, %89, %cst_51 {dimension_numbers = #tpu.dot_dimension_numbers<[1], [0], [0], [1], [0, 0, 1, 1], [], []>} : vector<8x128xbf16>, vector<128x128xbf16>, vector<8x128xf32> -> vector<8x128xf32>
    %91 = arith.addf %85, %90 : vector<8x128xf32>
    %92 = vector.extract_strided_slice %84 {offsets = [0, 1, 0], sizes = [8, 1, 128], strides = [1, 1, 1]} : vector<8x4x128xbf16> to vector<8x1x128xbf16>
    %93 = vector.shape_cast %92 : vector<8x1x128xbf16> to vector<8x128xbf16>
    %c1_52 = arith.constant 1 : index
    %c0_53 = arith.constant 0 : index
    %c0_54 = arith.constant 0 : index
    %94 = vector.load %arg6[%c1_52, %c0_53, %c0_54] : memref<4x128x128xbf16, #tpu.memory_space<vmem>>, vector<1x128x128xbf16>
    %95 = vector.shape_cast %94 : vector<1x128x128xbf16> to vector<128x128xbf16>
    %cst_55 = arith.constant dense<0.000000e+00> : vector<8x128xf32>
    %96 = tpu.matmul %93, %95, %cst_55 {dimension_numbers = #tpu.dot_dimension_numbers<[1], [0], [0], [1], [0, 0, 1, 1], [], []>} : vector<8x128xbf16>, vector<128x128xbf16>, vector<8x128xf32> -> vector<8x128xf32>
    %97 = arith.addf %91, %96 : vector<8x128xf32>
    %98 = vector.extract_strided_slice %84 {offsets = [0, 2, 0], sizes = [8, 1, 128], strides = [1, 1, 1]} : vector<8x4x128xbf16> to vector<8x1x128xbf16>
    %99 = vector.shape_cast %98 : vector<8x1x128xbf16> to vector<8x128xbf16>
    %c2_56 = arith.constant 2 : index
    %c0_57 = arith.constant 0 : index
    %c0_58 = arith.constant 0 : index
    %100 = vector.load %arg6[%c2_56, %c0_57, %c0_58] : memref<4x128x128xbf16, #tpu.memory_space<vmem>>, vector<1x128x128xbf16>
    %101 = vector.shape_cast %100 : vector<1x128x128xbf16> to vector<128x128xbf16>
    %cst_59 = arith.constant dense<0.000000e+00> : vector<8x128xf32>
    %102 = tpu.matmul %99, %101, %cst_59 {dimension_numbers = #tpu.dot_dimension_numbers<[1], [0], [0], [1], [0, 0, 1, 1], [], []>} : vector<8x128xbf16>, vector<128x128xbf16>, vector<8x128xf32> -> vector<8x128xf32>
    %103 = arith.addf %97, %102 : vector<8x128xf32>
    %104 = vector.extract_strided_slice %84 {offsets = [0, 3, 0], sizes = [8, 1, 128], strides = [1, 1, 1]} : vector<8x4x128xbf16> to vector<8x1x128xbf16>
    %105 = vector.shape_cast %104 : vector<8x1x128xbf16> to vector<8x128xbf16>
    %c3_60 = arith.constant 3 : index
    %c0_61 = arith.constant 0 : index
    %c0_62 = arith.constant 0 : index
    %106 = vector.load %arg6[%c3_60, %c0_61, %c0_62] : memref<4x128x128xbf16, #tpu.memory_space<vmem>>, vector<1x128x128xbf16>
    %107 = vector.shape_cast %106 : vector<1x128x128xbf16> to vector<128x128xbf16>
    %cst_63 = arith.constant dense<0.000000e+00> : vector<8x128xf32>
    %108 = tpu.matmul %105, %107, %cst_63 {dimension_numbers = #tpu.dot_dimension_numbers<[1], [0], [0], [1], [0, 0, 1, 1], [], []>} : vector<8x128xbf16>, vector<128x128xbf16>, vector<8x128xf32> -> vector<8x128xf32>
    %109 = arith.addf %103, %108 : vector<8x128xf32>
    %c0_64 = arith.constant 0 : index
    %c0_65 = arith.constant 0 : index
    %110 = vector.load %arg7[%c0_64, %c0_65] : memref<1x128xf32, #tpu.memory_space<vmem>>, vector<1x128xf32>
    %111 = vector.broadcast %110 : vector<1x128xf32> to vector<8x128xf32>
    %112 = arith.addf %109, %111 : vector<8x128xf32>
    %cst_66 = arith.constant 0.000000e+00 : f32
    %113 = vector.broadcast %cst_66 : f32 to vector<8x128xf32>
    %114 = arith.maximumf %112, %113 : vector<8x128xf32>
    %115 = arith.truncf %114 : vector<8x128xf32> to vector<8x128xbf16>
    %c0_67 = arith.constant 0 : index
    %c0_68 = arith.constant 0 : index
    %116 = vector.load %arg8[%c0_67, %c0_68] : memref<128x128xbf16, #tpu.memory_space<vmem>>, vector<128x128xbf16>
    %cst_69 = arith.constant dense<0.000000e+00> : vector<8x128xf32>
    %117 = tpu.matmul %115, %116, %cst_69 {dimension_numbers = #tpu.dot_dimension_numbers<[1], [0], [0], [1], [0, 0, 1, 1], [], []>} : vector<8x128xbf16>, vector<128x128xbf16>, vector<8x128xf32> -> vector<8x128xf32>
    %c0_70 = arith.constant 0 : index
    %c0_71 = arith.constant 0 : index
    %118 = vector.load %arg9[%c0_70, %c0_71] : memref<1x128xf32, #tpu.memory_space<vmem>>, vector<1x128xf32>
    %119 = vector.broadcast %118 : vector<1x128xf32> to vector<8x128xf32>
    %120 = arith.addf %117, %119 : vector<8x128xf32>
    %cst_72 = arith.constant 0.000000e+00 : f32
    %121 = vector.broadcast %cst_72 : f32 to vector<8x128xf32>
    %122 = arith.maximumf %120, %121 : vector<8x128xf32>
    %123 = arith.truncf %122 : vector<8x128xf32> to vector<8x128xbf16>
    %c0_73 = arith.constant 0 : index
    %c0_74 = arith.constant 0 : index
    %124 = vector.load %arg10[%c0_73, %c0_74] : memref<128x128xbf16, #tpu.memory_space<vmem>>, vector<128x128xbf16>
    %cst_75 = arith.constant dense<0.000000e+00> : vector<8x128xf32>
    %125 = tpu.matmul %123, %124, %cst_75 {dimension_numbers = #tpu.dot_dimension_numbers<[1], [0], [0], [1], [0, 0, 1, 1], [], []>} : vector<8x128xbf16>, vector<128x128xbf16>, vector<8x128xf32> -> vector<8x128xf32>
    %c0_76 = arith.constant 0 : index
    %c0_77 = arith.constant 0 : index
    %126 = vector.load %arg11[%c0_76, %c0_77] : memref<1x128xf32, #tpu.memory_space<vmem>>, vector<1x128xf32>
    %127 = vector.broadcast %126 : vector<1x128xf32> to vector<8x128xf32>
    %128 = arith.addf %125, %127 : vector<8x128xf32>
    %c0_78 = arith.constant 0 : index
    %c0_79 = arith.constant 0 : index
    %129 = vector.load %arg12[%c0_78, %c0_79] : memref<8x128xf32, #tpu.memory_space<vmem>>, vector<8x128xf32>
    tpu.vector_store %arg12[%c0_78, %c0_79], %128 {strides = array<i32>} : memref<8x128xf32, #tpu.memory_space<vmem>>, vector<8x128xf32>,
    return
  }
  func.func @transform_0(%arg0: i32) -> (i32, i32, i32) {
    %c0_i32 = arith.constant 0 : i32
    %c0_i32_0 = arith.constant 0 : i32
    %c0_i32_1 = arith.constant 0 : i32
    return %arg0, %c0_i32, %c0_i32_0 : i32, i32, i32
  }
  func.func @transform_1(%arg0: i32) -> (i32, i32, i32) {
    %c0_i32 = arith.constant 0 : i32
    %c0_i32_0 = arith.constant 0 : i32
    %c0_i32_1 = arith.constant 0 : i32
    %c0_i32_2 = arith.constant 0 : i32
    return %c0_i32, %c0_i32_0, %c0_i32_1 : i32, i32, i32
  }
  func.func @transform_2(%arg0: i32) -> (i32, i32) {
    %c0_i32 = arith.constant 0 : i32
    %c0_i32_0 = arith.constant 0 : i32
    %c0_i32_1 = arith.constant 0 : i32
    return %c0_i32, %c0_i32_0 : i32, i32
  }
  func.func @transform_3(%arg0: i32) -> (i32, i32, i32) {
    %c0_i32 = arith.constant 0 : i32
    %c0_i32_0 = arith.constant 0 : i32
    %c0_i32_1 = arith.constant 0 : i32
    %c0_i32_2 = arith.constant 0 : i32
    return %c0_i32, %c0_i32_0, %c0_i32_1 : i32, i32, i32
  }
  func.func @transform_4(%arg0: i32) -> (i32, i32) {
    %c0_i32 = arith.constant 0 : i32
    %c0_i32_0 = arith.constant 0 : i32
    %c0_i32_1 = arith.constant 0 : i32
    return %c0_i32, %c0_i32_0 : i32, i32
  }
  func.func @transform_5(%arg0: i32) -> (i32, i32, i32) {
    %c0_i32 = arith.constant 0 : i32
    %c0_i32_0 = arith.constant 0 : i32
    %c0_i32_1 = arith.constant 0 : i32
    %c0_i32_2 = arith.constant 0 : i32
    return %c0_i32, %c0_i32_0, %c0_i32_1 : i32, i32, i32
  }
  func.func @transform_6(%arg0: i32) -> (i32, i32) {
    %c0_i32 = arith.constant 0 : i32
    %c0_i32_0 = arith.constant 0 : i32
    %c0_i32_1 = arith.constant 0 : i32
    return %c0_i32, %c0_i32_0 : i32, i32
  }
  func.func @transform_7(%arg0: i32) -> (i32, i32) {
    %c0_i32 = arith.constant 0 : i32
    %c0_i32_0 = arith.constant 0 : i32
    %c0_i32_1 = arith.constant 0 : i32
    return %c0_i32, %c0_i32_0 : i32, i32
  }
  func.func @transform_8(%arg0: i32) -> (i32, i32) {
    %c0_i32 = arith.constant 0 : i32
    %c0_i32_0 = arith.constant 0 : i32
    %c0_i32_1 = arith.constant 0 : i32
    return %c0_i32, %c0_i32_0 : i32, i32
  }
  func.func @transform_9(%arg0: i32) -> (i32, i32) {
    %c0_i32 = arith.constant 0 : i32
    %c0_i32_0 = arith.constant 0 : i32
    %c0_i32_1 = arith.constant 0 : i32
    return %c0_i32, %c0_i32_0 : i32, i32
  }
  func.func @transform_10(%arg0: i32) -> (i32, i32) {
    %c0_i32 = arith.constant 0 : i32
    %c0_i32_0 = arith.constant 0 : i32
    %c0_i32_1 = arith.constant 0 : i32
    return %c0_i32, %c0_i32_0 : i32, i32
  }
  func.func @transform_11(%arg0: i32) -> (i32, i32) {
    %c0_i32 = arith.constant 0 : i32
    %c0_i32_0 = arith.constant 0 : i32
    return %arg0, %c0_i32 : i32, i32
  }
}

</mosaic_0001>

<bundles_post_ra>
// kernel: tile.8
= control target key start
LH: loop header
LB: loop body
LE: loop exit
PB: predicated region body
PF: predicated region fallthrough
CT: control target
= control target key end

     0   :  { %s28_s0 = inlined_call_operand.vmem [shape: f32[8], index: 0, kind: input, shape index: {}]   ;;  %s29_s1 = inlined_call_operand.vmem [shape: f32[12,8], index: 1, kind: output, shape index: {}]  }
   0x1   :  { %v4_v0 = vld [vmem:[%s28_s0] ss:$0 sm:$0xff] }
   0x2   :  { %5 = vst [vmem:[%s29_s1] sm:$0xff] %v4_v0  ;;  %8 = vst [vmem:[%s29_s1 + $0x8] sm:$0xff] %v4_v0 }

// kernel: tile.9
= control target key start
LH: loop header
LB: loop body
LE: loop exit
PB: predicated region body
PF: predicated region fallthrough
CT: control target
= control target key end

     0   :  { %s101_s10 = smov 88   ;;  %s102_s11 = smov 72   ;;  %vm3_vm0 = vcmask 64512   ;;  %vm9_vm1 = vcmask 786112   ;;  %vm15_vm2 = vcmask 720512   ;;  %vm21_vm3 = vcmask 654912   ;;  %s161_s0 = inlined_call_operand.vmem [shape: f32[12,8], index: 0, kind: input, shape index: {}]   ;;  %s162_s1 = inlined_call_operand.vmem [shape: f32[96], index: 1, kind: output, shape index: {}]  }
   0x1   :  { %v79_v0 = vld [vmem:[%s161_s0 + $0xb] sm:$0x1]   ;;  %v81_v1 = vld [vmem:[%s161_s0 + $0x9] sm:$0x1]   ;;  %v80_v2 = vld [vmem:[%s161_s0 + $0xa] sm:$0x1]  }
   0x2   :  { %7 = vrot.lane.b32.xlu0 %v79_v0, %s101_s10  ;;  %19 = vrot.lane.b32.xlu1 %v81_v1, %s102_s11  ;;  %v82_v3 = vld [vmem:[%s161_s0 + $0x8] sm:$0x1]   ;;  %s103_s16 = smov 80   ;;  %s104_s17 = smov 64   ;;  %v83_v4 = vld [vmem:[%s161_s0 + $0x7] sm:$0x1]  }
   0x3   :  { %v2_v5 = vld [vmem:[%s161_s0] sm:$0x1]   ;;  %v84_v6 = vld [vmem:[%s161_s0 + $0x6] sm:$0x1]   ;;  %s105_s24 = smov 56   ;;  %s106_s25 = smov 48  }
   0x4   :  { %4 = vst.msk [vmem:[#allocation0] sm:$0x1] %vm3_vm0, %v2_v5   ;;  %v85_v7 = vld [vmem:[%s161_s0 + $0x5] sm:$0x1]   ;;  %v86_v8 = vld [vmem:[%s161_s0 + $0x4] sm:$0x1]  }
   0x5   :  { %s107_s30 = smov 40   ;;  %s108_s2 = smov 32   ;;  %v87_v9 = vld [vmem:[%s161_s0 + $0x3] sm:$0x1]   ;;  %v88_v10 = vld [vmem:[%s161_s0 + $0x2] sm:$0x1]  }
   0x6   :  { %13 = vrot.lane.b32.xlu0 %v80_v2, %s103_s16  ;;  %25 = vrot.lane.b32.xlu1 %v82_v3, %s104_s17  ;;  %s109_s7 = smov 24   ;;  %s110_s8 = smov 16   ;;  %v89_v11 = vld [vmem:[%s161_s0 + $0x1] sm:$0x1]   ;;  %vm27_vm4 = vcmask 589312   ;;  %vm33_vm5 = vcmask 523712  }
   0x7   :  { %s111_s0 = smov 8   ;;  %vm39_vm6 = vcmask 458112   ;;  %vm45_vm7 = vcmask 392512   ;;  %vm51_vm8 = vcmask 326912   ;;  %vm57_vm9 = vcmask 261312  }
   0x8   :  { %vm63_vm10 = vcmask 195712   ;;  %vm69_vm11 = vcmask 130112  }
   0xa   :  { %31 = vrot.lane.b32.xlu0 %v83_v4, %s105_s24  ;;  %37 = vrot.lane.b32.xlu1 %v84_v6, %s106_s25 }
   0xe   :  { %43 = vrot.lane.b32.xlu0 %v85_v7, %s107_s30  ;;  %49 = vrot.lane.b32.xlu1 %v86_v8, %s108_s2 }
  0x12   :  { %55 = vrot.lane.b32.xlu0 %v87_v9, %s109_s7  ;;  %61 = vrot.lane.b32.xlu1 %v88_v10, %s110_s8 }
  0x16   :  { %67 = vrot.lane.b32.xlu0 %v89_v11, %s111_s0 }
  0x74   :  { %v8_v12 = vpop.permute.xlu0 %7   ;;  %v20_v13 = vpop.permute.xlu1 %19  }
  0x75   :  { %10 = vst.msk [vmem:[#allocation0] sm:$0x1] %vm9_vm1, %v8_v12  }
  0x78   :  { %v14_v14 = vpop.permute.xlu0 %13   ;;  %v26_v15 = vpop.permute.xlu1 %25  }
  0x79   :  { %16 = vst.msk [vmem:[#allocation0] sm:$0x1] %vm15_vm2, %v14_v14  }
  0x7a   :  { %22 = vst.msk [vmem:[#allocation0] sm:$0x1] %vm21_vm3, %v20_v13  }
  0x7b   :  { %28 = vst.msk [vmem:[#allocation0] sm:$0x1] %vm27_vm4, %v26_v15  }
  0x7c   :  { %v32_v16 = vpop.permute.xlu0 %31   ;;  %v38_v17 = vpop.permute.xlu1 %37  }
  0x7d   :  { %34 = vst.msk [vmem:[#allocation0] sm:$0x1] %vm33_vm5, %v32_v16  }
  0x7e   :  { %40 = vst.msk [vmem:[#allocation0] sm:$0x1] %vm39_vm6, %v38_v17  }
  0x80   :  { %v44_v18 = vpop.permute.xlu0 %43   ;;  %v50_v19 = vpop.permute.xlu1 %49  }
  0x81   :  { %46 = vst.msk [vmem:[#allocation0] sm:$0x1] %vm45_vm7, %v44_v18  }
  0x82   :  { %52 = vst.msk [vmem:[#allocation0] sm:$0x1] %vm51_vm8, %v50_v19  }
  0x84   :  { %v56_v20 = vpop.permute.xlu0 %55   ;;  %v62_v21 = vpop.permute.xlu1 %61  }
  0x85   :  { %58 = vst.msk [vmem:[#allocation0] sm:$0x1] %vm57_vm9, %v56_v20  }
  0x86   :  { %64 = vst.msk [vmem:[#allocation0] sm:$0x1] %vm63_vm10, %v62_v21  }
  0x88   :  { %v68_v22 = vpop.permute.xlu0 %67  }
  0x89   :  { %70 = vst.msk [vmem:[#allocation0] sm:$0x1] %vm69_vm11, %v68_v22  }
  0x90   :  { %v75_v23 = vld [vmem:[#allocation0] sm:$0x1] }
  0x91   :  { %78 = vst [vmem:[%s162_s1] sm:$0x1] %v75_v23 }

// kernel: lenet1c_forward.1
= control target key start
LH: loop header
LB: loop body
LE: loop exit
PB: predicated region body
PF: predicated region fallthrough
CT: control target
= control target key end

     0   :  { %vm446_vm0 = vcmask 1045504   ;;  %v11007_v1 = vmov 0   ;;  %vm75_vm1 = vsmask.f32 3328  ;;  %vm76_vm2 = vsmask.f32 7440  ;;  %s10956_s1 = inlined_call_operand.vmem [shape: bf16[5,28,256], index: 1, kind: input, shape index: {}]   ;;  %s10957_s0 = inlined_call_operand.vmem [shape: bf16[8,28,28], index: 0, kind: input, shape index: {}]   ;;  %s10958_s3 = inlined_call_operand.vmem [shape: bf16[5,128,256], index: 3, kind: input, shape index: {}]   ;;  %s10959_s2 = inlined_call_operand.vmem [shape: f32[1,256], index: 2, kind: input, shape index: {}]   ;;  %s10960_s5 = inlined_call_operand.vmem [shape: bf16[4,128,128], index: 5, kind: input, shape index: {}]   ;;  %s10961_s4 = inlined_call_operand.vmem [shape: f32[1,256], index: 4, kind: input, shape index: {}]   ;;  %s10962_s7 = inlined_call_operand.vmem [shape: bf16[128,128], index: 7, kind: input, shape index: {}]   ;;  %s10963_s9 = inlined_call_operand.vmem [shape: bf16[128,128], index: 9, kind: input, shape index: {}]   ;;  %s10964_s6 = inlined_call_operand.vmem [shape: f32[1,128], index: 6, kind: input, shape index: {}]   ;;  %s10965_s8 = inlined_call_operand.vmem [shape: f32[1,128], index: 8, kind: input, shape index: {}]   ;;  %s10966_s10 = inlined_call_operand.vmem [shape: f32[1,128], index: 10, kind: input, shape index: {}]   ;;  %s10967_s11 = inlined_call_operand.vmem [shape: f32[8,128], index: 11, kind: output, shape index: {}]  }
   0x1   :  { %v6809_v0 = vld [vmem:[%s10956_s1 + $0x34] ss:$8 sps:$4 sm:$0x3f]   ;;  %485 = vmatprep.mubr.bf16.mxu0 %v11007_v1  ;;  %758 = vmatprep.mubr.bf16.mxu1 %v11007_v1  ;;  %v6811_v2 = vld [vmem:[%s10956_s1 + $0x30] ss:$8 sps:$4 sm:$0x3f]   ;;  %vm7189_vm4 = vmor %vm75_vm1, %vm76_vm2 }
   0x2   :  { %6231 = vmatprep.subr.msk.bf16.mxu0 %vm446_vm0, %v6809_v0  ;;  %v6812_v3 = vld [vmem:[%s10956_s1 + $0x14] ss:$8 sps:$4 sm:$0x3f]   ;;  %v6814_v4 = vld [vmem:[%s10956_s1 + $0x10] ss:$8 sps:$4 sm:$0x3f]  }
   0x3   :  { %v448_v5 = vsel %vm446_vm0, %v6811_v2, 0  ;;  %v6815_v6 = vld [vmem:[%s10956_s1 + $0x24] ss:$8 sps:$4 sm:$0xff]   ;;  %6260 = vmatprep.subr.msk.bf16.mxu1 %vm446_vm0, %v6812_v3  ;;  %v721_v7 = vsel %vm446_vm0, %v6814_v4, 0  ;;  %v6817_v8 = vld [vmem:[%s10956_s1 + $0x20] ss:$8 sps:$4 sm:$0xff]  }
   0x4   :  { %466 = vmatpush1.bf16.msra.mxu0 %v448_v5  ;;  %739 = vmatpush1.bf16.msra.mxu1 %v721_v7  ;;  %v6818_v9 = vld [vmem:[%s10956_s1 + $0x4] ss:$8 sps:$4 sm:$0xff]   ;;  %v6820_v10 = vld [vmem:[%s10956_s1] ss:$8 sps:$4 sm:$0xff]   ;;  %vm409_vm3 = vcmask 228352   ;;  %vm887_vm8 = vcmask 1042432  }
   0x5   :  { %467 = vmatprep.subr.bf16.mxu0 %v6815_v6  ;;  %v6821_v11 = vld [vmem:[%s10956_s1 + $0x54] ss:$8 sps:$4 sm:$0x3f]   ;;  %740 = vmatprep.subr.bf16.mxu1 %v6818_v9  ;;  %v7149_v12 = vld [vmem:[%s10957_s0] sm:$0xf]  ;;  %vm888_vm9 = vcmask 1046532  }
   0x6   :  { %v7154_v13 = vld [vmem:[%s10957_s0 + $0x4] sm:$0xf]  ;;  %v7159_v14 = vld [vmem:[%s10957_s0 + $0x8] sm:$0xf]  ;;  %v79_v15 = vshrl.u32 %v7149_v12, 16  ;;  %v82_v16 = vshll.u32 %v7149_v12, 16  ;;  %vm7809_vm10 = vmor %vm887_vm8, %vm888_vm9 }
   0x7   :  { %v88_v17 = vshll.u32 %v7154_v13, 16  ;;  %v92_v18 = vshrl.u32 %v7154_v13, 16  ;;  %v98_v19 = vshll.u32 %v7159_v14, 16  ;;  %v6244_v20 = vcombine.low %v7149_v12, %v7154_v13  ;;  %v6824_v21 = vld [vmem:[%s10956_s1 + $0x50] ss:$8 sps:$4 sm:$0x3f]  }
   0x8   :  { %468 = vmatpush1.bf16.msra.mxu0 %v6817_v8  ;;  %741 = vmatpush1.bf16.msra.mxu1 %v6820_v10  ;;  %v81_v22 = vrot.slane %v79_v15, 4  ;;  %v84_v23 = vrot.slane %v82_v16, 5  ;;  %v7175_v26 = vld [vmem:[%s10957_s0 + $0xc] sm:$0x3]  ;;  %v7177_v27 = vrot.slane %v79_v15, 5  ;;  %v7179_v28 = vrot.slane %v82_v16, 6 }
   0x9   :  { %6301 = vmatprep.subr.msk.bf16.mxu0 %vm446_vm0, %v6821_v11  ;;  %v90_v24 = vrot.slane %v88_v17, 5  ;;  %v94_v25 = vrot.slane %v92_v18, 4  ;;  %v1279_v29 = vrot.slane %v92_v18, 5  ;;  %v7184_v30 = vld [vmem:[%s10957_s0 + $0x10] sm:$0xf]  ;;  %v100_v33 = vrot.slane %v98_v19, 5 }
   0xa   :  { %v85_v31 = vor.u32 %v84_v23, %v81_v22  ;;  %v1280_v34 = vrot.slane %v88_v17, 6  ;;  %v1277_v36 = vor.u32 %v7179_v28, %v7177_v27  ;;  %v102_v37 = vshrl.u32 %v7159_v14, 16  ;;  %v7203_v42 = vld [vmem:[%s10957_s0 + $0x14] sm:$0xf]  ;;  %v7211_v48 = vld [vmem:[%s10957_s0 + $0x18] sm:$0xf] }
   0xb   :  { %v95_v32 = vor.u32 %v94_v25, %v90_v24  ;;  %6261 = vmatmul.mubr.msk.bf16.vlgmr.msra.gmra.mxu1 %vm409_vm3, %v6244_v20  ;;  %v108_v38 = vshll.u32 %v7175_v26, 16  ;;  %v113_v43 = vshrl.u32 %v7184_v30, 16  ;;  %v1285_v44 = vrot.slane %v98_v19, 6  ;;  %v7227_v57 = vld [vmem:[%s10957_s0 + $0x1c] sm:$0x3] }
   0xc   :  { %768 = vmatprep.mubr.bf16.mxu1 %v11007_v1  ;;  %v86_v39 = vrot.slane %v85_v31, 4  ;;  %v7198_v41 = vor.u32 %v1280_v34, %v1279_v29  ;;  %v1066_v45 = vsel %vm446_vm0, %v6824_v21, 0  ;;  %v104_v46 = vrot.slane %v102_v37, 4  ;;  %v7232_v58 = vld [vmem:[%s10957_s0 + $0x20] sm:$0xf] }
   0xd   :  { %v96_v40 = vrot.slane %v95_v32, 4  ;;  %v116_v47 = vshll.u32 %v7184_v30, 16  ;;  %v110_v51 = vrot.slane %v108_v38, 5  ;;  %v115_v52 = vrot.slane %v113_v43, 4  ;;  %v7241_v63 = vld [vmem:[%s10957_s0 + $0x24] sm:$0xf] }
   0xe   :  { %v91_v49 = vsel %vm7189_vm4, %v86_v39, %v90_v24  ;;  %v105_v54 = vor.u32 %v104_v46, %v100_v33  ;;  %v122_v56 = vshll.u32 %v7203_v42, 16  ;;  %v1284_v59 = vrot.slane %v102_v37, 5  ;;  %v6832_v5 = vld [vmem:[%s10956_s1 + $0x44] ss:$8 sps:$4 sm:$0xff]   ;;  %v6830_v10 = vld [vmem:[%s10956_s1 + $0x40] ss:$8 sps:$4 sm:$0xff]  }
   0xf   :  { %v101_v50 = vsel %vm7189_vm4, %v96_v40, %v100_v33  ;;  %v118_v55 = vrot.slane %v116_v47, 5  ;;  %v6245_v60 = vcombine.low %v7159_v14, %v7184_v30  ;;  %v126_v61 = vshrl.u32 %v7203_v42, 16  ;;  %v7278_v31 = vld [vmem:[%s10957_s0 + $0x28] sm:$0xf] }
  0x10   :  { %v6215_v53 = vcombine.low %v91_v49, %v101_v50  ;;  %v132_v62 = vshll.u32 %v7211_v48, 16  ;;  %v106_v0 = vrot.slane %v105_v54, 4  ;;  %v124_v3 = vrot.slane %v122_v56, 5  ;;  %v7518_v27 = vld [vmem:[%s10957_s0 + $0x68] sm:$0xf] }
  0x11   :  { %v119_v2 = vor.u32 %v118_v55, %v115_v52  ;;  %v136_v4 = vshrl.u32 %v7211_v48, 16  ;;  %v7251_v6 = vor.u32 %v1285_v44, %v1284_v59  ;;  %v128_v7 = vrot.slane %v126_v61, 4  ;;  %v7293_v44 = vld [vmem:[%s10957_s0 + $0x30] sm:$0xf]  ;;  %v7310_v59 = vld [vmem:[%s10957_s0 + $0x2c] sm:$0x3] }
  0x12   :  { %6232 = vmatmul.mubr.msk.bf16.vlgmr.msra.gmra.mxu0 %vm409_vm3, %v6215_v53  ;;  %v134_v8 = vrot.slane %v132_v62, 5  ;;  %v10999_v9 = vshll.u32 %v7227_v57, 16  ;;  %v111_v11 = vsel %vm7189_vm4, %v106_v0, %v110_v51  ;;  %v10998_v19 = vshrl.u32 %v7232_v58, 16  ;;  %11092 = vst [vmem:[#allocation2_spill] sm:$0xff] %v7293_v44  ;;  %11093 = vst [vmem:[#allocation3_spill] sm:$0xff] %v7310_v59 }
  0x13   :  { %1084 = vmatpush1.bf16.msra.mxu0 %v1066_v45  ;;  %495 = vmatprep.mubr.bf16.mxu0 %v11007_v1  ;;  %v120_v15 = vrot.slane %v119_v2, 4  ;;  %v138_v16 = vrot.slane %v136_v4, 4  ;;  %v129_v17 = vor.u32 %v128_v7, %v124_v3  ;;  %v10993_v20 = vshll.u32 %v7232_v58, 16 }
  0x14   :  { %6262 = vmatmul.mubr.msk.bf16.gmra.mxu1 %vm409_vm3, %v6245_v60  ;;  %1085 = vmatprep.subr.bf16.mxu0 %v6832_v5  ;;  %v144_v18 = vrot.slane %v10999_v9, 5  ;;  %v10986_v23 = vshll.u32 %v7241_v63, 16  ;;  %v10987_v24 = vshrl.u32 %v7241_v63, 16  ;;  %v149_v32 = vrot.slane %v10998_v19, 4  ;;  %v7319_v5 = vld [vmem:[%s10957_s0 + $0x38] sm:$0xf] }
  0x15   :  { %778 = vmatprep.mubr.bf16.mxu1 %v11007_v1  ;;  %v125_v21 = vsel %vm7189_vm4, %v120_v15, %v124_v3  ;;  %v139_v22 = vor.u32 %v138_v16, %v134_v8  ;;  %v130_v29 = vrot.slane %v129_v17, 4  ;;  %v152_v33 = vrot.slane %v10993_v20, 5  ;;  %v7333_v15 = vld [vmem:[%s10957_s0 + $0x34] sm:$0xf] }
  0x16   :  { %v6216_v25 = vcombine.low %v111_v11, %v125_v21  ;;  %v6246_v37 = vcombine.low %v7203_v42, %v7211_v48  ;;  %v158_v39 = vrot.slane %v10986_v23, 5  ;;  %v162_v40 = vrot.slane %v10987_v24, 4  ;;  %11094 = vst [vmem:[#allocation4_spill] sm:$0xff] %v7333_v15 }
  0x17   :  { %1086 = vmatpush1.bf16.msra.mxu0 %v6830_v10  ;;  %v140_v34 = vrot.slane %v139_v22, 4  ;;  %v153_v45 = vor.u32 %v152_v33, %v149_v32  ;;  %v10985_v46 = vshrl.u32 %v7278_v31, 16  ;;  %v10984_v50 = vshll.u32 %v7278_v31, 16  ;;  %v6839_v10 = vld [vmem:[%s10956_s1 + $0x74] ss:$8 sps:$4 sm:$0x3f]  }
  0x18   :  { %v163_v49 = vor.u32 %v162_v40, %v158_v39  ;;  %v135_v51 = vsel %vm7189_vm4, %v130_v29, %v134_v8  ;;  %v10977_v53 = vshrl.u32 %v7293_v44, 16  ;;  %v10976_v54 = vshll.u32 %v7293_v44, 16  ;;  %6334 = vmatprep.subr.msk.bf16.mxu1 %vm446_vm0, %v6839_v10 }
  0x19   :  { %v145_v52 = vsel %vm7189_vm4, %v140_v34, %v144_v18  ;;  %v154_v55 = vrot.slane %v153_v45, 4  ;;  %v172_v60 = vrot.slane %v10985_v46, 4  ;;  %v168_v3 = vrot.slane %v10984_v50, 5  ;;  %v7351_v34 = vld [vmem:[%s10957_s0 + $0x40] sm:$0xf] }
  0x1a   :  { %6233 = vmatmul.mubr.msk.bf16.gmra.mxu0 %vm409_vm3, %v6216_v25  ;;  %v6217_v0 = vcombine.low %v135_v51, %v145_v52  ;;  %v164_v2 = vrot.slane %v163_v49, 4  ;;  %v183_v7 = vrot.slane %v10977_v53, 4  ;;  %v186_v8 = vrot.slane %v10976_v54, 5  ;;  %v7362_v45 = vld [vmem:[%s10957_s0 + $0x44] sm:$0xf] }
  0x1b   :  { %505 = vmatprep.mubr.bf16.mxu0 %v11007_v1  ;;  %v6247_v11 = vcombine.low %v7232_v58, %v7241_v63  ;;  %v159_v16 = vsel %vm7189_vm4, %v154_v55, %v158_v39  ;;  %v173_v17 = vor.u32 %v172_v60, %v168_v3  ;;  %v10978_v18 = vshll.u32 %v7310_v59, 16 }
  0x1c   :  { %6263 = vmatmul.mubr.msk.bf16.gmra.mxu1 %vm409_vm3, %v6246_v37  ;;  %v169_v21 = vsel %vm7189_vm4, %v164_v2, %v168_v3  ;;  %v10973_v22 = vshrl.u32 %v7333_v15, 16  ;;  %v10968_v25 = vshll.u32 %v7319_v5, 16  ;;  %v10969_v29 = vshrl.u32 %v7319_v5, 16  ;;  %v6845_v37 = vld [vmem:[%s10956_s1 + $0x94] ss:$8 sps:$4 sm:$0x3f]  }
  0x1d   :  { %788 = vmatprep.mubr.bf16.mxu1 %v11007_v1  ;;  %v187_v32 = vor.u32 %v186_v8, %v183_v7  ;;  %v10970_v33 = vshll.u32 %v7333_v15, 16  ;;  %v6218_v39 = vcombine.low %v159_v16, %v169_v21  ;;  %v178_v40 = vrot.slane %v10978_v18, 5  ;;  %6375 = vmatprep.subr.msk.bf16.mxu0 %vm446_vm0, %v6845_v37  ;;  %v7378_v2 = vld [vmem:[%s10957_s0 + $0x3c] sm:$0x3]  ;;  %v7389_v16 = vld [vmem:[%s10957_s0 + $0x50] sm:$0xf] }
  0x1e   :  { %v174_v49 = vrot.slane %v173_v17, 4  ;;  %v196_v51 = vrot.slane %v10973_v22, 4  ;;  %v7368_v52 = vrot.slane %v10968_v25, 5  ;;  %v206_v55 = vrot.slane %v10969_v29, 4  ;;  %v7399_v25 = vld [vmem:[%s10957_s0 + $0x48] sm:$0xf] }
  0x1f   :  { %v188_v60 = vrot.slane %v187_v32, 4  ;;  %v10971_v3 = vshrl.u32 %v7351_v34, 16  ;;  %v10972_v7 = vshll.u32 %v7351_v34, 16  ;;  %v6248_v8 = vcombine.low %v7278_v31, %v7293_v44 }
  0x20   :  { %v10974_v10 = vshll.u32 %v7362_v45, 16  ;;  %v179_v17 = vsel %vm7189_vm4, %v174_v49, %v178_v40  ;;  %v207_v32 = vor.u32 %v206_v55, %v7368_v52  ;;  %v10980_v37 = vshll.u32 %v7378_v2, 16 }
  0x21   :  { %v220_v40 = vrot.slane %v10972_v7, 5  ;;  %v10979_v49 = vshrl.u32 %v7399_v25, 16  ;;  %vm1272_vm5 = vsmask.f32 2304  ;;  %vm1273_vm6 = vsmask.f32 6416 }
  0x22   :  { %6234 = vmatmul.mubr.msk.bf16.gmra.mxu0 %vm409_vm3, %v6217_v0  ;;  %v192_v0 = vrot.slane %v10970_v33, 5  ;;  %v10982_v33 = vshrl.u32 %v7389_v16, 16  ;;  %v208_v22 = vrot.slane %v207_v32, 4  ;;  %vm7542_vm7 = vmor %vm1272_vm5, %vm1273_vm6  ;;  %vm1737_vm11 = vcmask 1041408  }
  0x23   :  { %515 = vmatprep.mubr.bf16.mxu0 %v11007_v1  ;;  %v240_v54 = vrot.slane %v10979_v49, 4  ;;  %vm1738_vm12 = vcmask 1045508   ;;  %vm3712_vm14 = vcmask 1041409   ;;  %vm3714_vm15 = vcmask 1042434  }
  0x24   :  { %6264 = vmatmul.mubr.msk.bf16.gmra.mxu1 %vm409_vm3, %v6247_v11  ;;  %v10975_v11 = vshrl.u32 %v7362_v45, 16  ;;  %v197_v21 = vor.u32 %v196_v51, %v192_v0  ;;  %v193_v29 = vsel %vm7189_vm4, %v188_v60, %v192_v0  ;;  %v226_v51 = vrot.slane %v10974_v10, 5  ;;  %vm8051_vm13 = vmor %vm1737_vm11, %vm1738_vm12 }
  0x25   :  { %798 = vmatprep.mubr.bf16.mxu1 %v11007_v1  ;;  %v10981_v60 = vshll.u32 %v7389_v16, 16  ;;  %v10983_v0 = vshll.u32 %v7399_v25, 16  ;;  %v212_v10 = vrot.slane %v10980_v37, 5  ;;  %vm3718_vm1 = vcmask 1044484  }
  0x26   :  { %v230_v55 = vrot.slane %v10975_v11, 4  ;;  %v198_v7 = vrot.slane %v197_v21, 4  ;;  %v6249_v11 = vcombine.low %v7333_v15, %v7319_v5  ;;  %v251_v21 = vrot.slane %v10982_v33, 4 }
  0x27   :  { %v254_v32 = vrot.slane %v10981_v60, 5  ;;  %v213_v60 = vsel %vm7189_vm4, %v208_v22, %v212_v10  ;;  %vm3720_vm2 = vcmask 1045509   ;;  %vm7052_vm5 = vmmov 0  }
  0x28   :  { %v231_v18 = vor.u32 %v230_v55, %v226_v51  ;;  %v203_v37 = vsel %vm7189_vm4, %v198_v7, %v7368_v52  ;;  %v6250_v7 = vcombine.low %v7351_v34, %v7362_v45 }
  0x29   :  { %v255_v24 = vor.u32 %v254_v32, %v251_v21 }
  0x2a   :  { %6235 = vmatmul.mubr.msk.bf16.gmra.mxu0 %vm409_vm3, %v6218_v39  ;;  %v217_v39 = vrot.slane %v10971_v3, 4  ;;  %v6219_v3 = vcombine.low %v179_v17, %v193_v29  ;;  %v7432_v29 = vld [vmem:[%s10957_s0 + $0x4c] sm:$0x3]  ;;  %v7437_v17 = vld [vmem:[%s10957_s0 + $0x54] sm:$0xf]  ;;  %v232_v23 = vrot.slane %v231_v18, 4  ;;  %v6220_v18 = vcombine.low %v203_v37, %v213_v60 }
  0x2b   :  { %525 = vmatprep.mubr.bf16.mxu0 %v11007_v1  ;;  %v10992_v50 = vshll.u32 %v7437_v17, 16 }
  0x2c   :  { %6265 = vmatmul.mubr.msk.bf16.gmra.mxu1 %vm409_vm3, %v6248_v8  ;;  %v7421_v8 = vld [vmem:[%s10957_s0 + $0x58] sm:$0xf]  ;;  %v221_v53 = vor.u32 %v220_v40, %v217_v39  ;;  %v236_v39 = vrot.slane %v10983_v0, 5  ;;  %v10990_v40 = vshrl.u32 %v7437_v17, 16  ;;  %v10991_v0 = vshll.u32 %v7432_v29, 16 }
  0x2d   :  { %808 = vmatprep.mubr.bf16.mxu1 %v11007_v1  ;;  %v10988_v55 = vshll.u32 %v7421_v8, 16  ;;  %v10989_v49 = vshrl.u32 %v7421_v8, 16  ;;  %v260_v21 = vrot.slane %v10992_v50, 5  ;;  %v7496_v50 = vld [vmem:[%s10957_s0 + $0x64] sm:$0xf] }
  0x2e   :  { %v241_v33 = vor.u32 %v240_v54, %v236_v39  ;;  %v222_v46 = vrot.slane %v221_v53, 4  ;;  %v264_v22 = vrot.slane %v10990_v40, 4  ;;  %v7475_v53 = vld [vmem:[%s10957_s0 + $0x60] sm:$0xf]  ;;  %v256_v40 = vrot.slane %v255_v24, 4 }
  0x2f   :  { %v7468_v54 = vrot.slane %v10988_v55, 5  ;;  %v274_v52 = vrot.slane %v10989_v49, 4  ;;  %v237_v49 = vsel %vm7189_vm4, %v232_v23, %v236_v39  ;;  %v10994_v37 = vshrl.u32 %v7475_v53, 16  ;;  %v6847_v23 = vld [vmem:[%s10956_s1 + $0x90] ss:$8 sps:$4 sm:$0x3f]  }
  0x30   :  { %v242_v10 = vrot.slane %v241_v33, 4  ;;  %v227_v55 = vsel %vm7189_vm4, %v222_v46, %v226_v51  ;;  %v6841_v33 = vld [vmem:[%s10956_s1 + $0x70] ss:$8 sps:$4 sm:$0x3f]   ;;  %v265_v60 = vor.u32 %v264_v22, %v260_v21  ;;  %v10995_v46 = vshll.u32 %v7475_v53, 16 }
  0x31   :  { %v1278_v24 = vrot.slane %v1277_v36, 4  ;;  %v6844_v51 = vld [vmem:[%s10956_s1 + $0x64] ss:$8 sps:$4 sm:$0xff]   ;;  %v1283_v39 = vrot.slane %v7198_v41, 4  ;;  %v6221_v22 = vcombine.low %v227_v55, %v237_v49  ;;  %v261_v28 = vsel %vm7189_vm4, %v256_v40, %v260_v21 }
  0x32   :  { %6236 = vmatmul.mubr.msk.bf16.gmra.mxu0 %vm409_vm3, %v6219_v3  ;;  %v7461_v3 = vld [vmem:[%s10957_s0 + $0x5c] sm:$0x3]  ;;  %v285_v36 = vrot.slane %v10994_v37, 4  ;;  %v10997_v49 = vshll.u32 %v7496_v50, 16  ;;  %v1531_v55 = vsel %vm446_vm0, %v6841_v33, 0  ;;  %v7534_v40 = vsel %vm446_vm0, %v6847_v23, 0 }
  0x33   :  { %535 = vmatprep.mubr.bf16.mxu0 %v11007_v1  ;;  %v10996_v32 = vshll.u32 %v7461_v3, 16  ;;  %1549 = vmatpush1.bf16.msra.mxu1 %v1531_v55  ;;  %v11002_v21 = vshrl.u32 %v7496_v50, 16  ;;  %v11000_v37 = vshll.u32 %v7518_v27, 16  ;;  %v6252_v33 = vcombine.low %v7437_v17, %v7421_v8 }
  0x34   :  { %6266 = vmatmul.mubr.msk.bf16.gmra.mxu1 %vm409_vm3, %v6249_v11  ;;  %v246_v11 = vrot.slane %v10991_v0, 5  ;;  %v275_v0 = vor.u32 %v274_v52, %v7468_v54  ;;  %1550 = vmatprep.subr.bf16.mxu1 %v6844_v51  ;;  %v7548_v23 = vrot.slane %v10997_v49, 5  ;;  %v7553_v51 = vld [vmem:[%s10957_s0 + $0x6c] sm:$0x3]  ;;  %vm3716_vm0 = vcmask 1043459  }
  0x35   :  { %818 = vmatprep.mubr.bf16.mxu1 %v11007_v1  ;;  %v280_v20 = vrot.slane %v10996_v32, 5  ;;  %v1282_v32 = vsel %vm7542_vm7, %v1278_v24, %v7198_v41  ;;  %v298_v41 = vrot.slane %v11002_v21, 4  ;;  %v7578_v24 = vrot.slane %v11000_v37, 5 }
  0x36   :  { %v247_v52 = vsel %vm7189_vm4, %v242_v10, %v246_v11  ;;  %v276_v10 = vrot.slane %v275_v0, 4  ;;  %v288_v11 = vrot.slane %v10995_v46, 5  ;;  %v6251_v0 = vcombine.low %v7399_v25, %v7389_v16  ;;  %v7558_v46 = vld [vmem:[%s10957_s0 + $0x70] sm:$0xf] }
  0x37   :  { %v6222_v55 = vcombine.low %v247_v52, %v261_v28  ;;  %v1287_v52 = vsel %vm7542_vm7, %v1283_v39, %v7251_v6  ;;  %v1288_v37 = vrot.slane %v7251_v6, 4 }
  0x38   :  { %v281_v49 = vsel %vm7189_vm4, %v276_v10, %v280_v20  ;;  %v289_v19 = vor.u32 %v288_v11, %v285_v36  ;;  %v7571_v9 = vcombine.low %v1282_v32, %v1287_v52  ;;  %v11005_v20 = vshll.u32 %v7553_v51, 16 }
  0x39   :  { %v11004_v32 = vshrl.u32 %v7558_v46, 16  ;;  %v1292_v36 = vrot.slane %v108_v38, 6  ;;  %v1295_v10 = vrot.slane %v113_v43, 5  ;;  %v1296_v11 = vrot.slane %v116_v47, 6 }
  0x3a   :  { %6237 = vmatmul.mubr.msk.bf16.gmra.mxu0 %vm409_vm3, %v6220_v18  ;;  %v266_v18 = vrot.slane %v265_v60, 4  ;;  %v7599_v52 = vrot.slane %v289_v19, 4  ;;  %v1304_v47 = vrot.slane %v136_v4, 5  ;;  %v11097_v4 = vshll.u32 %v7227_v57, 16 }
  0x3b   :  { %545 = vmatprep.mubr.bf16.mxu0 %v11007_v1 }
  0x3c   :  { %6267 = vmatmul.mubr.msk.bf16.gmra.mxu1 %vm409_vm3, %v6250_v7  ;;  %v6842_v7 = vld [vmem:[%s10956_s1 + $0x60] ss:$8 sps:$4 sm:$0xff]   ;;  %v271_v28 = vsel %vm7189_vm4, %v266_v18, %v7468_v54  ;;  %v11001_v54 = vshrl.u32 %v7518_v27, 16 }
  0x3d   :  { %828 = vmatprep.mubr.bf16.mxu1 %v11007_v1  ;;  %1551 = vmatpush1.bf16.msra.mxu1 %v6842_v7  ;;  %v7590_v18 = vcombine.low %v271_v28, %v281_v49  ;;  %v1299_v7 = vrot.slane %v126_v61, 5  ;;  %v1300_v49 = vrot.slane %v122_v56, 6  ;;  %v1297_v28 = vor.u32 %v1296_v11, %v1295_v10  ;;  %v7612_v61 = vld [vmem:[%s10957_s0 + $0x74] sm:$0xf] }
  0x3e   :  { %v308_v43 = vrot.slane %v11001_v54, 4  ;;  %v1309_v56 = vshrl.u32 %v7227_v57, 16  ;;  %v11003_v10 = vshll.u32 %v7558_v46, 16  ;;  %v1312_v54 = vrot.slane %v11097_v4, 6 }
  0x3f   :  { %v1301_v6 = vor.u32 %v1300_v49, %v1299_v7  ;;  %v1298_v11 = vrot.slane %v1297_v28, 4  ;;  %v319_v49 = vrot.slane %v11004_v32, 4  ;;  %v11006_v28 = vshll.u32 %v7612_v61, 16 }
  0x41   :  { %v1302_v4 = vsel %vm7542_vm7, %v1298_v11, %v1301_v6  ;;  %v11100_v11 = vshrl.u32 %v7241_v63, 16 }
  0x42   :  { %6238 = vmatmul.mubr.msk.bf16.gmra.mxu0 %vm409_vm3, %v6221_v22  ;;  %v1289_v22 = vshrl.u32 %v7175_v26, 16 }
  0x43   :  { %555 = vmatprep.mubr.bf16.mxu0 %v11007_v1 }
  0x44   :  { %6268 = vmatmul.mubr.msk.bf16.gmra.mxu1 %vm409_vm3, %v6251_v0  ;;  %v1291_v38 = vrot.slane %v1289_v22, 5  ;;  %v299_v0 = vor.u32 %v298_v41, %v7548_v23  ;;  %v1305_v22 = vrot.slane %v132_v62, 6  ;;  %v7619_v41 = vrot.slane %v11005_v20, 5 }
  0x45   :  { %838 = vmatprep.mubr.bf16.mxu1 %v11007_v1  ;;  %v295_v62 = vsel %vm7189_vm4, %v7599_v52, %v7548_v23  ;;  %v309_v23 = vor.u32 %v308_v43, %v7578_v24  ;;  %v322_v52 = vrot.slane %v11003_v10, 5  ;;  %v11102_v10 = vshrl.u32 %v7278_v31, 16 }
  0x46   :  { %v1293_v19 = vor.u32 %v1292_v36, %v1291_v38  ;;  %v1303_v36 = vrot.slane %v1301_v6, 4  ;;  %v1306_v7 = vor.u32 %v1305_v22, %v1304_v47  ;;  %v1311_v38 = vrot.slane %v1309_v56, 5 }
  0x47   :  { %v1324_v32 = vrot.slane %v11102_v10, 5  ;;  %v11110_v10 = vshrl.u32 %v7333_v15, 16 }
  0x48   :  { %v1294_v21 = vsel %vm7542_vm7, %v1288_v37, %v1293_v19  ;;  %v300_v37 = vrot.slane %v299_v0, 4  ;;  %v1308_v19 = vrot.slane %v1306_v7, 4  ;;  %v1313_v22 = vor.u32 %v1312_v54, %v1311_v38 }
  0x49   :  { %v7637_v47 = vcombine.low %v1294_v21, %v1302_v4  ;;  %v7653_v21 = vld [vmem:[%s10957_s0 + $0x78] sm:$0xf]  ;;  %v11098_v0 = vshrl.u32 %v7232_v58, 16  ;;  %v11009_v54 = vshrl.u32 %v7612_v61, 16 }
  0x4a   :  { %6239 = vmatmul.mubr.msk.bf16.gmra.mxu0 %vm409_vm3, %v6222_v55  ;;  %v7641_v55 = vsel %vm7542_vm7, %v1303_v36, %v1306_v7  ;;  %v1319_v36 = vrot.slane %v11100_v11, 5  ;;  %v11101_v7 = vshll.u32 %v7241_v63, 16  ;;  %v7666_v38 = vsel %vm7542_vm7, %v1308_v19, %v1313_v22 }
  0x4b   :  { %565 = vmatprep.mubr.bf16.mxu0 %v11007_v1  ;;  %v1315_v56 = vrot.slane %v11098_v0, 5  ;;  %v11103_v0 = vshll.u32 %v7278_v31, 16  ;;  %v305_v19 = vsel %vm7189_vm4, %v300_v37, %v7578_v24  ;;  %v7681_v22 = vrot.slane %v309_v23, 4 }
  0x4c   :  { %6269 = vmatmul.mubr.msk.bf16.gmra.mxu1 %vm409_vm3, %v6252_v33  ;;  %v11099_v33 = vshll.u32 %v7232_v58, 16  ;;  %v1320_v4 = vrot.slane %v11101_v7, 6  ;;  %v323_v24 = vor.u32 %v322_v52, %v319_v49  ;;  %v332_v37 = vrot.slane %v11009_v54, 4 }
  0x4d   :  { %848 = vmatprep.mubr.bf16.mxu1 %v11007_v1  ;;  %v1325_v20 = vrot.slane %v11103_v0, 6  ;;  %v7687_v0 = vld [vmem:[%s10957_s0 + $0x7c] sm:$0x3]  ;;  %v11105_v23 = vshrl.u32 %v7293_v44, 16  ;;  %v11107_v49 = vcombine.low %v7475_v53, %v7496_v50 }
  0x4e   :  { %v1316_v43 = vrot.slane %v11099_v33, 6  ;;  %v7674_v33 = vrot.slane %v11006_v28, 5  ;;  %v1321_v6 = vor.u32 %v1320_v4, %v1319_v36  ;;  %v11106_v36 = vmov 0  }
  0x4f   :  { %v1326_v39 = vor.u32 %v1325_v20, %v1324_v32  ;;  %v11104_v20 = vshll.u32 %v7310_v59, 16 }
  0x50   :  { %v1317_v7 = vor.u32 %v1316_v43, %v1315_v56  ;;  %v1323_v11 = vrot.slane %v1321_v6, 4  ;;  %v1329_v56 = vshrl.u32 %v7310_v59, 16  ;;  %v1335_v43 = vrot.slane %v11105_v23, 5 }
  0x51   :  { %v1332_v32 = vrot.slane %v11104_v20, 6  ;;  %v1328_v28 = vrot.slane %v1326_v39, 4  ;;  %v11109_v23 = vshll.u32 %v7293_v44, 16 }
  0x52   :  { %v1318_v1 = vrot.slane %v1317_v7, 4  ;;  %6240 = vmatmul.mubr.msk.bf16.gmra.mxu0 %vm409_vm3, %v7590_v18  ;;  %v1327_v7 = vsel %vm7542_vm7, %v1323_v11, %v1326_v39  ;;  %v1331_v18 = vrot.slane %v1329_v56, 5  ;;  %v11111_v39 = vshll.u32 %v7653_v21, 16 }
  0x53   :  { %575 = vmatprep.mubr.bf16.mxu0 %v11106_v36  ;;  %v1336_v54 = vrot.slane %v11109_v23, 6  ;;  %v11114_v23 = vshrl.u32 %v7319_v5, 16 }
  0x54   :  { %v1322_v4 = vsel %vm7542_vm7, %v1318_v1, %v1321_v6  ;;  %6270 = vmatmul.mubr.msk.bf16.gmra.mxu1 %vm409_vm3, %v11107_v49  ;;  %v1339_v1 = vrot.slane %v11110_v10, 5  ;;  %v6224_v6 = vcombine.low %v295_v62, %v305_v19  ;;  %v7718_v11 = vrot.slane %v11111_v39, 5 }
  0x55   :  { %v7709_v20 = vcombine.low %v1322_v4, %v1327_v7  ;;  %858 = vmatprep.mubr.bf16.mxu1 %v11106_v36  ;;  %v1333_v56 = vor.u32 %v1332_v32, %v1331_v18  ;;  %v11112_v49 = vshll.u32 %v7333_v15, 16  ;;  %v11113_v4 = vshrl.u32 %v7653_v21, 16 }
  0x56   :  { %v1337_v52 = vor.u32 %v1336_v54, %v1335_v43  ;;  %v1344_v44 = vrot.slane %v11114_v23, 5  ;;  %v11115_v10 = vshll.u32 %v7319_v5, 16  ;;  %v324_v19 = vrot.slane %v323_v24, 4 }
  0x57   :  { %11108 = vst [vmem:[#allocation5_spill] sm:$0xff] %v7709_v20  ;;  %v1340_v59 = vrot.slane %v11112_v49, 6  ;;  %v342_v7 = vrot.slane %v11113_v4, 4  ;;  %v333_v20 = vor.u32 %v332_v37, %v7674_v33  ;;  %v1334_v39 = vsel %vm7542_vm7, %v1328_v28, %v1333_v56 }
  0x58   :  { %v1345_v62 = vrot.slane %v11115_v10, 6  ;;  %v1338_v18 = vrot.slane %v1337_v52, 4  ;;  %v1349_v49 = vshrl.u32 %v7378_v2, 16  ;;  %v11116_v4 = vshll.u32 %v7378_v2, 16 }
  0x59   :  { %v1341_v32 = vor.u32 %v1340_v59, %v1339_v1  ;;  %v315_v43 = vsel %vm7189_vm4, %v7681_v22, %v7619_v41  ;;  %v343_v24 = vor.u32 %v342_v7, %v7718_v11  ;;  %v329_v37 = vsel %vm7189_vm4, %v324_v19, %v7674_v33 }
  0x5a   :  { %v1346_v15 = vor.u32 %v1345_v62, %v1344_v44  ;;  %v1352_v54 = vrot.slane %v11116_v4, 6  ;;  %6241 = vmatmul.mubr.msk.bf16.gmra.mxu0 %vm409_vm3, %v6224_v6  ;;  %v1351_v44 = vrot.slane %v1349_v49, 5  ;;  %v11117_v52 = vshll.u32 %v7687_v0, 16 }
  0x5b   :  { %v1343_v23 = vrot.slane %v1341_v32, 4  ;;  %v1342_v59 = vsel %vm7542_vm7, %v1338_v18, %v1341_v32  ;;  %585 = vmatprep.mubr.bf16.mxu0 %v11106_v36  ;;  %v11118_v6 = vcombine.low %v7518_v27, %v7558_v46  ;;  %v334_v56 = vrot.slane %v333_v20, 4 }
  0x5c   :  { %v1348_v28 = vrot.slane %v1346_v15, 4  ;;  %v348_v1 = vrot.slane %v11117_v52, 5  ;;  %v7748_v41 = vcombine.low %v1334_v39, %v1342_v59  ;;  %v1353_v7 = vor.u32 %v1352_v54, %v1351_v44 }
  0x5d   :  { %v7752_v22 = vsel %vm7542_vm7, %v1343_v23, %v1346_v15  ;;  %6271 = vmatmul.mubr.msk.bf16.gmra.mxu1 %vm409_vm3, %v11118_v6  ;;  %v11119_v10 = vshrl.u32 %v7351_v34, 16  ;;  %v11120_v33 = vshll.u32 %v7351_v34, 16  ;;  %v11121_v39 = vshrl.u32 %v7362_v45, 16 }
  0x5e   :  { %868 = vmatprep.mubr.bf16.mxu1 %v11106_v36  ;;  %v11122_v15 = vshll.u32 %v7362_v45, 16  ;;  %v11123_v49 = vshrl.u32 %v7399_v25, 16  ;;  %v11124_v20 = vshll.u32 %v7399_v25, 16  ;;  %v6225_v23 = vcombine.low %v315_v43, %v329_v37 }
  0x5f   :  { %v1355_v62 = vrot.slane %v11119_v10, 5  ;;  %v1356_v19 = vrot.slane %v11120_v33, 6  ;;  %v1359_v32 = vrot.slane %v11121_v39, 5  ;;  %v344_v59 = vrot.slane %v343_v24, 4 }
  0x60   :  { %v1360_v18 = vrot.slane %v11122_v15, 6  ;;  %v1364_v4 = vrot.slane %v11123_v49, 5  ;;  %v1365_v54 = vrot.slane %v11124_v20, 6  ;;  %v7773_v44 = vsel %vm7542_vm7, %v1348_v28, %v1353_v7 }
  0x61   :  { %v1357_v52 = vor.u32 %v1356_v19, %v1355_v62  ;;  %v6323_v6 = vcombine.low %v7752_v22, %v7773_v44  ;;  %v6255_v39 = vcombine.low %v7612_v61, %v7653_v21  ;;  %v892_v49 = vrot.slane %v7154_v13, 5 }
  0x62   :  { %v1361_v10 = vor.u32 %v1360_v18, %v1359_v32  ;;  %v1366_v33 = vor.u32 %v1365_v54, %v1364_v4  ;;  %v1369_v24 = vshrl.u32 %v7432_v29, 16  ;;  %v11125_v28 = vshll.u32 %v7432_v29, 16  ;;  %6242 = vmatmul.mubr.msk.bf16.gmra.mxu0 %vm409_vm3, %v6225_v23 }
  0x63   :  { %v1358_v15 = vrot.slane %v1357_v52, 4  ;;  %v339_v7 = vsel %vm7189_vm4, %v334_v56, %v7718_v11  ;;  %v349_v62 = vsel %vm7189_vm4, %v344_v59, %v348_v1  ;;  %v11126_v13 = vshrl.u32 %v7389_v16, 16  ;;  %595 = vmatprep.mubr.bf16.mxu0 %v11106_v36 }
  0x64   :  { %v1363_v43 = vrot.slane %v1361_v10, 4  ;;  %v1372_v37 = vrot.slane %v11125_v28, 6  ;;  %v1368_v4 = vrot.slane %v1366_v33, 4  ;;  %v1371_v20 = vrot.slane %v1369_v24, 5 }
  0x65   :  { %v1362_v19 = vsel %vm7542_vm7, %v1358_v15, %v1361_v10  ;;  %v1375_v32 = vrot.slane %v11126_v13, 5  ;;  %v11127_v54 = vshll.u32 %v7389_v16, 16  ;;  %6272 = vmatmul.mubr.msk.bf16.gmra.mxu1 %vm409_vm3, %v6255_v39  ;;  %v11128_v11 = vshrl.u32 %v7437_v17, 16 }
  0x66   :  { %v1367_v18 = vsel %vm7542_vm7, %v1363_v43, %v1366_v33  ;;  %v11129_v56 = vshll.u32 %v7437_v17, 16  ;;  %v6226_v52 = vcombine.low %v339_v7, %v349_v62  ;;  %v6273_v10 = vrot.slane %v7149_v12, 9  ;;  %1568 = vmatprep.mubr.bf16.mxu1 %v11106_v36  ;;  %v7020_v43 = vld [vmem:[%s10957_s0] sm:$0xf] }
  0x67   :  { %v1376_v23 = vrot.slane %v11127_v54, 6  ;;  %v7799_v35 = vcombine.low %v1362_v19, %v1367_v18  ;;  %v1379_v1 = vrot.slane %v11128_v11, 5  ;;  %v1373_v33 = vor.u32 %v1372_v37, %v1371_v20 }
  0x68   :  { %v1380_v59 = vrot.slane %v11129_v56, 6  ;;  %v11132_v24 = vshrl.u32 %v7421_v8, 16  ;;  %v11133_v19 = vshll.u32 %v7421_v8, 16  ;;  %v1389_v7 = vshrl.u32 %v7461_v3, 16 }
  0x69   :  { %v1377_v15 = vor.u32 %v1376_v23, %v1375_v32  ;;  %v894_v12 = vrot.slane %v892_v49, 4  ;;  %v895_v62 = vrot.slane %v7159_v14, 5  ;;  %v1374_v37 = vsel %vm7542_vm7, %v1368_v4, %v1373_v33 }
  0x6a   :  { %v1381_v39 = vor.u32 %v1380_v59, %v1379_v1  ;;  %v1384_v28 = vrot.slane %v11132_v24, 5  ;;  %v1385_v13 = vrot.slane %v11133_v19, 6  ;;  %v1391_v54 = vrot.slane %v1389_v7, 5  ;;  %6243 = vmatmul.mubr.msk.bf16.gmra.mxu0 %vm409_vm3, %v6226_v52 }
  0x6b   :  { %v1378_v32 = vrot.slane %v1377_v15, 4  ;;  %v11134_v23 = vshll.u32 %v7461_v3, 16  ;;  %v893_v1 = vsel %vm7809_vm10, %v6273_v10, %v892_v49  ;;  %v897_v59 = vrot.slane %v895_v62, 4  ;;  %1103 = vmatprep.mubr.bf16.mxu0 %v11106_v36 }
  0x6c   :  { %v1383_v18 = vrot.slane %v1381_v39, 4  ;;  %v1386_v20 = vor.u32 %v1385_v13, %v1384_v28  ;;  %v896_v15 = vsel %vm7809_vm10, %v894_v12, %v895_v62  ;;  %v898_v49 = vrot.slane %v7175_v26, 5 }
  0x6d   :  { %v1392_v11 = vrot.slane %v11134_v23, 6  ;;  %v1382_v56 = vsel %vm7542_vm7, %v1378_v32, %v1381_v39  ;;  %v6274_v10 = vrot.slane %v7184_v30, 9  ;;  %6335 = vmatmul.mubr.msk.bf16.vlgmr.msra.gmra.mxu1 %vm409_vm3, %v7571_v9  ;;  %v11135_v52 = vshrl.u32 %v7475_v53, 16 }
  0x6e   :  { %v7828_v14 = vcombine.low %v1374_v37, %v1382_v56  ;;  %v7832_v4 = vsel %vm7542_vm7, %v1383_v18, %v1386_v20  ;;  %v1388_v33 = vrot.slane %v1386_v20, 4  ;;  %v11136_v28 = vshll.u32 %v7475_v53, 16  ;;  %1578 = vmatprep.mubr.bf16.mxu1 %v11106_v36 }
  0x6f   :  { %v1393_v39 = vor.u32 %v1392_v11, %v1391_v54  ;;  %v1395_v24 = vrot.slane %v11135_v52, 5  ;;  %v11137_v13 = vshrl.u32 %v7496_v50, 16  ;;  %v11138_v37 = vshll.u32 %v7496_v50, 16 }
  0x70   :  { %v1396_v19 = vrot.slane %v11136_v28, 6  ;;  %v902_v26 = vrot.slane %v7203_v42, 5  ;;  %v11139_v9 = vshrl.u32 %v7518_v27, 16  ;;  %v11140_v32 = vshll.u32 %v7518_v27, 16 }
  0x71   :  { %v1399_v7 = vrot.slane %v11137_v13, 5  ;;  %v1400_v12 = vrot.slane %v11138_v37, 6  ;;  %v7853_v30 = vsel %vm7542_vm7, %v1388_v33, %v1393_v39  ;;  %v6285_v20 = vcombine.low %v893_v1, %v896_v15  ;;  %v6850_v33 = vld [vmem:[%s10956_s1 + $0x84] ss:$8 sps:$4 sm:$0xff]  }
  0x72   :  { %v1404_v62 = vrot.slane %v11139_v9, 5  ;;  %v1405_v18 = vrot.slane %v11140_v32, 6  ;;  %v6326_v54 = vcombine.low %v7832_v4, %v7853_v30  ;;  %v1397_v23 = vor.u32 %v1396_v19, %v1395_v24 }
  0x73   :  { %v1401_v11 = vor.u32 %v1400_v12, %v1399_v7  ;;  %v899_v42 = vsel %vm7809_vm10, %v897_v59, %v898_v49  ;;  %v1409_v28 = vshrl.u32 %v7553_v51, 16  ;;  %v903_v1 = vsel %vm7809_vm10, %v6274_v10, %v902_v26  ;;  %6302 = vmatmul.mubr.msk.bf16.vlgmr.msra.gmra.mxu0 %vm409_vm3, %v6285_v20 }
  0x74   :  { %v1406_v56 = vor.u32 %v1405_v18, %v1404_v62  ;;  %v1398_v39 = vrot.slane %v1397_v23, 4  ;;  %v905_v15 = vrot.slane %v7211_v48, 5  ;;  %v11141_v24 = vshll.u32 %v7553_v51, 16  ;;  %1934 = vmatpush1.bf16.msra.mxu0 %v7534_v40  ;;  %1113 = vmatprep.mubr.bf16.mxu0 %v11106_v36  ;;  %v6848_v48 = vld [vmem:[%s10956_s1 + $0x80] ss:$8 sps:$4 sm:$0xff]  }
  0x75   :  { %v1403_v52 = vrot.slane %v1401_v11, 4  ;;  %v11142_v13 = vshrl.u32 %v7558_v46, 16  ;;  %v1411_v12 = vrot.slane %v1409_v28, 5  ;;  %v11143_v9 = vshll.u32 %v7558_v46, 16  ;;  %6336 = vmatmul.mubr.msk.bf16.gmra.mxu1 %vm409_vm3, %v7637_v47  ;;  %1935 = vmatprep.subr.bf16.mxu0 %v6850_v33 }
  0x76   :  { %v1412_v19 = vrot.slane %v11141_v24, 6  ;;  %v1402_v59 = vsel %vm7542_vm7, %v1398_v39, %v1401_v11  ;;  %v1408_v37 = vrot.slane %v1406_v56, 4  ;;  %v11144_v32 = vshrl.u32 %v7612_v61, 16  ;;  %1588 = vmatprep.mubr.bf16.mxu1 %v11106_v36 }
  0x77   :  { %v1415_v7 = vrot.slane %v11142_v13, 5  ;;  %v1407_v49 = vsel %vm7542_vm7, %v1403_v52, %v1406_v56  ;;  %v1416_v62 = vrot.slane %v11143_v9, 6  ;;  %v6286_v20 = vcombine.low %v899_v42, %v903_v1 }
  0x78   :  { %v7884_v10 = vcombine.low %v1402_v59, %v1407_v49  ;;  %v1419_v18 = vrot.slane %v11144_v32, 5  ;;  %v1413_v40 = vor.u32 %v1412_v19, %v1411_v12  ;;  %v11145_v23 = vshll.u32 %v7612_v61, 16  ;;  %1936 = vmatpush1.bf16.msra.mxu0 %v6848_v48 }
  0x79   :  { %v904_v56 = vrot.slane %v902_v26, 4  ;;  %v1417_v39 = vor.u32 %v1416_v62, %v1415_v7  ;;  %v11146_v52 = vshrl.u32 %v7653_v21, 16  ;;  %v11147_v24 = vshll.u32 %v7653_v21, 16 }
  0x7a   :  { %v1420_v11 = vrot.slane %v11145_v23, 6  ;;  %v907_v59 = vrot.slane %v905_v15, 4  ;;  %v908_v42 = vrot.slane %v7227_v57, 5  ;;  %v1414_v47 = vsel %vm7542_vm7, %v1408_v37, %v1413_v40 }
  0x7b   :  { %v1424_v28 = vrot.slane %v11146_v52, 5  ;;  %v1425_v13 = vrot.slane %v11147_v24, 6  ;;  %v1418_v1 = vrot.slane %v1417_v39, 4  ;;  %v1429_v26 = vshrl.u32 %v7687_v0, 16  ;;  %6303 = vmatmul.mubr.msk.bf16.gmra.mxu0 %vm409_vm3, %v6286_v20  ;;  %v11151_v24 = vld [vmem:[#allocation3_spill] sm:$0xff] }
  0x7c   :  { %v1421_v33 = vor.u32 %v1420_v11, %v1419_v18  ;;  %v11148_v7 = vshll.u32 %v7687_v0, 16  ;;  %1123 = vmatprep.mubr.bf16.mxu0 %v11106_v36  ;;  %v906_v48 = vsel %vm7809_vm10, %v904_v56, %v905_v15  ;;  %v909_v18 = vsel %vm7809_vm10, %v907_v59, %v908_v42  ;;  %v11153_v42 = vld [vmem:[#allocation4_spill] sm:$0xff] }
  0x7d   :  { %v1426_v19 = vor.u32 %v1425_v13, %v1424_v28  ;;  %v1431_v32 = vrot.slane %v1429_v26, 5  ;;  %v912_v40 = vrot.slane %v7241_v63, 5  ;;  %v11149_v20 = vcombine.low %v7641_v55, %v7666_v38  ;;  %v11150_v38 = vld [vmem:[#allocation5_spill] sm:$0xff] }
  0x7e   :  { %v1432_v49 = vrot.slane %v11148_v7, 6  ;;  %v1423_v12 = vrot.slane %v1421_v33, 4  ;;  %v1422_v9 = vsel %vm7542_vm7, %v1418_v1, %v1421_v33  ;;  %v6287_v39 = vcombine.low %v906_v48, %v909_v18 }
  0x7f   :  { %v1428_v62 = vrot.slane %v1426_v19, 4  ;;  %v7908_v57 = vcombine.low %v1414_v47, %v1422_v9  ;;  %6337 = vmatmul.mubr.msk.bf16.gmra.mxu1 %vm409_vm3, %v11149_v20  ;;  %v6275_v56 = vrot.slane %v7232_v58, 9  ;;  %v914_v52 = vrot.slane %v912_v40, 4 }
  0x80   :  { %v7912_v37 = vsel %vm7542_vm7, %v1423_v12, %v1426_v19  ;;  %v1433_v23 = vor.u32 %v1432_v49, %v1431_v32  ;;  %1598 = vmatprep.mubr.bf16.mxu1 %v11106_v36  ;;  %v915_v63 = vrot.slane %v7278_v31, 5  ;;  %v918_v13 = vrot.slane %v11151_v24, 5  ;;  %v11152_v31 = vld [vmem:[#allocation2_spill] sm:$0xff] }
  0x81   :  { %v913_v55 = vsel %vm7809_vm10, %v6275_v56, %v912_v40  ;;  %v6276_v59 = vrot.slane %v11152_v31, 9  ;;  %v922_v47 = vrot.slane %v11153_v42, 5  ;;  %v925_v19 = vrot.slane %v7319_v5, 5 }
  0x82   :  { %v7927_v11 = vsel %vm7542_vm7, %v1428_v62, %v1433_v23  ;;  %v916_v60 = vsel %vm7809_vm10, %v914_v52, %v915_v63  ;;  %v917_v58 = vrot.slane %v915_v63, 4  ;;  %v928_v12 = vrot.slane %v7378_v2, 5 }
  0x83   :  { %v6329_v15 = vcombine.low %v7912_v37, %v7927_v11  ;;  %6304 = vmatmul.mubr.msk.bf16.gmra.mxu0 %vm409_vm3, %v6287_v39  ;;  %v6288_v28 = vcombine.low %v913_v55, %v916_v60  ;;  %v923_v1 = vsel %vm7809_vm10, %v6276_v59, %v922_v47  ;;  %v924_v7 = vrot.slane %v922_v47, 4  ;;  %v7021_v47 = vld [vmem:[%s10957_s0 + $0x8] sm:$0xf] }
  0x84   :  { %1133 = vmatprep.mubr.bf16.mxu0 %v11106_v36  ;;  %v919_v33 = vsel %vm7809_vm10, %v917_v58, %v918_v13  ;;  %v927_v49 = vrot.slane %v925_v19, 4  ;;  %v932_v62 = vrot.slane %v7362_v45, 5  ;;  %v935_v48 = vrot.slane %v7399_v25, 5 }
  0x85   :  { %v6289_v26 = vcombine.low %v919_v33, %v923_v1  ;;  %v926_v9 = vsel %vm7809_vm10, %v924_v7, %v925_v19  ;;  %v6278_v25 = vrot.slane %v7389_v16, 9  ;;  %v942_v18 = vrot.slane %v7437_v17, 5 }
  0x86   :  { %v929_v5 = vsel %vm7809_vm10, %v927_v49, %v928_v12  ;;  %v934_v32 = vrot.slane %v932_v62, 4  ;;  %v945_v23 = vrot.slane %v7421_v8, 5  ;;  %v948_v20 = vrot.slane %v7461_v3, 5  ;;  %v7022_v12 = vld [vmem:[%s10957_s0 + $0xc] sm:$0x3] }
  0x87   :  { %6338 = vmatmul.mubr.msk.bf16.gmra.mxu1 %vm409_vm3, %v11150_v38  ;;  %v6290_v2 = vcombine.low %v926_v9, %v929_v5  ;;  %v952_v56 = vrot.slane %v7496_v50, 5  ;;  %v955_v63 = vrot.slane %v7518_v27, 5  ;;  %v6280_v27 = vrot.slane %v7558_v46, 9  ;;  %v7023_v5 = vld [vmem:[%s10957_s0 + $0x10] sm:$0xf] }
  0x88   :  { %1608 = vmatprep.mubr.bf16.mxu1 %v11106_v36  ;;  %v936_v22 = vsel %vm7809_vm10, %v934_v32, %v935_v48  ;;  %v947_v17 = vrot.slane %v945_v23, 4  ;;  %v962_v55 = vrot.slane %v7612_v61, 5  ;;  %v965_v38 = vrot.slane %v7653_v21, 5 }
  0x89   :  { %v954_v52 = vrot.slane %v952_v56, 4  ;;  %v6347_v59 = vrot.slane %v7020_v43, 10  ;;  %v1745_v33 = vrot.slane %v7021_v47, 6  ;;  %v1748_v9 = vrot.slane %v7022_v12, 6 }
  0x8a   :  { %v949_v8 = vsel %vm7809_vm10, %v947_v17, %v948_v20  ;;  %v967_v61 = vrot.slane %v965_v38, 4  ;;  %vm3724_vm4 = vcmask 1047559  }
  0x8b   :  { %6305 = vmatmul.mubr.msk.bf16.gmra.mxu0 %vm409_vm3, %v6288_v28  ;;  %v956_v4 = vsel %vm7809_vm10, %v954_v52, %v955_v63  ;;  %v968_v28 = vrot.slane %v7687_v0, 5  ;;  %v1747_v49 = vrot.slane %v1745_v33, 4 }
  0x8c   :  { %1143 = vmatprep.mubr.bf16.mxu0 %v11106_v36 }
  0x8d   :  { %v969_v24 = vsel %vm7809_vm10, %v967_v61, %v968_v28 }
  0x8f   :  { %6339 = vmatmul.mubr.msk.bf16.gmra.mxu1 %vm409_vm3, %v7748_v41  ;;  %v6277_v41 = vrot.slane %v7351_v34, 9  ;;  %v937_v34 = vrot.slane %v935_v48, 4 }
  0x90   :  { %1618 = vmatprep.mubr.bf16.mxu1 %v11106_v36 }
  0x91   :  { %v933_v45 = vsel %vm7809_vm10, %v6277_v41, %v932_v62  ;;  %v6348_v62 = vrot.slane %v7023_v5, 10  ;;  %v7031_v5 = vld [vmem:[%s10957_s0 + $0x30] sm:$0xf] }
  0x92   :  { %v6291_v44 = vcombine.low %v933_v45, %v936_v22  ;;  %v1749_v22 = vsel %vm8051_vm13, %v1747_v49, %v1748_v9 }
  0x93   :  { %6306 = vmatmul.mubr.msk.bf16.gmra.mxu0 %vm409_vm3, %v6289_v26 }
  0x94   :  { %1153 = vmatprep.mubr.bf16.mxu0 %v11106_v36 }
  0x97   :  { %6340 = vmatmul.mubr.msk.bf16.gmra.mxu1 %vm409_vm3, %v6323_v6  ;;  %v938_v6 = vrot.slane %v7432_v29, 5  ;;  %v944_v29 = vrot.slane %v942_v18, 4 }
  0x98   :  { %1628 = vmatprep.mubr.bf16.mxu1 %v11106_v36 }
  0x99   :  { %v939_v40 = vsel %vm7809_vm10, %v937_v34, %v938_v6  ;;  %v946_v39 = vsel %vm7809_vm10, %v944_v29, %v945_v23  ;;  %v7025_v34 = vld [vmem:[%s10957_s0 + $0x18] sm:$0xf] }
  0x9a   :  { %v6293_v3 = vcombine.low %v946_v39, %v949_v8  ;;  %v1755_v6 = vrot.slane %v7025_v34, 6  ;;  %v7026_v39 = vld [vmem:[%s10957_s0 + $0x1c] sm:$0x3] }
  0x9b   :  { %6307 = vmatmul.mubr.msk.bf16.gmra.mxu0 %vm409_vm3, %v6290_v2  ;;  %v7024_v2 = vld [vmem:[%s10957_s0 + $0x14] sm:$0xf]  ;;  %v1758_v8 = vrot.slane %v7026_v39, 6 }
  0x9c   :  { %1163 = vmatprep.mubr.bf16.mxu0 %v11106_v36  ;;  %v1752_v41 = vrot.slane %v7024_v2, 6  ;;  %v1757_v20 = vrot.slane %v1755_v6, 4  ;;  %v7032_v2 = vld [vmem:[%s10957_s0 + $0x34] sm:$0xf] }
  0x9e   :  { %v1754_v17 = vrot.slane %v1752_v41, 4 }
  0x9f   :  { %6341 = vmatmul.mubr.msk.bf16.gmra.mxu1 %vm409_vm3, %v7799_v35  ;;  %v943_v35 = vsel %vm7809_vm10, %v6278_v25, %v942_v18 }
  0xa0   :  { %1638 = vmatprep.mubr.bf16.mxu1 %v11106_v36  ;;  %v6292_v16 = vcombine.low %v939_v40, %v943_v35 }
  0xa3   :  { %6308 = vmatmul.mubr.msk.bf16.gmra.mxu0 %vm409_vm3, %v6291_v44  ;;  %v1753_v44 = vsel %vm8051_vm13, %v6348_v62, %v1752_v41  ;;  %v6350_v62 = vrot.slane %v7031_v5, 10  ;;  %v1772_v41 = vrot.slane %v7032_v2, 6 }
  0xa4   :  { %1173 = vmatprep.mubr.bf16.mxu0 %v11106_v36  ;;  %v6360_v23 = vcombine.low %v1749_v22, %v1753_v44 }
  0xa7   :  { %6342 = vmatmul.mubr.msk.bf16.gmra.mxu1 %vm409_vm3, %v7828_v14  ;;  %v6279_v14 = vrot.slane %v7475_v53, 9  ;;  %v957_v53 = vrot.slane %v955_v63, 4 }
  0xa8   :  { %1648 = vmatprep.mubr.bf16.mxu1 %v11106_v36 }
  0xa9   :  { %v953_v50 = vsel %vm7809_vm10, %v6279_v14, %v952_v56 }
  0xaa   :  { %v6294_v30 = vcombine.low %v953_v50, %v956_v4  ;;  %v1756_v50 = vsel %vm8051_vm13, %v1754_v17, %v1755_v6  ;;  %v1759_v4 = vsel %vm8051_vm13, %v1757_v20, %v1758_v8 }
  0xab   :  { %6309 = vmatmul.mubr.msk.bf16.gmra.mxu0 %vm409_vm3, %v6292_v16 }
  0xac   :  { %1183 = vmatprep.mubr.bf16.mxu0 %v11106_v36 }
  0xaf   :  { %6343 = vmatmul.mubr.msk.bf16.gmra.mxu1 %vm409_vm3, %v6326_v54  ;;  %v958_v54 = vrot.slane %v7553_v51, 5  ;;  %v964_v51 = vrot.slane %v962_v55, 4 }
  0xb0   :  { %1658 = vmatprep.mubr.bf16.mxu1 %v11106_v36 }
  0xb1   :  { %v959_v60 = vsel %vm7809_vm10, %v957_v53, %v958_v54  ;;  %v966_v58 = vsel %vm7809_vm10, %v964_v51, %v965_v38  ;;  %v7028_v51 = vld [vmem:[%s10957_s0 + $0x20] sm:$0xf] }
  0xb2   :  { %v6296_v31 = vcombine.low %v966_v58, %v969_v24  ;;  %v6349_v61 = vrot.slane %v7028_v51, 10  ;;  %v7029_v58 = vld [vmem:[%s10957_s0 + $0x28] sm:$0xf] }
  0xb3   :  { %6310 = vmatmul.mubr.msk.bf16.gmra.mxu0 %vm409_vm3, %v6293_v3  ;;  %v1765_v24 = vrot.slane %v7029_v58, 6 }
  0xb4   :  { %1193 = vmatprep.mubr.bf16.mxu0 %v11106_v36 }
  0xb5   :  { %v1767_v9 = vrot.slane %v1765_v24, 4 }
  0xb7   :  { %6344 = vmatmul.mubr.msk.bf16.gmra.mxu1 %vm409_vm3, %v7884_v10  ;;  %v963_v10 = vsel %vm7809_vm10, %v6280_v27, %v962_v55 }
  0xb8   :  { %1668 = vmatprep.mubr.bf16.mxu1 %v11106_v36  ;;  %v6295_v46 = vcombine.low %v959_v60, %v963_v10  ;;  %v6361_v10 = vcombine.low %v1756_v50, %v1759_v4  ;;  %v1774_v50 = vrot.slane %v1772_v41, 4 }
  0xbb   :  { %6311 = vmatmul.mubr.msk.bf16.gmra.mxu0 %vm409_vm3, %v6294_v30  ;;  %v7027_v30 = vld [vmem:[%s10957_s0 + $0x24] sm:$0xf] }
  0xbc   :  { %1203 = vmatprep.mubr.bf16.mxu0 %v11106_v36  ;;  %v1762_v53 = vrot.slane %v7027_v30, 6  ;;  %v7034_v30 = vld [vmem:[%s10957_s0 + $0x3c] sm:$0x3] }
  0xbe   :  { %v1764_v28 = vrot.slane %v1762_v53, 4 }
  0xbf   :  { %6345 = vmatmul.mubr.msk.bf16.gmra.mxu1 %vm409_vm3, %v7908_v57  ;;  %v7019_v57 = vld [vmem:[%s10957_s0 + $0x4] sm:$0xf] }
  0xc0   :  { %1678 = vmatprep.mubr.bf16.mxu1 %v11106_v36  ;;  %v1742_v13 = vrot.slane %v7019_v57, 6  ;;  %v1766_v47 = vsel %vm8051_vm13, %v1764_v28, %v1765_v24  ;;  %v7035_v28 = vld [vmem:[%s10957_s0 + $0x44] sm:$0xf] }
  0xc1   :  { %v1782_v58 = vrot.slane %v7035_v28, 6 }
  0xc2   :  { %v1744_v42 = vrot.slane %v1742_v13, 4 }
  0xc3   :  { %6312 = vmatmul.mubr.msk.bf16.gmra.mxu0 %vm409_vm3, %v6295_v46 }
  0xc4   :  { %1213 = vmatprep.mubr.bf16.mxu0 %v11106_v36  ;;  %v1746_v1 = vsel %vm8051_vm13, %v1744_v42, %v1745_v33  ;;  %v1763_v42 = vsel %vm8051_vm13, %v6349_v61, %v1762_v53  ;;  %v1778_v53 = vrot.slane %v7034_v30, 6 }
  0xc7   :  { %6346 = vmatmul.mubr.msk.bf16.gmra.mxu1 %vm409_vm3, %v6329_v15  ;;  %v1743_v15 = vsel %vm8051_vm13, %v6347_v59, %v1742_v13 }
  0xc8   :  { %3895 = vmatprep.mubr.bf16.mxu1 %v11106_v36  ;;  %v6359_v26 = vcombine.low %v1743_v15, %v1746_v1 }
  0xcb   :  { %6313 = vmatmul.mubr.msk.bf16.gmra.mxu0 %vm409_vm3, %v6296_v31  ;;  %v760_v11 = vpop.f32.mrf.mxu1 }
  0xcc   :  { %1953 = vmatprep.mubr.bf16.mxu0 %v11106_v36 }
  0xcd   :  { %v762_v19 = vpop.f32.mrf.mxu1 }
  0xcf   :  { %v764_v7 = vpop.f32.mrf.mxu1 }
  0xd1   :  { %v8070_v32 = vpop.f32.mrf.mxu1 }
  0xd2   :  { %v487_v48 = vpop.f32.mrf.mxu0 }
  0xd3   :  { %6376 = vmatmul.mubr.msk.bf16.vlgmr.msra.gmra.mxu0 %vm409_vm3, %v6359_v26  ;;  %v8073_v45 = vadd.f32 %v760_v11, %v487_v48 }
  0xd4   :  { %1963 = vmatprep.mubr.bf16.mxu0 %v11106_v36  ;;  %v489_v25 = vpop.f32.mrf.mxu0  ;;  %v770_v18 = vpop.f32.mrf.mxu1 }
  0xd5   :  { %v8083_v40 = vadd.f32 %v762_v19, %v489_v25  ;;  %v6362_v19 = vcombine.low %v1763_v42, %v1766_v47 }
  0xd6   :  { %v491_v35 = vpop.f32.mrf.mxu0  ;;  %v772_v16 = vpop.f32.mrf.mxu1 }
  0xd7   :  { %v8085_v29 = vadd.f32 %v764_v7, %v491_v35  ;;  %v7030_v7 = vld [vmem:[%s10957_s0 + $0x2c] sm:$0x3]  ;;  %v7033_v35 = vld [vmem:[%s10957_s0 + $0x38] sm:$0xf] }
  0xd8   :  { %v8090_v56 = vpop.f32.mrf.mxu0  ;;  %v774_v3 = vpop.f32.mrf.mxu1  ;;  %v1768_v49 = vrot.slane %v7030_v7, 6  ;;  %v7037_v7 = vld [vmem:[%s10957_s0 + $0x48] sm:$0xf] }
  0xda   :  { %v497_v14 = vpop.f32.mrf.mxu0  ;;  %v8093_v52 = vpop.f32.mrf.mxu1  ;;  %v1769_v25 = vsel %vm8051_vm13, %v1767_v9, %v1768_v49  ;;  %v1785_v49 = vrot.slane %v7037_v7, 6 }
  0xdb   :  { %6377 = vmatmul.mubr.msk.bf16.gmra.mxu0 %vm409_vm3, %v6360_v23  ;;  %11156 = vst [vmem:[#allocation5_spill] sm:$0xff] %v8093_v52  ;;  %v8095_v63 = vadd.f32 %v770_v18, %v497_v14  ;;  %v1773_v18 = vsel %vm8051_vm13, %v6350_v62, %v1772_v41  ;;  %v1775_v23 = vrot.slane %v7033_v35, 6  ;;  %v1818_v52 = vrot.slane %v7687_v0, 6 }
  0xdc   :  { %1973 = vmatprep.mubr.bf16.mxu0 %v11106_v36  ;;  %v499_v54 = vpop.f32.mrf.mxu0  ;;  %v780_v27 = vpop.f32.mrf.mxu1  ;;  %v6363_v8 = vcombine.low %v1769_v25, %v1773_v18 }
  0xdd   :  { %v8105_v55 = vadd.f32 %v772_v16, %v499_v54  ;;  %v1777_v4 = vrot.slane %v1775_v23, 4  ;;  %v1776_v51 = vsel %vm8051_vm13, %v1774_v50, %v1775_v23  ;;  %v1787_v50 = vrot.slane %v1785_v49, 4 }
  0xde   :  { %v501_v60 = vpop.f32.mrf.mxu0  ;;  %v782_v38 = vpop.f32.mrf.mxu1 }
  0xdf   :  { %v8107_v46 = vadd.f32 %v774_v3, %v501_v60  ;;  %v1779_v61 = vsel %vm8051_vm13, %v1777_v4, %v1778_v53  ;;  %v7039_v4 = vld [vmem:[%s10957_s0 + $0x50] sm:$0xf]  ;;  %v7040_v53 = vld [vmem:[%s10957_s0 + $0x54] sm:$0xf] }
  0xe0   :  { %v8115_v57 = vpop.f32.mrf.mxu0  ;;  %v784_v13 = vpop.f32.mrf.mxu1  ;;  %v6364_v47 = vcombine.low %v1776_v51, %v1779_v61  ;;  %v6352_v30 = vrot.slane %v7039_v4, 10  ;;  %v7043_v4 = vld [vmem:[%s10957_s0 + $0x64] sm:$0xf] }
  0xe1   :  { %11157 = vst [vmem:[#allocation3_spill] sm:$0xff] %v8115_v57 }
  0xe2   :  { %v507_v31 = vpop.f32.mrf.mxu0  ;;  %v8118_v43 = vpop.f32.mrf.mxu1 }
  0xe3   :  { %6378 = vmatmul.mubr.msk.bf16.gmra.mxu0 %vm409_vm3, %v6361_v10  ;;  %11158 = vst [vmem:[#allocation2_spill] sm:$0xff] %v8118_v43  ;;  %v8120_v59 = vadd.f32 %v780_v27, %v507_v31 }
  0xe4   :  { %1983 = vmatprep.mubr.bf16.mxu0 %v11106_v36  ;;  %v509_v33 = vpop.f32.mrf.mxu0  ;;  %v790_v11 = vpop.f32.mrf.mxu1 }
  0xe5   :  { %v8127_v15 = vadd.f32 %v782_v38, %v509_v33 }
  0xe6   :  { %v511_v1 = vpop.f32.mrf.mxu0  ;;  %v792_v26 = vpop.f32.mrf.mxu1 }
  0xe7   :  { %v8132_v12 = vadd.f32 %v784_v13, %v511_v1  ;;  %v7036_v1 = vld [vmem:[%s10957_s0 + $0x40] sm:$0xf] }
  0xe8   :  { %v8140_v48 = vpop.f32.mrf.mxu0  ;;  %v794_v22 = vpop.f32.mrf.mxu1 }
  0xe9   :  { %11159 = vst [vmem:[#allocation4_spill] sm:$0xff] %v8140_v48 }
  0xea   :  { %v517_v44 = vpop.f32.mrf.mxu0  ;;  %v8143_v34 = vpop.f32.mrf.mxu1 }
  0xeb   :  { %6379 = vmatmul.mubr.msk.bf16.gmra.mxu0 %vm409_vm3, %v6362_v19  ;;  %v8145_v6 = vadd.f32 %v790_v11, %v517_v44  ;;  %v6351_v19 = vrot.slane %v7036_v1, 10 }
  0xec   :  { %1993 = vmatprep.mubr.bf16.mxu0 %v11106_v36  ;;  %v519_v16 = vpop.f32.mrf.mxu0  ;;  %v800_v17 = vpop.f32.mrf.mxu1 }
  0xed   :  { %v8155_v20 = vadd.f32 %v792_v26, %v519_v16  ;;  %v1784_v26 = vrot.slane %v1782_v58, 4 }
  0xee   :  { %v521_v39 = vpop.f32.mrf.mxu0  ;;  %v802_v3 = vpop.f32.mrf.mxu1 }
  0xef   :  { %v8157_v14 = vadd.f32 %v794_v22, %v521_v39  ;;  %v1783_v22 = vsel %vm8051_vm13, %v6351_v19, %v1782_v58  ;;  %v1786_v44 = vsel %vm8051_vm13, %v1784_v26, %v1785_v49  ;;  %v7038_v39 = vld [vmem:[%s10957_s0 + $0x4c] sm:$0x3] }
  0xf0   :  { %v8162_v54 = vpop.f32.mrf.mxu0  ;;  %v804_v27 = vpop.f32.mrf.mxu1  ;;  %v6365_v16 = vcombine.low %v1783_v22, %v1786_v44  ;;  %v7042_v44 = vld [vmem:[%s10957_s0 + $0x5c] sm:$0x3] }
  0xf2   :  { %v527_v60 = vpop.f32.mrf.mxu0  ;;  %v8165_v10 = vpop.f32.mrf.mxu1 }
  0xf3   :  { %6380 = vmatmul.mubr.msk.bf16.gmra.mxu0 %vm409_vm3, %v6363_v8  ;;  %v8167_v38 = vadd.f32 %v800_v17, %v527_v60  ;;  %v1788_v8 = vrot.slane %v7038_v39, 6 }
  0xf4   :  { %2003 = vmatprep.mubr.bf16.mxu0 %v11106_v36  ;;  %v529_v24 = vpop.f32.mrf.mxu0  ;;  %v810_v13 = vpop.f32.mrf.mxu1 }
  0xf5   :  { %v8177_v31 = vadd.f32 %v802_v3, %v529_v24  ;;  %v1789_v24 = vsel %vm8051_vm13, %v1787_v50, %v1788_v8 }
  0xf6   :  { %v531_v42 = vpop.f32.mrf.mxu0  ;;  %v812_v33 = vpop.f32.mrf.mxu1 }
  0xf7   :  { %v8179_v11 = vadd.f32 %v804_v27, %v531_v42  ;;  %v1792_v27 = vrot.slane %v7040_v53, 6  ;;  %v7041_v42 = vld [vmem:[%s10957_s0 + $0x58] sm:$0xf] }
  0xf8   :  { %v8187_v9 = vpop.f32.mrf.mxu0  ;;  %v814_v5 = vpop.f32.mrf.mxu1 }
  0xfa   :  { %v537_v62 = vpop.f32.mrf.mxu0  ;;  %v8190_v2 = vpop.f32.mrf.mxu1 }
  0xfb   :  { %6381 = vmatmul.mubr.msk.bf16.gmra.mxu0 %vm409_vm3, %v6364_v47  ;;  %v8192_v41 = vadd.f32 %v810_v13, %v537_v62  ;;  %v1793_v13 = vsel %vm8051_vm13, %v6352_v30, %v1792_v27  ;;  %v1795_v47 = vrot.slane %v7041_v42, 6  ;;  %v1794_v62 = vrot.slane %v1792_v27, 4 }
  0xfc   :  { %2013 = vmatprep.mubr.bf16.mxu0 %v11106_v36  ;;  %v539_v25 = vpop.f32.mrf.mxu0  ;;  %v820_v18 = vpop.f32.mrf.mxu1  ;;  %v6366_v7 = vcombine.low %v1789_v24, %v1793_v13  ;;  %v1802_v30 = vrot.slane %v7043_v4, 6 }
  0xfd   :  { %v8199_v35 = vadd.f32 %v812_v33, %v539_v25  ;;  %v1797_v22 = vrot.slane %v1795_v47, 4  ;;  %v1798_v25 = vrot.slane %v7042_v44, 6  ;;  %v1796_v8 = vsel %vm8051_vm13, %v1794_v62, %v1795_v47  ;;  %v7044_v47 = vld [vmem:[%s10957_s0 + $0x60] sm:$0xf] }
  0xfe   :  { %v541_v23 = vpop.f32.mrf.mxu0  ;;  %v822_v17 = vpop.f32.mrf.mxu1 }
  0xff   :  { %v8204_v3 = vadd.f32 %v814_v5, %v541_v23  ;;  %v1799_v50 = vsel %vm8051_vm13, %v1797_v22, %v1798_v25 }
 0x100   :  { %v8212_v60 = vpop.f32.mrf.mxu0  ;;  %v824_v51 = vpop.f32.mrf.mxu1  ;;  %v6367_v24 = vcombine.low %v1796_v8, %v1799_v50 }
 0x102   :  { %v547_v61 = vpop.f32.mrf.mxu0  ;;  %v8215_v28 = vpop.f32.mrf.mxu1 }
 0x103   :  { %6382 = vmatmul.mubr.msk.bf16.gmra.mxu0 %vm409_vm3, %v6365_v16  ;;  %v8217_v58 = vadd.f32 %v820_v18, %v547_v61 }
 0x104   :  { %2023 = vmatprep.mubr.bf16.mxu0 %v11106_v36  ;;  %v549_v33 = vpop.f32.mrf.mxu0  ;;  %v830_v1 = vpop.f32.mrf.mxu1 }
 0x105   :  { %v8227_v19 = vadd.f32 %v822_v17, %v549_v33  ;;  %v6353_v33 = vrot.slane %v7044_v47, 10 }
 0x106   :  { %v551_v26 = vpop.f32.mrf.mxu0  ;;  %v832_v49 = vpop.f32.mrf.mxu1 }
 0x107   :  { %v8229_v5 = vadd.f32 %v824_v51, %v551_v26  ;;  %v7045_v26 = vld [vmem:[%s10957_s0 + $0x68] sm:$0xf] }
 0x108   :  { %v8234_v18 = vpop.f32.mrf.mxu0  ;;  %v834_v23 = vpop.f32.mrf.mxu1 }
 0x10a   :  { %v557_v16 = vpop.f32.mrf.mxu0  ;;  %v8237_v17 = vpop.f32.mrf.mxu1 }
 0x10b   :  { %6383 = vmatmul.mubr.msk.bf16.gmra.mxu0 %vm409_vm3, %v6366_v7  ;;  %v8239_v39 = vadd.f32 %v830_v1, %v557_v16  ;;  %v1804_v1 = vrot.slane %v1802_v30, 4  ;;  %v1805_v7 = vrot.slane %v7045_v26, 6 }
 0x10c   :  { %2033 = vmatprep.mubr.bf16.mxu0 %v11106_v36  ;;  %v559_v53 = vpop.f32.mrf.mxu0  ;;  %v840_v27 = vpop.f32.mrf.mxu1 }
 0x10d   :  { %v8249_v51 = vadd.f32 %v832_v49, %v559_v53  ;;  %v1806_v16 = vsel %vm8051_vm13, %v1804_v1, %v1805_v7 }
 0x10e   :  { %v561_v61 = vpop.f32.mrf.mxu0  ;;  %v842_v13 = vpop.f32.mrf.mxu1 }
 0x10f   :  { %v8251_v42 = vadd.f32 %v834_v23, %v561_v61  ;;  %v1803_v23 = vsel %vm8051_vm13, %v6353_v33, %v1802_v30  ;;  %v7047_v30 = vld [vmem:[%s10957_s0 + $0x70] sm:$0xf] }
 0x110   :  { %v8259_v62 = vpop.f32.mrf.mxu0  ;;  %v844_v49 = vpop.f32.mrf.mxu1  ;;  %v6368_v61 = vcombine.low %v1803_v23, %v1806_v16  ;;  %v6354_v33 = vrot.slane %v7047_v30, 10  ;;  %v1815_v30 = vrot.slane %v7653_v21, 6 }
 0x112   :  { %v567_v22 = vpop.f32.mrf.mxu0  ;;  %v8262_v44 = vpop.f32.mrf.mxu1 }
 0x113   :  { %6384 = vmatmul.mubr.msk.bf16.gmra.mxu0 %vm409_vm3, %v6367_v24  ;;  %11160 = vst [vmem:[#allocation6_spill] sm:$0xff] %v8262_v44  ;;  %v8264_v25 = vadd.f32 %v840_v27, %v567_v22  ;;  %v1807_v24 = vrot.slane %v1805_v7, 4  ;;  %v7046_v27 = vld [vmem:[%s10957_s0 + $0x6c] sm:$0x3] }
 0x114   :  { %2043 = vmatprep.mubr.bf16.mxu0 %v11106_v36  ;;  %v569_v8 = vpop.f32.mrf.mxu0  ;;  %v850_v50 = vpop.f32.mrf.mxu1  ;;  %v1808_v22 = vrot.slane %v7046_v27, 6 }
 0x115   :  { %v8271_v4 = vadd.f32 %v842_v13, %v569_v8  ;;  %v7048_v13 = vld [vmem:[%s10957_s0 + $0x74] sm:$0xf] }
 0x116   :  { %v571_v53 = vpop.f32.mrf.mxu0  ;;  %v852_v47 = vpop.f32.mrf.mxu1  ;;  %v1812_v1 = vrot.slane %v7048_v13, 6 }
 0x117   :  { %v8273_v26 = vadd.f32 %v844_v49, %v571_v53  ;;  %v1809_v53 = vsel %vm8051_vm13, %v1807_v24, %v1808_v22 }
 0x118   :  { %v8284_v23 = vpop.f32.mrf.mxu0  ;;  %v854_v7 = vpop.f32.mrf.mxu1  ;;  %v1813_v27 = vsel %vm8051_vm13, %v6354_v33, %v1812_v1 }
 0x119   :  { %11161 = vst [vmem:[#allocation7_spill] sm:$0xff] %v8284_v23 }
 0x11a   :  { %v577_v49 = vpop.f32.mrf.mxu0  ;;  %v8287_v16 = vpop.f32.mrf.mxu1 }
 0x11b   :  { %6385 = vmatmul.mubr.msk.bf16.gmra.mxu0 %vm409_vm3, %v6368_v61  ;;  %11162 = vst [vmem:[#allocation8_spill] sm:$0xff] %v8287_v16  ;;  %v8289_v8 = vadd.f32 %v850_v50, %v577_v49  ;;  %v6369_v61 = vcombine.low %v1809_v53, %v1813_v27  ;;  %v1814_v50 = vrot.slane %v1812_v1, 4  ;;  %v1817_v49 = vrot.slane %v1815_v30, 4 }
 0x11c   :  { %2053 = vmatprep.mubr.bf16.mxu0 %v11106_v36  ;;  %v579_v13 = vpop.f32.mrf.mxu0 }
 0x11d   :  { %v860_v44 = vpop.f32.mrf.mxu1  ;;  %v8297_v23 = vadd.f32 %v852_v47, %v579_v13  ;;  %v1819_v47 = vsel %vm8051_vm13, %v1817_v49, %v1818_v52 }
 0x11e   :  { %v581_v43 = vpop.f32.mrf.mxu0 }
 0x11f   :  { %v862_v48 = vpop.f32.mrf.mxu1  ;;  %v8299_v16 = vadd.f32 %v854_v7, %v581_v43  ;;  %v1816_v43 = vsel %vm8051_vm13, %v1814_v50, %v1815_v30  ;;  %v6851_v30 = vld [vmem:[%s10958_s3 + $0xf0] ss:$8 sps:$4 sm:$0xff]  }
 0x120   :  { %v8302_v57 = vpop.f32.mrf.mxu0  ;;  %v6370_v27 = vcombine.low %v1816_v43, %v1819_v47 }
 0x121   :  { %v864_v24 = vpop.f32.mrf.mxu1 }
 0x122   :  { %v587_v22 = vpop.f32.mrf.mxu0 }
 0x123   :  { %6386 = vmatmul.mubr.msk.bf16.gmra.mxu0 %vm409_vm3, %v6369_v61  ;;  %v8305_v21 = vpop.f32.mrf.mxu1  ;;  %v8307_v33 = vadd.f32 %v860_v44, %v587_v22  ;;  %v6853_v44 = vld [vmem:[%s10958_s3 + $0xf4] ss:$8 sps:$4 sm:$0xff]  }
 0x124   :  { %2063 = vmatprep.mubr.bf16.mxu0 %v11106_v36  ;;  %v589_v1 = vpop.f32.mrf.mxu0  ;;  %3863 = vmatprep.subr.bf16.mxu1 %v6853_v44 }
 0x125   :  { %v870_v0 = vpop.f32.mrf.mxu1  ;;  %v8314_v7 = vadd.f32 %v862_v48, %v589_v1  ;;  %3864 = vmatpush1.bf16.msra.mxu1 %v6851_v30 }
 0x126   :  { %v591_v53 = vpop.f32.mrf.mxu0 }
 0x127   :  { %v872_v13 = vpop.f32.mrf.mxu1  ;;  %v8319_v61 = vadd.f32 %v864_v24, %v591_v53 }
 0x128   :  { %v8324_v50 = vpop.f32.mrf.mxu0 }
 0x129   :  { %v874_v37 = vpop.f32.mrf.mxu1 }
 0x12a   :  { %v597_v52 = vpop.f32.mrf.mxu0 }
 0x12b   :  { %6387 = vmatmul.mubr.msk.bf16.gmra.mxu0 %vm409_vm3, %v6370_v27  ;;  %v8327_v48 = vpop.f32.mrf.mxu1  ;;  %v8329_v49 = vadd.f32 %v870_v0, %v597_v52  ;;  %vm3722_vm3 = vcmask 1046534  }
 0x12c   :  { %11163 = vst [vmem:[#allocation9_spill] sm:$0xff] %v8327_v48  ;;  %4644 = vmatprep.mubr.bf16.mxu0 %v11106_v36  ;;  %v599_v24 = vpop.f32.mrf.mxu0 }
 0x12d   :  { %v8332_v22 = vpop.f32.mrf.mxu1  ;;  %v8334_v43 = vadd.f32 %v872_v13, %v599_v24 }
 0x12e   :  { %v601_v47 = vpop.f32.mrf.mxu0 }
 0x12f   :  { %v8336_v1 = vpop.f32.mrf.mxu1  ;;  %v8338_v53 = vadd.f32 %v874_v37, %v601_v47 }
 0x130   :  { %11164 = vst [vmem:[#allocation10_spill] sm:$0xff] %v8336_v1  ;;  %v8340_v44 = vpop.f32.mrf.mxu0 }
 0x131   :  { %11165 = vst [vmem:[#allocation11_spill] sm:$0xff] %v8338_v53  ;;  %v8342_v30 = vpop.f32.mrf.mxu1 }
 0x132   :  { %11166 = vst [vmem:[#allocation12_spill] sm:$0xff] %v8342_v30 }
 0x133   :  { %v1105_v27 = vpop.f32.mrf.mxu0  ;;  %v8344_v48 = vpop.f32.mrf.mxu1 }
 0x134   :  { %11167 = vst [vmem:[#allocation13_spill] sm:$0xff] %v8344_v48  ;;  %v8347_v0 = vadd.f32 %v1105_v27, %v8073_v45 }
 0x135   :  { %v1107_v52 = vpop.f32.mrf.mxu0  ;;  %v8349_v36 = vpop.f32.mrf.mxu1 }
 0x136   :  { %11168 = vst [vmem:[#allocation14_spill] sm:$0xff] %v8349_v36  ;;  %v8352_v13 = vadd.f32 %v1107_v52, %v8083_v40 }
 0x137   :  { %v1109_v24 = vpop.f32.mrf.mxu0  ;;  %v8354_v1 = vpop.f32.mrf.mxu1 }
 0x138   :  { %11169 = vst [vmem:[#allocation15_spill] sm:$0xff] %v8354_v1  ;;  %v8357_v37 = vadd.f32 %v1109_v24, %v8085_v29 }
 0x139   :  { %v8359_v47 = vpop.f32.mrf.mxu0  ;;  %v8361_v53 = vpop.f32.mrf.mxu1 }
 0x13a   :  { %11170 = vst [vmem:[#allocation16_spill] sm:$0xff] %v8357_v37  ;;  %11171 = vst [vmem:[#allocation17_spill] sm:$0xff] %v8361_v53 }
 0x13b   :  { %v1115_v48 = vpop.f32.mrf.mxu0  ;;  %v8363_v30 = vpop.f32.mrf.mxu1 }
 0x13c   :  { %11172 = vst [vmem:[#allocation18_spill] sm:$0xff] %v8363_v30  ;;  %v8366_v45 = vadd.f32 %v1115_v48, %v8095_v63 }
 0x13d   :  { %v1117_v27 = vpop.f32.mrf.mxu0 }
 0x13e   :  { %v8371_v40 = vadd.f32 %v1117_v27, %v8105_v55  ;;  %v6856_v55 = vld [vmem:[%s10958_s3 + $0xe4] ss:$8 sps:$4 sm:$0xff]  }
 0x13f   :  { %v8368_v36 = vpop.f32.mrf.mxu1  ;;  %v1119_v52 = vpop.f32.mrf.mxu0  ;;  %3865 = vmatprep.subr.bf16.mxu1 %v6856_v55 }
 0x140   :  { %11173 = vst [vmem:[#allocation19_spill] sm:$0xff] %v8368_v36  ;;  %v8376_v29 = vadd.f32 %v1119_v52, %v8107_v46  ;;  %v6854_v46 = vld [vmem:[%s10958_s3 + $0xe0] ss:$8 sps:$4 sm:$0xff]  }
 0x141   :  { %v8373_v1 = vpop.f32.mrf.mxu1  ;;  %v8378_v24 = vpop.f32.mrf.mxu0  ;;  %3866 = vmatpush1.bf16.msra.mxu1 %v6854_v46 }
 0x142   :  { %11174 = vst [vmem:[#allocation20_spill] sm:$0xff] %v8373_v1 }
 0x143   :  { %v8380_v53 = vpop.f32.mrf.mxu1  ;;  %v1125_v30 = vpop.f32.mrf.mxu0 }
 0x144   :  { %11175 = vst [vmem:[#allocation21_spill] sm:$0xff] %v8380_v53  ;;  %v8385_v63 = vadd.f32 %v1125_v30, %v8120_v59 }
 0x145   :  { %v8382_v37 = vpop.f32.mrf.mxu1  ;;  %v1127_v48 = vpop.f32.mrf.mxu0 }
 0x146   :  { %11176 = vst [vmem:[#allocation22_spill] sm:$0xff] %v8382_v37  ;;  %11177 = vst [vmem:[#allocation23_spill] sm:$0xff] %v8385_v63  ;;  %v8396_v52 = vadd.f32 %v1127_v48, %v8127_v15 }
 0x147   :  { %v8390_v27 = vpop.f32.mrf.mxu1  ;;  %v1129_v53 = vpop.f32.mrf.mxu0 }
 0x148   :  { %11178 = vst [vmem:[#allocation24_spill] sm:$0xff] %v8390_v27  ;;  %v8401_v59 = vadd.f32 %v1129_v53, %v8132_v12  ;;  %v797_v12 = vadd.f32 %v8143_v34, %v8162_v54  ;;  %v807_v54 = vadd.f32 %v8165_v10, %v8187_v9 }
 0x149   :  { %v8398_v37 = vpop.f32.mrf.mxu1  ;;  %v8403_v30 = vpop.f32.mrf.mxu0 }
 0x14a   :  { %11179 = vst [vmem:[#allocation25_spill] sm:$0xff] %v8398_v37 }
 0x14b   :  { %v8405_v1 = vpop.f32.mrf.mxu1  ;;  %v1135_v27 = vpop.f32.mrf.mxu0 }
 0x14c   :  { %11180 = vst [vmem:[#allocation26_spill] sm:$0xff] %v8405_v1  ;;  %v8410_v63 = vadd.f32 %v1135_v27, %v8145_v6 }
 0x14d   :  { %v8407_v36 = vpop.f32.mrf.mxu1  ;;  %v1137_v15 = vpop.f32.mrf.mxu0 }
 0x14e   :  { %11181 = vst [vmem:[#allocation27_spill] sm:$0xff] %v8407_v36  ;;  %11182 = vst [vmem:[#allocation28_spill] sm:$0xff] %v8410_v63  ;;  %v8415_v55 = vadd.f32 %v1137_v15, %v8155_v20 }
 0x14f   :  { %v8412_v48 = vpop.f32.mrf.mxu1  ;;  %v1139_v46 = vpop.f32.mrf.mxu0 }
 0x150   :  { %11183 = vst [vmem:[#allocation29_spill] sm:$0xff] %v8412_v48  ;;  %v8422_v53 = vadd.f32 %v1139_v46, %v8157_v14 }
 0x151   :  { %v8417_v37 = vpop.f32.mrf.mxu1  ;;  %v1141_v1 = vpop.f32.mrf.mxu0 }
 0x152   :  { %11184 = vst [vmem:[#allocation30_spill] sm:$0xff] %v8417_v37  ;;  %v8426_v6 = vadd.f32 %v1141_v1, %v797_v12 }
 0x153   :  { %v8424_v36 = vpop.f32.mrf.mxu1  ;;  %v1145_v27 = vpop.f32.mrf.mxu0 }
 0x154   :  { %v8431_v20 = vadd.f32 %v1145_v27, %v8167_v38  ;;  %v6859_v38 = vld [vmem:[%s10958_s3 + $0x1f4] ss:$8 sps:$4 sm:$0xff]  }
 0x155   :  { %v8428_v63 = vpop.f32.mrf.mxu1  ;;  %v1147_v15 = vpop.f32.mrf.mxu0  ;;  %4612 = vmatprep.subr.bf16.mxu0 %v6859_v38 }
 0x156   :  { %v8436_v37 = vadd.f32 %v1147_v15, %v8177_v31  ;;  %v6857_v31 = vld [vmem:[%s10958_s3 + $0x1f0] ss:$8 sps:$4 sm:$0xff]  }
 0x157   :  { %v8433_v48 = vpop.f32.mrf.mxu1  ;;  %v1149_v34 = vpop.f32.mrf.mxu0  ;;  %4613 = vmatpush1.bf16.msra.mxu0 %v6857_v31  ;;  %v817_v31 = vadd.f32 %v8190_v2, %v8212_v60 }
 0x158   :  { %v8443_v1 = vadd.f32 %v1149_v34, %v8179_v11  ;;  %v6862_v34 = vld [vmem:[%s10958_s3 + $0x1e4] ss:$8 sps:$4 sm:$0xff]  }
 0x159   :  { %v8438_v14 = vpop.f32.mrf.mxu1  ;;  %v1151_v46 = vpop.f32.mrf.mxu0  ;;  %4614 = vmatprep.subr.bf16.mxu0 %v6862_v34 }
 0x15a   :  { %11185 = vst [vmem:[#allocation31_spill] sm:$0xff] %v8438_v14  ;;  %v8453_v27 = vadd.f32 %v1151_v46, %v807_v54  ;;  %v6860_v54 = vld [vmem:[%s10958_s3 + $0x1e0] ss:$8 sps:$4 sm:$0xff]  }
 0x15b   :  { %v8448_v12 = vpop.f32.mrf.mxu1  ;;  %v1155_v15 = vpop.f32.mrf.mxu0  ;;  %4615 = vmatpush1.bf16.msra.mxu0 %v6860_v54 }
 0x15c   :  { %11186 = vst [vmem:[#allocation32_spill] sm:$0xff] %v8448_v12  ;;  %v8458_v10 = vadd.f32 %v1155_v15, %v8192_v41  ;;  %v6865_v41 = vld [vmem:[%s10958_s3 + $0xd4] ss:$8 sps:$4 sm:$0xff]  }
 0x15d   :  { %v8455_v14 = vpop.f32.mrf.mxu1  ;;  %v1157_v11 = vpop.f32.mrf.mxu0  ;;  %3867 = vmatprep.subr.bf16.mxu1 %v6865_v41  ;;  %v827_v41 = vadd.f32 %v8215_v28, %v8234_v18 }
 0x15e   :  { %11187 = vst [vmem:[#allocation33_spill] sm:$0xff] %v8455_v14  ;;  %v8466_v12 = vadd.f32 %v1157_v11, %v8199_v35  ;;  %v6863_v35 = vld [vmem:[%s10958_s3 + $0xd0] ss:$8 sps:$4 sm:$0xff]  }
 0x15f   :  { %v8460_v9 = vpop.f32.mrf.mxu1  ;;  %v1159_v38 = vpop.f32.mrf.mxu0  ;;  %3868 = vmatpush1.bf16.msra.mxu1 %v6863_v35 }
 0x160   :  { %11188 = vst [vmem:[#allocation34_spill] sm:$0xff] %v8460_v9  ;;  %v8479_v15 = vadd.f32 %v1159_v38, %v8204_v3 }
 0x161   :  { %v8471_v46 = vpop.f32.mrf.mxu1  ;;  %v1161_v11 = vpop.f32.mrf.mxu0 }
 0x162   :  { %11189 = vst [vmem:[#allocation35_spill] sm:$0xff] %v8471_v46  ;;  %11190 = vst [vmem:[#allocation36_spill] sm:$0xff] %v8479_v15  ;;  %v8486_v34 = vadd.f32 %v1161_v11, %v817_v31 }
 0x163   :  { %v8484_v9 = vpop.f32.mrf.mxu1  ;;  %v1165_v46 = vpop.f32.mrf.mxu0 }
 0x164   :  { %v8491_v2 = vadd.f32 %v1165_v46, %v8217_v58 }
 0x165   :  { %v8488_v14 = vpop.f32.mrf.mxu1  ;;  %v1167_v3 = vpop.f32.mrf.mxu0 }
 0x166   :  { %11191 = vst [vmem:[#allocation37_spill] sm:$0xff] %v8488_v14  ;;  %v8496_v38 = vadd.f32 %v1167_v3, %v8227_v19 }
 0x167   :  { %v8493_v60 = vpop.f32.mrf.mxu1  ;;  %v1169_v54 = vpop.f32.mrf.mxu0 }
 0x168   :  { %11192 = vst [vmem:[#allocation38_spill] sm:$0xff] %v8493_v60  ;;  %v8503_v31 = vadd.f32 %v1169_v54, %v8229_v5  ;;  %v837_v5 = vadd.f32 %v8237_v17, %v8259_v62 }
 0x169   :  { %v8498_v15 = vpop.f32.mrf.mxu1  ;;  %v1171_v35 = vpop.f32.mrf.mxu0 }
 0x16a   :  { %11193 = vst [vmem:[#allocation39_spill] sm:$0xff] %v8498_v15  ;;  %v8507_v58 = vadd.f32 %v1171_v35, %v827_v41  ;;  %v6868_v41 = vld [vmem:[%s10958_s3 + $0x1d4] ss:$8 sps:$4 sm:$0xff]  }
 0x16b   :  { %v8505_v11 = vpop.f32.mrf.mxu1  ;;  %v1175_v46 = vpop.f32.mrf.mxu0  ;;  %4616 = vmatprep.subr.bf16.mxu0 %v6868_v41 }
 0x16c   :  { %v8512_v19 = vadd.f32 %v1175_v46, %v8239_v39 }
 0x16d   :  { %v8509_v14 = vpop.f32.mrf.mxu1  ;;  %v1177_v3 = vpop.f32.mrf.mxu0 }
 0x16e   :  { %v8515_v15 = vadd.f32 %v1177_v3, %v8249_v51  ;;  %v6866_v51 = vld [vmem:[%s10958_s3 + $0x1d0] ss:$8 sps:$4 sm:$0xff]  }
 0x16f   :  { %v8517_v60 = vpop.f32.mrf.mxu1  ;;  %v1179_v28 = vpop.f32.mrf.mxu0  ;;  %4617 = vmatpush1.bf16.msra.mxu0 %v6866_v51 }
 0x170   :  { %v8522_v18 = vadd.f32 %v1179_v28, %v8251_v42 }
 0x171   :  { %v1181_v54 = vpop.f32.mrf.mxu0  ;;  %v8529_v35 = vpop.f32.mrf.mxu1 }
 0x172   :  { %v8527_v39 = vadd.f32 %v1181_v54, %v837_v5  ;;  %11194 = vst [vmem:[#allocation40_spill] sm:$0xff] %v8529_v35  ;;  %v6871_v5 = vld [vmem:[%s10958_s3 + $0xc4] ss:$8 sps:$4 sm:$0xff]   ;;  %v2124_v35 = vlaneseq }
 0x173   :  { %v1185_v46 = vpop.f32.mrf.mxu0  ;;  %v8540_v3 = vpop.f32.mrf.mxu1  ;;  %3869 = vmatprep.subr.bf16.mxu1 %v6871_v5 }
 0x174   :  { %v8535_v17 = vadd.f32 %v1185_v46, %v8264_v25  ;;  %11195 = vst [vmem:[#allocation41_spill] sm:$0xff] %v8540_v3  ;;  %v6869_v25 = vld [vmem:[%s10958_s3 + $0xc0] ss:$8 sps:$4 sm:$0xff]  }
 0x175   :  { %v1187_v42 = vpop.f32.mrf.mxu0  ;;  %v8556_v51 = vpop.f32.mrf.mxu1  ;;  %3870 = vmatpush1.bf16.msra.mxu1 %v6869_v25  ;;  %v6872_v46 = vld [vmem:[%s10958_s3 + $0x1c0] ss:$8 sps:$4 sm:$0xff]  }
 0x176   :  { %v8538_v62 = vadd.f32 %v1187_v42, %v8271_v4  ;;  %v6874_v4 = vld [vmem:[%s10958_s3 + $0x1c4] ss:$8 sps:$4 sm:$0xff]   ;;  %11197 = vst [vmem:[#allocation43_spill] sm:$0xff] %v8556_v51 }
 0x177   :  { %v1189_v28 = vpop.f32.mrf.mxu0  ;;  %4618 = vmatprep.subr.bf16.mxu0 %v6874_v4  ;;  %v8567_v3 = vpop.f32.mrf.mxu1  ;;  %v6877_v4 = vld [vmem:[%s10958_s3 + $0xb4] ss:$8 sps:$4 sm:$0xff]  }
 0x178   :  { %v8546_v54 = vadd.f32 %v1189_v28, %v8273_v26  ;;  %4619 = vmatpush1.bf16.msra.mxu0 %v6872_v46  ;;  %11200 = vst [vmem:[#allocation46_spill] sm:$0xff] %v8567_v3  ;;  %3871 = vmatprep.subr.bf16.mxu1 %v6877_v4 }
 0x179   :  { %v8551_v41 = vpop.f32.mrf.mxu0 }
 0x17a   :  { %11196 = vst [vmem:[#allocation42_spill] sm:$0xff] %v8546_v54 }
 0x17b   :  { %v1195_v26 = vpop.f32.mrf.mxu0 }
 0x17c   :  { %v8562_v42 = vadd.f32 %v1195_v26, %v8289_v8  ;;  %v8577_v8 = vpop.f32.mrf.mxu1  ;;  %v6878_v26 = vld [vmem:[%s10958_s3 + $0x1b0] ss:$8 sps:$4 sm:$0xff]  }
 0x17d   :  { %v1197_v28 = vpop.f32.mrf.mxu0  ;;  %11203 = vst [vmem:[#allocation49_spill] sm:$0xff] %v8577_v8 }
 0x17e   :  { %11198 = vst [vmem:[#allocation44_spill] sm:$0xff] %v8562_v42  ;;  %v8565_v5 = vadd.f32 %v1197_v28, %v8297_v23  ;;  %v6875_v23 = vld [vmem:[%s10958_s3 + $0xb0] ss:$8 sps:$4 sm:$0xff]   ;;  %v8593_v8 = vpop.f32.mrf.mxu1 }
 0x17f   :  { %v1199_v54 = vpop.f32.mrf.mxu0  ;;  %3872 = vmatpush1.bf16.msra.mxu1 %v6875_v23  ;;  %11206 = vst [vmem:[#allocation52_spill] sm:$0xff] %v8593_v8 }
 0x180   :  { %11199 = vst [vmem:[#allocation45_spill] sm:$0xff] %v8565_v5  ;;  %v8570_v51 = vadd.f32 %v1199_v54, %v8299_v16  ;;  %v6880_v16 = vld [vmem:[%s10958_s3 + $0x1b4] ss:$8 sps:$4 sm:$0xff]   ;;  %v7050_v5 = vmov 1983009808  }
 0x181   :  { %v8572_v25 = vpop.f32.mrf.mxu0  ;;  %4620 = vmatprep.subr.bf16.mxu0 %v6880_v16  ;;  %v2280_v3 = vunpack.c.l.s4 %v7050_v5  ;;  %v767_v16 = vadd.f32 %v8070_v32, %v8090_v56  ;;  %v6883_v32 = vld [vmem:[%s10958_s3 + $0xa4] ss:$8 sps:$4 sm:$0xff]  }
 0x182   :  { %11201 = vst [vmem:[#allocation47_spill] sm:$0xff] %v8570_v51  ;;  %11202 = vst [vmem:[#allocation48_spill] sm:$0xff] %v8572_v25  ;;  %v8591_v51 = vshrl.u32 %v2124_v35, 7  ;;  %4621 = vmatpush1.bf16.msra.mxu0 %v6878_v26  ;;  %v11211_v26 = vld [vmem:[#allocation3_spill] sm:$0xff]  ;;  %3873 = vmatprep.subr.bf16.mxu1 %v6883_v32 }
 0x183   :  { %v1205_v46 = vpop.f32.mrf.mxu0  ;;  %v2281_v5 = vunpack.c.0.s8 %v2280_v3  ;;  %v11215_v56 = vld [vmem:[#allocation7_spill] sm:$0xff] }
 0x184   :  { %v8586_v54 = vadd.f32 %v1205_v46, %v8307_v33  ;;  %11205 = vst [vmem:[#allocation51_spill] sm:$0xff] %v8591_v51  ;;  %v1227_v46 = vadd.f32 %v8359_v47, %v767_v16  ;;  %v6884_v32 = vld [vmem:[%s10958_s3 + $0x1a0] ss:$8 sps:$4 sm:$0xff]  }
 0x185   :  { %v1207_v28 = vpop.f32.mrf.mxu0 }
 0x186   :  { %11204 = vst [vmem:[#allocation50_spill] sm:$0xff] %v8586_v54  ;;  %v8596_v4 = vadd.f32 %v1207_v28, %v8314_v7  ;;  %v8607_v54 = vpop.f32.mrf.mxu1  ;;  %v2122_v7 = vld [vmem:[%s10959_s2] sm:$0x3]  ;;  %v11212_v28 = vld [vmem:[#allocation5_spill] sm:$0xff] }
 0x187   :  { %v1209_v42 = vpop.f32.mrf.mxu0  ;;  %11210 = vst [vmem:[#allocation56_spill] sm:$0xff] %v8607_v54  ;;  %v11216_v54 = vld [vmem:[#allocation6_spill] sm:$0xff] }
 0x188   :  { %11207 = vst [vmem:[#allocation53_spill] sm:$0xff] %v8596_v4  ;;  %v8599_v33 = vadd.f32 %v1209_v42, %v8319_v61  ;;  %v777_v61 = vadd.f32 %v11212_v28, %v11211_v26  ;;  %v11214_v4 = vld [vmem:[#allocation2_spill] sm:$0xff]  ;;  %v11217_v26 = vsub.s32 0, %v8591_v51 }
 0x189   :  { %v8601_v23 = vpop.f32.mrf.mxu0 }
 0x18a   :  { %11208 = vst [vmem:[#allocation54_spill] sm:$0xff] %v8599_v33  ;;  %11209 = vst [vmem:[#allocation55_spill] sm:$0xff] %v8601_v23  ;;  %v11213_v33 = vld [vmem:[#allocation4_spill] sm:$0xff]  ;;  %v847_v23 = vadd.f32 %v11216_v54, %v11215_v56  ;;  %v1231_v3 = vadd.f32 %v8378_v24, %v777_v61  ;;  %v8628_v28 = vrot.slane %v2122_v7, %v11217_v26  ;;  %v8642_v24 = vpop.f32.mrf.mxu1 }
 0x18b   :  { %v1215_v42 = vpop.f32.mrf.mxu0  ;;  %v787_v8 = vadd.f32 %v11214_v4, %v11213_v33  ;;  %v11218_v4 = vsub.s32 1, %v8591_v51  ;;  %v11219_v33 = vld [vmem:[#allocation8_spill] sm:$0xff]  ;;  %v8655_v56 = vadd.f32 %v8305_v21, %v8324_v50  ;;  %v11226_v50 = vld [vmem:[#allocation13_spill] sm:$0xff] }
 0x18c   :  { %v8618_v35 = vadd.f32 %v1215_v42, %v8329_v49  ;;  %v6881_v49 = vld [vmem:[%s10958_s3 + $0xa0] ss:$8 sps:$4 sm:$0xff]   ;;  %v8639_v16 = vadd.f32 %v11219_v33, %v8302_v57  ;;  %v8648_v42 = vsub.s32 %v2281_v5, %v8591_v51  ;;  %v11222_v57 = vld [vmem:[#allocation9_spill] sm:$0xff]  ;;  %v11224_v26 = vld [vmem:[#allocation16_spill] sm:$0xff]  ;;  %v1692_v33 = vadd.f32 %v11226_v50, %v1227_v46 }
 0x18d   :  { %v1217_v25 = vpop.f32.mrf.mxu0  ;;  %v8632_v47 = vrot.slane %v2122_v7, %v11218_v4  ;;  %v1235_v54 = vadd.f32 %v8403_v30, %v787_v8  ;;  %v6886_v7 = vld [vmem:[%s10958_s3 + $0x1a4] ss:$8 sps:$4 sm:$0xff]   ;;  %v8659_v30 = vadd.f32 %v11222_v57, %v8340_v44  ;;  %3874 = vmatpush1.bf16.msra.mxu1 %v6881_v49  ;;  %v11225_v4 = vld [vmem:[#allocation12_spill] sm:$0xff]  ;;  %v11230_v49 = vld [vmem:[#allocation17_spill] sm:$0xff] }
 0x18e   :  { %v8645_v61 = vadd.f32 %v1217_v25, %v8334_v43  ;;  %11221 = vst [vmem:[#allocation5_spill] sm:$0xff] %v8648_v42  ;;  %v1689_v43 = vadd.f32 %v8332_v22, %v8347_v0  ;;  %v11223_v25 = vld [vmem:[#allocation10_spill] sm:$0xff]  ;;  %v1691_v21 = vadd.f32 %v11225_v4, %v11224_v26  ;;  %v11228_v51 = vld [vmem:[#allocation11_spill] sm:$0xff]  ;;  %4622 = vmatprep.subr.bf16.mxu0 %v6886_v7 }
 0x18f   :  { %v1690_v8 = vadd.f32 %v11223_v25, %v8352_v13  ;;  %v1219_v5 = vpop.f32.mrf.mxu0  ;;  %v11227_v44 = vld [vmem:[#allocation14_spill] sm:$0xff]  ;;  %v11229_v0 = vld [vmem:[#allocation15_spill] sm:$0xff]  ;;  %v8684_v25 = vadd.f32 %v11230_v49, %v8376_v29  ;;  %4623 = vmatpush1.bf16.msra.mxu0 %v6884_v32  ;;  %v1672_v49 = vpop.f32.mrf.mxu1 }
 0x190   :  { %11220 = vst [vmem:[#allocation3_spill] sm:$0xff] %v8645_v61  ;;  %v8673_v57 = vadd.f32 %v11227_v44, %v8366_v45  ;;  %v8676_v22 = vadd.f32 %v1219_v5, %v11228_v51  ;;  %v8680_v13 = vadd.f32 %v11229_v0, %v8371_v40  ;;  %v11231_v61 = vld [vmem:[#allocation18_spill] sm:$0xff]  ;;  %v11232_v46 = vld [vmem:[#allocation23_spill] sm:$0xff]  ;;  %v11234_v51 = vld [vmem:[#allocation20_spill] sm:$0xff] }
 0x191   :  { %v8687_v26 = vadd.f32 %v11231_v61, %v1231_v3  ;;  %v11233_v4 = vld [vmem:[#allocation19_spill] sm:$0xff]  ;;  %v8693_v45 = vpop.f32.mrf.mxu0  ;;  %v8697_v7 = vadd.f32 %v11234_v51, %v8396_v52  ;;  %v11235_v40 = vld [vmem:[#allocation21_spill] sm:$0xff]  ;;  %v11236_v29 = vld [vmem:[#allocation22_spill] sm:$0xff] }
 0x192   :  { %v8691_v50 = vadd.f32 %v11233_v4, %v11232_v46  ;;  %v8701_v5 = vadd.f32 %v11235_v40, %v8401_v59  ;;  %v8704_v44 = vadd.f32 %v11236_v29, %v1235_v54  ;;  %v11237_v3 = vld [vmem:[#allocation28_spill] sm:$0xff]  ;;  %v11239_v46 = vld [vmem:[#allocation25_spill] sm:$0xff]  ;;  %v11240_v32 = vld [vmem:[#allocation26_spill] sm:$0xff] }
 0x193   :  { %v11238_v61 = vld [vmem:[#allocation24_spill] sm:$0xff]  ;;  %v8712_v4 = vadd.f32 %v11239_v46, %v8415_v55  ;;  %v8716_v52 = vadd.f32 %v11240_v32, %v8422_v53  ;;  %v11241_v51 = vld [vmem:[#allocation27_spill] sm:$0xff]  ;;  %v11242_v54 = vld [vmem:[#allocation29_spill] sm:$0xff]  ;;  %v1955_v29 = vpop.f32.mrf.mxu0  ;;  %v8732_v55 = vadd.f32 %v8424_v36, %v8443_v1  ;;  %v8736_v53 = vadd.f32 %v8428_v63, %v8453_v27 }
 0x194   :  { %v8708_v0 = vadd.f32 %v11238_v61, %v11237_v3  ;;  %v8720_v59 = vadd.f32 %v11241_v51, %v8426_v6  ;;  %v8724_v40 = vadd.f32 %v11242_v54, %v8431_v20  ;;  %v11243_v3 = vld [vmem:[#allocation30_spill] sm:$0xff]  ;;  %v2074_v46 = vadd.f32 %v1955_v29, %v1689_v43  ;;  %v11244_v20 = vld [vmem:[#allocation31_spill] sm:$0xff]  ;;  %v11245_v51 = vld [vmem:[#allocation36_spill] sm:$0xff]  ;;  %v1674_v43 = vpop.f32.mrf.mxu1 }
 0x195   :  { %v8728_v61 = vadd.f32 %v11243_v3, %v8436_v37  ;;  %v8740_v6 = vadd.f32 %v8433_v48, %v8458_v10  ;;  %v8744_v32 = vadd.f32 %v11244_v20, %v8466_v12  ;;  %v11246_v37 = vld [vmem:[#allocation32_spill] sm:$0xff]  ;;  %v11247_v36 = vld [vmem:[#allocation33_spill] sm:$0xff]  ;;  %v1957_v3 = vpop.f32.mrf.mxu0  ;;  %v11248_v63 = vld [vmem:[#allocation34_spill] sm:$0xff]  ;;  %v8765_v20 = vadd.f32 %v8484_v9, %v8503_v31 }
 0x196   :  { %v8748_v54 = vadd.f32 %v11246_v37, %v11245_v51  ;;  %v8752_v1 = vadd.f32 %v11247_v36, %v8486_v34  ;;  %v8756_v27 = vadd.f32 %v11248_v63, %v8491_v2  ;;  %v11249_v48 = vld [vmem:[#allocation35_spill] sm:$0xff]  ;;  %v2134_v12 = vadd.f32 %v8628_v28, %v2074_v46  ;;  %v11250_v34 = vld [vmem:[#allocation37_spill] sm:$0xff]  ;;  %v11251_v37 = vld [vmem:[#allocation38_spill] sm:$0xff] }
 0x197   :  { %v8760_v10 = vadd.f32 %v11249_v48, %v8496_v38  ;;  %v2075_v29 = vadd.f32 %v1957_v3, %v1690_v8  ;;  %v8769_v51 = vadd.f32 %v11250_v34, %v8507_v58  ;;  %v8773_v2 = vadd.f32 %v11251_v37, %v8512_v19  ;;  %v1959_v38 = vpop.f32.mrf.mxu0  ;;  %v6889_v46 = vld [vmem:[%s10958_s3 + $0x94] ss:$8 sps:$4 sm:$0xff]   ;;  %v11252_v8 = vld [vmem:[#allocation39_spill] sm:$0xff]  ;;  %v6887_v19 = vld [vmem:[%s10958_s3 + $0x90] ss:$8 sps:$4 sm:$0xff]   ;;  %v1676_v48 = vpop.f32.mrf.mxu1 }
 0x198   :  { %v1259_v36 = vadd.f32 %v8551_v41, %v847_v23  ;;  %v8781_v3 = vadd.f32 %v11252_v8, %v8515_v15  ;;  %v8785_v9 = vadd.f32 %v8505_v11, %v8522_v18  ;;  %v2076_v58 = vadd.f32 %v1959_v38, %v1691_v21  ;;  %v11257_v15 = vld [vmem:[#allocation40_spill] sm:$0xff]  ;;  %3875 = vmatprep.subr.bf16.mxu1 %v6889_v46  ;;  %v11261_v38 = vld [vmem:[#allocation41_spill] sm:$0xff] }
 0x199   :  { %v2135_v31 = vadd.f32 %v8632_v47, %v2075_v29  ;;  %v8793_v41 = vadd.f32 %v8509_v14, %v8527_v39  ;;  %v8797_v23 = vadd.f32 %v8517_v60, %v8535_v17  ;;  %v8801_v63 = vadd.f32 %v11257_v15, %v8538_v62  ;;  %v11259_v11 = vld [vmem:[#allocation48_spill] sm:$0xff]  ;;  %v1961_v21 = vpop.f32.mrf.mxu0  ;;  %3876 = vmatpush1.bf16.msra.mxu1 %v6887_v19  ;;  %v11260_v39 = vld [vmem:[#allocation42_spill] sm:$0xff]  ;;  %v11263_v17 = vld [vmem:[#allocation43_spill] sm:$0xff] }
 0x19a   :  { %11253 = vst [vmem:[#allocation4_spill] sm:$0xff] %v8781_v3  ;;  %11254 = vst [vmem:[#allocation2_spill] sm:$0xff] %v8785_v9  ;;  %v1263_v18 = vadd.f32 %v11259_v11, %v8639_v16  ;;  %v2182_v29 = vmax.f32 %v2134_v12, 0.0  ;;  %v2136_v37 = vadd.f32 %v8628_v28, %v2076_v58  ;;  %v2077_v14 = vadd.f32 %v1961_v21, %v1692_v33  ;;  %v11265_v62 = vld [vmem:[#allocation44_spill] sm:$0xff]  ;;  %v11266_v15 = vld [vmem:[#allocation46_spill] sm:$0xff] }
 0x19b   :  { %11255 = vst [vmem:[#allocation7_spill] sm:$0xff] %v8793_v41  ;;  %11256 = vst [vmem:[#allocation6_spill] sm:$0xff] %v8797_v23  ;;  %v2183_v34 = vmax.f32 %v2135_v31, 0.0  ;;  %v8808_v60 = vadd.f32 %v11261_v38, %v11260_v39  ;;  %v8811_v8 = vadd.f32 %v11263_v17, %v1259_v36  ;;  %v11268_v16 = vld [vmem:[#allocation55_spill] sm:$0xff]  ;;  %v1965_v12 = vpop.f32.mrf.mxu0  ;;  %v11269_v31 = vld [vmem:[#allocation45_spill] sm:$0xff] }
 0x19c   :  { %11258 = vst [vmem:[#allocation8_spill] sm:$0xff] %v8801_v63  ;;  %v8815_v63 = vadd.f32 %v11266_v15, %v11265_v62  ;;  %v1267_v46 = vadd.f32 %v11268_v16, %v8655_v56  ;;  %v11270_v11 = vld [vmem:[#allocation49_spill] sm:$0xff]  ;;  %v2137_v19 = vadd.f32 %v8632_v47, %v2077_v14  ;;  %v2078_v21 = vadd.f32 %v1965_v12, %v8673_v57  ;;  %v11272_v39 = vld [vmem:[#allocation47_spill] sm:$0xff]  ;;  %v11273_v36 = vld [vmem:[#allocation52_spill] sm:$0xff] }
 0x19d   :  { %11262 = vst [vmem:[#allocation9_spill] sm:$0xff] %v8808_v60  ;;  %11264 = vst [vmem:[#allocation10_spill] sm:$0xff] %v8811_v8  ;;  %v8821_v58 = vadd.f32 %v11270_v11, %v11269_v31  ;;  %v2230_v33 = vmax.f32 %v2182_v29, %v2183_v34  ;;  %v8827_v38 = vadd.f32 %v11273_v36, %v11272_v39  ;;  %v11275_v17 = vld [vmem:[#allocation56_spill] sm:$0xff]  ;;  %v11277_v15 = vld [vmem:[#allocation50_spill] sm:$0xff]  ;;  %v2184_v16 = vmax.f32 %v2136_v37, 0.0  ;;  %v1680_v31 = vpop.f32.mrf.mxu1 }
 0x19e   :  { %11267 = vst [vmem:[#allocation16_spill] sm:$0xff] %v8815_v63  ;;  %v8830_v62 = vadd.f32 %v11275_v17, %v1263_v18  ;;  %v8834_v56 = vadd.f32 %v8642_v24, %v11277_v15  ;;  %v1967_v63 = vpop.f32.mrf.mxu0  ;;  %v2185_v34 = vmax.f32 %v2137_v19, 0.0  ;;  %v8838_v57 = vadd.f32 %v8628_v28, %v2078_v21  ;;  %v11279_v14 = vld [vmem:[#allocation53_spill] sm:$0xff]  ;;  %v11281_v39 = vld [vmem:[#allocation54_spill] sm:$0xff] }
 0x19f   :  { %11271 = vst [vmem:[#allocation12_spill] sm:$0xff] %v8821_v58  ;;  %11274 = vst [vmem:[#allocation13_spill] sm:$0xff] %v8827_v38  ;;  %v2278_v11 = vcombine.high %v2230_v33, %v2230_v33  ;;  %v2285_v29 = vrot.slane %v2230_v33, %v8648_v42  ;;  %v8841_v12 = vadd.f32 %v1672_v49, %v11279_v14 }
 0x1a0   :  { %11276 = vst [vmem:[#allocation14_spill] sm:$0xff] %v8830_v62  ;;  %11278 = vst [vmem:[#allocation11_spill] sm:$0xff] %v8834_v56  ;;  %v8844_v18 = vadd.f32 %v1674_v43, %v11281_v39  ;;  %v8846_v36 = vadd.f32 %v1676_v48, %v1267_v46  ;;  %v2079_v24 = vadd.f32 %v1967_v63, %v8680_v13  ;;  %v1969_v43 = vpop.f32.mrf.mxu0 }
 0x1a1   :  { %11280 = vst [vmem:[#allocation15_spill] sm:$0xff] %v8841_v12  ;;  %v2292_v37 = vrot.slane %v2278_v11, %v8648_v42  ;;  %v2293_v17 = vcombine.high %v2285_v29, %v2285_v29  ;;  %v2783_v15 = vsel %vm1737_vm11, %v2285_v29, -inf  ;;  %v2231_v33 = vmax.f32 %v2184_v16, %v2185_v34 }
 0x1a2   :  { %11282 = vst [vmem:[#allocation17_spill] sm:$0xff] %v8844_v18  ;;  %11283 = vst [vmem:[#allocation18_spill] sm:$0xff] %v8846_v36  ;;  %v8852_v19 = vadd.f32 %v1680_v31, %v8618_v35  ;;  %v2784_v21 = vrot.slane %v2783_v15, 4  ;;  %v8856_v14 = vadd.f32 %v8632_v47, %v2079_v24  ;;  %v6892_v35 = vld [vmem:[%s10958_s3 + $0x194] ss:$8 sps:$4 sm:$0xff]  }
 0x1a3   :  { %v2294_v48 = vcombine.high %v2292_v37, %v2292_v37  ;;  %v2790_v46 = vsel %vm1737_vm11, %v2293_v17, -inf  ;;  %v2797_v13 = vsel %vm1737_vm11, %v2292_v37, -inf  ;;  %v2295_v63 = vcombine.high %v2231_v33, %v2231_v33  ;;  %v6890_v37 = vld [vmem:[%s10958_s3 + $0x190] ss:$8 sps:$4 sm:$0xff]   ;;  %4624 = vmatprep.subr.bf16.mxu0 %v6892_v35 }
 0x1a4   :  { %11284 = vst [vmem:[#allocation23_spill] sm:$0xff] %v8852_v19  ;;  %v2785_v11 = vmax.f32 %v2783_v15, %v2784_v21  ;;  %v2791_v39 = vrot.slane %v2790_v46, 4  ;;  %v2798_v29 = vrot.slane %v2797_v13, 4  ;;  %v2302_v16 = vrot.slane %v2231_v33, %v8648_v42  ;;  %4625 = vmatpush1.bf16.msra.mxu0 %v6890_v37 }
 0x1a5   :  { %v2804_v31 = vsel %vm1737_vm11, %v2294_v48, -inf  ;;  %v2309_v34 = vrot.slane %v2295_v63, %v8648_v42  ;;  %v8868_v17 = vadd.f32 %v1969_v43, %v8684_v25 }
 0x1a6   :  { %v2786_v15 = vrot.slane %v2785_v11, 2  ;;  %v2792_v21 = vmax.f32 %v2790_v46, %v2791_v39  ;;  %v2799_v33 = vmax.f32 %v2797_v13, %v2798_v29  ;;  %v2805_v49 = vrot.slane %v2804_v31, 4 }
 0x1a7   :  { %v2310_v19 = vcombine.high %v2302_v16, %v2302_v16  ;;  %v2311_v36 = vcombine.high %v2309_v34, %v2309_v34  ;;  %v2811_v48 = vsel %vm1737_vm11, %v2302_v16, -inf  ;;  %v2825_v63 = vsel %vm1737_vm11, %v2309_v34, -inf  ;;  %v6895_v16 = vld [vmem:[%s10958_s3 + $0x84] ss:$8 sps:$4 sm:$0xff]  }
 0x1a8   :  { %v2787_v24 = vmax.f32 %v2785_v11, %v2786_v15  ;;  %v2793_v18 = vrot.slane %v2792_v21, 2  ;;  %v2800_v25 = vrot.slane %v2799_v33, 2  ;;  %v2806_v43 = vmax.f32 %v2804_v31, %v2805_v49  ;;  %3877 = vmatprep.subr.bf16.mxu1 %v6895_v16 }
 0x1a9   :  { %v2812_v12 = vrot.slane %v2811_v48, 4  ;;  %v2818_v56 = vsel %vm1737_vm11, %v2310_v19, -inf  ;;  %v2826_v62 = vrot.slane %v2825_v63, 4  ;;  %v2832_v46 = vsel %vm1737_vm11, %v2311_v36, -inf  ;;  %v6893_v19 = vld [vmem:[%s10958_s3 + $0x80] ss:$8 sps:$4 sm:$0xff]  }
 0x1aa   :  { %v2788_v13 = vrot.slane %v2787_v24, 1  ;;  %v2794_v39 = vmax.f32 %v2792_v21, %v2793_v18  ;;  %v2801_v29 = vmax.f32 %v2799_v33, %v2800_v25  ;;  %v2807_v35 = vrot.slane %v2806_v43, 2  ;;  %v6898_v21 = vld [vmem:[%s10958_s3 + $0x184] ss:$8 sps:$4 sm:$0xff]   ;;  %v1682_v33 = vpop.f32.mrf.mxu1  ;;  %3878 = vmatpush1.bf16.msra.mxu1 %v6893_v19 }
 0x1ab   :  { %v2813_v11 = vmax.f32 %v2811_v48, %v2812_v12  ;;  %v2819_v34 = vrot.slane %v2818_v56, 4  ;;  %v2827_v49 = vmax.f32 %v2825_v63, %v2826_v62  ;;  %v2833_v31 = vrot.slane %v2832_v46, 4  ;;  %v6896_v62 = vld [vmem:[%s10958_s3 + $0x180] ss:$8 sps:$4 sm:$0xff]   ;;  %4626 = vmatprep.subr.bf16.mxu0 %v6898_v21 }
 0x1ac   :  { %v2789_v37 = vmax.f32 %v2787_v24, %v2788_v13  ;;  %v2795_v36 = vrot.slane %v2794_v39, 1  ;;  %v2802_v15 = vrot.slane %v2801_v29, 1  ;;  %v2808_v18 = vmax.f32 %v2806_v43, %v2807_v35  ;;  %4627 = vmatpush1.bf16.msra.mxu0 %v6896_v62  ;;  %v11287_v62 = vld [vmem:[#allocation3_spill] sm:$0xff] }
 0x1ad   :  { %v2814_v25 = vrot.slane %v2813_v11, 2  ;;  %v2820_v38 = vmax.f32 %v2818_v56, %v2819_v34  ;;  %v2828_v12 = vrot.slane %v2827_v49, 2  ;;  %v2834_v48 = vmax.f32 %v2832_v46, %v2833_v31  ;;  %v1684_v46 = vpop.f32.mrf.mxu1 }
 0x1ae   :  { %v2796_v63 = vmax.f32 %v2794_v39, %v2795_v36  ;;  %v2803_v24 = vmax.f32 %v2801_v29, %v2802_v15  ;;  %v2809_v13 = vrot.slane %v2808_v18, 1  ;;  %v3455_v58 = vpack.c.bf16 %v2789_v37, %v2789_v37 }
 0x1af   :  { %v2815_v43 = vmax.f32 %v2813_v11, %v2814_v25  ;;  %v2821_v35 = vrot.slane %v2820_v38, 2  ;;  %v2829_v16 = vmax.f32 %v2827_v49, %v2828_v12  ;;  %v2835_v8 = vrot.slane %v2834_v48, 2  ;;  %v1971_v25 = vpop.f32.mrf.mxu0 }
 0x1b0   :  { %v2810_v60 = vmax.f32 %v2808_v18, %v2809_v13  ;;  %v3456_v23 = vpack.c.bf16 %v2796_v63, %v2796_v63  ;;  %v3457_v56 = vpack.c.bf16 %v2803_v24, %v2803_v24  ;;  %v3944_v34 = vunpack.c.l.b16 %v3455_v58 }
 0x1b1   :  { %v2816_v31 = vrot.slane %v2815_v43, 1  ;;  %v2822_v19 = vmax.f32 %v2820_v38, %v2821_v35  ;;  %v2830_v41 = vrot.slane %v2829_v16, 1  ;;  %v2836_v9 = vmax.f32 %v2834_v48, %v2835_v8 }
 0x1b2   :  { %v3458_v3 = vpack.c.bf16 %v2810_v60, %v2810_v60  ;;  %v3648_v39 = vunpack.c.l.b16 %v3456_v23  ;;  %v3649_v29 = vunpack.c.l.b16 %v3457_v56  ;;  %v11285_v37 = vmax.f32 %v8856_v14, 0.0  ;;  %v1686_v23 = vpop.f32.mrf.mxu1 }
 0x1b3   :  { %v11286_v11 = vmax.f32 %v8838_v57, 0.0  ;;  %v2817_v49 = vmax.f32 %v2815_v43, %v2816_v31  ;;  %v2823_v15 = vrot.slane %v2822_v19, 1  ;;  %v2831_v21 = vmax.f32 %v2829_v16, %v2830_v41  ;;  %v1975_v43 = vpop.f32.mrf.mxu0 }
 0x1b4   :  { %v2837_v18 = vrot.slane %v2836_v9, 1  ;;  %v1271_v58 = vadd.f32 %v8693_v45, %v8659_v30  ;;  %v8895_v12 = vunpack.c.l.b16 %v3458_v3  ;;  %v3952_v8 = vsel %vm3712_vm14, %v3648_v39, %v3944_v34 }
 0x1b5   :  { %v2232_v36 = vmax.f32 %v11286_v11, %v11285_v37  ;;  %v3953_v38 = vsel %vm3714_vm15, %v3649_v29, %v3952_v8  ;;  %v2824_v14 = vmax.f32 %v2822_v19, %v2823_v15  ;;  %v3459_v57 = vpack.c.bf16 %v2817_v49, %v2817_v49 }
 0x1b6   :  { %v2838_v48 = vmax.f32 %v2836_v9, %v2837_v18  ;;  %v8900_v63 = vadd.f32 %v1682_v33, %v11287_v62  ;;  %v8904_v41 = vsel %vm3716_vm0, %v8895_v12, %v3953_v38  ;;  %v8908_v30 = vsel %vm3712_vm14, %v8895_v12, %v3649_v29 }
 0x1b7   :  { %v2312_v60 = vcombine.high %v2232_v36, %v2232_v36  ;;  %11289 = vst [vmem:[#allocation20_spill] sm:$0xff] %v8904_v41  ;;  %v3461_v45 = vpack.c.bf16 %v2831_v21, %v2831_v21  ;;  %v3460_v3 = vpack.c.bf16 %v2824_v14, %v2824_v14  ;;  %v2319_v13 = vrot.slane %v2232_v36, %v8648_v42 }
 0x1b8   :  { %11288 = vst [vmem:[#allocation19_spill] sm:$0xff] %v8900_v63  ;;  %v3462_v24 = vpack.c.bf16 %v2838_v48, %v2838_v48  ;;  %v2140_v9 = vadd.f32 %v8628_v28, %v8868_v17  ;;  %v8914_v33 = vadd.f32 %v1684_v46, %v8676_v22  ;;  %v8916_v35 = vadd.f32 %v1686_v23, %v1271_v58 }
 0x1b9   :  { %v2326_v16 = vrot.slane %v2312_v60, %v8648_v42  ;;  %v2081_v56 = vadd.f32 %v1971_v25, %v8687_v26  ;;  %v3713_v34 = vsel %vm3712_vm14, %v3649_v29, %v3648_v39  ;;  %v8921_v31 = vunpack.c.l.b16 %v3459_v57  ;;  %v1977_v26 = vpop.f32.mrf.mxu0 }
 0x1ba   :  { %11290 = vst [vmem:[#allocation21_spill] sm:$0xff] %v8914_v33  ;;  %11291 = vst [vmem:[#allocation22_spill] sm:$0xff] %v8916_v35  ;;  %v8923_v19 = vunpack.c.l.b16 %v3460_v3  ;;  %v8925_v37 = vunpack.c.l.b16 %v3461_v45  ;;  %v2327_v11 = vcombine.high %v2319_v13, %v2319_v13  ;;  %v2839_v36 = vsel %vm1737_vm11, %v2319_v13, -inf }
 0x1bb   :  { %11292 = vst [vmem:[#allocation28_spill] sm:$0xff] %v8921_v31  ;;  %v2328_v17 = vcombine.high %v2326_v16, %v2326_v16  ;;  %v2853_v22 = vsel %vm1737_vm11, %v2326_v16, -inf  ;;  %v8929_v46 = vunpack.c.l.b16 %v3462_v24  ;;  %v2840_v49 = vrot.slane %v2839_v36, 4 }
 0x1bc   :  { %11293 = vst [vmem:[#allocation24_spill] sm:$0xff] %v8923_v19  ;;  %11294 = vst [vmem:[#allocation25_spill] sm:$0xff] %v8925_v37  ;;  %v2854_v15 = vrot.slane %v2853_v22, 4  ;;  %v2188_v21 = vmax.f32 %v2140_v9, 0.0  ;;  %v4734_v39 = vsel %vm3712_vm14, %v8923_v19, %v8921_v31  ;;  %v2846_v29 = vsel %vm1737_vm11, %v2327_v11, -inf }
 0x1bd   :  { %11295 = vst [vmem:[#allocation26_spill] sm:$0xff] %v8929_v46  ;;  %v2860_v18 = vsel %vm1737_vm11, %v2328_v17, -inf  ;;  %v2141_v25 = vadd.f32 %v8632_v47, %v2081_v56  ;;  %v2841_v58 = vmax.f32 %v2839_v36, %v2840_v49  ;;  %v2847_v8 = vrot.slane %v2846_v29, 4 }
 0x1be   :  { %v2855_v60 = vmax.f32 %v2853_v22, %v2854_v15  ;;  %v2861_v23 = vrot.slane %v2860_v18, 4  ;;  %v4468_v38 = vsel %vm3712_vm14, %v8921_v31, %v8895_v12  ;;  %v2082_v48 = vadd.f32 %v1975_v43, %v8691_v50 }
 0x1bf   :  { %v2189_v14 = vmax.f32 %v2141_v25, 0.0  ;;  %v2083_v57 = vadd.f32 %v1977_v26, %v8697_v7  ;;  %v2842_v62 = vrot.slane %v2841_v58, 2  ;;  %v2848_v45 = vmax.f32 %v2846_v29, %v2847_v8 }
 0x1c0   :  { %v2856_v3 = vrot.slane %v2855_v60, 2  ;;  %v2862_v24 = vmax.f32 %v2860_v18, %v2861_v23  ;;  %v4735_v13 = vsel %vm3714_vm15, %v8925_v37, %v4734_v39  ;;  %v2142_v16 = vadd.f32 %v8628_v28, %v2082_v48 }
 0x1c1   :  { %v2233_v9 = vmax.f32 %v2188_v21, %v2189_v14  ;;  %v2143_v56 = vadd.f32 %v8632_v47, %v2083_v57  ;;  %v2843_v11 = vmax.f32 %v2841_v58, %v2842_v62  ;;  %v2849_v17 = vrot.slane %v2848_v45, 2 }
 0x1c2   :  { %v2857_v36 = vmax.f32 %v2855_v60, %v2856_v3  ;;  %v2863_v22 = vrot.slane %v2862_v24, 2  ;;  %v2190_v7 = vmax.f32 %v2142_v16, 0.0 }
 0x1c3   :  { %v2329_v49 = vcombine.high %v2233_v9, %v2233_v9  ;;  %v2336_v50 = vrot.slane %v2233_v9, %v8648_v42  ;;  %v2191_v43 = vmax.f32 %v2143_v56, 0.0  ;;  %v2844_v15 = vrot.slane %v2843_v11, 1 }
 0x1c4   :  { %v2850_v26 = vmax.f32 %v2848_v45, %v2849_v17  ;;  %v2858_v29 = vrot.slane %v2857_v36, 1  ;;  %v2864_v18 = vmax.f32 %v2862_v24, %v2863_v22  ;;  %v8953_v45 = vsel %vm3714_vm15, %v8895_v12, %v3713_v34  ;;  %v1979_v22 = vpop.f32.mrf.mxu0 }
 0x1c5   :  { %v2343_v39 = vrot.slane %v2329_v49, %v8648_v42  ;;  %v2344_v21 = vcombine.high %v2336_v50, %v2336_v50  ;;  %v2867_v25 = vsel %vm1737_vm11, %v2336_v50, -inf  ;;  %v2234_v8 = vmax.f32 %v2190_v7, %v2191_v43 }
 0x1c6   :  { %v2845_v23 = vmax.f32 %v2843_v11, %v2844_v15  ;;  %v2851_v58 = vrot.slane %v2850_v26, 1  ;;  %v2859_v14 = vmax.f32 %v2857_v36, %v2858_v29  ;;  %v2865_v60 = vrot.slane %v2864_v18, 1 }
 0x1c7   :  { %v2345_v48 = vcombine.high %v2343_v39, %v2343_v39  ;;  %v2868_v57 = vrot.slane %v2867_v25, 4  ;;  %v2874_v62 = vsel %vm1737_vm11, %v2344_v21, -inf  ;;  %v2881_v3 = vsel %vm1737_vm11, %v2343_v39, -inf }
 0x1c8   :  { %v8958_v24 = vsel %vm3714_vm15, %v8921_v31, %v8908_v30  ;;  %v2852_v9 = vmax.f32 %v2850_v26, %v2851_v58  ;;  %v8960_v16 = vmax.f32 %v2864_v18, %v2865_v60  ;;  %v2875_v11 = vrot.slane %v2874_v62, 4 }
 0x1c9   :  { %11296 = vst [vmem:[#allocation27_spill] sm:$0xff] %v8958_v24  ;;  %v2869_v56 = vmax.f32 %v2867_v25, %v2868_v57  ;;  %v2882_v17 = vrot.slane %v2881_v3, 4  ;;  %v2888_v36 = vsel %vm1737_vm11, %v2345_v48, -inf  ;;  %v8965_v49 = vsel %vm3714_vm15, %v8923_v19, %v4468_v38 }
 0x1ca   :  { %v3463_v12 = vpack.c.bf16 %v2845_v23, %v2845_v23  ;;  %v3465_v34 = vpack.c.bf16 %v2859_v14, %v2859_v14  ;;  %v8969_v50 = vsel %vm3716_vm0, %v8929_v46, %v4735_v13  ;;  %v2876_v7 = vmax.f32 %v2874_v62, %v2875_v11 }
 0x1cb   :  { %v2870_v30 = vrot.slane %v2869_v56, 2  ;;  %v2883_v43 = vmax.f32 %v2881_v3, %v2882_v17  ;;  %v2889_v15 = vrot.slane %v2888_v36, 4  ;;  %v3464_v26 = vpack.c.bf16 %v2852_v9, %v2852_v9  ;;  %v1981_v17 = vpop.f32.mrf.mxu0 }
 0x1cc   :  { %v2346_v18 = vcombine.high %v2234_v8, %v2234_v8  ;;  %v2084_v39 = vadd.f32 %v1979_v22, %v8701_v5  ;;  %v2877_v38 = vrot.slane %v2876_v7, 2  ;;  %v8974_v58 = vunpack.c.l.b16 %v3463_v12 }
 0x1cd   :  { %v2871_v21 = vmax.f32 %v2869_v56, %v2870_v30  ;;  %v2884_v25 = vrot.slane %v2883_v43, 2  ;;  %v2890_v23 = vmax.f32 %v2888_v36, %v2889_v15  ;;  %v8976_v14 = vunpack.c.l.b16 %v3465_v34  ;;  %v1985_v41 = vpop.f32.mrf.mxu0 }
 0x1ce   :  { %11297 = vst [vmem:[#allocation29_spill] sm:$0xff] %v8974_v58  ;;  %v2353_v13 = vrot.slane %v2234_v8, %v8648_v42  ;;  %v2360_v60 = vrot.slane %v2346_v18, %v8648_v42  ;;  %v2878_v57 = vmax.f32 %v2876_v7, %v2877_v38 }
 0x1cf   :  { %11298 = vst [vmem:[#allocation30_spill] sm:$0xff] %v8976_v14  ;;  %v2872_v48 = vrot.slane %v2871_v21, 1  ;;  %v2885_v62 = vmax.f32 %v2883_v43, %v2884_v25  ;;  %v2891_v3 = vrot.slane %v2890_v23, 2 }
 0x1d0   :  { %v2361_v9 = vcombine.high %v2353_v13, %v2353_v13  ;;  %v2362_v11 = vcombine.high %v2360_v60, %v2360_v60  ;;  %v2895_v5 = vsel %vm1737_vm11, %v2353_v13, -inf  ;;  %v2909_v56 = vsel %vm1737_vm11, %v2360_v60, -inf }
 0x1d1   :  { %v2873_v36 = vmax.f32 %v2871_v21, %v2872_v48  ;;  %v2879_v22 = vrot.slane %v2878_v57, 1  ;;  %v2886_v12 = vrot.slane %v2885_v62, 1  ;;  %v2892_v34 = vmax.f32 %v2890_v23, %v2891_v3 }
 0x1d2   :  { %v2896_v30 = vrot.slane %v2895_v5, 4  ;;  %v2902_v8 = vsel %vm1737_vm11, %v2361_v9, -inf  ;;  %v2910_v15 = vrot.slane %v2909_v56, 4  ;;  %v2916_v7 = vsel %vm1737_vm11, %v2362_v11, -inf }
 0x1d3   :  { %v2880_v43 = vmax.f32 %v2878_v57, %v2879_v22  ;;  %v2887_v18 = vmax.f32 %v2885_v62, %v2886_v12  ;;  %v2893_v38 = vrot.slane %v2892_v34, 1  ;;  %v3467_v25 = vpack.c.bf16 %v2873_v36, %v2873_v36 }
 0x1d4   :  { %v2897_v29 = vmax.f32 %v2895_v5, %v2896_v30  ;;  %v2903_v13 = vrot.slane %v2902_v8, 4  ;;  %v2911_v24 = vmax.f32 %v2909_v56, %v2910_v15  ;;  %v2917_v60 = vrot.slane %v2916_v7, 4  ;;  %v1987_v56 = vpop.f32.mrf.mxu0 }
 0x1d5   :  { %v8984_v21 = vunpack.c.l.b16 %v3464_v26  ;;  %v2894_v48 = vmax.f32 %v2892_v34, %v2893_v38  ;;  %v3468_v23 = vpack.c.bf16 %v2880_v43, %v2880_v43  ;;  %v3469_v3 = vpack.c.bf16 %v2887_v18, %v2887_v18 }
 0x1d6   :  { %v2898_v35 = vrot.slane %v2897_v29, 2  ;;  %v2904_v33 = vmax.f32 %v2902_v8, %v2903_v13  ;;  %v2912_v9 = vrot.slane %v2911_v24, 2  ;;  %v2918_v63 = vmax.f32 %v2916_v7, %v2917_v60 }
 0x1d7   :  { %11299 = vst [vmem:[#allocation31_spill] sm:$0xff] %v8984_v21  ;;  %v3470_v14 = vpack.c.bf16 %v2894_v48, %v2894_v48  ;;  %v3656_v11 = vunpack.c.l.b16 %v3468_v23  ;;  %v3657_v57 = vunpack.c.l.b16 %v3469_v3  ;;  %v3945_v62 = vunpack.c.l.b16 %v3467_v25 }
 0x1d8   :  { %v2899_v22 = vmax.f32 %v2897_v29, %v2898_v35  ;;  %v2905_v36 = vrot.slane %v2904_v33, 2  ;;  %v2913_v5 = vmax.f32 %v2911_v24, %v2912_v9  ;;  %v2919_v12 = vrot.slane %v2918_v63, 2 }
 0x1d9   :  { %v3658_v30 = vunpack.c.l.b16 %v3470_v14  ;;  %v3959_v26 = vsel %vm3712_vm14, %v3656_v11, %v3945_v62  ;;  %v2144_v34 = vadd.f32 %v8628_v28, %v2084_v39  ;;  %v2085_v15 = vadd.f32 %v1981_v17, %v8704_v44  ;;  %v1989_v17 = vpop.f32.mrf.mxu0 }
 0x1da   :  { %v3960_v8 = vsel %vm3714_vm15, %v3657_v57, %v3959_v26  ;;  %v2900_v7 = vrot.slane %v2899_v22, 1  ;;  %v2906_v43 = vmax.f32 %v2904_v33, %v2905_v36  ;;  %v2914_v18 = vrot.slane %v2913_v5, 1 }
 0x1db   :  { %v4737_v35 = vsel %vm3718_vm1, %v8974_v58, %v8969_v50  ;;  %v8994_v24 = vsel %vm3716_vm0, %v3658_v30, %v3960_v8  ;;  %v8997_v29 = vsel %vm3712_vm14, %v3658_v30, %v3657_v57  ;;  %v2920_v14 = vmax.f32 %v2918_v63, %v2919_v12 }
 0x1dc   :  { %11300 = vst [vmem:[#allocation36_spill] sm:$0xff] %v8994_v24  ;;  %v2901_v38 = vmax.f32 %v2899_v22, %v2900_v7  ;;  %v2907_v39 = vrot.slane %v2906_v43, 1  ;;  %v2915_v25 = vmax.f32 %v2913_v5, %v2914_v18  ;;  %v2145_v44 = vadd.f32 %v8632_v47, %v2085_v15 }
 0x1dd   :  { %v2921_v13 = vrot.slane %v2920_v14, 1  ;;  %v2192_v33 = vmax.f32 %v2144_v34, 0.0  ;;  %v2086_v60 = vadd.f32 %v1985_v41, %v8708_v0  ;;  %v2087_v48 = vadd.f32 %v1987_v56, %v8712_v4 }
 0x1de   :  { %v2908_v50 = vmax.f32 %v2906_v43, %v2907_v39  ;;  %v3471_v23 = vpack.c.bf16 %v2901_v38, %v2901_v38  ;;  %v3473_v3 = vpack.c.bf16 %v2915_v25, %v2915_v25  ;;  %v2193_v9 = vmax.f32 %v2145_v44, 0.0  ;;  %v1991_v38 = vpop.f32.mrf.mxu0 }
 0x1df   :  { %v2922_v62 = vmax.f32 %v2920_v14, %v2921_v13  ;;  %v2146_v36 = vadd.f32 %v8628_v28, %v2086_v60  ;;  %v2147_v63 = vadd.f32 %v8632_v47, %v2087_v48  ;;  %v2088_v22 = vadd.f32 %v1989_v17, %v8716_v52 }
 0x1e0   :  { %v3726_v5 = vsel %vm3712_vm14, %v3657_v57, %v3656_v11  ;;  %v3472_v12 = vpack.c.bf16 %v2908_v50, %v2908_v50  ;;  %v9006_v26 = vunpack.c.l.b16 %v3471_v23  ;;  %v2235_v34 = vmax.f32 %v2192_v33, %v2193_v9 }
 0x1e1   :  { %v3474_v0 = vpack.c.bf16 %v2922_v62, %v2922_v62  ;;  %v9008_v41 = vunpack.c.l.b16 %v3473_v3  ;;  %v2194_v4 = vmax.f32 %v2146_v36, 0.0  ;;  %v2195_v56 = vmax.f32 %v2147_v63, 0.0 }
 0x1e2   :  { %11301 = vst [vmem:[#allocation32_spill] sm:$0xff] %v9006_v26  ;;  %v11303_v15 = vpack.c.bf16 %v8960_v16, %v8960_v16  ;;  %v9017_v7 = vsel %vm3720_vm2, %v8984_v21, %v4737_v35  ;;  %v9019_v52 = vunpack.c.l.b16 %v3472_v12  ;;  %v2363_v11 = vcombine.high %v2235_v34, %v2235_v34 }
 0x1e3   :  { %11302 = vst [vmem:[#allocation33_spill] sm:$0xff] %v9008_v41  ;;  %11305 = vst [vmem:[#allocation35_spill] sm:$0xff] %v9017_v7  ;;  %v9022_v57 = vsel %vm3714_vm15, %v3658_v30, %v3726_v5  ;;  %v2370_v43 = vrot.slane %v2235_v34, %v8648_v42  ;;  %v2236_v18 = vmax.f32 %v2194_v4, %v2195_v56  ;;  %v9028_v16 = vunpack.c.l.b16 %v3474_v0 }
 0x1e4   :  { %v9013_v8 = vunpack.c.l.b16 %v11303_v15  ;;  %11306 = vst [vmem:[#allocation37_spill] sm:$0xff] %v9019_v52  ;;  %v9026_v14 = vadd.f32 %v8628_v28, %v2088_v22  ;;  %v9032_v39 = vsel %vm3712_vm14, %v9006_v26, %v3658_v30  ;;  %v4741_v35 = vsel %vm3712_vm14, %v9019_v52, %v9006_v26 }
 0x1e5   :  { %11307 = vst [vmem:[#allocation38_spill] sm:$0xff] %v9028_v16  ;;  %v2377_v25 = vrot.slane %v2363_v11, %v8648_v42  ;;  %v2378_v44 = vcombine.high %v2370_v43, %v2370_v43  ;;  %v2923_v17 = vsel %vm1737_vm11, %v2370_v43, -inf  ;;  %v4742_v13 = vsel %vm3714_vm15, %v9008_v41, %v4741_v35 }
 0x1e6   :  { %11304 = vst [vmem:[#allocation34_spill] sm:$0xff] %v9013_v8  ;;  %v2380_v33 = vcombine.high %v2236_v18, %v2236_v18  ;;  %v2924_v48 = vrot.slane %v2923_v17, 4  ;;  %v2089_v30 = vadd.f32 %v1991_v38, %v8720_v59  ;;  %v2387_v9 = vrot.slane %v2236_v18, %v8648_v42 }
 0x1e7   :  { %v2379_v60 = vcombine.high %v2377_v25, %v2377_v25  ;;  %v2937_v50 = vsel %vm1737_vm11, %v2377_v25, -inf  ;;  %v2930_v23 = vsel %vm1737_vm11, %v2378_v44, -inf  ;;  %v4743_v5 = vsel %vm3716_vm0, %v9028_v16, %v4742_v13 }
 0x1e8   :  { %v2938_v3 = vrot.slane %v2937_v50, 4  ;;  %v2394_v62 = vrot.slane %v2380_v33, %v8648_v42  ;;  %v2925_v36 = vmax.f32 %v2923_v17, %v2924_v48  ;;  %v2931_v63 = vrot.slane %v2930_v23, 4 }
 0x1e9   :  { %v2944_v22 = vsel %vm1737_vm11, %v2379_v60, -inf  ;;  %v2395_v0 = vcombine.high %v2387_v9, %v2387_v9  ;;  %v2951_v15 = vsel %vm1737_vm11, %v2387_v9, -inf }
 0x1ea   :  { %v2939_v12 = vmax.f32 %v2937_v50, %v2938_v3  ;;  %v2945_v34 = vrot.slane %v2944_v22, 4  ;;  %v2396_v4 = vcombine.high %v2394_v62, %v2394_v62  ;;  %v2926_v56 = vrot.slane %v2925_v36, 2  ;;  %v1995_v3 = vpop.f32.mrf.mxu0 }
 0x1eb   :  { %v2932_v59 = vmax.f32 %v2930_v23, %v2931_v63  ;;  %v2965_v11 = vsel %vm1737_vm11, %v2394_v62, -inf  ;;  %v2952_v38 = vrot.slane %v2951_v15, 4  ;;  %v2958_v35 = vsel %vm1737_vm11, %v2395_v0, -inf }
 0x1ec   :  { %v2940_v43 = vrot.slane %v2939_v12, 2  ;;  %v2946_v18 = vmax.f32 %v2944_v22, %v2945_v34  ;;  %v2927_v25 = vmax.f32 %v2925_v36, %v2926_v56  ;;  %v2959_v17 = vrot.slane %v2958_v35, 4 }
 0x1ed   :  { %v2933_v44 = vrot.slane %v2932_v59, 2  ;;  %v2966_v33 = vrot.slane %v2965_v11, 4  ;;  %v2953_v48 = vmax.f32 %v2951_v15, %v2952_v38  ;;  %v2972_v50 = vsel %vm1737_vm11, %v2396_v4, -inf  ;;  %v1997_v15 = vpop.f32.mrf.mxu0 }
 0x1ee   :  { %v2941_v13 = vmax.f32 %v2939_v12, %v2940_v43  ;;  %v2947_v60 = vrot.slane %v2946_v18, 2  ;;  %v2928_v23 = vrot.slane %v2927_v25, 1  ;;  %v2960_v9 = vmax.f32 %v2958_v35, %v2959_v17 }
 0x1ef   :  { %v2934_v63 = vmax.f32 %v2932_v59, %v2933_v44  ;;  %v2967_v8 = vmax.f32 %v2965_v11, %v2966_v33  ;;  %v2954_v22 = vrot.slane %v2953_v48, 2  ;;  %v2973_v34 = vrot.slane %v2972_v50, 4 }
 0x1f0   :  { %v2942_v62 = vrot.slane %v2941_v13, 1  ;;  %v2948_v7 = vmax.f32 %v2946_v18, %v2947_v60  ;;  %v2929_v24 = vmax.f32 %v2927_v25, %v2928_v23  ;;  %v2961_v36 = vrot.slane %v2960_v9, 2 }
 0x1f1   :  { %v2935_v0 = vrot.slane %v2934_v63, 1  ;;  %v2968_v56 = vrot.slane %v2967_v8, 2  ;;  %v2955_v12 = vmax.f32 %v2953_v48, %v2954_v22  ;;  %v2974_v43 = vmax.f32 %v2972_v50, %v2973_v34  ;;  %v1999_v50 = vpop.f32.mrf.mxu0 }
 0x1f2   :  { %v2943_v21 = vmax.f32 %v2941_v13, %v2942_v62  ;;  %v2949_v16 = vrot.slane %v2948_v7, 1  ;;  %v3475_v4 = vpack.c.bf16 %v2929_v24, %v2929_v24  ;;  %v2962_v41 = vmax.f32 %v2960_v9, %v2961_v36 }
 0x1f3   :  { %v2936_v38 = vmax.f32 %v2934_v63, %v2935_v0  ;;  %v2969_v58 = vmax.f32 %v2967_v8, %v2968_v56  ;;  %v2956_v35 = vrot.slane %v2955_v12, 1  ;;  %v2975_v11 = vrot.slane %v2974_v43, 2 }
 0x1f4   :  { %v2950_v59 = vmax.f32 %v2948_v7, %v2949_v16  ;;  %v2149_v18 = vadd.f32 %v8632_v47, %v2089_v30  ;;  %v9054_v17 = vunpack.c.l.b16 %v3475_v4  ;;  %v2963_v25 = vrot.slane %v2962_v41, 1 }
 0x1f5   :  { %v3476_v44 = vpack.c.bf16 %v2936_v38, %v2936_v38  ;;  %v2970_v33 = vrot.slane %v2969_v58, 1  ;;  %v3477_v60 = vpack.c.bf16 %v2943_v21, %v2943_v21  ;;  %v2957_v13 = vmax.f32 %v2955_v12, %v2956_v35 }
 0x1f6   :  { %11308 = vst [vmem:[#allocation39_spill] sm:$0xff] %v9054_v17  ;;  %v2976_v23 = vmax.f32 %v2974_v43, %v2975_v11  ;;  %v2090_v48 = vadd.f32 %v1995_v3, %v8724_v40  ;;  %v3478_v63 = vpack.c.bf16 %v2950_v59, %v2950_v59  ;;  %v2964_v8 = vmax.f32 %v2962_v41, %v2963_v25 }
 0x1f7   :  { %v9057_v24 = vunpack.c.l.b16 %v3476_v44  ;;  %v2971_v7 = vmax.f32 %v2969_v58, %v2970_v33  ;;  %v4744_v16 = vsel %vm3718_vm1, %v9054_v17, %v4743_v5  ;;  %v2196_v9 = vmax.f32 %v9026_v14, 0.0  ;;  %v2001_v14 = vpop.f32.mrf.mxu0 }
 0x1f8   :  { %v2977_v30 = vrot.slane %v2976_v23, 1  ;;  %v2197_v62 = vmax.f32 %v2149_v18, 0.0  ;;  %v9065_v21 = vsel %vm3714_vm15, %v9006_v26, %v8997_v29  ;;  %v3479_v22 = vpack.c.bf16 %v2957_v13, %v2957_v13 }
 0x1f9   :  { %11309 = vst [vmem:[#allocation40_spill] sm:$0xff] %v9057_v24  ;;  %11310 = vst [vmem:[#allocation48_spill] sm:$0xff] %v9065_v21  ;;  %v3480_v40 = vpack.c.bf16 %v2964_v8, %v2964_v8  ;;  %v3481_v3 = vpack.c.bf16 %v2971_v7, %v2971_v7  ;;  %v9070_v41 = vsel %vm3714_vm15, %v9019_v52, %v9032_v39  ;;  %v9072_v58 = vunpack.c.l.b16 %v3477_v60  ;;  %v2005_v13 = vpop.f32.mrf.mxu0 }
 0x1fa   :  { %v2237_v5 = vmax.f32 %v2196_v9, %v2197_v62  ;;  %v2091_v34 = vadd.f32 %v1997_v15, %v8728_v61  ;;  %v9075_v0 = vunpack.c.l.b16 %v3478_v63  ;;  %v9079_v29 = vsel %vm3720_vm2, %v9057_v24, %v4744_v16 }
 0x1fb   :  { %11311 = vst [vmem:[#allocation42_spill] sm:$0xff] %v9072_v58  ;;  %11313 = vst [vmem:[#allocation43_spill] sm:$0xff] %v9079_v29  ;;  %v2150_v36 = vadd.f32 %v8628_v28, %v2090_v48  ;;  %v2092_v56 = vadd.f32 %v1999_v50, %v8732_v55  ;;  %v2978_v12 = vmax.f32 %v2976_v23, %v2977_v30  ;;  %v9085_v4 = vunpack.c.l.b16 %v3480_v40 }
 0x1fc   :  { %11312 = vst [vmem:[#allocation41_spill] sm:$0xff] %v9075_v0  ;;  %v2397_v43 = vcombine.high %v2237_v5, %v2237_v5  ;;  %v2404_v39 = vrot.slane %v2237_v5, %v8648_v42  ;;  %v2151_v38 = vadd.f32 %v8632_v47, %v2091_v34  ;;  %v9087_v61 = vunpack.c.l.b16 %v3481_v3 }
 0x1fd   :  { %v9089_v15 = vunpack.c.l.b16 %v3479_v22  ;;  %v2093_v59 = vadd.f32 %v2001_v14, %v8736_v53  ;;  %v2152_v55 = vadd.f32 %v8628_v28, %v2092_v56  ;;  %v2198_v25 = vmax.f32 %v2150_v36, 0.0 }
 0x1fe   :  { %11314 = vst [vmem:[#allocation44_spill] sm:$0xff] %v9087_v61  ;;  %v2411_v35 = vrot.slane %v2397_v43, %v8648_v42  ;;  %v2412_v11 = vcombine.high %v2404_v39, %v2404_v39  ;;  %v2979_v18 = vsel %vm1737_vm11, %v2404_v39, -inf  ;;  %v2199_v33 = vmax.f32 %v2151_v38, 0.0 }
 0x1ff   :  { %v2980_v44 = vrot.slane %v2979_v18, 4  ;;  %v2153_v60 = vadd.f32 %v8632_v47, %v2093_v59  ;;  %v3482_v23 = vpack.c.bf16 %v2978_v12, %v2978_v12  ;;  %v2200_v9 = vmax.f32 %v2152_v55, 0.0 }
 0x200   :  { %v2413_v48 = vcombine.high %v2411_v35, %v2411_v35  ;;  %v2986_v50 = vsel %vm1737_vm11, %v2412_v11, -inf  ;;  %v2993_v63 = vsel %vm1737_vm11, %v2411_v35, -inf  ;;  %v2238_v16 = vmax.f32 %v2198_v25, %v2199_v33 }
 0x201   :  { %v2981_v53 = vmax.f32 %v2979_v18, %v2980_v44  ;;  %v2987_v8 = vrot.slane %v2986_v50, 4  ;;  %v2994_v7 = vrot.slane %v2993_v63, 4  ;;  %v2201_v62 = vmax.f32 %v2153_v60, 0.0 }
 0x202   :  { %v3000_v30 = vsel %vm1737_vm11, %v2413_v48, -inf  ;;  %v2094_v22 = vadd.f32 %v2005_v13, %v8740_v6  ;;  %v9100_v14 = vunpack.c.l.b16 %v3482_v23  ;;  %v2414_v36 = vcombine.high %v2238_v16, %v2238_v16 }
 0x203   :  { %v2982_v40 = vrot.slane %v2981_v53, 2  ;;  %v2988_v3 = vmax.f32 %v2986_v50, %v2987_v8  ;;  %v2995_v5 = vmax.f32 %v2993_v63, %v2994_v7  ;;  %v3001_v34 = vrot.slane %v3000_v30, 4  ;;  %v2007_v50 = vpop.f32.mrf.mxu0 }
 0x204   :  { %v2421_v56 = vrot.slane %v2238_v16, %v8648_v42  ;;  %v2239_v12 = vmax.f32 %v2200_v9, %v2201_v62  ;;  %v2428_v35 = vrot.slane %v2414_v36, %v8648_v42  ;;  %v9106_v6 = vadd.f32 %v8628_v28, %v2094_v22 }
 0x205   :  { %v2983_v43 = vmax.f32 %v2981_v53, %v2982_v40  ;;  %v2989_v39 = vrot.slane %v2988_v3, 2  ;;  %v2996_v38 = vrot.slane %v2995_v5, 2  ;;  %v3002_v59 = vmax.f32 %v3000_v30, %v3001_v34 }
 0x206   :  { %v2429_v11 = vcombine.high %v2421_v56, %v2421_v56  ;;  %v3007_v18 = vsel %vm1737_vm11, %v2421_v56, -inf  ;;  %v2430_v60 = vcombine.high %v2428_v35, %v2428_v35  ;;  %v3021_v48 = vsel %vm1737_vm11, %v2428_v35, -inf }
 0x207   :  { %v2984_v55 = vrot.slane %v2983_v43, 1  ;;  %v2990_v44 = vmax.f32 %v2988_v3, %v2989_v39  ;;  %v2997_v25 = vmax.f32 %v2995_v5, %v2996_v38  ;;  %v3003_v33 = vrot.slane %v3002_v59, 2  ;;  %v2009_v38 = vpop.f32.mrf.mxu0 }
 0x208   :  { %v3008_v13 = vrot.slane %v3007_v18, 4  ;;  %v3014_v23 = vsel %vm1737_vm11, %v2429_v11, -inf  ;;  %v3022_v9 = vrot.slane %v3021_v48, 4  ;;  %v3028_v62 = vsel %vm1737_vm11, %v2430_v60, -inf }
 0x209   :  { %v2985_v63 = vmax.f32 %v2983_v43, %v2984_v55  ;;  %v2991_v53 = vrot.slane %v2990_v44, 1  ;;  %v2998_v8 = vrot.slane %v2997_v25, 1  ;;  %v3004_v7 = vmax.f32 %v3002_v59, %v3003_v33 }
 0x20a   :  { %v3009_v16 = vmax.f32 %v3007_v18, %v3008_v13  ;;  %v3015_v30 = vrot.slane %v3014_v23, 4  ;;  %v3023_v56 = vmax.f32 %v3021_v48, %v3022_v9  ;;  %v3029_v39 = vrot.slane %v3028_v62, 4 }
 0x20b   :  { %v2992_v22 = vmax.f32 %v2990_v44, %v2991_v53  ;;  %v2999_v40 = vmax.f32 %v2997_v25, %v2998_v8  ;;  %v3005_v3 = vrot.slane %v3004_v7, 1  ;;  %v3483_v5 = vpack.c.bf16 %v2985_v63, %v2985_v63  ;;  %v2011_v8 = vpop.f32.mrf.mxu0 }
 0x20c   :  { %v3010_v34 = vrot.slane %v3009_v16, 2  ;;  %v3016_v36 = vmax.f32 %v3014_v23, %v3015_v30  ;;  %v2431_v55 = vcombine.high %v2239_v12, %v2239_v12  ;;  %v9116_v59 = vsel %vm3712_vm14, %v9085_v4, %v9089_v15 }
 0x20d   :  { %v9111_v35 = vmax.f32 %v3004_v7, %v3005_v3  ;;  %v3484_v43 = vpack.c.bf16 %v2992_v22, %v2992_v22  ;;  %v3485_v11 = vpack.c.bf16 %v2999_v40, %v2999_v40  ;;  %11315 = vst [vmem:[#allocation46_spill] sm:$0xff] %v9116_v59  ;;  %v9121_v18 = vsel %vm3712_vm14, %v9100_v14, %v9087_v61 }
 0x20e   :  { %11316 = vst [vmem:[#allocation55_spill] sm:$0xff] %v9121_v18  ;;  %v9123_v44 = vmax.f32 %v3009_v16, %v3010_v34  ;;  %v2095_v25 = vadd.f32 %v2007_v50, %v8744_v32  ;;  %v9126_v33 = vunpack.c.l.b16 %v3483_v5  ;;  %v3017_v60 = vrot.slane %v3016_v36, 2 }
 0x20f   :  { %v2438_v13 = vrot.slane %v2239_v12, %v8648_v42  ;;  %v2202_v23 = vmax.f32 %v9106_v6, 0.0  ;;  %v9132_v48 = vunpack.c.l.b16 %v3484_v43  ;;  %v3024_v63 = vrot.slane %v3023_v56, 2 }
 0x210   :  { %11317 = vst [vmem:[#allocation45_spill] sm:$0xff] %v9126_v33  ;;  %v9134_v53 = vmax.f32 %v3028_v62, %v3029_v39  ;;  %v9136_v7 = vunpack.c.l.b16 %v3485_v11  ;;  %v2445_v32 = vrot.slane %v2431_v55, %v8648_v42  ;;  %v2155_v6 = vadd.f32 %v8632_v47, %v2095_v25 }
 0x211   :  { %11318 = vst [vmem:[#allocation49_spill] sm:$0xff] %v9132_v48  ;;  %v2446_v50 = vcombine.high %v2438_v13, %v2438_v13  ;;  %v3035_v16 = vsel %vm1737_vm11, %v2438_v13, -inf  ;;  %v2096_v9 = vadd.f32 %v2009_v38, %v8748_v54  ;;  %v2097_v3 = vadd.f32 %v2011_v8, %v8752_v1 }
 0x212   :  { %11319 = vst [vmem:[#allocation47_spill] sm:$0xff] %v9134_v53  ;;  %11320 = vst [vmem:[#allocation52_spill] sm:$0xff] %v9136_v7  ;;  %v3036_v30 = vrot.slane %v3035_v16, 4  ;;  %v2447_v22 = vcombine.high %v2445_v32, %v2445_v32  ;;  %v3049_v62 = vsel %vm1737_vm11, %v2445_v32, -inf  ;;  %v9146_v5 = vmax.f32 %v3016_v36, %v3017_v60 }
 0x213   :  { %v3042_v40 = vsel %vm1737_vm11, %v2446_v50, -inf  ;;  %v3050_v43 = vrot.slane %v3049_v62, 4  ;;  %v2203_v55 = vmax.f32 %v2155_v6, 0.0  ;;  %v2156_v13 = vadd.f32 %v8628_v28, %v2096_v9 }
 0x214   :  { %v3037_v34 = vmax.f32 %v3035_v16, %v3036_v30  ;;  %v3043_v39 = vrot.slane %v3042_v40, 4  ;;  %v3056_v11 = vsel %vm1737_vm11, %v2447_v22, -inf  ;;  %v2157_v25 = vadd.f32 %v8632_v47, %v2097_v3 }
 0x215   :  { %v3051_v12 = vmax.f32 %v3049_v62, %v3050_v43  ;;  %v3057_v50 = vrot.slane %v3056_v11, 4  ;;  %v9151_v15 = vmax.f32 %v3023_v56, %v3024_v63  ;;  %v2240_v32 = vmax.f32 %v2202_v23, %v2203_v55 }
 0x216   :  { %v3038_v54 = vrot.slane %v3037_v34, 2  ;;  %v3044_v38 = vmax.f32 %v3042_v40, %v3043_v39  ;;  %v2204_v1 = vmax.f32 %v2156_v13, 0.0  ;;  %v2205_v36 = vmax.f32 %v2157_v25, 0.0  ;;  %v2015_v39 = vpop.f32.mrf.mxu0 }
 0x217   :  { %11321 = vst [vmem:[#allocation56_spill] sm:$0xff] %v9151_v15  ;;  %v3052_v16 = vrot.slane %v3051_v12, 2  ;;  %v3058_v30 = vmax.f32 %v3056_v11, %v3057_v50  ;;  %v2448_v6 = vcombine.high %v2240_v32, %v2240_v32  ;;  %v2455_v9 = vrot.slane %v2240_v32, %v8648_v42 }
 0x218   :  { %v3039_v60 = vmax.f32 %v3037_v34, %v3038_v54  ;;  %v3045_v8 = vrot.slane %v3044_v38, 2  ;;  %v2241_v0 = vmax.f32 %v2204_v1, %v2205_v36  ;;  %v2098_v36 = vadd.f32 %v2015_v39, %v8756_v27  ;;  %v2017_v27 = vpop.f32.mrf.mxu0 }
 0x219   :  { %v3053_v40 = vmax.f32 %v3051_v12, %v3052_v16  ;;  %v3059_v62 = vrot.slane %v3058_v30, 2  ;;  %v2462_v23 = vrot.slane %v2448_v6, %v8648_v42  ;;  %v2463_v63 = vcombine.high %v2455_v9, %v2455_v9 }
 0x21a   :  { %v3040_v3 = vrot.slane %v3039_v60, 1  ;;  %v3046_v29 = vmax.f32 %v3044_v38, %v3045_v8  ;;  %v3063_v34 = vsel %vm1737_vm11, %v2455_v9, -inf }
 0x21b   :  { %v3054_v55 = vrot.slane %v3053_v40, 1  ;;  %v3060_v13 = vmax.f32 %v3058_v30, %v3059_v62  ;;  %v2464_v25 = vcombine.high %v2462_v23, %v2462_v23  ;;  %v3064_v54 = vrot.slane %v3063_v34, 4 }
 0x21c   :  { %v3041_v43 = vmax.f32 %v3039_v60, %v3040_v3  ;;  %v3047_v11 = vrot.slane %v3046_v29, 1  ;;  %v3070_v50 = vsel %vm1737_vm11, %v2463_v63, -inf  ;;  %v3077_v38 = vsel %vm1737_vm11, %v2462_v23, -inf }
 0x21d   :  { %v3055_v32 = vmax.f32 %v3053_v40, %v3054_v55  ;;  %v3061_v1 = vrot.slane %v3060_v13, 1  ;;  %v3065_v8 = vmax.f32 %v3063_v34, %v3064_v54  ;;  %v3071_v16 = vrot.slane %v3070_v50, 4 }
 0x21e   :  { %v3048_v12 = vmax.f32 %v3046_v29, %v3047_v11  ;;  %v3078_v6 = vrot.slane %v3077_v38, 4  ;;  %v3084_v9 = vsel %vm1737_vm11, %v2464_v25, -inf  ;;  %v3491_v3 = vpack.c.bf16 %v3041_v43, %v3041_v43 }
 0x21f   :  { %v3062_v60 = vmax.f32 %v3060_v13, %v3061_v1  ;;  %v2465_v30 = vcombine.high %v2241_v0, %v2241_v0  ;;  %v3066_v62 = vrot.slane %v3065_v8, 2  ;;  %v3072_v56 = vmax.f32 %v3070_v50, %v3071_v16  ;;  %v2019_v16 = vpop.f32.mrf.mxu0 }
 0x220   :  { %v3492_v22 = vpack.c.bf16 %v3048_v12, %v3048_v12  ;;  %v3079_v53 = vmax.f32 %v3077_v38, %v3078_v6  ;;  %v3085_v63 = vrot.slane %v3084_v9, 4  ;;  %v3493_v18 = vpack.c.bf16 %v3055_v32, %v3055_v32 }
 0x221   :  { %v3494_v23 = vpack.c.bf16 %v3062_v60, %v3062_v60  ;;  %v2472_v29 = vrot.slane %v2241_v0, %v8648_v42  ;;  %v9164_v40 = vadd.f32 %v8628_v28, %v2098_v36  ;;  %v3067_v34 = vmax.f32 %v3065_v8, %v3066_v62 }
 0x222   :  { %v3073_v39 = vrot.slane %v3072_v56, 2  ;;  %v3080_v11 = vrot.slane %v3079_v53, 2  ;;  %v3086_v55 = vmax.f32 %v3084_v9, %v3085_v63  ;;  %v9166_v13 = vunpack.c.l.b16 %v3492_v22 }
 0x223   :  { %v3947_v43 = vunpack.c.l.b16 %v3491_v3  ;;  %v2479_v25 = vrot.slane %v2465_v30, %v8648_v42  ;;  %v2480_v54 = vcombine.high %v2472_v29, %v2472_v29  ;;  %v3068_v50 = vrot.slane %v3067_v34, 1 }
 0x224   :  { %v3074_v38 = vmax.f32 %v3072_v56, %v3073_v39  ;;  %v3081_v12 = vmax.f32 %v3079_v53, %v3080_v11  ;;  %v3087_v32 = vrot.slane %v3086_v55, 2  ;;  %v9169_v1 = vunpack.c.l.b16 %v3494_v23 }
 0x225   :  { %v2481_v0 = vcombine.high %v2479_v25, %v2479_v25  ;;  %v3091_v36 = vsel %vm1737_vm11, %v2472_v29, -inf  ;;  %v3098_v8 = vsel %vm1737_vm11, %v2480_v54, -inf  ;;  %v3069_v6 = vmax.f32 %v3067_v34, %v3068_v50  ;;  %v2021_v54 = vpop.f32.mrf.mxu0 }
 0x226   :  { %11322 = vst [vmem:[#allocation50_spill] sm:$0xff] %v9169_v1  ;;  %v3075_v9 = vrot.slane %v3074_v38, 1  ;;  %v3082_v22 = vrot.slane %v3081_v12, 1  ;;  %v3088_v60 = vmax.f32 %v3086_v55, %v3087_v32  ;;  %v3092_v3 = vrot.slane %v3091_v36, 4 }
 0x227   :  { %v3099_v62 = vrot.slane %v3098_v8, 4  ;;  %v3105_v30 = vsel %vm1737_vm11, %v2479_v25, -inf  ;;  %v3112_v56 = vsel %vm1737_vm11, %v2481_v0, -inf  ;;  %v3495_v39 = vpack.c.bf16 %v3069_v6, %v3069_v6 }
 0x228   :  { %v3076_v53 = vmax.f32 %v3074_v38, %v3075_v9  ;;  %v3083_v63 = vmax.f32 %v3081_v12, %v3082_v22  ;;  %v3089_v23 = vrot.slane %v3088_v60, 1  ;;  %v3093_v11 = vmax.f32 %v3091_v36, %v3092_v3 }
 0x229   :  { %v3100_v21 = vmax.f32 %v3098_v8, %v3099_v62  ;;  %v3106_v29 = vrot.slane %v3105_v30, 4  ;;  %v3113_v59 = vrot.slane %v3112_v56, 4  ;;  %v9175_v15 = vunpack.c.l.b16 %v3493_v18 }
 0x22a   :  { %v3090_v34 = vmax.f32 %v3088_v60, %v3089_v23  ;;  %v3496_v50 = vpack.c.bf16 %v3076_v53, %v3076_v53  ;;  %v3497_v55 = vpack.c.bf16 %v3083_v63, %v3083_v63  ;;  %v11324_v32 = vpack.c.bf16 %v9111_v35, %v9111_v35 }
 0x22b   :  { %11323 = vst [vmem:[#allocation53_spill] sm:$0xff] %v9175_v15  ;;  %v3094_v0 = vrot.slane %v3093_v11, 2  ;;  %v3101_v38 = vrot.slane %v3100_v21, 2  ;;  %v9182_v12 = vmax.f32 %v3105_v30, %v3106_v29  ;;  %v11326_v36 = vrot.slane %v9146_v5, 1 }
 0x22c   :  { %v9180_v25 = vunpack.c.l.b16 %v11324_v32  ;;  %v9191_v18 = vsel %vm3712_vm14, %v9166_v13, %v3947_v43  ;;  %v9196_v6 = vsel %vm3712_vm14, %v9169_v1, %v9175_v15  ;;  %v9198_v35 = vunpack.c.l.b16 %v3495_v39 }
 0x22d   :  { %v9187_v8 = vmax.f32 %v9146_v5, %v11326_v36  ;;  %11328 = vst [vmem:[#allocation57_spill] sm:$0xff] %v9191_v18  ;;  %11329 = vst [vmem:[#allocation58_spill] sm:$0xff] %v9196_v6  ;;  %v3498_v9 = vpack.c.bf16 %v3090_v34, %v3090_v34  ;;  %v9200_v22 = vunpack.c.l.b16 %v3496_v50  ;;  %v9202_v60 = vunpack.c.l.b16 %v3497_v55  ;;  %v2025_v5 = vpop.f32.mrf.mxu0 }
 0x22e   :  { %11325 = vst [vmem:[#allocation54_spill] sm:$0xff] %v9180_v25  ;;  %11330 = vst [vmem:[#allocation59_spill] sm:$0xff] %v9198_v35  ;;  %v9204_v3 = vmax.f32 %v3112_v56, %v3113_v59  ;;  %v2206_v62 = vmax.f32 %v9164_v40, 0.0  ;;  %v2099_v43 = vadd.f32 %v2017_v27, %v8760_v10  ;;  %v2100_v30 = vadd.f32 %v2019_v16, %v8765_v20 }
 0x22f   :  { %11327 = vst [vmem:[#allocation3_spill] sm:$0xff] %v9187_v8  ;;  %11331 = vst [vmem:[#allocation60_spill] sm:$0xff] %v9200_v22  ;;  %v2101_v53 = vadd.f32 %v2021_v54, %v8769_v51  ;;  %v9210_v63 = vmax.f32 %v3093_v11, %v3094_v0  ;;  %v9212_v23 = vmax.f32 %v3100_v21, %v3101_v38  ;;  %v9226_v27 = vpop.f32.mrf.mxu0  ;;  %v9230_v54 = vunpack.c.l.b16 %v3498_v9 }
 0x230   :  { %11332 = vst [vmem:[#allocation61_spill] sm:$0xff] %v9202_v60  ;;  %11333 = vst [vmem:[#allocation62_spill] sm:$0xff] %v9204_v3  ;;  %v3717_v59 = vsel %vm3716_vm0, %v8921_v31, %v8953_v45  ;;  %v2159_v56 = vadd.f32 %v8632_v47, %v2099_v43  ;;  %v2160_v40 = vadd.f32 %v8628_v28, %v2100_v30  ;;  %v11335_v30 = vld [vmem:[#allocation29_spill] sm:$0xff] }
 0x231   :  { %v2161_v10 = vadd.f32 %v8632_v47, %v2101_v53  ;;  %v3719_v20 = vsel %vm3718_vm1, %v8923_v19, %v3717_v59  ;;  %11334 = vst [vmem:[#allocation63_spill] sm:$0xff] %v9230_v54  ;;  %v3728_v34 = vsel %vm3716_vm0, %v9006_v26, %v9022_v57  ;;  %v2102_v50 = vadd.f32 %v2025_v5, %v8773_v2  ;;  %v11336_v2 = vld [vmem:[#allocation33_spill] sm:$0xff] }
 0x232   :  { %v3721_v21 = vsel %vm3720_vm2, %v8925_v37, %v3719_v20  ;;  %v2207_v16 = vmax.f32 %v2159_v56, 0.0  ;;  %v2208_v45 = vmax.f32 %v2160_v40, 0.0  ;;  %v4470_v55 = vsel %vm3716_vm0, %v8925_v37, %v8965_v49  ;;  %v9251_v49 = vpop.f32.mrf.mxu0  ;;  %v11337_v40 = vld [vmem:[#allocation38_spill] sm:$0xff] }
 0x233   :  { %v2209_v11 = vmax.f32 %v2161_v10, 0.0  ;;  %v3723_v29 = vsel %vm3722_vm3, %v8929_v46, %v3721_v21  ;;  %v3729_v38 = vsel %vm3718_vm1, %v9019_v52, %v3728_v34  ;;  %v4471_v36 = vsel %vm3718_vm1, %v8929_v46, %v4470_v55 }
 0x234   :  { %v2242_v32 = vmax.f32 %v2206_v62, %v2207_v16  ;;  %v9247_v57 = vsel %vm3724_vm4, %v11335_v30, %v3723_v29  ;;  %v3730_v5 = vsel %vm3720_vm2, %v11336_v2, %v3729_v38  ;;  %v9258_v20 = vadd.f32 %v8628_v28, %v2102_v50  ;;  %v9277_v38 = vpop.f32.mrf.mxu0 }
 0x235   :  { %v2243_v0 = vmax.f32 %v2208_v45, %v2209_v11  ;;  %v3731_v10 = vsel %vm3722_vm3, %v11337_v40, %v3730_v5  ;;  %v9262_v21 = vsel %vm3720_vm2, %v11335_v30, %v4471_v36  ;;  %v9267_v16 = vsel %vm3716_vm0, %v11336_v2, %v9070_v41 }
 0x236   :  { %v2482_v62 = vcombine.high %v2242_v32, %v2242_v32  ;;  %v2489_v53 = vrot.slane %v2242_v32, %v8648_v42 }
 0x237   :  { %v2499_v59 = vcombine.high %v2243_v0, %v2243_v0  ;;  %v2506_v56 = vrot.slane %v2243_v0, %v8648_v42  ;;  %v9275_v0 = vsel %vm3724_vm4, %v9054_v17, %v3731_v10 }
 0x238   :  { %v2496_v45 = vrot.slane %v2482_v62, %v8648_v42  ;;  %v2497_v11 = vcombine.high %v2489_v53, %v2489_v53  ;;  %v3119_v29 = vsel %vm1737_vm11, %v2489_v53, -inf }
 0x239   :  { %v2513_v34 = vrot.slane %v2499_v59, %v8648_v42  ;;  %v3120_v55 = vrot.slane %v3119_v29, 4  ;;  %v2514_v32 = vcombine.high %v2506_v56, %v2506_v56  ;;  %v3147_v50 = vsel %vm1737_vm11, %v2506_v56, -inf }
 0x23a   :  { %v2498_v36 = vcombine.high %v2496_v45, %v2496_v45  ;;  %v3126_v41 = vsel %vm1737_vm11, %v2497_v11, -inf  ;;  %v3133_v5 = vsel %vm1737_vm11, %v2496_v45, -inf  ;;  %v3148_v59 = vrot.slane %v3147_v50, 4  ;;  %v9285_v11 = vpop.f32.mrf.mxu0 }
 0x23b   :  { %v2515_v62 = vcombine.high %v2513_v34, %v2513_v34  ;;  %v3121_v51 = vmax.f32 %v3119_v29, %v3120_v55  ;;  %v3127_v53 = vrot.slane %v3126_v41, 4  ;;  %v3134_v9 = vrot.slane %v3133_v5, 4 }
 0x23c   :  { %v3140_v39 = vsel %vm1737_vm11, %v2498_v36, -inf  ;;  %v3154_v56 = vsel %vm1737_vm11, %v2514_v32, -inf  ;;  %v3161_v43 = vsel %vm1737_vm11, %v2513_v34, -inf  ;;  %v3149_v45 = vmax.f32 %v3147_v50, %v3148_v59  ;;  %v2037_v50 = vpop.f32.mrf.mxu0 }
 0x23d   :  { %v3168_v10 = vsel %vm1737_vm11, %v2515_v62, -inf  ;;  %v3122_v3 = vrot.slane %v3121_v51, 2  ;;  %v3128_v6 = vmax.f32 %v3126_v41, %v3127_v53  ;;  %v3135_v30 = vmax.f32 %v3133_v5, %v3134_v9  ;;  %v6901_v41 = vld [vmem:[%s10958_s3 + $0x74] ss:$8 sps:$4 sm:$0xff]  }
 0x23e   :  { %v3141_v18 = vrot.slane %v3140_v39, 4  ;;  %v3155_v2 = vrot.slane %v3154_v56, 4  ;;  %v3162_v29 = vrot.slane %v3161_v43, 4  ;;  %v3169_v55 = vrot.slane %v3168_v10, 4  ;;  %4096 = vmatprep.subr.bf16.mxu1 %v6901_v41 }
 0x23f   :  { %v3123_v52 = vmax.f32 %v3121_v51, %v3122_v3  ;;  %v3129_v46 = vrot.slane %v3128_v6, 2  ;;  %v3136_v26 = vrot.slane %v3135_v30, 2  ;;  %v3150_v37 = vrot.slane %v3149_v45, 2 }
 0x240   :  { %v3142_v36 = vmax.f32 %v3140_v39, %v3141_v18  ;;  %v3156_v32 = vmax.f32 %v3154_v56, %v3155_v2  ;;  %v3163_v19 = vmax.f32 %v3161_v43, %v3162_v29  ;;  %v3170_v34 = vmax.f32 %v3168_v10, %v3169_v55 }
 0x241   :  { %v3124_v9 = vrot.slane %v3123_v52, 1  ;;  %v3130_v5 = vmax.f32 %v3128_v6, %v3129_v46  ;;  %v3137_v62 = vmax.f32 %v3135_v30, %v3136_v26  ;;  %v3151_v59 = vmax.f32 %v3149_v45, %v3150_v37  ;;  %v2039_v26 = vpop.f32.mrf.mxu0 }
 0x242   :  { %v3143_v53 = vrot.slane %v3142_v36, 2  ;;  %v3157_v31 = vrot.slane %v3156_v32, 2  ;;  %v3164_v8 = vrot.slane %v3163_v19, 2  ;;  %v3171_v3 = vrot.slane %v3170_v34, 2 }
 0x243   :  { %v3125_v51 = vmax.f32 %v3123_v52, %v3124_v9  ;;  %v3131_v18 = vrot.slane %v3130_v5, 1  ;;  %v3138_v39 = vrot.slane %v3137_v62, 1  ;;  %v3152_v43 = vrot.slane %v3151_v59, 1 }
 0x244   :  { %v3144_v2 = vmax.f32 %v3142_v36, %v3143_v53  ;;  %v3158_v56 = vmax.f32 %v3156_v32, %v3157_v31  ;;  %v3165_v10 = vmax.f32 %v3163_v19, %v3164_v8  ;;  %v3172_v29 = vmax.f32 %v3170_v34, %v3171_v3  ;;  %v6899_v32 = vld [vmem:[%s10958_s3 + $0x70] ss:$8 sps:$4 sm:$0xff]  }
 0x245   :  { %v3132_v55 = vmax.f32 %v3130_v5, %v3131_v18  ;;  %v3139_v54 = vmax.f32 %v3137_v62, %v3138_v39  ;;  %v3503_v46 = vpack.c.bf16 %v3125_v51, %v3125_v51  ;;  %v3153_v6 = vmax.f32 %v3151_v59, %v3152_v43  ;;  %v2041_v62 = vpop.f32.mrf.mxu0  ;;  %v11340_v51 = vld [vmem:[#allocation31_spill] sm:$0xff] }
 0x246   :  { %v3145_v60 = vrot.slane %v3144_v2, 1  ;;  %v3159_v30 = vrot.slane %v3158_v56, 1  ;;  %v3166_v37 = vrot.slane %v3165_v10, 1  ;;  %v3173_v45 = vrot.slane %v3172_v29, 1 }
 0x247   :  { %v3504_v25 = vpack.c.bf16 %v3132_v55, %v3132_v55  ;;  %v3505_v41 = vpack.c.bf16 %v3139_v54, %v3139_v54  ;;  %v4478_v52 = vsel %vm3718_vm1, %v11337_v40, %v9267_v16  ;;  %v3507_v8 = vpack.c.bf16 %v3153_v6, %v3153_v6  ;;  %v11344_v55 = vld [vmem:[#allocation2_spill] sm:$0xff]  ;;  %v2045_v6 = vpop.f32.mrf.mxu0 }
 0x248   :  { %v3146_v22 = vmax.f32 %v3144_v2, %v3145_v60  ;;  %v3160_v36 = vmax.f32 %v3158_v56, %v3159_v30  ;;  %v3167_v31 = vmax.f32 %v3165_v10, %v3166_v37  ;;  %v3174_v19 = vmax.f32 %v3172_v29, %v3173_v45  ;;  %v11343_v10 = vld [vmem:[#allocation4_spill] sm:$0xff]  ;;  %v11345_v37 = vld [vmem:[#allocation7_spill] sm:$0xff] }
 0x249   :  { %v11338_v34 = vrot.slane %v9212_v23, 1  ;;  %v11339_v60 = vrot.slane %v9182_v12, 2  ;;  %v3775_v16 = vpack.c.b16 %v9275_v0, %v9247_v57  ;;  %v9308_v53 = vunpack.c.l.b16 %v3504_v25 }
 0x24a   :  { %v3506_v5 = vpack.c.bf16 %v3146_v22, %v3146_v22  ;;  %v3948_v59 = vunpack.c.l.b16 %v3503_v46  ;;  %v2210_v3 = vmax.f32 %v9258_v20, 0.0  ;;  %v9314_v18 = vunpack.c.l.b16 %v3505_v41  ;;  %v11346_v41 = vld [vmem:[#allocation6_spill] sm:$0xff] }
 0x24b   :  { %v9299_v9 = vmax.f32 %v9212_v23, %v11338_v34  ;;  %v9304_v54 = vmax.f32 %v9182_v12, %v11339_v60  ;;  %v4473_v23 = vsel %vm3722_vm3, %v11340_v51, %v9262_v21  ;;  %v3508_v39 = vpack.c.bf16 %v3160_v36, %v3160_v36  ;;  %3896 = vmatmul.mubr.bf16.vlgmr.msra.gmra.mxu1 %v3775_v16  ;;  %v11342_v21 = vld [vmem:[#allocation30_spill] sm:$0xff]  ;;  %v11347_v36 = vld [vmem:[#allocation8_spill] sm:$0xff] }
 0x24c   :  { %v3509_v2 = vpack.c.bf16 %v3167_v31, %v3167_v31  ;;  %v4479_v12 = vsel %vm3720_vm2, %v9054_v17, %v4478_v52  ;;  %v9318_v22 = vunpack.c.l.b16 %v3506_v5  ;;  %v3510_v57 = vpack.c.bf16 %v3174_v19, %v3174_v19  ;;  %4097 = vmatpush1.bf16.msra.mxu1 %v6899_v32  ;;  %v11348_v32 = vld [vmem:[#allocation9_spill] sm:$0xff]  ;;  %v11350_v16 = vld [vmem:[#allocation16_spill] sm:$0xff] }
 0x24d   :  { %v9320_v25 = vunpack.c.l.b16 %v3507_v8  ;;  %v4480_v20 = vsel %vm3722_vm3, %v9057_v24, %v4479_v12  ;;  %v11341_v0 = vmov 0   ;;  %v4474_v43 = vsel %vm3724_vm4, %v11342_v21, %v4473_v23 }
 0x24e   :  { %3905 = vmatprep.mubr.bf16.mxu1 %v11341_v0  ;;  %v4481_v56 = vsel %vm3724_vm4, %v9072_v58, %v4480_v20  ;;  %v2103_v29 = vadd.f32 %v9226_v27, %v11343_v10  ;;  %v2104_v46 = vadd.f32 %v9251_v49, %v11344_v55  ;;  %v2105_v45 = vadd.f32 %v9277_v38, %v11345_v37  ;;  %v11349_v27 = vld [vmem:[#allocation10_spill] sm:$0xff] }
 0x24f   :  { %v4524_v30 = vpack.c.b16 %v4481_v56, %v4474_v43  ;;  %v2106_v52 = vadd.f32 %v9285_v11, %v11346_v41  ;;  %v2107_v31 = vadd.f32 %v2037_v50, %v11347_v36  ;;  %v2108_v34 = vadd.f32 %v2039_v26, %v11348_v32 }
 0x250   :  { %v2163_v19 = vadd.f32 %v8632_v47, %v2103_v29  ;;  %v2164_v8 = vadd.f32 %v8628_v28, %v2104_v46  ;;  %v2109_v60 = vadd.f32 %v2041_v62, %v11349_v27  ;;  %v2165_v49 = vadd.f32 %v8632_v47, %v2105_v45 }
 0x251   :  { %4645 = vmatmul.mubr.bf16.vlgmr.msra.gmra.mxu0 %v4524_v30  ;;  %v2166_v5 = vadd.f32 %v8628_v28, %v2106_v52  ;;  %v2167_v38 = vadd.f32 %v8632_v47, %v2107_v31  ;;  %v2110_v23 = vadd.f32 %v2045_v6, %v11350_v16  ;;  %v9348_v11 = vsel %vm3712_vm14, %v9308_v53, %v3948_v59  ;;  %v2047_v6 = vpop.f32.mrf.mxu0 }
 0x252   :  { %11351 = vst [vmem:[#allocation4_spill] sm:$0xff] %v9348_v11  ;;  %v2211_v50 = vmax.f32 %v2163_v19, 0.0  ;;  %v2168_v12 = vadd.f32 %v8628_v28, %v2108_v34  ;;  %v2169_v26 = vadd.f32 %v8632_v47, %v2109_v60  ;;  %4654 = vmatprep.mubr.bf16.mxu0 %v11341_v0  ;;  %v2212_v62 = vmax.f32 %v2164_v8, 0.0  ;;  %v11354_v8 = vld [vmem:[#allocation12_spill] sm:$0xff] }
 0x253   :  { %v2213_v20 = vmax.f32 %v2165_v49, 0.0  ;;  %v2214_v43 = vmax.f32 %v2166_v5, 0.0  ;;  %v2215_v56 = vmax.f32 %v2167_v38, 0.0  ;;  %v9354_v46 = vadd.f32 %v8628_v28, %v2110_v23  ;;  %v6907_v34 = vld [vmem:[%s10958_s3 + $0x54] ss:$8 sps:$4 sm:$0xff]  }
 0x254   :  { %v2244_v10 = vmax.f32 %v2210_v3, %v2211_v50  ;;  %v2216_v29 = vmax.f32 %v2168_v12, 0.0  ;;  %v2217_v55 = vmax.f32 %v2169_v26, 0.0  ;;  %v9356_v59 = vunpack.c.l.b16 %v3508_v39  ;;  %v6902_v3 = vld [vmem:[%s10958_s3 + $0x60] ss:$8 sps:$4 sm:$0xff]   ;;  %v6904_v39 = vld [vmem:[%s10958_s3 + $0x64] ss:$8 sps:$4 sm:$0xff]  }
 0x255   :  { %v9358_v30 = vunpack.c.l.b16 %v3509_v2  ;;  %v2245_v37 = vmax.f32 %v2212_v62, %v2213_v20  ;;  %v9360_v45 = vmax.f32 %v2214_v43, %v2215_v56  ;;  %v9362_v41 = vunpack.c.l.b16 %v3510_v57  ;;  %4098 = vmatprep.subr.bf16.mxu1 %v6904_v39  ;;  %v6905_v12 = vld [vmem:[%s10958_s3 + $0x50] ss:$8 sps:$4 sm:$0xff]   ;;  %v2049_v56 = vpop.f32.mrf.mxu0 }
 0x256   :  { %v2516_v52 = vcombine.high %v2244_v10, %v2244_v10  ;;  %v2523_v36 = vrot.slane %v2244_v10, %v8648_v42  ;;  %v9365_v31 = vmax.f32 %v2216_v29, %v2217_v55  ;;  %v9376_v2 = vsel %vm3712_vm14, %v9318_v22, %v9314_v18  ;;  %4099 = vmatpush1.bf16.msra.mxu1 %v6902_v3  ;;  %v6910_v10 = vld [vmem:[%s10958_s3 + $0x44] ss:$8 sps:$4 sm:$0xff]  }
 0x257   :  { %11352 = vst [vmem:[#allocation2_spill] sm:$0xff] %v9362_v41  ;;  %11353 = vst [vmem:[#allocation7_spill] sm:$0xff] %v9376_v2  ;;  %v2533_v57 = vcombine.high %v2245_v37, %v2245_v37  ;;  %v2540_v19 = vrot.slane %v2245_v37, %v8648_v42  ;;  %v2111_v32 = vadd.f32 %v2047_v6, %v11354_v8  ;;  %4100 = vmatprep.subr.bf16.mxu1 %v6907_v34 }
 0x258   :  { %v2530_v27 = vrot.slane %v2516_v52, %v8648_v42  ;;  %v2531_v60 = vcombine.high %v2523_v36, %v2523_v36  ;;  %v3175_v49 = vsel %vm1737_vm11, %v2523_v36, -inf }
 0x259   :  { %v3176_v38 = vrot.slane %v3175_v49, 4  ;;  %v2547_v16 = vrot.slane %v2533_v57, %v8648_v42  ;;  %v2548_v23 = vcombine.high %v2540_v19, %v2540_v19  ;;  %v3203_v50 = vsel %vm1737_vm11, %v2540_v19, -inf }
 0x25a   :  { %v2532_v26 = vcombine.high %v2530_v27, %v2530_v27  ;;  %v3182_v62 = vsel %vm1737_vm11, %v2531_v60, -inf  ;;  %v3189_v20 = vsel %vm1737_vm11, %v2530_v27, -inf  ;;  %v3204_v43 = vrot.slane %v3203_v50, 4  ;;  %v11355_v27 = vld [vmem:[#allocation13_spill] sm:$0xff]  ;;  %4101 = vmatpush1.bf16.msra.mxu1 %v6905_v12  ;;  %v6908_v60 = vld [vmem:[%s10958_s3 + $0x40] ss:$8 sps:$4 sm:$0xff]  }
 0x25b   :  { %v3177_v29 = vmax.f32 %v3175_v49, %v3176_v38  ;;  %v3183_v55 = vrot.slane %v3182_v62, 4  ;;  %v3190_v6 = vrot.slane %v3189_v20, 4  ;;  %v2549_v37 = vcombine.high %v2547_v16, %v2547_v16  ;;  %4102 = vmatprep.subr.bf16.mxu1 %v6910_v10 }
 0x25c   :  { %v3196_v52 = vsel %vm1737_vm11, %v2532_v26, -inf  ;;  %v3205_v36 = vmax.f32 %v3203_v50, %v3204_v43  ;;  %v3210_v3 = vsel %vm1737_vm11, %v2548_v23, -inf  ;;  %v3217_v39 = vsel %vm1737_vm11, %v2547_v16, -inf  ;;  %v6913_v16 = vld [vmem:[%s10958_s3 + $0x34] ss:$8 sps:$4 sm:$0xff]  }
 0x25d   :  { %v3178_v57 = vrot.slane %v3177_v29, 2  ;;  %v3184_v19 = vmax.f32 %v3182_v62, %v3183_v55  ;;  %v3191_v8 = vmax.f32 %v3189_v20, %v3190_v6  ;;  %v9400_v34 = vadd.f32 %v2049_v56, %v11355_v27 }
 0x25e   :  { %v3206_v49 = vrot.slane %v3205_v36, 2  ;;  %v3211_v38 = vrot.slane %v3210_v3, 4  ;;  %v3218_v5 = vrot.slane %v3217_v39, 4  ;;  %v3224_v50 = vsel %vm1737_vm11, %v2549_v37, -inf  ;;  %4103 = vmatpush1.bf16.msra.mxu1 %v6908_v60 }
 0x25f   :  { %v9409_v23 = vmax.f32 %v3177_v29, %v3178_v57  ;;  %v3197_v26 = vrot.slane %v3196_v52, 4  ;;  %v2550_v12 = vcombine.high %v9360_v45, %v9360_v45  ;;  %v2557_v62 = vrot.slane %v9360_v45, %v8648_v42  ;;  %v6911_v29 = vld [vmem:[%s10958_s3 + $0x30] ss:$8 sps:$4 sm:$0xff]   ;;  %4104 = vmatprep.subr.bf16.mxu1 %v6913_v16 }
 0x260   :  { %v3207_v20 = vmax.f32 %v3205_v36, %v3206_v49  ;;  %v3212_v43 = vmax.f32 %v3210_v3, %v3211_v38  ;;  %v3219_v56 = vmax.f32 %v3217_v39, %v3218_v5  ;;  %v3225_v55 = vrot.slane %v3224_v50, 4  ;;  %v6916_v5 = vld [vmem:[%s10958_s3 + $0x24] ss:$8 sps:$4 sm:$0xff]  }
 0x261   :  { %v3185_v6 = vrot.slane %v3184_v19, 2  ;;  %v3192_v37 = vrot.slane %v3191_v8, 2  ;;  %v2567_v10 = vcombine.high %v9365_v31, %v9365_v31  ;;  %v9418_v27 = vadd.f32 %v8632_v47, %v2111_v32 }
 0x262   :  { %v3208_v57 = vrot.slane %v3207_v20, 1  ;;  %v3213_v58 = vrot.slane %v3212_v43, 2  ;;  %v3220_v45 = vrot.slane %v3219_v56, 2  ;;  %v3226_v36 = vmax.f32 %v3224_v50, %v3225_v55  ;;  %4105 = vmatpush1.bf16.msra.mxu1 %v6911_v29 }
 0x263   :  { %v9426_v3 = vmax.f32 %v3196_v52, %v3197_v26  ;;  %v2564_v39 = vrot.slane %v2550_v12, %v8648_v42  ;;  %v2565_v32 = vcombine.high %v2557_v62, %v2557_v62  ;;  %v3231_v60 = vsel %vm1737_vm11, %v2557_v62, -inf  ;;  %v6914_v52 = vld [vmem:[%s10958_s3 + $0x20] ss:$8 sps:$4 sm:$0xff]   ;;  %4106 = vmatprep.subr.bf16.mxu1 %v6916_v5  ;;  %v6917_v5 = vld [vmem:[%s10958_s3 + $0x10] ss:$8 sps:$4 sm:$0xff]  }
 0x264   :  { %v3214_v38 = vmax.f32 %v3212_v43, %v3213_v58  ;;  %v3221_v21 = vmax.f32 %v3219_v56, %v3220_v45  ;;  %v3227_v2 = vrot.slane %v3226_v36, 2  ;;  %v9431_v24 = vmax.f32 %v3184_v19, %v3185_v6  ;;  %v6919_v58 = vld [vmem:[%s10958_s3 + $0x14] ss:$8 sps:$4 sm:$0xff]  }
 0x265   :  { %11356 = vst [vmem:[#allocation6_spill] sm:$0xff] %v9426_v3  ;;  %v2566_v50 = vcombine.high %v2564_v39, %v2564_v39  ;;  %v3232_v16 = vrot.slane %v3231_v60, 4  ;;  %v3238_v55 = vsel %vm1737_vm11, %v2565_v32, -inf  ;;  %v3209_v26 = vmax.f32 %v3207_v20, %v3208_v57 }
 0x266   :  { %v3215_v12 = vrot.slane %v3214_v38, 1  ;;  %v3222_v17 = vrot.slane %v3221_v21, 1  ;;  %v3228_v62 = vmax.f32 %v3226_v36, %v3227_v2  ;;  %v3239_v43 = vrot.slane %v3238_v55, 4  ;;  %4107 = vmatpush1.bf16.msra.mxu1 %v6914_v52 }
 0x267   :  { %v3233_v19 = vmax.f32 %v3231_v60, %v3232_v16  ;;  %v3245_v56 = vsel %vm1737_vm11, %v2564_v39, -inf  ;;  %v3252_v6 = vsel %vm1737_vm11, %v2566_v50, -inf  ;;  %v9442_v29 = vmax.f32 %v3191_v8, %v3192_v37  ;;  %4108 = vmatprep.subr.bf16.mxu1 %v6919_v58  ;;  %v6922_v37 = vld [vmem:[%s10958_s3 + $0x4] ss:$8 sps:$4 sm:$0xff]  }
 0x268   :  { %v3216_v32 = vmax.f32 %v3214_v38, %v3215_v12  ;;  %v3229_v20 = vrot.slane %v3228_v62, 1  ;;  %v3240_v49 = vmax.f32 %v3238_v55, %v3239_v43  ;;  %v3246_v2 = vrot.slane %v3245_v56, 4 }
 0x269   :  { %v3234_v57 = vrot.slane %v3233_v19, 2  ;;  %v3253_v36 = vrot.slane %v3252_v6, 4  ;;  %v3223_v60 = vmax.f32 %v3221_v21, %v3222_v17  ;;  %v3515_v39 = vpack.c.bf16 %v3209_v26, %v3209_v26 }
 0x26a   :  { %v3230_v16 = vmax.f32 %v3228_v62, %v3229_v20  ;;  %v2574_v8 = vrot.slane %v9365_v31, %v8648_v42  ;;  %v3241_v50 = vrot.slane %v3240_v49, 2  ;;  %v3247_v55 = vmax.f32 %v3245_v56, %v3246_v2  ;;  %4109 = vmatpush1.bf16.msra.mxu1 %v6917_v5  ;;  %v6920_v31 = vld [vmem:[%s10958_s3] ss:$8 sps:$4 sm:$0xff]  }
 0x26b   :  { %v3235_v38 = vmax.f32 %v3233_v19, %v3234_v57  ;;  %v3254_v12 = vmax.f32 %v3252_v6, %v3253_v36  ;;  %v3187_v52 = vrot.slane %v9431_v24, 1  ;;  %v3516_v43 = vpack.c.bf16 %v3216_v32, %v3216_v32  ;;  %4110 = vmatprep.subr.bf16.mxu1 %v6922_v37  ;;  %v6925_v6 = vld [vmem:[%s10958_s3 + $0x174] ss:$8 sps:$4 sm:$0xff]  }
 0x26c   :  { %v3518_v45 = vpack.c.bf16 %v3230_v16, %v3230_v16  ;;  %v2581_v17 = vrot.slane %v2567_v10, %v8648_v42  ;;  %v3242_v26 = vmax.f32 %v3240_v49, %v3241_v50  ;;  %v3248_v62 = vrot.slane %v3247_v55, 2 }
 0x26d   :  { %v3236_v21 = vrot.slane %v3235_v38, 1  ;;  %v3255_v20 = vrot.slane %v3254_v12, 2  ;;  %v3517_v58 = vpack.c.bf16 %v3223_v60, %v3223_v60  ;;  %v3949_v19 = vunpack.c.l.b16 %v3515_v39 }
 0x26e   :  { %v2582_v57 = vcombine.high %v2574_v8, %v2574_v8  ;;  %v2583_v56 = vcombine.high %v2581_v17, %v2581_v17  ;;  %v3243_v10 = vrot.slane %v3242_v26, 1  ;;  %v3249_v2 = vmax.f32 %v3247_v55, %v3248_v62  ;;  %4111 = vmatpush1.bf16.msra.mxu1 %v6920_v31 }
 0x26f   :  { %v3237_v32 = vmax.f32 %v3235_v38, %v3236_v21  ;;  %v3256_v49 = vmax.f32 %v3254_v12, %v3255_v20  ;;  %v9461_v36 = vunpack.c.l.b16 %v3516_v43  ;;  %v3259_v5 = vsel %vm1737_vm11, %v2574_v8, -inf  ;;  %4346 = vmatprep.subr.bf16.mxu1 %v6925_v6 }
 0x270   :  { %v3266_v16 = vsel %vm1737_vm11, %v2582_v57, -inf  ;;  %v3273_v60 = vsel %vm1737_vm11, %v2581_v17, -inf  ;;  %v9466_v39 = vunpack.c.l.b16 %v3518_v45  ;;  %v3244_v50 = vmax.f32 %v3242_v26, %v3243_v10 }
 0x271   :  { %v3250_v37 = vrot.slane %v3249_v2, 1  ;;  %v3257_v3 = vrot.slane %v3256_v49, 1  ;;  %v3260_v51 = vrot.slane %v3259_v5, 4  ;;  %v3267_v11 = vrot.slane %v3266_v16, 4 }
 0x272   :  { %v3274_v38 = vrot.slane %v3273_v60, 4  ;;  %v3280_v55 = vsel %vm1737_vm11, %v2583_v56, -inf  ;;  %v3519_v21 = vpack.c.bf16 %v3237_v32, %v3237_v32  ;;  %v3520_v8 = vpack.c.bf16 %v3244_v50, %v3244_v50 }
 0x273   :  { %v3251_v12 = vmax.f32 %v3249_v2, %v3250_v37  ;;  %v3258_v43 = vmax.f32 %v3256_v49, %v3257_v3  ;;  %v3261_v62 = vmax.f32 %v3259_v5, %v3260_v51  ;;  %v3268_v20 = vmax.f32 %v3266_v16, %v3267_v11  ;;  %v2051_v2 = vpop.f32.mrf.mxu0 }
 0x274   :  { %v3275_v57 = vmax.f32 %v3273_v60, %v3274_v38  ;;  %v3281_v17 = vrot.slane %v3280_v55, 4  ;;  %v9469_v45 = vunpack.c.l.b16 %v3517_v58  ;;  %v2219_v31 = vmax.f32 %v9418_v27, 0.0  ;;  %v11363_v60 = vld [vmem:[#allocation14_spill] sm:$0xff] }
 0x275   :  { %v3521_v26 = vpack.c.bf16 %v3251_v12, %v3251_v12  ;;  %v3522_v10 = vpack.c.bf16 %v3258_v43, %v3258_v43  ;;  %v9473_v40 = vmax.f32 %v9431_v24, %v3187_v52  ;;  %v3262_v41 = vrot.slane %v3261_v62, 2 }
 0x276   :  { %v3269_v56 = vrot.slane %v3268_v20, 2  ;;  %v3276_v6 = vrot.slane %v3275_v57, 2  ;;  %v9477_v3 = vsel %vm3712_vm14, %v9461_v36, %v3949_v19  ;;  %v9482_v51 = vsel %vm3712_vm14, %v9466_v39, %v9469_v45 }
 0x277   :  { %11357 = vst [vmem:[#allocation8_spill] sm:$0xff] %v9477_v3  ;;  %11358 = vst [vmem:[#allocation9_spill] sm:$0xff] %v9482_v51  ;;  %v9484_v11 = vunpack.c.l.b16 %v3519_v21  ;;  %v11359_v27 = vmax.f32 %v9354_v46, 0.0  ;;  %v9488_v24 = vunpack.c.l.b16 %v3520_v8  ;;  %v9490_v52 = vunpack.c.l.b16 %v3521_v26 }
 0x278   :  { %v9492_v32 = vmax.f32 %v3280_v55, %v3281_v17  ;;  %v2172_v19 = vadd.f32 %v8628_v28, %v9400_v34  ;;  %v9496_v49 = vunpack.c.l.b16 %v3522_v10  ;;  %v2113_v50 = vadd.f32 %v2051_v2, %v11363_v60 }
 0x279   :  { %v2248_v58 = vmax.f32 %v11359_v27, %v2219_v31  ;;  %11360 = vst [vmem:[#allocation10_spill] sm:$0xff] %v9490_v52  ;;  %v9500_v37 = vmax.f32 %v3261_v62, %v3262_v41  ;;  %v9502_v46 = vmax.f32 %v3268_v20, %v3269_v56  ;;  %v9504_v38 = vmax.f32 %v3275_v57, %v3276_v6 }
 0x27a   :  { %11361 = vst [vmem:[#allocation16_spill] sm:$0xff] %v9492_v32  ;;  %11362 = vst [vmem:[#allocation12_spill] sm:$0xff] %v9496_v49  ;;  %v11364_v12 = vrot.slane %v9123_v44, 1  ;;  %v2173_v8 = vadd.f32 %v8632_v47, %v2113_v50  ;;  %v2220_v26 = vmax.f32 %v2172_v19, 0.0  ;;  %v11365_v41 = vrot.slane %v9210_v63, 1 }
 0x27b   :  { %v2584_v5 = vcombine.high %v2248_v58, %v2248_v58  ;;  %v2591_v16 = vrot.slane %v2248_v58, %v8648_v42 }
 0x27c   :  { %v3013_v55 = vmax.f32 %v9123_v44, %v11364_v12  ;;  %v9515_v62 = vmax.f32 %v9210_v63, %v11365_v41  ;;  %v2221_v31 = vmax.f32 %v2173_v8, 0.0  ;;  %v3733_v63 = vsel %vm3712_vm14, %v9087_v61, %v9085_v4 }
 0x27d   :  { %v2598_v43 = vrot.slane %v2584_v5, %v8648_v42  ;;  %v2599_v34 = vcombine.high %v2591_v16, %v2591_v16  ;;  %v3287_v21 = vsel %vm1737_vm11, %v2591_v16, -inf }
 0x27e   :  { %v3288_v17 = vrot.slane %v3287_v21, 4  ;;  %v3487_v20 = vpack.c.bf16 %v3013_v55, %v3013_v55  ;;  %v2249_v5 = vmax.f32 %v2220_v26, %v2221_v31 }
 0x27f   :  { %v2600_v57 = vcombine.high %v2598_v43, %v2598_v43  ;;  %v3294_v10 = vsel %vm1737_vm11, %v2599_v34, -inf  ;;  %v3301_v44 = vsel %vm1737_vm11, %v2598_v43, -inf }
 0x280   :  { %v3289_v6 = vmax.f32 %v3287_v21, %v3288_v17  ;;  %v3295_v2 = vrot.slane %v3294_v10, 4  ;;  %v3302_v27 = vrot.slane %v3301_v44, 4  ;;  %v2601_v55 = vcombine.high %v2249_v5, %v2249_v5 }
 0x281   :  { %v3308_v19 = vsel %vm1737_vm11, %v2600_v57, -inf  ;;  %v2608_v43 = vrot.slane %v2249_v5, %v8648_v42  ;;  %v9528_v21 = vunpack.c.l.b16 %v3487_v20 }
 0x282   :  { %v3290_v16 = vrot.slane %v3289_v6, 2  ;;  %v3296_v60 = vmax.f32 %v3294_v10, %v3295_v2  ;;  %v3303_v50 = vmax.f32 %v3301_v44, %v3302_v27  ;;  %v3309_v12 = vrot.slane %v3308_v19, 4 }
 0x283   :  { %11366 = vst [vmem:[#allocation13_spill] sm:$0xff] %v9528_v21  ;;  %v2615_v57 = vrot.slane %v2601_v55, %v8648_v42  ;;  %v2616_v31 = vcombine.high %v2608_v43, %v2608_v43  ;;  %v3315_v4 = vsel %vm1737_vm11, %v2608_v43, -inf  ;;  %v3734_v10 = vsel %vm3714_vm15, %v9100_v14, %v3733_v63 }
 0x284   :  { %v3291_v8 = vmax.f32 %v3289_v6, %v3290_v16  ;;  %v3297_v17 = vrot.slane %v3296_v60, 2  ;;  %v3304_v41 = vrot.slane %v3303_v50, 2  ;;  %v3310_v26 = vmax.f32 %v3308_v19, %v3309_v12  ;;  %v2055_v16 = vpop.f32.mrf.mxu0 }
 0x285   :  { %v2617_v56 = vcombine.high %v2615_v57, %v2615_v57  ;;  %v3316_v58 = vrot.slane %v3315_v4, 4  ;;  %v3322_v20 = vsel %vm1737_vm11, %v2616_v31, -inf  ;;  %v3329_v6 = vsel %vm1737_vm11, %v2615_v57, -inf }
 0x286   :  { %v3292_v44 = vrot.slane %v3291_v8, 1  ;;  %v3298_v2 = vmax.f32 %v3296_v60, %v3297_v17  ;;  %v3305_v27 = vmax.f32 %v3303_v50, %v3304_v41  ;;  %v3311_v5 = vrot.slane %v3310_v26, 2  ;;  %v9539_v49 = vpop.f32.mrf.mxu0 }
 0x287   :  { %v3735_v43 = vsel %vm3716_vm0, %v9126_v33, %v3734_v10  ;;  %v3317_v34 = vmax.f32 %v3315_v4, %v3316_v58  ;;  %v3323_v32 = vrot.slane %v3322_v20, 4  ;;  %v3330_v63 = vrot.slane %v3329_v6, 4 }
 0x288   :  { %v3299_v19 = vrot.slane %v3298_v2, 1  ;;  %v3306_v12 = vrot.slane %v3305_v27, 1  ;;  %v3312_v55 = vmax.f32 %v3310_v26, %v3311_v5  ;;  %v3336_v60 = vsel %vm1737_vm11, %v2617_v56, -inf }
 0x289   :  { %v3293_v50 = vmax.f32 %v3291_v8, %v3292_v44  ;;  %v3318_v3 = vrot.slane %v3317_v34, 2  ;;  %v3324_v31 = vmax.f32 %v3322_v20, %v3323_v32  ;;  %v3331_v61 = vmax.f32 %v3329_v6, %v3330_v63 }
 0x28a   :  { %v3300_v17 = vmax.f32 %v3298_v2, %v3299_v19  ;;  %v3307_v41 = vmax.f32 %v3305_v27, %v3306_v12  ;;  %v3313_v51 = vrot.slane %v3312_v55, 1  ;;  %v3337_v57 = vrot.slane %v3336_v60, 4  ;;  %v2059_v12 = vpop.f32.mrf.mxu0 }
 0x28b   :  { %v3740_v58 = vsel %vm3712_vm14, %v9175_v15, %v9166_v13  ;;  %v3319_v4 = vmax.f32 %v3317_v34, %v3318_v3  ;;  %v3325_v10 = vrot.slane %v3324_v31, 2  ;;  %v3332_v56 = vrot.slane %v3331_v61, 2 }
 0x28c   :  { %v3314_v52 = vmax.f32 %v3312_v55, %v3313_v51  ;;  %v3528_v26 = vpack.c.bf16 %v3300_v17, %v3300_v17  ;;  %v3529_v5 = vpack.c.bf16 %v3307_v41, %v3307_v41  ;;  %v3338_v8 = vmax.f32 %v3336_v60, %v3337_v57  ;;  %v11368_v41 = vld [vmem:[#allocation11_spill] sm:$0xff] }
 0x28d   :  { %v3527_v44 = vpack.c.bf16 %v3293_v50, %v3293_v50  ;;  %v3736_v32 = vsel %vm3718_vm1, %v9132_v48, %v3735_v43  ;;  %v3320_v20 = vrot.slane %v3319_v4, 1  ;;  %v3326_v6 = vmax.f32 %v3324_v31, %v3325_v10  ;;  %v2061_v10 = vpop.f32.mrf.mxu0 }
 0x28e   :  { %v3530_v2 = vpack.c.bf16 %v3314_v52, %v3314_v52  ;;  %v9544_v27 = vunpack.c.l.b16 %v3528_v26  ;;  %v3333_v51 = vmax.f32 %v3331_v61, %v3332_v56  ;;  %v3339_v19 = vrot.slane %v3338_v8, 2  ;;  %v11378_v56 = vld [vmem:[#allocation3_spill] sm:$0xff] }
 0x28f   :  { %v9548_v55 = vunpack.c.l.b16 %v3529_v5  ;;  %v3737_v13 = vsel %vm3720_vm2, %v9136_v7, %v3736_v32  ;;  %v3741_v3 = vsel %vm3714_vm15, %v9169_v1, %v3740_v58  ;;  %v9556_v52 = vmax.f32 %v3319_v4, %v3320_v20  ;;  %v11369_v58 = vld [vmem:[#allocation54_spill] sm:$0xff] }
 0x290   :  { %v9550_v63 = vunpack.c.l.b16 %v3530_v2  ;;  %v3327_v34 = vrot.slane %v3326_v6, 1  ;;  %v3334_v60 = vrot.slane %v3333_v51, 1  ;;  %v3340_v43 = vmax.f32 %v3338_v8, %v3339_v19  ;;  %v11372_v2 = vld [vmem:[#allocation60_spill] sm:$0xff] }
 0x291   :  { %v3950_v50 = vunpack.c.l.b16 %v3527_v44  ;;  %v3742_v17 = vsel %vm3716_vm0, %v9198_v35, %v3741_v3  ;;  %v2114_v31 = vadd.f32 %v2055_v16, %v11368_v41  ;;  %v3738_v4 = vsel %vm3722_vm3, %v11369_v58, %v3737_v13  ;;  %v11373_v16 = vld [vmem:[#allocation56_spill] sm:$0xff] }
 0x292   :  { %v9561_v61 = vsel %vm3712_vm14, %v9550_v63, %v9548_v55  ;;  %v9566_v57 = vmax.f32 %v3326_v6, %v3327_v34  ;;  %v9568_v26 = vmax.f32 %v3333_v51, %v3334_v60  ;;  %v3341_v5 = vrot.slane %v3340_v43, 1  ;;  %v11376_v34 = vld [vmem:[#allocation61_spill] sm:$0xff] }
 0x293   :  { %11367 = vst [vmem:[#allocation14_spill] sm:$0xff] %v9561_v61  ;;  %v11370_v8 = vpack.c.bf16 %v9515_v62, %v9515_v62  ;;  %v3743_v32 = vsel %vm3718_vm1, %v11372_v2, %v3742_v17  ;;  %v3026_v20 = vrot.slane %v11373_v16, 1  ;;  %v11374_v6 = vrot.slane %v9502_v46, 1 }
 0x294   :  { %v9588_v19 = vsel %vm3712_vm14, %v9544_v27, %v3950_v50  ;;  %v3531_v13 = vpack.c.bf16 %v9556_v52, %v9556_v52  ;;  %v2174_v62 = vadd.f32 %v8628_v28, %v2114_v31  ;;  %v3739_v3 = vsel %vm3724_vm4, %v9528_v21, %v3738_v4  ;;  %v11377_v52 = vld [vmem:[#allocation63_spill] sm:$0xff] }
 0x295   :  { %v9576_v44 = vunpack.c.l.b16 %v11370_v8  ;;  %v9584_v51 = vmax.f32 %v9502_v46, %v11374_v6  ;;  %11375 = vst [vmem:[#allocation56_spill] sm:$0xff] %v9588_v19  ;;  %v3744_v60 = vsel %vm3720_vm2, %v11376_v34, %v3743_v32  ;;  %v3027_v17 = vmax.f32 %v11373_v16, %v3026_v20  ;;  %v2065_v6 = vpop.f32.mrf.mxu0 }
 0x296   :  { %v3110_v46 = vrot.slane %v9304_v54, 1  ;;  %v3342_v41 = vmax.f32 %v3340_v43, %v3341_v5  ;;  %v3532_v50 = vpack.c.bf16 %v9566_v57, %v9566_v57  ;;  %v3533_v8 = vpack.c.bf16 %v9568_v26, %v9568_v26 }
 0x297   :  { %11371 = vst [vmem:[#allocation11_spill] sm:$0xff] %v9576_v44  ;;  %v3745_v31 = vsel %vm3722_vm3, %v11377_v52, %v3744_v60  ;;  %v3488_v16 = vpack.c.bf16 %v11378_v56, %v11378_v56  ;;  %v3489_v20 = vpack.c.bf16 %v3027_v17, %v3027_v17  ;;  %v2222_v5 = vmax.f32 %v2174_v62, 0.0 }
 0x298   :  { %v3746_v4 = vsel %vm3724_vm4, %v9576_v44, %v3745_v31  ;;  %v3111_v32 = vmax.f32 %v9304_v54, %v3110_v46  ;;  %v3500_v57 = vpack.c.bf16 %v9299_v9, %v9299_v9  ;;  %v4482_v26 = vsel %vm3712_vm14, %v9126_v33, %v9100_v14  ;;  %v2067_v46 = vpop.f32.mrf.mxu0 }
 0x299   :  { %v3776_v43 = vpack.c.b16 %v3746_v4, %v3739_v3  ;;  %v9615_v61 = vunpack.c.l.b16 %v3488_v16  ;;  %v9617_v19 = vunpack.c.l.b16 %v3489_v20  ;;  %v4483_v54 = vsel %vm3714_vm15, %v9132_v48, %v4482_v26  ;;  %v11382_v3 = vld [vmem:[#allocation15_spill] sm:$0xff]  ;;  %v11384_v16 = vld [vmem:[#allocation17_spill] sm:$0xff]  ;;  %v11385_v26 = vld [vmem:[#allocation18_spill] sm:$0xff] }
 0x29a   :  { %v3501_v60 = vpack.c.bf16 %v3111_v32, %v3111_v32  ;;  %v9621_v56 = vunpack.c.l.b16 %v3500_v57  ;;  %v4484_v62 = vsel %vm3716_vm0, %v9136_v7, %v4483_v54  ;;  %v4489_v9 = vsel %vm3712_vm14, %v9198_v35, %v9169_v1 }
 0x29b   :  { %11379 = vst [vmem:[#allocation3_spill] sm:$0xff] %v9615_v61  ;;  %11380 = vst [vmem:[#allocation64_spill] sm:$0xff] %v9617_v19  ;;  %3906 = vmatmul.mubr.bf16.gmra.mxu1 %v3776_v43  ;;  %v2115_v17 = vadd.f32 %v9539_v49, %v11382_v3  ;;  %v4485_v4 = vsel %vm3718_vm1, %v11369_v58, %v4484_v62  ;;  %v4490_v32 = vsel %vm3714_vm15, %v11372_v2, %v4489_v9  ;;  %v11386_v9 = vld [vmem:[#allocation23_spill] sm:$0xff] }
 0x29c   :  { %11381 = vst [vmem:[#allocation65_spill] sm:$0xff] %v9621_v56  ;;  %v9630_v31 = vunpack.c.l.b16 %v3501_v60  ;;  %v2116_v20 = vadd.f32 %v2059_v12, %v11384_v16  ;;  %3915 = vmatprep.mubr.bf16.mxu1 %v11341_v0  ;;  %v4486_v43 = vsel %vm3720_vm2, %v9528_v21, %v4485_v4  ;;  %v4491_v57 = vsel %vm3716_vm0, %v11376_v34, %v4490_v32 }
 0x29d   :  { %v2175_v49 = vadd.f32 %v8632_v47, %v2115_v17  ;;  %v2117_v60 = vadd.f32 %v2061_v10, %v11385_v26  ;;  %v4487_v54 = vsel %vm3722_vm3, %v9615_v61, %v4486_v43  ;;  %v4492_v62 = vsel %vm3718_vm1, %v11377_v52, %v4491_v57  ;;  %v2069_v17 = vpop.f32.mrf.mxu0  ;;  %v11387_v26 = vld [vmem:[#allocation19_spill] sm:$0xff] }
 0x29e   :  { %11383 = vst [vmem:[#allocation15_spill] sm:$0xff] %v9630_v31  ;;  %v2176_v12 = vadd.f32 %v8628_v28, %v2116_v20  ;;  %v2118_v3 = vadd.f32 %v2065_v6, %v11386_v9  ;;  %v3534_v16 = vpack.c.bf16 %v3342_v41, %v3342_v41  ;;  %v4493_v4 = vsel %vm3720_vm2, %v9576_v44, %v4492_v62 }
 0x29f   :  { %v2223_v21 = vmax.f32 %v2175_v49, 0.0  ;;  %v2177_v32 = vadd.f32 %v8632_v47, %v2117_v60  ;;  %v4488_v10 = vsel %vm3724_vm4, %v9617_v19, %v4487_v54  ;;  %v4494_v43 = vsel %vm3722_vm3, %v9621_v56, %v4493_v4 }
 0x2a0   :  { %v2178_v57 = vadd.f32 %v8628_v28, %v2118_v3  ;;  %v2119_v20 = vadd.f32 %v2067_v46, %v11387_v26  ;;  %v4495_v41 = vsel %vm3724_vm4, %v9630_v31, %v4494_v43  ;;  %v2224_v9 = vmax.f32 %v2176_v12, 0.0  ;;  %v2071_v46 = vpop.f32.mrf.mxu0  ;;  %v11388_v12 = vld [vmem:[#allocation21_spill] sm:$0xff] }
 0x2a1   :  { %v2250_v6 = vmax.f32 %v2222_v5, %v2223_v21  ;;  %v2225_v62 = vmax.f32 %v2177_v32, 0.0  ;;  %v9661_v49 = vunpack.c.l.b16 %v3531_v13  ;;  %v9663_v60 = vunpack.c.l.b16 %v3532_v50 }
 0x2a2   :  { %v4525_v61 = vpack.c.b16 %v4495_v41, %v4488_v10  ;;  %v2179_v54 = vadd.f32 %v8632_v47, %v2119_v20  ;;  %v9666_v19 = vunpack.c.l.b16 %v3533_v8  ;;  %v9669_v26 = vunpack.c.l.b16 %v3534_v16 }
 0x2a3   :  { %v2618_v4 = vcombine.high %v2250_v6, %v2250_v6  ;;  %v2625_v3 = vrot.slane %v2250_v6, %v8648_v42  ;;  %v2251_v56 = vmax.f32 %v2224_v9, %v2225_v62  ;;  %v2226_v21 = vmax.f32 %v2178_v57, 0.0  ;;  %v11389_v6 = vld [vmem:[#allocation22_spill] sm:$0xff] }
 0x2a4   :  { %4655 = vmatmul.mubr.bf16.gmra.mxu0 %v4525_v61  ;;  %v2227_v5 = vmax.f32 %v2179_v54, 0.0  ;;  %v2120_v13 = vadd.f32 %v2069_v17, %v11388_v12  ;;  %v2121_v16 = vadd.f32 %v2071_v46, %v11389_v6  ;;  %v11391_v34 = vrot.slane %v9500_v37, 1 }
 0x2a5   :  { %v2632_v50 = vrot.slane %v2618_v4, %v8648_v42  ;;  %v2633_v32 = vcombine.high %v2625_v3, %v2625_v3  ;;  %v3343_v10 = vsel %vm1737_vm11, %v2625_v3, -inf  ;;  %v2635_v43 = vcombine.high %v2251_v56, %v2251_v56  ;;  %4664 = vmatprep.mubr.bf16.mxu0 %v11341_v0 }
 0x2a6   :  { %v3344_v8 = vrot.slane %v3343_v10, 4  ;;  %v2642_v20 = vrot.slane %v2251_v56, %v8648_v42  ;;  %v2252_v41 = vmax.f32 %v2226_v21, %v2227_v5  ;;  %v9684_v5 = vadd.f32 %v8628_v28, %v2120_v13 }
 0x2a7   :  { %v2634_v9 = vcombine.high %v2632_v50, %v2632_v50  ;;  %v3350_v61 = vsel %vm1737_vm11, %v2633_v32, -inf  ;;  %v3357_v57 = vsel %vm1737_vm11, %v2632_v50, -inf  ;;  %v2649_v17 = vrot.slane %v2635_v43, %v8648_v42 }
 0x2a8   :  { %v3345_v62 = vmax.f32 %v3343_v10, %v3344_v8  ;;  %v3351_v54 = vrot.slane %v3350_v61, 4  ;;  %v3358_v4 = vrot.slane %v3357_v57, 4  ;;  %v2650_v3 = vcombine.high %v2642_v20, %v2642_v20 }
 0x2a9   :  { %v3364_v12 = vsel %vm1737_vm11, %v2634_v9, -inf  ;;  %v2651_v31 = vcombine.high %v2649_v17, %v2649_v17  ;;  %v3371_v44 = vsel %vm1737_vm11, %v2642_v20, -inf  ;;  %v3385_v56 = vsel %vm1737_vm11, %v2649_v17, -inf }
 0x2aa   :  { %v3346_v21 = vrot.slane %v3345_v62, 2  ;;  %v3352_v46 = vmax.f32 %v3350_v61, %v3351_v54  ;;  %v9687_v50 = vadd.f32 %v8632_v47, %v2121_v16  ;;  %v3372_v32 = vrot.slane %v3371_v44, 4 }
 0x2ab   :  { %v3378_v10 = vsel %vm1737_vm11, %v2650_v3, -inf  ;;  %v3386_v43 = vrot.slane %v3385_v56, 4  ;;  %v3392_v8 = vsel %vm1737_vm11, %v2651_v31, -inf  ;;  %v3359_v9 = vmax.f32 %v3357_v57, %v3358_v4 }
 0x2ac   :  { %v3353_v6 = vrot.slane %v3352_v46, 2  ;;  %v3365_v52 = vrot.slane %v3364_v12, 4  ;;  %v11390_v20 = vrot.slane %v9409_v23, 1  ;;  %v3373_v61 = vmax.f32 %v3371_v44, %v3372_v32 }
 0x2ad   :  { %v3379_v28 = vrot.slane %v3378_v10, 4  ;;  %v3387_v13 = vmax.f32 %v3385_v56, %v3386_v43  ;;  %v3393_v54 = vrot.slane %v3392_v8, 4  ;;  %v9696_v47 = vmax.f32 %v3345_v62, %v3346_v21 }
 0x2ae   :  { %v9694_v17 = vmax.f32 %v9409_v23, %v11390_v20  ;;  %v3354_v16 = vmax.f32 %v3352_v46, %v3353_v6  ;;  %v2228_v3 = vmax.f32 %v9684_v5, 0.0  ;;  %v9702_v31 = vmax.f32 %v9500_v37, %v11391_v34 }
 0x2af   :  { %v3374_v57 = vrot.slane %v3373_v61, 2  ;;  %v3380_v4 = vmax.f32 %v3378_v10, %v3379_v28  ;;  %v3388_v58 = vrot.slane %v3387_v13, 2  ;;  %v3394_v2 = vmax.f32 %v3392_v8, %v3393_v54 }
 0x2b0   :  { %v3360_v23 = vrot.slane %v3359_v9, 2  ;;  %v9704_v20 = vmax.f32 %v3364_v12, %v3365_v52  ;;  %v2652_v44 = vcombine.high %v2252_v41, %v2252_v41  ;;  %v2659_v56 = vrot.slane %v2252_v41, %v8648_v42 }
 0x2b1   :  { %v3375_v62 = vmax.f32 %v3373_v61, %v3374_v57  ;;  %v3381_v21 = vrot.slane %v3380_v4, 2  ;;  %v3389_v46 = vmax.f32 %v3387_v13, %v3388_v58  ;;  %v3395_v32 = vrot.slane %v3394_v2, 2 }
 0x2b2   :  { %11392 = vst [vmem:[#allocation17_spill] sm:$0xff] %v9704_v20  ;;  %v2666_v43 = vrot.slane %v2652_v44, %v8648_v42  ;;  %v2667_v37 = vcombine.high %v2659_v56, %v2659_v56  ;;  %v3399_v34 = vsel %vm1737_vm11, %v2659_v56, -inf  ;;  %v3355_v10 = vrot.slane %v3354_v16, 1 }
 0x2b3   :  { %v3382_v6 = vmax.f32 %v3380_v4, %v3381_v21  ;;  %v3390_v8 = vrot.slane %v3389_v46, 1  ;;  %v3396_v28 = vmax.f32 %v3394_v2, %v3395_v32  ;;  %v3400_v12 = vrot.slane %v3399_v34, 4 }
 0x2b4   :  { %v2668_v52 = vcombine.high %v2666_v43, %v2666_v43  ;;  %v3406_v54 = vsel %vm1737_vm11, %v2667_v37, -inf  ;;  %v3413_v41 = vsel %vm1737_vm11, %v2666_v43, -inf  ;;  %v3376_v61 = vrot.slane %v3375_v62, 1 }
 0x2b5   :  { %v3383_v58 = vrot.slane %v3382_v6, 1  ;;  %v3391_v13 = vmax.f32 %v3389_v46, %v3390_v8  ;;  %v3397_v57 = vrot.slane %v3396_v28, 1  ;;  %v3401_v5 = vmax.f32 %v3399_v34, %v3400_v12 }
 0x2b6   :  { %v3407_v20 = vrot.slane %v3406_v54, 4  ;;  %v3414_v44 = vrot.slane %v3413_v41, 4  ;;  %v3420_v7 = vsel %vm1737_vm11, %v2668_v52, -inf  ;;  %v2229_v2 = vmax.f32 %v9687_v50, 0.0 }
 0x2b7   :  { %v3384_v56 = vmax.f32 %v3382_v6, %v3383_v58  ;;  %v3398_v35 = vmax.f32 %v3396_v28, %v3397_v57  ;;  %v3541_v4 = vpack.c.bf16 %v3391_v13, %v3391_v13  ;;  %v3402_v21 = vrot.slane %v3401_v5, 2 }
 0x2b8   :  { %v3408_v32 = vmax.f32 %v3406_v54, %v3407_v20  ;;  %v3415_v48 = vmax.f32 %v3413_v41, %v3414_v44  ;;  %v3421_v37 = vrot.slane %v3420_v7, 4  ;;  %v9714_v1 = vmax.f32 %v3354_v16, %v3355_v10 }
 0x2b9   :  { %v9716_v43 = vmax.f32 %v3359_v9, %v3360_v23  ;;  %v3377_v46 = vmax.f32 %v3375_v62, %v3376_v61  ;;  %v3542_v8 = vpack.c.bf16 %v3398_v35, %v3398_v35  ;;  %v3403_v34 = vmax.f32 %v3401_v5, %v3402_v21 }
 0x2ba   :  { %v3409_v12 = vrot.slane %v3408_v32, 2  ;;  %v3416_v33 = vrot.slane %v3415_v48, 2  ;;  %v3422_v15 = vmax.f32 %v3420_v7, %v3421_v37  ;;  %v3540_v52 = vpack.c.bf16 %v3384_v56, %v3384_v56 }
 0x2bb   :  { %v9718_v6 = vunpack.c.l.b16 %v3541_v4  ;;  %v9720_v28 = vunpack.c.l.b16 %v3542_v8  ;;  %v2253_v50 = vmax.f32 %v2228_v3, %v2229_v2  ;;  %v3404_v58 = vrot.slane %v3403_v34, 1 }
 0x2bc   :  { %v3410_v20 = vmax.f32 %v3408_v32, %v3409_v12  ;;  %v3417_v54 = vmax.f32 %v3415_v48, %v3416_v33  ;;  %v3423_v41 = vrot.slane %v3422_v15, 2  ;;  %v3539_v16 = vpack.c.bf16 %v3377_v46, %v3377_v46 }
 0x2bd   :  { %v9725_v9 = vsel %vm3712_vm14, %v9720_v28, %v9718_v6  ;;  %v2669_v35 = vcombine.high %v2253_v50, %v2253_v50  ;;  %v2676_v23 = vrot.slane %v2253_v50, %v8648_v42  ;;  %v3405_v7 = vmax.f32 %v3403_v34, %v3404_v58 }
 0x2be   :  { %v3411_v62 = vrot.slane %v3410_v20, 1  ;;  %v3418_v5 = vrot.slane %v3417_v54, 1  ;;  %v3424_v10 = vmax.f32 %v3422_v15, %v3423_v41  ;;  %v9728_v61 = vunpack.c.l.b16 %v3540_v52 }
 0x2bf   :  { %v9731_v3 = vrot.slane %v2669_v35, %v8648_v42  ;;  %v2684_v33 = vcombine.high %v2676_v23, %v2676_v23  ;;  %v3427_v48 = vsel %vm1737_vm11, %v2676_v23, -inf  ;;  %v3543_v56 = vpack.c.bf16 %v3405_v7, %v3405_v7 }
 0x2c0   :  { %v3412_v13 = vmax.f32 %v3410_v20, %v3411_v62  ;;  %v3419_v57 = vmax.f32 %v3417_v54, %v3418_v5  ;;  %v3425_v44 = vrot.slane %v3424_v10, 1  ;;  %v3951_v4 = vunpack.c.l.b16 %v3539_v16 }
 0x2c1   :  { %v3428_v2 = vrot.slane %v3427_v48, 4  ;;  %v3434_v21 = vsel %vm1737_vm11, %v2684_v33, -inf  ;;  %v3441_v32 = vsel %vm1737_vm11, %v9731_v3, -inf  ;;  %v3511_v8 = vpack.c.bf16 %v9694_v17, %v9694_v17 }
 0x2c2   :  { %v3426_v15 = vmax.f32 %v3424_v10, %v3425_v44  ;;  %v3544_v37 = vpack.c.bf16 %v3412_v13, %v3412_v13  ;;  %v3545_v46 = vpack.c.bf16 %v3419_v57, %v3419_v57  ;;  %v9741_v34 = vsel %vm3712_vm14, %v9728_v61, %v3951_v4 }
 0x2c3   :  { %v3429_v12 = vmax.f32 %v3427_v48, %v3428_v2  ;;  %v3435_v52 = vrot.slane %v3434_v21, 4  ;;  %v3442_v50 = vrot.slane %v3441_v32, 4  ;;  %v9743_v20 = vunpack.c.l.b16 %v3543_v56 }
 0x2c4   :  { %v3546_v58 = vpack.c.bf16 %v3426_v15, %v3426_v15  ;;  %v3523_v41 = vpack.c.bf16 %v9702_v31, %v9702_v31  ;;  %v9749_v16 = vunpack.c.l.b16 %v3544_v37  ;;  %v9751_v7 = vunpack.c.l.b16 %v3545_v46 }
 0x2c5   :  { %v3430_v35 = vrot.slane %v3429_v12, 2  ;;  %v3436_v17 = vmax.f32 %v3434_v21, %v3435_v52  ;;  %v3443_v23 = vmax.f32 %v3441_v32, %v3442_v50  ;;  %v9755_v5 = vunpack.c.l.b16 %v3511_v8 }
 0x2c6   :  { %v9753_v62 = vunpack.c.l.b16 %v3546_v58  ;;  %v3747_v10 = vsel %vm3712_vm14, %v9314_v18, %v9308_v53  ;;  %v9762_v57 = vunpack.c.l.b16 %v3523_v41  ;;  %v3754_v56 = vsel %vm3712_vm14, %v9469_v45, %v9461_v36 }
 0x2c7   :  { %v3431_v33 = vmax.f32 %v3429_v12, %v3430_v35  ;;  %v3437_v48 = vrot.slane %v3436_v17, 2  ;;  %v3444_v13 = vrot.slane %v3443_v23, 2  ;;  %v3748_v31 = vsel %vm3714_vm15, %v9318_v22, %v3747_v10  ;;  %v11393_v12 = vld [vmem:[#allocation2_spill] sm:$0xff] }
 0x2c8   :  { %v3749_v44 = vsel %vm3716_vm0, %v9320_v25, %v3748_v31  ;;  %v3194_v4 = vrot.slane %v9442_v29, 1  ;;  %v3755_v37 = vsel %vm3714_vm15, %v9466_v39, %v3754_v56  ;;  %v3278_v8 = vrot.slane %v9504_v38, 1  ;;  %v11394_v10 = vld [vmem:[#allocation10_spill] sm:$0xff] }
 0x2c9   :  { %v3432_v2 = vrot.slane %v3431_v33, 1  ;;  %v3438_v21 = vmax.f32 %v3436_v17, %v3437_v48  ;;  %v9770_v53 = vmax.f32 %v3443_v23, %v3444_v13  ;;  %v3750_v32 = vsel %vm3718_vm1, %v9356_v59, %v3749_v44  ;;  %v11395_v44 = vld [vmem:[#allocation12_spill] sm:$0xff] }
 0x2ca   :  { %v3751_v15 = vsel %vm3720_vm2, %v9358_v30, %v3750_v32  ;;  %v3195_v46 = vmax.f32 %v9442_v29, %v3194_v4  ;;  %v3756_v50 = vsel %vm3716_vm0, %v9484_v11, %v3755_v37  ;;  %v3512_v58 = vpack.c.bf16 %v9473_v40, %v9473_v40 }
 0x2cb   :  { %v3439_v36 = vrot.slane %v3438_v21, 1  ;;  %v3752_v52 = vsel %vm3722_vm3, %v11393_v12, %v3751_v15  ;;  %v3757_v35 = vsel %vm3718_vm1, %v9488_v24, %v3756_v50  ;;  %v3279_v29 = vmax.f32 %v9504_v38, %v3278_v8 }
 0x2cc   :  { %v3753_v41 = vsel %vm3724_vm4, %v9755_v5, %v3752_v52  ;;  %v3513_v17 = vpack.c.bf16 %v3195_v46, %v3195_v46  ;;  %v3758_v48 = vsel %vm3720_vm2, %v11394_v10, %v3757_v35  ;;  %v3524_v13 = vpack.c.bf16 %v9584_v51, %v9584_v51 }
 0x2cd   :  { %v3440_v23 = vmax.f32 %v3438_v21, %v3439_v36  ;;  %v9795_v31 = vunpack.c.l.b16 %v3512_v58  ;;  %v3759_v40 = vsel %vm3722_vm3, %v11395_v44, %v3758_v48  ;;  %v3525_v56 = vpack.c.bf16 %v3279_v29, %v3279_v29 }
 0x2ce   :  { %v9799_v4 = vunpack.c.l.b16 %v3513_v17  ;;  %v4496_v38 = vsel %vm3712_vm14, %v9320_v25, %v9318_v22  ;;  %v3760_v21 = vsel %vm3724_vm4, %v9762_v57, %v3759_v40  ;;  %v9806_v32 = vunpack.c.l.b16 %v3524_v13 }
 0x2cf   :  { %v4497_v51 = vsel %vm3714_vm15, %v9356_v59, %v4496_v38  ;;  %v4503_v15 = vsel %vm3712_vm14, %v9484_v11, %v9466_v39  ;;  %v3777_v37 = vpack.c.b16 %v3760_v21, %v3753_v41  ;;  %v9813_v46 = vunpack.c.l.b16 %v3525_v56 }
 0x2d0   :  { %v4498_v8 = vsel %vm3716_vm0, %v9358_v30, %v4497_v51  ;;  %v4504_v36 = vsel %vm3714_vm15, %v9488_v24, %v4503_v15  ;;  %v11396_v58 = vrot.slane %v9696_v47, 1  ;;  %v3433_v29 = vmax.f32 %v3431_v33, %v3432_v2 }
 0x2d1   :  { %v4499_v52 = vsel %vm3718_vm1, %v11393_v12, %v4498_v8  ;;  %v4505_v50 = vsel %vm3716_vm0, %v11394_v10, %v4504_v36  ;;  %3916 = vmatmul.mubr.bf16.gmra.mxu1 %v3777_v37  ;;  %v3761_v48 = vsel %vm3712_vm14, %v9548_v55, %v9544_v27  ;;  %v3768_v13 = vsel %vm3712_vm14, %v9718_v6, %v9728_v61 }
 0x2d2   :  { %v3349_v35 = vmax.f32 %v9696_v47, %v11396_v58  ;;  %v4500_v41 = vsel %vm3720_vm2, %v9755_v5, %v4499_v52  ;;  %v4506_v17 = vsel %vm3718_vm1, %v11395_v44, %v4505_v50  ;;  %3925 = vmatprep.mubr.bf16.mxu1 %v11341_v0  ;;  %v3547_v2 = vpack.c.bf16 %v3433_v29, %v3433_v29 }
 0x2d3   :  { %v4501_v40 = vsel %vm3722_vm3, %v9795_v31, %v4500_v41  ;;  %v4507_v47 = vsel %vm3720_vm2, %v9762_v57, %v4506_v17  ;;  %v3762_v38 = vsel %vm3714_vm15, %v9550_v63, %v3761_v48  ;;  %v3769_v61 = vsel %vm3714_vm15, %v9720_v28, %v3768_v13 }
 0x2d4   :  { %v3535_v33 = vpack.c.bf16 %v3349_v35, %v3349_v35  ;;  %v4502_v56 = vsel %vm3724_vm4, %v9799_v4, %v4501_v40  ;;  %v4508_v27 = vsel %vm3722_vm3, %v9806_v32, %v4507_v47  ;;  %v9853_v15 = vunpack.c.l.b16 %v3547_v2 }
 0x2d5   :  { %v4509_v21 = vsel %vm3724_vm4, %v9813_v46, %v4508_v27  ;;  %v3763_v37 = vsel %vm3716_vm0, %v9661_v49, %v3762_v38  ;;  %v3770_v52 = vsel %vm3716_vm0, %v9743_v20, %v3769_v61  ;;  %v3362_v50 = vrot.slane %v9716_v43, 1 }
 0x2d6   :  { %v9851_v51 = vunpack.c.l.b16 %v3535_v33  ;;  %v4526_v8 = vpack.c.b16 %v4509_v21, %v4502_v56  ;;  %v3764_v36 = vsel %vm3718_vm1, %v9663_v60, %v3763_v37  ;;  %v3771_v35 = vsel %vm3718_vm1, %v9749_v16, %v3770_v52  ;;  %v11398_v52 = vld [vmem:[#allocation20_spill] sm:$0xff] }
 0x2d7   :  { %v3765_v58 = vsel %vm3720_vm2, %v9666_v19, %v3764_v36  ;;  %v3446_v29 = vrot.slane %v9770_v53, 1  ;;  %v3536_v41 = vpack.c.bf16 %v9714_v1, %v9714_v1  ;;  %v3772_v48 = vsel %vm3720_vm2, %v9751_v7, %v3771_v35 }
 0x2d8   :  { %4665 = vmatmul.mubr.bf16.gmra.mxu0 %v4526_v8  ;;  %v3766_v17 = vsel %vm3722_vm3, %v9669_v26, %v3765_v58  ;;  %v3363_v13 = vmax.f32 %v9716_v43, %v3362_v50  ;;  %v3548_v40 = vpack.c.bf16 %v3440_v23, %v3440_v23  ;;  %v3773_v33 = vsel %vm3722_vm3, %v9753_v62, %v3772_v48  ;;  %v11399_v50 = vld [vmem:[#allocation28_spill] sm:$0xff] }
 0x2d9   :  { %v3767_v47 = vsel %vm3724_vm4, %v9851_v51, %v3766_v17  ;;  %4674 = vmatprep.mubr.bf16.mxu0 %v11341_v0  ;;  %v3447_v1 = vmax.f32 %v9770_v53, %v3446_v29  ;;  %v9880_v2 = vunpack.c.l.b16 %v3536_v41  ;;  %v3774_v56 = vsel %vm3724_vm4, %v9853_v15, %v3773_v33  ;;  %v11401_v17 = vld [vmem:[#allocation24_spill] sm:$0xff] }
 0x2da   :  { %v3537_v27 = vpack.c.bf16 %v3363_v13, %v3363_v13  ;;  %v9884_v38 = vunpack.c.l.b16 %v3548_v40  ;;  %v4510_v43 = vsel %vm3712_vm14, %v9661_v49, %v9550_v63  ;;  %v3778_v23 = vpack.c.b16 %v3774_v56, %v3767_v47  ;;  %v11402_v47 = vld [vmem:[#allocation25_spill] sm:$0xff]  ;;  %v11404_v56 = vld [vmem:[#allocation32_spill] sm:$0xff] }
 0x2db   :  { %v3549_v61 = vpack.c.bf16 %v3447_v1, %v3447_v1  ;;  %v4511_v21 = vsel %vm3714_vm15, %v9663_v60, %v4510_v43  ;;  %v4517_v53 = vsel %vm3712_vm14, %v9743_v20, %v9720_v28  ;;  %v3955_v58 = vsel %vm3718_vm1, %v11399_v50, %v11398_v52  ;;  %v11403_v1 = vld [vmem:[#allocation36_spill] sm:$0xff]  ;;  %v11407_v50 = vld [vmem:[#allocation33_spill] sm:$0xff] }
 0x2dc   :  { %v9894_v37 = vunpack.c.l.b16 %v3537_v27  ;;  %v4512_v8 = vsel %vm3716_vm0, %v9666_v19, %v4511_v21  ;;  %v4518_v36 = vsel %vm3714_vm15, %v9749_v16, %v4517_v53  ;;  %3926 = vmatmul.mubr.bf16.gmra.mxu1 %v3778_v23  ;;  %v3956_v48 = vsel %vm3720_vm2, %v11401_v17, %v3955_v58  ;;  %v11406_v53 = vld [vmem:[#allocation37_spill] sm:$0xff] }
 0x2dd   :  { %v9903_v35 = vunpack.c.l.b16 %v3549_v61  ;;  %v4513_v29 = vsel %vm3718_vm1, %v9669_v26, %v4512_v8  ;;  %v4519_v41 = vsel %vm3716_vm0, %v9751_v7, %v4518_v36  ;;  %4128 = vmatprep.mubr.bf16.mxu1 %v11341_v0  ;;  %v3957_v33 = vsel %vm3722_vm3, %v11402_v47, %v3956_v48  ;;  %v11405_v61 = vld [vmem:[#allocation26_spill] sm:$0xff] }
 0x2de   :  { %11397 = vst [vmem:[#allocation18_spill] sm:$0xff] %v9894_v37  ;;  %v4514_v13 = vsel %vm3720_vm2, %v9851_v51, %v4513_v29  ;;  %v4520_v40 = vsel %vm3718_vm1, %v9753_v62, %v4519_v41  ;;  %v3962_v27 = vsel %vm3718_vm1, %v11404_v56, %v11403_v1  ;;  %v3958_v21 = vsel %vm3724_vm4, %v11405_v61, %v3957_v33  ;;  %v11408_v29 = vld [vmem:[#allocation46_spill] sm:$0xff]  ;;  %v11409_v41 = vld [vmem:[#allocation44_spill] sm:$0xff]  ;;  %v11411_v56 = vld [vmem:[#allocation57_spill] sm:$0xff] }
 0x2df   :  { %11400 = vst [vmem:[#allocation23_spill] sm:$0xff] %v9903_v35  ;;  %v4515_v43 = vsel %vm3722_vm3, %v9880_v2, %v4514_v13  ;;  %v4521_v23 = vsel %vm3720_vm2, %v9853_v15, %v4520_v40  ;;  %v3963_v8 = vsel %vm3720_vm2, %v11406_v53, %v3962_v27  ;;  %v3967_v48 = vsel %vm3714_vm15, %v11409_v41, %v11408_v29  ;;  %v11410_v40 = vld [vmem:[#allocation38_spill] sm:$0xff]  ;;  %v11412_v27 = vld [vmem:[#allocation53_spill] sm:$0xff] }
 0x2e0   :  { %v4516_v36 = vsel %vm3724_vm4, %v9894_v37, %v4515_v43  ;;  %v4522_v52 = vsel %vm3722_vm3, %v9884_v38, %v4521_v23  ;;  %v3964_v58 = vsel %vm3722_vm3, %v11407_v50, %v3963_v8  ;;  %v3968_v1 = vsel %vm3716_vm0, %v9100_v14, %v3967_v48  ;;  %v6923_v8 = vld [vmem:[%s10958_s3 + $0x170] ss:$8 sps:$4 sm:$0xff]   ;;  %v6928_v14 = vld [vmem:[%s10958_s3 + $0x164] ss:$8 sps:$4 sm:$0xff]  }
 0x2e1   :  { %v4523_v13 = vsel %vm3724_vm4, %v9903_v35, %v4522_v52  ;;  %v3965_v33 = vsel %vm3724_vm4, %v11410_v40, %v3964_v58  ;;  %v3974_v43 = vsel %vm3714_vm15, %v11412_v27, %v11411_v56  ;;  %v11413_v29 = vld [vmem:[#allocation45_spill] sm:$0xff]  ;;  %v11414_v52 = vld [vmem:[#allocation50_spill] sm:$0xff]  ;;  %v11416_v56 = vld [vmem:[#allocation59_spill] sm:$0xff] }
 0x2e2   :  { %v4527_v23 = vpack.c.b16 %v4523_v13, %v4516_v36  ;;  %v4008_v54 = vpack.c.b16 %v3965_v33, %v3958_v21  ;;  %v3969_v41 = vsel %vm3718_vm1, %v11413_v29, %v3968_v1  ;;  %v3975_v42 = vsel %vm3716_vm0, %v11414_v52, %v3974_v43  ;;  %v11415_v58 = vld [vmem:[#allocation49_spill] sm:$0xff]  ;;  %v11417_v13 = vld [vmem:[#allocation4_spill] sm:$0xff]  ;;  %v11421_v37 = vld [vmem:[#allocation54_spill] sm:$0xff] }
 0x2e3   :  { %v3970_v48 = vsel %vm3720_vm2, %v11415_v58, %v3969_v41  ;;  %v3976_v36 = vsel %vm3718_vm1, %v11416_v56, %v3975_v42  ;;  %v3981_v21 = vsel %vm3714_vm15, %v9314_v18, %v11417_v13  ;;  %v11418_v33 = vld [vmem:[#allocation8_spill] sm:$0xff]  ;;  %v11422_v13 = vld [vmem:[#allocation61_spill] sm:$0xff] }
 0x2e4   :  { %v3988_v1 = vsel %vm3714_vm15, %v9469_v45, %v11418_v33  ;;  %4675 = vmatmul.mubr.bf16.gmra.mxu0 %v4527_v23  ;;  %v11419_v27 = vld [vmem:[#allocation52_spill] sm:$0xff]  ;;  %v3982_v41 = vsel %vm3716_vm0, %v9318_v22, %v3981_v21  ;;  %4129 = vmatmul.mubr.bf16.vlgmr.msra.gmra.mxu1 %v4008_v54  ;;  %v11424_v54 = vld [vmem:[#allocation63_spill] sm:$0xff] }
 0x2e5   :  { %v3971_v43 = vsel %vm3722_vm3, %v11419_v27, %v3970_v48  ;;  %v11420_v52 = vld [vmem:[#allocation60_spill] sm:$0xff]  ;;  %v3989_v42 = vsel %vm3716_vm0, %v9466_v39, %v3988_v1  ;;  %v3983_v23 = vsel %vm3718_vm1, %v9320_v25, %v3982_v41  ;;  %4347 = vmatpush1.bf16.msra.mxu1 %v6923_v8  ;;  %v6926_v39 = vld [vmem:[%s10958_s3 + $0x160] ss:$8 sps:$4 sm:$0xff]   ;;  %4138 = vmatprep.mubr.bf16.mxu1 %v11341_v0 }
 0x2e6   :  { %v3977_v35 = vsel %vm3720_vm2, %v11420_v52, %v3976_v36  ;;  %v3972_v18 = vsel %vm3724_vm4, %v11421_v37, %v3971_v43  ;;  %v3990_v48 = vsel %vm3718_vm1, %v9484_v11, %v3989_v42  ;;  %v11423_v36 = vcombine.high %v9731_v3, %v9731_v3  ;;  %4348 = vmatprep.subr.bf16.mxu1 %v6928_v14  ;;  %v6931_v3 = vld [vmem:[%s10958_s3 + $0x154] ss:$8 sps:$4 sm:$0xff]  }
 0x2e7   :  { %v3978_v45 = vsel %vm3722_vm3, %v11422_v13, %v3977_v35  ;;  %v3984_v21 = vsel %vm3720_vm2, %v9356_v59, %v3983_v23  ;;  %v3991_v33 = vsel %vm3720_vm2, %v9488_v24, %v3990_v48  ;;  %v11425_v41 = vld [vmem:[#allocation56_spill] sm:$0xff]  ;;  %v4002_v23 = vsel %vm3714_vm15, %v9718_v6, %v9741_v34 }
 0x2e8   :  { %v9987_v22 = vsel %vm1737_vm11, %v11423_v36, -inf  ;;  %v3979_v35 = vsel %vm3724_vm4, %v11424_v54, %v3978_v45  ;;  %v3985_v1 = vsel %vm3722_vm3, %v9358_v30, %v3984_v21  ;;  %v3992_v43 = vsel %vm3722_vm3, %v11394_v10, %v3991_v33 }
 0x2e9   :  { %v4009_v8 = vpack.c.b16 %v3979_v35, %v3972_v18  ;;  %v3995_v42 = vsel %vm3714_vm15, %v9548_v55, %v11425_v41  ;;  %v10011_v45 = vsel %vm3724_vm4, %v11393_v12, %v3985_v1  ;;  %v10015_v14 = vsel %vm3724_vm4, %v11395_v44, %v3992_v43  ;;  %v11426_v35 = vld [vmem:[#allocation27_spill] sm:$0xff]  ;;  %4349 = vmatpush1.bf16.msra.mxu1 %v6926_v39  ;;  %v11427_v1 = vld [vmem:[#allocation48_spill] sm:$0xff] }
 0x2ea   :  { %v3996_v18 = vsel %vm3716_vm0, %v9550_v63, %v3995_v42  ;;  %v4010_v48 = vpack.c.b16 %v10015_v14, %v10011_v45  ;;  %v4003_v36 = vsel %vm3716_vm0, %v9720_v28, %v4002_v23  ;;  %v4204_v21 = vsel %vm3716_vm0, %v11401_v17, %v11426_v35  ;;  %v6929_v63 = vld [vmem:[%s10958_s3 + $0x150] ss:$8 sps:$4 sm:$0xff]   ;;  %4350 = vmatprep.subr.bf16.mxu1 %v6931_v3  ;;  %v6934_v17 = vld [vmem:[%s10958_s3 + $0x144] ss:$8 sps:$4 sm:$0xff]   ;;  %v6938_v45 = vld [vmem:[%s10958_s3 + $0x120] ss:$8 sps:$4 sm:$0xff]  }
 0x2eb   :  { %v3997_v55 = vsel %vm3718_vm1, %v9661_v49, %v3996_v18  ;;  %v4004_v34 = vsel %vm3718_vm1, %v9743_v20, %v4003_v36  ;;  %v4205_v33 = vsel %vm3718_vm1, %v11402_v47, %v4204_v21  ;;  %v4211_v28 = vsel %vm3716_vm0, %v11406_v53, %v11427_v1  ;;  %v11428_v42 = vld [vmem:[#allocation29_spill] sm:$0xff]  ;;  %v11430_v36 = vld [vmem:[#allocation39_spill] sm:$0xff] }
 0x2ec   :  { %v3998_v6 = vsel %vm3720_vm2, %v9663_v60, %v3997_v55  ;;  %v4005_v43 = vsel %vm3720_vm2, %v9749_v16, %v4004_v34  ;;  %v4206_v41 = vsel %vm3720_vm2, %v11405_v61, %v4205_v33  ;;  %v4212_v47 = vsel %vm3718_vm1, %v11407_v50, %v4211_v28  ;;  %4139 = vmatmul.mubr.bf16.gmra.mxu1 %v4009_v8  ;;  %v11429_v55 = vld [vmem:[#allocation31_spill] sm:$0xff]  ;;  %v11432_v33 = vld [vmem:[#allocation40_spill] sm:$0xff] }
 0x2ed   :  { %v3999_v39 = vsel %vm3722_vm3, %v9666_v19, %v3998_v6  ;;  %v4006_v3 = vsel %vm3722_vm3, %v9751_v7, %v4005_v43  ;;  %v4207_v18 = vsel %vm3722_vm3, %v11428_v42, %v4206_v41  ;;  %v4213_v23 = vsel %vm3720_vm2, %v11410_v40, %v4212_v47  ;;  %v11431_v21 = vld [vmem:[#allocation55_spill] sm:$0xff]  ;;  %4351 = vmatpush1.bf16.msra.mxu1 %v6929_v63  ;;  %v6937_v63 = vld [vmem:[%s10958_s3 + $0x134] ss:$8 sps:$4 sm:$0xff]   ;;  %v11433_v41 = vld [vmem:[#allocation58_spill] sm:$0xff] }
 0x2ee   :  { %v10056_v53 = vsel %vm3724_vm4, %v9669_v26, %v3999_v39  ;;  %v10066_v61 = vsel %vm3724_vm4, %v9753_v62, %v4006_v3  ;;  %v10070_v50 = vsel %vm3724_vm4, %v11429_v55, %v4207_v18  ;;  %v4214_v35 = vsel %vm3722_vm3, %v11430_v36, %v4213_v23  ;;  %v6932_v40 = vld [vmem:[%s10958_s3 + $0x140] ss:$8 sps:$4 sm:$0xff]   ;;  %4148 = vmatprep.mubr.bf16.mxu1 %v11341_v0  ;;  %v11435_v18 = vld [vmem:[#allocation17_spill] sm:$0xff] }
 0x2ef   :  { %v4217_v6 = vsel %vm3714_vm15, %v11413_v29, %v11431_v21  ;;  %v3449_v34 = vrot.slane %v9987_v22, 4  ;;  %v10086_v1 = vsel %vm3724_vm4, %v11432_v33, %v4214_v35  ;;  %4352 = vmatprep.subr.bf16.mxu1 %v6934_v17  ;;  %v4224_v47 = vsel %vm3714_vm15, %v11416_v56, %v11433_v41  ;;  %v11434_v3 = vld [vmem:[#allocation7_spill] sm:$0xff]  ;;  %v11436_v36 = vld [vmem:[#allocation9_spill] sm:$0xff]  ;;  %v11447_v39 = vld [vmem:[#allocation34_spill] sm:$0xff] }
 0x2f0   :  { %v4218_v28 = vsel %vm3716_vm0, %v11415_v58, %v4217_v6  ;;  %v4231_v42 = vsel %vm3714_vm15, %v9320_v25, %v11434_v3  ;;  %v4225_v23 = vsel %vm3716_vm0, %v11420_v52, %v4224_v47  ;;  %v4238_v35 = vsel %vm3714_vm15, %v9484_v11, %v11436_v36  ;;  %v6935_v47 = vld [vmem:[%s10958_s3 + $0x130] ss:$8 sps:$4 sm:$0xff]   ;;  %v11438_v36 = vld [vmem:[#allocation14_spill] sm:$0xff] }
 0x2f1   :  { %v4219_v43 = vsel %vm3718_vm1, %v11419_v27, %v4218_v28  ;;  %v4232_v55 = vsel %vm3716_vm0, %v9356_v59, %v4231_v42  ;;  %v4226_v6 = vsel %vm3718_vm1, %v11422_v13, %v4225_v23  ;;  %v4239_v28 = vsel %vm3716_vm0, %v9488_v24, %v4238_v35  ;;  %4353 = vmatpush1.bf16.msra.mxu1 %v6932_v40 }
 0x2f2   :  { %v4220_v21 = vsel %vm3720_vm2, %v11421_v37, %v4219_v43  ;;  %v4233_v33 = vsel %vm3718_vm1, %v9358_v30, %v4232_v55  ;;  %v10120_v41 = vmax.f32 %v9987_v22, %v3449_v34  ;;  %v4227_v43 = vsel %vm3720_vm2, %v11424_v54, %v4226_v6  ;;  %4354 = vmatprep.subr.bf16.mxu1 %v6937_v63  ;;  %v6940_v22 = vld [vmem:[%s10958_s3 + $0x124] ss:$8 sps:$4 sm:$0xff]   ;;  %v11439_v6 = vld [vmem:[#allocation13_spill] sm:$0xff] }
 0x2f3   :  { %v4234_v3 = vsel %vm3720_vm2, %v11393_v12, %v4233_v33  ;;  %v4240_v42 = vsel %vm3718_vm1, %v11394_v10, %v4239_v28  ;;  %v11437_v34 = vld [vmem:[#allocation11_spill] sm:$0xff]  ;;  %v4245_v35 = vsel %vm3714_vm15, %v9661_v49, %v11438_v36  ;;  %v10145_v63 = vsel %vm3722_vm3, %v11439_v6, %v4220_v21 }
 0x2f4   :  { %v4228_v40 = vsel %vm3722_vm3, %v11437_v34, %v4227_v43  ;;  %v4235_v23 = vsel %vm3722_vm3, %v9755_v5, %v4234_v3  ;;  %v4241_v55 = vsel %vm3720_vm2, %v11395_v44, %v4240_v42  ;;  %v4246_v43 = vsel %vm3716_vm0, %v9663_v60, %v4245_v35  ;;  %4149 = vmatmul.mubr.bf16.gmra.mxu1 %v4010_v48  ;;  %v11441_v3 = vld [vmem:[#allocation65_spill] sm:$0xff]  ;;  %v11445_v36 = vld [vmem:[#allocation43_spill] sm:$0xff] }
 0x2f5   :  { %v10149_v33 = vsel %vm3724_vm4, %v9795_v31, %v4235_v23  ;;  %v4242_v28 = vsel %vm3722_vm3, %v9762_v57, %v4241_v55  ;;  %v10160_v42 = vsel %vm3724_vm4, %v11441_v3, %v4228_v40  ;;  %v4247_v23 = vsel %vm3718_vm1, %v9666_v19, %v4246_v43  ;;  %4355 = vmatpush1.bf16.msra.mxu1 %v6935_v47  ;;  %v11444_v43 = vld [vmem:[#allocation30_spill] sm:$0xff] }
 0x2f6   :  { %11440 = vst [vmem:[#allocation19_spill] sm:$0xff] %v10149_v33  ;;  %v10164_v21 = vsel %vm3724_vm4, %v9806_v32, %v4242_v28  ;;  %v4252_v55 = vsel %vm3714_vm15, %v9743_v20, %v9725_v9  ;;  %4158 = vmatprep.mubr.bf16.mxu1 %v11341_v0  ;;  %v4248_v48 = vsel %vm3720_vm2, %v9669_v26, %v4247_v23  ;;  %v6943_v9 = vld [vmem:[%s10958_s3 + $0x114] ss:$8 sps:$4 sm:$0xff]   ;;  %v11443_v28 = vld [vmem:[#allocation35_spill] sm:$0xff]  ;;  %v11446_v23 = vld [vmem:[#allocation42_spill] sm:$0xff] }
 0x2f7   :  { %11442 = vst [vmem:[#allocation21_spill] sm:$0xff] %v10164_v21  ;;  %v4253_v40 = vsel %vm3716_vm0, %v9749_v16, %v4252_v55  ;;  %4356 = vmatprep.subr.bf16.mxu1 %v6940_v22  ;;  %v4249_v47 = vsel %vm3722_vm3, %v9851_v51, %v4248_v48  ;;  %v4739_v14 = vsel %vm3722_vm3, %v11444_v43, %v11443_v28  ;;  %v11450_v43 = vld [vmem:[#allocation47_spill] sm:$0xff]  ;;  %v11452_v33 = vld [vmem:[#allocation62_spill] sm:$0xff] }
 0x2f8   :  { %v4254_v35 = vsel %vm3718_vm1, %v9751_v7, %v4253_v40  ;;  %v4746_v17 = vsel %vm3722_vm3, %v11446_v23, %v11445_v36  ;;  %v10197_v22 = vsel %vm3724_vm4, %v9880_v2, %v4249_v47  ;;  %v10203_v48 = vsel %vm3724_vm4, %v11447_v39, %v4739_v14  ;;  %v11449_v40 = vld [vmem:[#allocation41_spill] sm:$0xff] }
 0x2f9   :  { %v4255_v55 = vsel %vm3720_vm2, %v9753_v62, %v4254_v35  ;;  %11448 = vst [vmem:[#allocation22_spill] sm:$0xff] %v10203_v48  ;;  %v10207_v8 = vsel %vm3724_vm4, %v11449_v40, %v4746_v17  ;;  %v11451_v47 = vrot.slane %v11450_v43, 2  ;;  %v11453_v35 = vrot.slane %v11452_v33, 2  ;;  %4357 = vmatpush1.bf16.msra.mxu1 %v6938_v45  ;;  %v6941_v39 = vld [vmem:[%s10958_s3 + $0x110] ss:$8 sps:$4 sm:$0xff]   ;;  %v11454_v40 = vld [vmem:[#allocation6_spill] sm:$0xff] }
 0x2fa   :  { %v4256_v28 = vsel %vm3722_vm3, %v9853_v15, %v4255_v55  ;;  %v4748_v14 = vsel %vm3712_vm14, %v11415_v58, %v11413_v29  ;;  %v4755_v55 = vsel %vm3712_vm14, %v11420_v52, %v11416_v56  ;;  %4358 = vmatprep.subr.bf16.mxu1 %v6943_v9  ;;  %v6946_v45 = vld [vmem:[%s10958_s3 + $0x104] ss:$8 sps:$4 sm:$0xff]   ;;  %v11456_v9 = vld [vmem:[#allocation16_spill] sm:$0xff]  ;;  %v11458_v36 = vpack.c.b16 %v10066_v61, %v10056_v53 }
 0x2fb   :  { %v3032_v23 = vmax.f32 %v11450_v43, %v11451_v47  ;;  %v3116_v21 = vmax.f32 %v11452_v33, %v11453_v35  ;;  %v10224_v17 = vsel %vm3724_vm4, %v9884_v38, %v4256_v28  ;;  %v11455_v43 = vrot.slane %v11454_v40, 2 }
 0x2fc   :  { %v4749_v29 = vsel %vm3714_vm15, %v11419_v27, %v4748_v14  ;;  %v4756_v56 = vsel %vm3714_vm15, %v11422_v13, %v4755_v55  ;;  %4159 = vmatmul.mubr.bf16.gmra.mxu1 %v11458_v36  ;;  %v6944_v13 = vld [vmem:[%s10958_s3 + $0x100] ss:$8 sps:$4 sm:$0xff]  }
 0x2fd   :  { %v3200_v33 = vmax.f32 %v11454_v40, %v11455_v43  ;;  %v3033_v47 = vrot.slane %v3032_v23, 1  ;;  %v3117_v35 = vrot.slane %v3116_v21, 1  ;;  %v4750_v58 = vsel %vm3716_vm0, %v11421_v37, %v4749_v29  ;;  %4359 = vmatpush1.bf16.msra.mxu1 %v6941_v39  ;;  %4378 = vmatprep.mubr.bf16.mxu1 %v11341_v0  ;;  %v11459_v14 = vld [vmem:[#allocation3_spill] sm:$0xff] }
 0x2fe   :  { %v11457_v40 = vrot.slane %v11456_v9, 2  ;;  %v4751_v27 = vsel %vm3718_vm1, %v11439_v6, %v4750_v58  ;;  %v4757_v37 = vsel %vm3716_vm0, %v11424_v54, %v4756_v56  ;;  %4360 = vmatprep.subr.bf16.mxu1 %v6946_v45  ;;  %v6949_v54 = vld [vmem:[%s10958_s3 + $0x274] ss:$8 sps:$4 sm:$0xff]  }
 0x2ff   :  { %v3201_v52 = vrot.slane %v3200_v33, 1  ;;  %v3034_v28 = vmax.f32 %v3032_v23, %v3033_v47  ;;  %v3118_v48 = vmax.f32 %v3116_v21, %v3117_v35  ;;  %v4752_v55 = vsel %vm3720_vm2, %v11459_v14, %v4751_v27  ;;  %v11460_v23 = vld [vmem:[#allocation64_spill] sm:$0xff]  ;;  %v11461_v35 = vld [vmem:[#allocation15_spill] sm:$0xff] }
 0x300   :  { %v3284_v43 = vmax.f32 %v11456_v9, %v11457_v40  ;;  %v4758_v53 = vsel %vm3718_vm1, %v11437_v34, %v4757_v37  ;;  %v4753_v39 = vsel %vm3722_vm3, %v11460_v23, %v4752_v55  ;;  %v11463_v55 = vrot.slane %v11435_v18, 2 }
 0x301   :  { %v3202_v61 = vmax.f32 %v3200_v33, %v3201_v52  ;;  %v3490_v6 = vpack.c.bf16 %v3034_v28, %v3034_v28  ;;  %v3502_v36 = vpack.c.bf16 %v3118_v48, %v3118_v48  ;;  %v4759_v47 = vsel %vm3720_vm2, %v11441_v3, %v4758_v53  ;;  %4361 = vmatpush1.bf16.msra.mxu1 %v6944_v13  ;;  %v6947_v3 = vld [vmem:[%s10958_s3 + $0x270] ss:$8 sps:$4 sm:$0xff]  }
 0x302   :  { %v3285_v21 = vrot.slane %v3284_v43, 1  ;;  %v4760_v29 = vsel %vm3722_vm3, %v11461_v35, %v4759_v47  ;;  %v4762_v33 = vsel %vm3712_vm14, %v9356_v59, %v9320_v25  ;;  %v4769_v28 = vsel %vm3712_vm14, %v9488_v24, %v9484_v11  ;;  %4878 = vmatprep.subr.bf16.mxu1 %v6949_v54  ;;  %v6952_v59 = vld [vmem:[%s10958_s3 + $0x264] ss:$8 sps:$4 sm:$0xff]  }
 0x303   :  { %v3514_v34 = vpack.c.bf16 %v3202_v61, %v3202_v61  ;;  %v4728_v45 = vunpack.c.l.b16 %v3490_v6  ;;  %v4729_v56 = vunpack.c.l.b16 %v3502_v36  ;;  %v4763_v48 = vsel %vm3714_vm15, %v9358_v30, %v4762_v33  ;;  %v11465_v47 = vld [vmem:[#allocation18_spill] sm:$0xff] }
 0x304   :  { %v3286_v58 = vmax.f32 %v3284_v43, %v3285_v21  ;;  %v4764_v40 = vsel %vm3716_vm0, %v11393_v12, %v4763_v48  ;;  %v4770_v25 = vsel %vm3714_vm15, %v11394_v10, %v4769_v28  ;;  %v11462_v13 = vpack.c.b16 %v10086_v1, %v10070_v50  ;;  %v6955_v1 = vld [vmem:[%s10958_s3 + $0x254] ss:$8 sps:$4 sm:$0xff]   ;;  %v6956_v33 = vld [vmem:[%s10958_s3 + $0x240] ss:$8 sps:$4 sm:$0xff]   ;;  %v6959_v48 = vld [vmem:[%s10958_s3 + $0x230] ss:$8 sps:$4 sm:$0xff]  }
 0x305   :  { %v4730_v9 = vunpack.c.l.b16 %v3514_v34  ;;  %v10292_v30 = vsel %vm3724_vm4, %v4728_v45, %v4753_v39  ;;  %v10295_v11 = vsel %vm3724_vm4, %v4729_v56, %v4760_v29  ;;  %v4765_v24 = vsel %vm3718_vm1, %v9755_v5, %v4764_v40  ;;  %v6964_v28 = vld [vmem:[%s10958_s3 + $0x224] ss:$8 sps:$4 sm:$0xff]   ;;  %v6962_v40 = vld [vmem:[%s10958_s3 + $0x220] ss:$8 sps:$4 sm:$0xff]  }
 0x306   :  { %v3526_v52 = vpack.c.bf16 %v3286_v58, %v3286_v58  ;;  %v4771_v12 = vsel %vm3716_vm0, %v11395_v44, %v4770_v25  ;;  %v4791_v10 = vpack.c.b16 %v10295_v11, %v10292_v30  ;;  %v4766_v27 = vsel %vm3720_vm2, %v9795_v31, %v4765_v24  ;;  %4379 = vmatmul.mubr.bf16.vlgmr.msra.gmra.mxu1 %v11462_v13  ;;  %v6967_v25 = vld [vmem:[%s10958_s3 + $0x214] ss:$8 sps:$4 sm:$0xff]   ;;  %v6970_v24 = vld [vmem:[%s10958_s3 + $0x204] ss:$8 sps:$4 sm:$0xff]  }
 0x307   :  { %v4772_v37 = vsel %vm3718_vm1, %v9762_v57, %v4771_v12  ;;  %v4767_v5 = vsel %vm3722_vm3, %v9799_v4, %v4766_v27  ;;  %v3368_v53 = vmax.f32 %v11435_v18, %v11463_v55  ;;  %v11464_v61 = vrot.slane %v10120_v41, 2  ;;  %4879 = vmatpush1.bf16.msra.mxu1 %v6947_v3  ;;  %v6950_v57 = vld [vmem:[%s10958_s3 + $0x260] ss:$8 sps:$4 sm:$0xff]   ;;  %4388 = vmatprep.mubr.bf16.mxu1 %v11341_v0  ;;  %v11467_v3 = vld [vmem:[#allocation21_spill] sm:$0xff] }
 0x308   :  { %v4731_v43 = vunpack.c.l.b16 %v3526_v52  ;;  %v4773_v44 = vsel %vm3720_vm2, %v9806_v32, %v4772_v37  ;;  %v10325_v4 = vsel %vm3724_vm4, %v4730_v9, %v4767_v5  ;;  %v4776_v50 = vsel %vm3712_vm14, %v9663_v60, %v9661_v49  ;;  %4880 = vmatprep.subr.bf16.mxu1 %v6952_v59  ;;  %v11468_v52 = vld [vmem:[#allocation19_spill] sm:$0xff]  ;;  %v6965_v59 = vld [vmem:[%s10958_s3 + $0x210] ss:$8 sps:$4 sm:$0xff]   ;;  %v11471_v27 = vld [vmem:[#allocation22_spill] sm:$0xff] }
 0x309   :  { %v3452_v31 = vmax.f32 %v10120_v41, %v11464_v61  ;;  %v4774_v32 = vsel %vm3722_vm3, %v9813_v46, %v4773_v44  ;;  %v3369_v41 = vrot.slane %v3368_v53, 1  ;;  %v4777_v54 = vsel %vm3714_vm15, %v9666_v19, %v4776_v50 }
 0x30a   :  { %v4775_v18 = vsel %vm3724_vm4, %v4731_v43, %v4774_v32  ;;  %v4222_v46 = vsel %vm3724_vm4, %v11459_v14, %v10145_v63  ;;  %v4778_v49 = vsel %vm3716_vm0, %v9669_v26, %v4777_v54  ;;  %v4783_v60 = vsel %vm3712_vm14, %v9749_v16, %v9743_v20  ;;  %v6953_v63 = vld [vmem:[%s10958_s3 + $0x250] ss:$8 sps:$4 sm:$0xff]   ;;  %v6958_v16 = vld [vmem:[%s10958_s3 + $0x244] ss:$8 sps:$4 sm:$0xff]   ;;  %v6968_v43 = vld [vmem:[%s10958_s3 + $0x200] ss:$8 sps:$4 sm:$0xff]  }
 0x30b   :  { %v3453_v21 = vrot.slane %v3452_v31, 1  ;;  %v4792_v6 = vpack.c.b16 %v4775_v18, %v10325_v4  ;;  %v3370_v36 = vmax.f32 %v3368_v53, %v3369_v41  ;;  %v4779_v39 = vsel %vm3718_vm1, %v9851_v51, %v4778_v49  ;;  %4881 = vmatpush1.bf16.msra.mxu1 %v6950_v57 }
 0x30c   :  { %v4784_v19 = vsel %vm3714_vm15, %v9751_v7, %v4783_v60  ;;  %v4259_v14 = vpack.c.b16 %v10160_v42, %v4222_v46  ;;  %v4780_v26 = vsel %vm3720_vm2, %v9880_v2, %v4779_v39  ;;  %4882 = vmatprep.subr.bf16.mxu1 %v6955_v1  ;;  %v11469_v9 = vpack.c.b16 %v11467_v3, %v11468_v52 }
 0x30d   :  { %v3454_v23 = vmax.f32 %v3452_v31, %v3453_v21  ;;  %v4785_v20 = vsel %vm3716_vm0, %v9753_v62, %v4784_v19  ;;  %v3538_v51 = vpack.c.bf16 %v3370_v36, %v3370_v36  ;;  %v4781_v35 = vsel %vm3722_vm3, %v11465_v47, %v4780_v26  ;;  %v11466_v62 = vld [vmem:[#allocation23_spill] sm:$0xff] }
 0x30e   :  { %v4786_v29 = vsel %vm3718_vm1, %v9853_v15, %v4785_v20  ;;  %4389 = vmatmul.mubr.bf16.gmra.mxu1 %v4259_v14  ;;  %v6961_v15 = vld [vmem:[%s10958_s3 + $0x234] ss:$8 sps:$4 sm:$0xff]   ;;  %v11470_v12 = vpack.c.b16 %v10224_v17, %v10197_v22  ;;  %v11472_v37 = vpack.c.b16 %v10207_v8, %v11471_v27  ;;  %v10417_v22 = vpop.f32.mrf.mxu1 }
 0x30f   :  { %v3550_v7 = vpack.c.bf16 %v3454_v23, %v3454_v23  ;;  %v4787_v42 = vsel %vm3720_vm2, %v9884_v38, %v4786_v29  ;;  %v4732_v2 = vunpack.c.l.b16 %v3538_v51  ;;  %4883 = vmatpush1.bf16.msra.mxu1 %v6953_v63  ;;  %4398 = vmatprep.mubr.bf16.mxu1 %v11341_v0 }
 0x310   :  { %v4788_v34 = vsel %vm3722_vm3, %v11466_v62, %v4787_v42  ;;  %4884 = vmatprep.subr.bf16.mxu1 %v6958_v16  ;;  %v10419_v17 = vpop.f32.mrf.mxu1 }
 0x311   :  { %v4733_v58 = vunpack.c.l.b16 %v3550_v7  ;;  %v4782_v38 = vsel %vm3724_vm4, %v4732_v2, %v4781_v35  ;;  %v10459_v19 = vpop.f32.mrf.mxu0 }
 0x312   :  { %v10421_v13 = vpop.f32.mrf.mxu1 }
 0x313   :  { %v4789_v45 = vsel %vm3724_vm4, %v4733_v58, %v4788_v34  ;;  %4885 = vmatpush1.bf16.msra.mxu1 %v6956_v33  ;;  %v10467_v16 = vpop.f32.mrf.mxu0  ;;  %v7051_v34 = vmov 0.0   ;;  %v6971_v33 = vld [vmem:[%s10960_s5 + $0x38] sm:$0xff]  }
 0x314   :  { %v4793_v56 = vpack.c.b16 %v4789_v45, %v4782_v38  ;;  %4886 = vmatprep.subr.bf16.mxu1 %v6961_v15  ;;  %v10423_v8 = vpop.f32.mrf.mxu1  ;;  %6685 = vmatprep.subr.bf16.mxu0 %v7051_v34 }
 0x315   :  { %v10473_v47 = vpop.f32.mrf.mxu0  ;;  %6701 = vmatprep.mubr.msk.bf16.mxu0 %vm7052_vm5, %v7051_v34 }
 0x316   :  { %4399 = vmatmul.mubr.bf16.gmra.mxu1 %v11469_v9 }
 0x317   :  { %4887 = vmatpush1.bf16.msra.mxu1 %v6959_v48  ;;  %4408 = vmatprep.mubr.bf16.mxu1 %v11341_v0  ;;  %v10477_v42 = vpop.f32.mrf.mxu0 }
 0x318   :  { %4888 = vmatprep.subr.bf16.mxu1 %v6964_v28 }
 0x31b   :  { %4889 = vmatpush1.bf16.msra.mxu1 %v6962_v40 }
 0x31c   :  { %4890 = vmatprep.subr.bf16.mxu1 %v6967_v25 }
 0x31e   :  { %4409 = vmatmul.mubr.bf16.gmra.mxu1 %v11470_v12  ;;  %v6973_v12 = vld [vmem:[%s10960_s5 + $0x30] sm:$0xff]  }
 0x31f   :  { %4891 = vmatpush1.bf16.msra.mxu1 %v6965_v59  ;;  %4910 = vmatprep.mubr.bf16.mxu1 %v11341_v0 }
 0x320   :  { %4892 = vmatprep.subr.bf16.mxu1 %v6970_v24  ;;  %v6972_v24 = vld [vmem:[%s10960_s5 + $0x78] sm:$0xff]  }
 0x321   :  { %6686 = vmatpush3.bf16.msra.mxu0 %v6972_v24 }
 0x322   :  { %6687 = vmatprep.subr.bf16.mxu0 %v7051_v34 }
 0x323   :  { %4893 = vmatpush1.bf16.msra.mxu1 %v6968_v43 }
 0x324   :  { %6705 = vmatprep.subr.bf16.mxu1 %v7051_v34 }
 0x326   :  { %4911 = vmatmul.mubr.bf16.vlgmr.msra.gmra.mxu1 %v11472_v37  ;;  %v6974_v37 = vld [vmem:[%s10960_s5 + $0x70] sm:$0xff]  }
 0x327   :  { %4920 = vmatprep.mubr.bf16.mxu1 %v11341_v0  ;;  %6706 = vmatpush3.bf16.msra.mxu1 %v6971_v33 }
 0x328   :  { %6707 = vmatprep.subr.bf16.mxu1 %v7051_v34  ;;  %6688 = vmatpush3.bf16.msra.mxu0 %v6974_v37 }
 0x329   :  { %6689 = vmatprep.subr.bf16.mxu0 %v7051_v34 }
 0x32b   :  { %6708 = vmatpush3.bf16.msra.mxu1 %v6973_v12 }
 0x32c   :  { %6709 = vmatprep.subr.bf16.mxu1 %v7051_v34 }
 0x32e   :  { %4921 = vmatmul.mubr.bf16.gmra.mxu1 %v4791_v10 }
 0x32f   :  { %4930 = vmatprep.mubr.bf16.mxu1 %v11341_v0 }
 0x336   :  { %4931 = vmatmul.mubr.bf16.gmra.mxu1 %v4792_v6 }
 0x337   :  { %4940 = vmatprep.mubr.bf16.mxu1 %v11341_v0 }
 0x33e   :  { %4941 = vmatmul.mubr.bf16.gmra.mxu1 %v4793_v56 }
 0x33f   :  { %6721 = vmatprep.mubr.msk.bf16.mxu1 %vm7052_vm5, %v7051_v34 }
 0x35b   :  { %v10425_v5 = vpop.f32.mrf.mxu1 }
 0x35d   :  { %v10427_v44 = vpop.f32.mrf.mxu1 }
 0x35f   :  { %v10429_v30 = vpop.f32.mrf.mxu1 }
 0x361   :  { %v3913_v11 = vpop.f32.mrf.mxu1 }
 0x364   :  { %v10479_v58 = vpop.f32.mrf.mxu0 }
 0x366   :  { %v10486_v38 = vpop.f32.mrf.mxu0 }
 0x368   :  { %v10489_v48 = vpop.f32.mrf.mxu0 }
 0x36a   :  { %v10491_v52 = vpop.f32.mrf.mxu0 }
 0x391   :  { %v3917_v10 = vpop.f32.mrf.mxu1 }
 0x393   :  { %v3919_v55 = vpop.f32.mrf.mxu1 }
 0x395   :  { %v3921_v53 = vpop.f32.mrf.mxu1 }
 0x397   :  { %v3923_v0 = vpop.f32.mrf.mxu1 }
 0x398   :  { %v10495_v40 = vpop.f32.mrf.mxu0 }
 0x39a   :  { %v10507_v43 = vpop.f32.mrf.mxu0 }
 0x39c   :  { %v10431_v61 = vpop.f32.mrf.mxu1 }
 0x39e   :  { %v10433_v31 = vpop.f32.mrf.mxu1 }
 0x3a0   :  { %v10435_v57 = vpop.f32.mrf.mxu1 }
 0x3a2   :  { %v10437_v4 = vpop.f32.mrf.mxu1 }
 0x3a4   :  { %v10439_v32 = vpop.f32.mrf.mxu1 }
 0x3a6   :  { %v10441_v50 = vpop.f32.mrf.mxu1 }
 0x3a8   :  { %v10443_v1 = vpop.f32.mrf.mxu1 }
 0x3aa   :  { %v10445_v18 = vpop.f32.mrf.mxu1 }
 0x3ab   :  { %v4137_v24 = vadd.f32 %v10445_v18, %v10423_v8 }
 0x3ac   :  { %v10447_v41 = vpop.f32.mrf.mxu1 }
 0x3ad   :  { %v4141_v12 = vadd.f32 %v10447_v41, %v10425_v5  ;;  %v6979_v5 = vld [vmem:[%s10960_s5 + $0x18] sm:$0xff]  }
 0x3ae   :  { %v10449_v21 = vpop.f32.mrf.mxu1 }
 0x3b0   :  { %v10451_v54 = vpop.f32.mrf.mxu1 }
 0x3b2   :  { %v4146_v46 = vpop.f32.mrf.mxu1 }
 0x3b3   :  { %v10453_v6 = vadd.f32 %v4146_v46, %v3913_v11  ;;  %v6975_v11 = vld [vmem:[%s10960_s5 + $0x28] sm:$0xff]  }
 0x3b4   :  { %v4150_v49 = vpop.f32.mrf.mxu1  ;;  %v6976_v46 = vld [vmem:[%s10960_s5 + $0x68] sm:$0xff]   ;;  %6710 = vmatpush3.bf16.msra.mxu1 %v6975_v11  ;;  %v6978_v11 = vld [vmem:[%s10960_s5 + $0x60] sm:$0xff]  }
 0x3b5   :  { %v10455_v60 = vadd.f32 %v4150_v49, %v3917_v10  ;;  %6711 = vmatprep.subr.bf16.mxu1 %v7051_v34  ;;  %6690 = vmatpush3.bf16.msra.mxu0 %v6976_v46 }
 0x3b6   :  { %v4152_v36 = vpop.f32.mrf.mxu1  ;;  %6691 = vmatprep.subr.bf16.mxu0 %v7051_v34 }
 0x3b7   :  { %v10457_v23 = vadd.f32 %v4152_v36, %v3919_v55  ;;  %v10525_v55 = vpop.f32.mrf.mxu0  ;;  %v6977_v36 = vld [vmem:[%s10960_s5 + $0x20] sm:$0xff]  }
 0x3b8   :  { %v4154_v39 = vpop.f32.mrf.mxu1  ;;  %6712 = vmatpush3.bf16.msra.mxu1 %v6977_v36 }
 0x3b9   :  { %v10461_v63 = vadd.f32 %v4154_v39, %v3921_v53  ;;  %v4131_v53 = vadd.f32 %v10439_v32, %v10417_v22  ;;  %v4133_v39 = vadd.f32 %v10441_v50, %v10419_v17  ;;  %v4135_v32 = vadd.f32 %v10443_v1, %v10421_v13  ;;  %v10548_v33 = vpop.f32.mrf.mxu0  ;;  %v11473_v17 = vld [vmem:[#allocation51_spill] sm:$0xff]  ;;  %6713 = vmatprep.subr.bf16.mxu1 %v7051_v34 }
 0x3ba   :  { %v4156_v14 = vpop.f32.mrf.mxu1  ;;  %v11474_v50 = vsub.s32 0, %v11473_v17  ;;  %v4143_v13 = vadd.f32 %v10449_v21, %v10427_v44  ;;  %v4145_v1 = vadd.f32 %v10451_v54, %v10429_v30  ;;  %6692 = vmatpush3.bf16.msra.mxu0 %v6978_v11 }
 0x3bb   :  { %v10463_v26 = vadd.f32 %v4156_v14, %v3923_v0  ;;  %v4967_v0 = vld [vmem:[%s10961_s4] sm:$0x3]  ;;  %v10568_v18 = vpop.f32.mrf.mxu0  ;;  %6693 = vmatprep.subr.bf16.mxu0 %v7051_v34 }
 0x3bc   :  { %v10465_v20 = vpop.f32.mrf.mxu1  ;;  %6714 = vmatpush3.bf16.msra.mxu1 %v6979_v5 }
 0x3bd   :  { %v4161_v44 = vadd.f32 %v10465_v20, %v10431_v61  ;;  %v4678_v20 = vpop.f32.mrf.mxu0  ;;  %6715 = vmatprep.subr.bf16.mxu1 %v7051_v34 }
 0x3be   :  { %v10469_v51 = vpop.f32.mrf.mxu1 }
 0x3c0   :  { %v10471_v7 = vpop.f32.mrf.mxu1 }
 0x3c1   :  { %v4165_v36 = vadd.f32 %v10471_v7, %v10435_v57 }
 0x3c2   :  { %v10475_v35 = vpop.f32.mrf.mxu1 }
 0x3c6   :  { %v4380_v29 = vpop.f32.mrf.mxu1 }
 0x3c7   :  { %v4419_v22 = vadd.f32 %v4380_v29, %v4131_v53  ;;  %v10556_v29 = vrot.slane %v4967_v0, %v11474_v50 }
 0x3c8   :  { %v4382_v2 = vpop.f32.mrf.mxu1 }
 0x3c9   :  { %v4420_v37 = vadd.f32 %v4382_v2, %v4133_v39  ;;  %v4685_v2 = vadd.f32 %v10459_v19, %v4419_v22  ;;  %v11475_v39 = vsub.s32 1, %v11473_v17  ;;  %v4167_v22 = vadd.f32 %v10475_v35, %v10437_v4 }
 0x3ca   :  { %v4384_v62 = vpop.f32.mrf.mxu1 }
 0x3cb   :  { %v4421_v53 = vadd.f32 %v4384_v62, %v4135_v32  ;;  %v10573_v50 = vrot.slane %v4967_v0, %v11475_v39  ;;  %v4686_v0 = vadd.f32 %v10467_v16, %v4420_v37 }
 0x3cc   :  { %v4386_v15 = vpop.f32.mrf.mxu1 }
 0x3cd   :  { %v4422_v41 = vadd.f32 %v4386_v15, %v4137_v24  ;;  %v4163_v15 = vadd.f32 %v10469_v51, %v10433_v31  ;;  %v4687_v61 = vadd.f32 %v10473_v47, %v4421_v53  ;;  %v6980_v31 = vld [vmem:[%s10960_s5 + $0x58] sm:$0xff]  }
 0x3ce   :  { %v4390_v45 = vpop.f32.mrf.mxu1  ;;  %6694 = vmatpush3.bf16.msra.mxu0 %v6980_v31  ;;  %v6986_v31 = vld [vmem:[%s10960_s5 + $0x40] sm:$0xff]  }
 0x3cf   :  { %v4423_v30 = vadd.f32 %v4390_v45, %v4141_v12  ;;  %v4688_v51 = vadd.f32 %v10477_v42, %v4422_v41  ;;  %6695 = vmatprep.subr.bf16.mxu0 %v7051_v34 }
 0x3d0   :  { %v4392_v56 = vpop.f32.mrf.mxu1 }
 0x3d1   :  { %v4424_v21 = vadd.f32 %v4392_v56, %v4143_v13  ;;  %v4689_v47 = vadd.f32 %v10479_v58, %v4423_v30 }
 0x3d2   :  { %v4394_v28 = vpop.f32.mrf.mxu1 }
 0x3d3   :  { %v4425_v54 = vadd.f32 %v4394_v28, %v4145_v1  ;;  %v4690_v35 = vadd.f32 %v10486_v38, %v4424_v21 }
 0x3d4   :  { %v4396_v3 = vpop.f32.mrf.mxu1 }
 0x3d5   :  { %v4426_v19 = vadd.f32 %v4396_v3, %v10453_v6  ;;  %v6981_v6 = vld [vmem:[%s10960_s5 + $0x10] sm:$0xff]   ;;  %v4691_v45 = vadd.f32 %v10489_v48, %v4425_v54  ;;  %v6983_v48 = vld [vmem:[%s10960_s5 + $0x8] sm:$0xff]  }
 0x3d6   :  { %v10493_v9 = vpop.f32.mrf.mxu1  ;;  %6716 = vmatpush3.bf16.msra.mxu1 %v6981_v6 }
 0x3d7   :  { %v4427_v4 = vadd.f32 %v10493_v9, %v10455_v60  ;;  %v10607_v3 = vadd.f32 %v10491_v52, %v4426_v19  ;;  %v4680_v52 = vpop.f32.mrf.mxu0  ;;  %6717 = vmatprep.subr.bf16.mxu1 %v7051_v34 }
 0x3d8   :  { %v10497_v25 = vpop.f32.mrf.mxu1 }
 0x3d9   :  { %v4428_v56 = vadd.f32 %v10497_v25, %v10457_v23  ;;  %v6982_v23 = vld [vmem:[%s10960_s5 + $0x50] sm:$0xff]   ;;  %v10626_v37 = vadd.f32 %v10495_v40, %v4427_v4  ;;  %v6984_v40 = vld [vmem:[%s10960_s5 + $0x48] sm:$0xff]  }
 0x3da   :  { %v10499_v59 = vpop.f32.mrf.mxu1  ;;  %6696 = vmatpush3.bf16.msra.mxu0 %v6982_v23  ;;  %6718 = vmatpush3.bf16.msra.mxu1 %v6983_v48 }
 0x3db   :  { %v4429_v24 = vadd.f32 %v10499_v59, %v10461_v63  ;;  %v10630_v1 = vadd.f32 %v10507_v43, %v4428_v56  ;;  %v6985_v43 = vld [vmem:[%s10960_s5] sm:$0xff]   ;;  %6697 = vmatprep.subr.bf16.mxu0 %v7051_v34  ;;  %6719 = vmatprep.subr.bf16.mxu1 %v7051_v34 }
 0x3dc   :  { %v10513_v27 = vpop.f32.mrf.mxu1 }
 0x3dd   :  { %v4430_v60 = vadd.f32 %v10513_v27, %v10463_v26  ;;  %v10633_v41 = vadd.f32 %v10525_v55, %v4429_v24  ;;  %v11476_v55 = vld [vmem:[#allocation5_spill] sm:$0xff] }
 0x3de   :  { %v10523_v10 = vpop.f32.mrf.mxu1  ;;  %6698 = vmatpush3.bf16.msra.mxu0 %v6984_v40  ;;  %6720 = vmatpush3.bf16.msra.mxu1 %v6985_v43 }
 0x3df   :  { %v4431_v58 = vadd.f32 %v10523_v10, %v4161_v44  ;;  %6699 = vmatprep.subr.bf16.mxu0 %v7051_v34  ;;  %6745 = vmatprep.subr.bf16.mxu1 %v7051_v34 }
 0x3e0   :  { %v10535_v49 = vpop.f32.mrf.mxu1 }
 0x3e1   :  { %v4432_v26 = vadd.f32 %v10535_v49, %v4163_v15  ;;  %v10636_v49 = vadd.f32 %v10548_v33, %v4430_v60 }
 0x3e2   :  { %v10546_v14 = vpop.f32.mrf.mxu1  ;;  %6700 = vmatpush3.bf16.msra.mxu0 %v6986_v31 }
 0x3e3   :  { %v4433_v27 = vadd.f32 %v10546_v14, %v4165_v36  ;;  %v10639_v14 = vadd.f32 %v10568_v18, %v4431_v58  ;;  %v10653_v21 = vadd.f32 %v4678_v20, %v4432_v26  ;;  %6725 = vmatprep.subr.bf16.mxu0 %v7051_v34 }
 0x3e4   :  { %v4416_v8 = vpop.f32.mrf.mxu1 }
 0x3e5   :  { %v4434_v10 = vadd.f32 %v4416_v8, %v4167_v22  ;;  %v4682_v8 = vpop.f32.mrf.mxu0  ;;  %v10655_v54 = vadd.f32 %v4680_v52, %v4433_v27 }
 0x3e6   :  { %v4912_v62 = vpop.f32.mrf.mxu1 }
 0x3e7   :  { %v4951_v46 = vadd.f32 %v4912_v62, %v4685_v2  ;;  %v10657_v62 = vadd.f32 %v4682_v8, %v4434_v10 }
 0x3e8   :  { %v4914_v32 = vpop.f32.mrf.mxu1 }
 0x3e9   :  { %v4979_v16 = vadd.f32 %v10556_v29, %v4951_v46  ;;  %v4952_v57 = vadd.f32 %v4914_v32, %v4686_v0 }
 0x3ea   :  { %v4916_v7 = vpop.f32.mrf.mxu1 }
 0x3eb   :  { %v4980_v28 = vadd.f32 %v10573_v50, %v4952_v57  ;;  %v4953_v42 = vadd.f32 %v4916_v7, %v4687_v61  ;;  %v4995_v9 = vmax.f32 %v4979_v16, 0.0 }
 0x3ec   :  { %v4918_v38 = vpop.f32.mrf.mxu1 }
 0x3ed   :  { %v4996_v25 = vmax.f32 %v4980_v28, 0.0  ;;  %v4981_v63 = vadd.f32 %v10556_v29, %v4953_v42  ;;  %v4954_v59 = vadd.f32 %v4918_v38, %v4688_v51 }
 0x3ee   :  { %v4922_v12 = vpop.f32.mrf.mxu1 }
 0x3ef   :  { %v5011_v17 = vmax.f32 %v4995_v9, %v4996_v25  ;;  %v4982_v11 = vadd.f32 %v10573_v50, %v4954_v59  ;;  %v4955_v13 = vadd.f32 %v4922_v12, %v4689_v47  ;;  %v4997_v53 = vmax.f32 %v4981_v63, 0.0 }
 0x3f0   :  { %v4924_v5 = vpop.f32.mrf.mxu1 }
 0x3f1   :  { %v5027_v2 = vcombine.high %v5011_v17, %v5011_v17  ;;  %v5034_v39 = vrot.slane %v5011_v17, %v11476_v55  ;;  %v4998_v44 = vmax.f32 %v4982_v11, 0.0  ;;  %v10649_v33 = vadd.f32 %v10556_v29, %v4955_v13 }
 0x3f2   :  { %v4956_v18 = vadd.f32 %v4924_v5, %v4690_v35  ;;  %v4926_v30 = vpop.f32.mrf.mxu1 }
 0x3f3   :  { %v5041_v15 = vrot.slane %v5027_v2, %v11476_v55  ;;  %v5042_v19 = vcombine.high %v5034_v39, %v5034_v39  ;;  %v5195_v46 = vsel %vm1737_vm11, %v5034_v39, -inf  ;;  %v5012_v0 = vmax.f32 %v4997_v53, %v4998_v44 }
 0x3f4   :  { %v5196_v36 = vrot.slane %v5195_v46, 4  ;;  %v4999_v22 = vmax.f32 %v10649_v33, 0.0  ;;  %v10663_v32 = vadd.f32 %v10573_v50, %v4956_v18  ;;  %v4957_v61 = vadd.f32 %v4926_v30, %v4691_v45  ;;  %v4928_v31 = vpop.f32.mrf.mxu1 }
 0x3f5   :  { %v5043_v6 = vcombine.high %v5041_v15, %v5041_v15  ;;  %v5202_v20 = vsel %vm1737_vm11, %v5042_v19, -inf  ;;  %v5209_v16 = vsel %vm1737_vm11, %v5041_v15, -inf  ;;  %v5044_v57 = vcombine.high %v5012_v0, %v5012_v0 }
 0x3f6   :  { %v5197_v51 = vmax.f32 %v5195_v46, %v5196_v36  ;;  %v5203_v4 = vrot.slane %v5202_v20, 4  ;;  %v5210_v7 = vrot.slane %v5209_v16, 4  ;;  %v5051_v47 = vrot.slane %v5012_v0, %v11476_v55 }
 0x3f7   :  { %v5216_v35 = vsel %vm1737_vm11, %v5043_v6, -inf  ;;  %v5058_v45 = vrot.slane %v5044_v57, %v11476_v55  ;;  %v5000_v56 = vmax.f32 %v10663_v32, 0.0  ;;  %v10677_v28 = vadd.f32 %v10556_v29, %v4957_v61 }
 0x3f8   :  { %v5198_v42 = vrot.slane %v5197_v51, 2  ;;  %v5204_v24 = vmax.f32 %v5202_v20, %v5203_v4  ;;  %v5211_v60 = vmax.f32 %v5209_v16, %v5210_v7  ;;  %v5217_v58 = vrot.slane %v5216_v35, 4 }
 0x3f9   :  { %v5059_v38 = vcombine.high %v5051_v47, %v5051_v47  ;;  %v5060_v23 = vcombine.high %v5058_v45, %v5058_v45  ;;  %v5223_v48 = vsel %vm1737_vm11, %v5051_v47, -inf  ;;  %v5237_v52 = vsel %vm1737_vm11, %v5058_v45, -inf }
 0x3fa   :  { %v5199_v9 = vmax.f32 %v5197_v51, %v5198_v42  ;;  %v5205_v25 = vrot.slane %v5204_v24, 2  ;;  %v5212_v63 = vrot.slane %v5211_v60, 2  ;;  %v5218_v59 = vmax.f32 %v5216_v35, %v5217_v58 }
 0x3fb   :  { %v5224_v26 = vrot.slane %v5223_v48, 4  ;;  %v5230_v27 = vsel %vm1737_vm11, %v5059_v38, -inf  ;;  %v5238_v10 = vrot.slane %v5237_v52, 4  ;;  %v5244_v12 = vsel %vm1737_vm11, %v5060_v23, -inf }
 0x3fc   :  { %v5200_v17 = vrot.slane %v5199_v9, 1  ;;  %v5206_v11 = vmax.f32 %v5204_v24, %v5205_v25  ;;  %v5213_v13 = vmax.f32 %v5211_v60, %v5212_v63  ;;  %v5219_v53 = vrot.slane %v5218_v59, 2 }
 0x3fd   :  { %v5225_v5 = vmax.f32 %v5223_v48, %v5224_v26  ;;  %v5231_v40 = vrot.slane %v5230_v27, 4  ;;  %v5239_v43 = vmax.f32 %v5237_v52, %v5238_v10  ;;  %v5245_v8 = vrot.slane %v5244_v12, 4  ;;  %v4932_v48 = vpop.f32.mrf.mxu1 }
 0x3fe   :  { %v5201_v2 = vmax.f32 %v5199_v9, %v5200_v17  ;;  %v5207_v39 = vrot.slane %v5206_v11, 1  ;;  %v5214_v44 = vrot.slane %v5213_v13, 1  ;;  %v5220_v18 = vmax.f32 %v5218_v59, %v5219_v53 }
 0x3ff   :  { %v5226_v30 = vrot.slane %v5225_v5, 2  ;;  %v5232_v15 = vmax.f32 %v5230_v27, %v5231_v40  ;;  %v5240_v19 = vrot.slane %v5239_v43, 2  ;;  %v5246_v46 = vmax.f32 %v5244_v12, %v5245_v8 }
 0x400   :  { %v5208_v0 = vmax.f32 %v5206_v11, %v5207_v39  ;;  %v5215_v36 = vmax.f32 %v5213_v13, %v5214_v44  ;;  %v5221_v32 = vrot.slane %v5220_v18, 1  ;;  %v5419_v61 = vpack.c.bf16 %v5201_v2, %v5201_v2 }
 0x401   :  { %v5227_v6 = vmax.f32 %v5225_v5, %v5226_v30  ;;  %v5233_v20 = vrot.slane %v5232_v15, 2  ;;  %v5241_v16 = vmax.f32 %v5239_v43, %v5240_v19  ;;  %v5247_v57 = vrot.slane %v5246_v46, 2 }
 0x402   :  { %v5222_v51 = vmax.f32 %v5220_v18, %v5221_v32  ;;  %v5420_v4 = vpack.c.bf16 %v5208_v0, %v5208_v0  ;;  %v5421_v7 = vpack.c.bf16 %v5215_v36, %v5215_v36  ;;  %v5605_v47 = vunpack.c.l.b16 %v5419_v61 }
 0x403   :  { %v5228_v35 = vrot.slane %v5227_v6, 1  ;;  %v5234_v45 = vmax.f32 %v5232_v15, %v5233_v20  ;;  %v5242_v42 = vrot.slane %v5241_v16, 1  ;;  %v5248_v24 = vmax.f32 %v5246_v46, %v5247_v57 }
 0x404   :  { %v5422_v60 = vpack.c.bf16 %v5222_v51, %v5222_v51  ;;  %v5492_v58 = vunpack.c.l.b16 %v5420_v4  ;;  %v5735_v38 = vunpack.c.l.b16 %v5421_v7  ;;  %v5013_v23 = vmax.f32 %v4999_v22, %v5000_v56  ;;  %v4934_v56 = vpop.f32.mrf.mxu1 }
 0x405   :  { %v5229_v52 = vmax.f32 %v5227_v6, %v5228_v35  ;;  %v5235_v9 = vrot.slane %v5234_v45, 1  ;;  %v5243_v25 = vmax.f32 %v5241_v16, %v5242_v42  ;;  %v5249_v63 = vrot.slane %v5248_v24, 1 }
 0x406   :  { %v5866_v59 = vunpack.c.l.b16 %v5422_v60  ;;  %v5061_v26 = vcombine.high %v5013_v23, %v5013_v23  ;;  %v5068_v27 = vrot.slane %v5013_v23, %v11476_v55  ;;  %v5001_v10 = vmax.f32 %v10677_v28, 0.0  ;;  %v4936_v61 = vpop.f32.mrf.mxu1 }
 0x407   :  { %v5236_v12 = vmax.f32 %v5234_v45, %v5235_v9  ;;  %v5250_v17 = vmax.f32 %v5248_v24, %v5249_v63  ;;  %v5423_v11 = vpack.c.bf16 %v5229_v52, %v5229_v52  ;;  %v5425_v13 = vpack.c.bf16 %v5243_v25, %v5243_v25 }
 0x408   :  { %v5075_v53 = vrot.slane %v5061_v26, %v11476_v55  ;;  %v5076_v5 = vcombine.high %v5068_v27, %v5068_v27  ;;  %v5251_v33 = vsel %vm1737_vm11, %v5068_v27, -inf  ;;  %v4958_v22 = vadd.f32 %v4928_v31, %v10607_v3 }
 0x409   :  { %v5424_v40 = vpack.c.bf16 %v5236_v12, %v5236_v12  ;;  %v5426_v43 = vpack.c.bf16 %v5250_v17, %v5250_v17  ;;  %v5606_v8 = vunpack.c.l.b16 %v5423_v11  ;;  %v5736_v2 = vunpack.c.l.b16 %v5425_v13 }
 0x40a   :  { %v5077_v39 = vcombine.high %v5075_v53, %v5075_v53  ;;  %v5252_v44 = vrot.slane %v5251_v33, 4  ;;  %v5258_v28 = vsel %vm1737_vm11, %v5076_v5, -inf  ;;  %v5265_v18 = vsel %vm1737_vm11, %v5075_v53, -inf }
 0x40b   :  { %v5493_v30 = vunpack.c.l.b16 %v5424_v40  ;;  %v10694_v15 = vsel %vm3712_vm14, %v5606_v8, %v5605_v47  ;;  %v10697_v19 = vsel %vm3712_vm14, %v5736_v2, %v5735_v38  ;;  %v5867_v46 = vunpack.c.l.b16 %v5426_v43 }
 0x40c   :  { %v5253_v3 = vmax.f32 %v5251_v33, %v5252_v44  ;;  %v5259_v0 = vrot.slane %v5258_v28, 4  ;;  %v5266_v36 = vrot.slane %v5265_v18, 4  ;;  %v5272_v32 = vsel %vm1737_vm11, %v5077_v39, -inf }
 0x40d   :  { %v10701_v31 = vsel %vm3712_vm14, %v5493_v30, %v5492_v58  ;;  %v10704_v6 = vsel %vm3712_vm14, %v5867_v46, %v5866_v59  ;;  %v5273_v20 = vrot.slane %v5272_v32, 4  ;;  %v4986_v16 = vadd.f32 %v10573_v50, %v4958_v22 }
 0x40e   :  { %v5254_v57 = vrot.slane %v5253_v3, 2  ;;  %v5260_v51 = vmax.f32 %v5258_v28, %v5259_v0  ;;  %v5267_v4 = vmax.f32 %v5265_v18, %v5266_v36  ;;  %v4959_v7 = vadd.f32 %v4932_v48, %v10626_v37  ;;  %v4938_v28 = vpop.f32.mrf.mxu1 }
 0x40f   :  { %v5274_v47 = vmax.f32 %v5272_v32, %v5273_v20  ;;  %v5002_v35 = vmax.f32 %v4986_v16, 0.0  ;;  %v4960_v45 = vadd.f32 %v4934_v56, %v10630_v1  ;;  %v4961_v42 = vadd.f32 %v4936_v61, %v10633_v41 }
 0x410   :  { %v5255_v24 = vmax.f32 %v5253_v3, %v5254_v57  ;;  %v5261_v60 = vrot.slane %v5260_v51, 2  ;;  %v5268_v58 = vrot.slane %v5267_v4, 2  ;;  %v4987_v38 = vadd.f32 %v10556_v29, %v4959_v7 }
 0x411   :  { %v5275_v23 = vrot.slane %v5274_v47, 2  ;;  %v5014_v52 = vmax.f32 %v5001_v10, %v5002_v35  ;;  %v4988_v9 = vadd.f32 %v10573_v50, %v4960_v45  ;;  %v10713_v25 = vadd.f32 %v10556_v29, %v4961_v42  ;;  %v4942_v45 = vpop.f32.mrf.mxu1 }
 0x412   :  { %v5256_v63 = vrot.slane %v5255_v24, 1  ;;  %v5262_v37 = vmax.f32 %v5260_v51, %v5261_v60  ;;  %v5269_v48 = vmax.f32 %v5267_v4, %v5268_v58  ;;  %v5003_v59 = vmax.f32 %v4987_v38, 0.0 }
 0x413   :  { %v5276_v26 = vmax.f32 %v5274_v47, %v5275_v23  ;;  %v5078_v1 = vcombine.high %v5014_v52, %v5014_v52  ;;  %v5085_v41 = vrot.slane %v5014_v52, %v11476_v55  ;;  %v5004_v27 = vmax.f32 %v4988_v9, 0.0 }
 0x414   :  { %v5257_v12 = vmax.f32 %v5255_v24, %v5256_v63  ;;  %v5263_v17 = vrot.slane %v5262_v37, 1  ;;  %v5270_v11 = vrot.slane %v5269_v48, 1  ;;  %v5005_v13 = vmax.f32 %v10713_v25, 0.0 }
 0x415   :  { %v5277_v10 = vrot.slane %v5276_v26, 1  ;;  %v5092_v53 = vrot.slane %v5078_v1, %v11476_v55  ;;  %v5093_v5 = vcombine.high %v5085_v41, %v5085_v41  ;;  %v5279_v33 = vsel %vm1737_vm11, %v5085_v41, -inf }
 0x416   :  { %v5264_v22 = vmax.f32 %v5262_v37, %v5263_v17  ;;  %v5271_v56 = vmax.f32 %v5269_v48, %v5270_v11  ;;  %v5427_v40 = vpack.c.bf16 %v5257_v12, %v5257_v12  ;;  %v5280_v43 = vrot.slane %v5279_v33, 4 }
 0x417   :  { %v5278_v8 = vmax.f32 %v5276_v26, %v5277_v10  ;;  %v5094_v2 = vcombine.high %v5092_v53, %v5092_v53  ;;  %v5286_v39 = vsel %vm1737_vm11, %v5093_v5, -inf  ;;  %v5293_v44 = vsel %vm1737_vm11, %v5092_v53, -inf }
 0x418   :  { %v5428_v18 = vpack.c.bf16 %v5264_v22, %v5264_v22  ;;  %v5429_v30 = vpack.c.bf16 %v5271_v56, %v5271_v56  ;;  %v5607_v46 = vunpack.c.l.b16 %v5427_v40  ;;  %v5281_v3 = vmax.f32 %v5279_v33, %v5280_v43 }
 0x419   :  { %v5430_v0 = vpack.c.bf16 %v5278_v8, %v5278_v8  ;;  %v5287_v36 = vrot.slane %v5286_v39, 4  ;;  %v5294_v32 = vrot.slane %v5293_v44, 4  ;;  %v5300_v61 = vsel %vm1737_vm11, %v5094_v2, -inf }
 0x41a   :  { %v5494_v20 = vunpack.c.l.b16 %v5428_v18  ;;  %v5614_v16 = vsel %vm3714_vm15, %v5607_v46, %v10694_v15  ;;  %v5737_v57 = vunpack.c.l.b16 %v5429_v30  ;;  %v5282_v51 = vrot.slane %v5281_v3, 2 }
 0x41b   :  { %v10724_v4 = vunpack.c.l.b16 %v5430_v0  ;;  %v5288_v7 = vmax.f32 %v5286_v39, %v5287_v36  ;;  %v5295_v47 = vmax.f32 %v5293_v44, %v5294_v32  ;;  %v5301_v35 = vrot.slane %v5300_v61, 4 }
 0x41c   :  { %v5501_v42 = vsel %vm3714_vm15, %v5494_v20, %v10701_v31  ;;  %v10730_v24 = vsel %vm3714_vm15, %v5737_v57, %v10697_v19  ;;  %v5283_v60 = vmax.f32 %v5281_v3, %v5282_v51  ;;  %v5015_v58 = vmax.f32 %v5003_v59, %v5004_v27 }
 0x41d   :  { %v5289_v38 = vrot.slane %v5288_v7, 2  ;;  %v5296_v23 = vrot.slane %v5295_v47, 2  ;;  %v5302_v15 = vmax.f32 %v5300_v61, %v5301_v35  ;;  %v4962_v52 = vadd.f32 %v4938_v28, %v10636_v49  ;;  %v4944_v28 = vpop.f32.mrf.mxu1 }
 0x41e   :  { %v5284_v9 = vrot.slane %v5283_v60, 1  ;;  %v5095_v63 = vcombine.high %v5015_v58, %v5015_v58  ;;  %v5102_v37 = vrot.slane %v5015_v58, %v11476_v55  ;;  %v4963_v48 = vadd.f32 %v4942_v45, %v10639_v14 }
 0x41f   :  { %v5290_v26 = vmax.f32 %v5288_v7, %v5289_v38  ;;  %v5297_v1 = vmax.f32 %v5295_v47, %v5296_v23  ;;  %v5303_v31 = vrot.slane %v5302_v15, 2  ;;  %v4990_v41 = vadd.f32 %v10573_v50, %v4962_v52  ;;  %v4946_v58 = vpop.f32.mrf.mxu1 }
 0x420   :  { %v5285_v19 = vmax.f32 %v5283_v60, %v5284_v9  ;;  %v5109_v12 = vrot.slane %v5095_v63, %v11476_v55  ;;  %v5110_v59 = vcombine.high %v5102_v37, %v5102_v37  ;;  %v5307_v27 = vsel %vm1737_vm11, %v5102_v37, -inf }
 0x421   :  { %v5291_v17 = vrot.slane %v5290_v26, 1  ;;  %v5298_v11 = vrot.slane %v5297_v1, 1  ;;  %v5304_v49 = vmax.f32 %v5302_v15, %v5303_v31  ;;  %v5308_v10 = vrot.slane %v5307_v27, 4 }
 0x422   :  { %v5431_v53 = vpack.c.bf16 %v5285_v19, %v5285_v19  ;;  %v5111_v5 = vcombine.high %v5109_v12, %v5109_v12  ;;  %v5314_v33 = vsel %vm1737_vm11, %v5110_v59, -inf  ;;  %v5321_v14 = vsel %vm1737_vm11, %v5109_v12, -inf }
 0x423   :  { %v5292_v22 = vmax.f32 %v5290_v26, %v5291_v17  ;;  %v5299_v56 = vmax.f32 %v5297_v1, %v5298_v11  ;;  %v5305_v40 = vrot.slane %v5304_v49, 1  ;;  %v5309_v43 = vmax.f32 %v5307_v27, %v5308_v10 }
 0x424   :  { %v5608_v8 = vunpack.c.l.b16 %v5431_v53  ;;  %v5315_v2 = vrot.slane %v5314_v33, 4  ;;  %v5322_v39 = vrot.slane %v5321_v14, 4  ;;  %v5328_v44 = vsel %vm1737_vm11, %v5111_v5, -inf }
 0x425   :  { %v5306_v18 = vmax.f32 %v5304_v49, %v5305_v40  ;;  %v5432_v30 = vpack.c.bf16 %v5292_v22, %v5292_v22  ;;  %v5433_v46 = vpack.c.bf16 %v5299_v56, %v5299_v56  ;;  %v5310_v3 = vrot.slane %v5309_v43, 2 }
 0x426   :  { %v5615_v0 = vsel %vm3716_vm0, %v5608_v8, %v5614_v16  ;;  %v5316_v36 = vmax.f32 %v5314_v33, %v5315_v2  ;;  %v5323_v32 = vmax.f32 %v5321_v14, %v5322_v39  ;;  %v5329_v61 = vrot.slane %v5328_v44, 4 }
 0x427   :  { %v5434_v20 = vpack.c.bf16 %v5306_v18, %v5306_v18  ;;  %v5495_v57 = vunpack.c.l.b16 %v5432_v30  ;;  %v10742_v51 = vunpack.c.l.b16 %v5433_v46  ;;  %v5311_v7 = vmax.f32 %v5309_v43, %v5310_v3 }
 0x428   :  { %v5317_v47 = vrot.slane %v5316_v36, 2  ;;  %v5324_v35 = vrot.slane %v5323_v32, 2  ;;  %v5330_v45 = vmax.f32 %v5328_v44, %v5329_v61  ;;  %v5006_v60 = vmax.f32 %v4990_v41, 0.0 }
 0x429   :  { %v5502_v38 = vsel %vm3716_vm0, %v5495_v57, %v5501_v42  ;;  %v10745_v23 = vunpack.c.l.b16 %v5434_v20  ;;  %v5312_v15 = vrot.slane %v5311_v7, 1  ;;  %v4991_v16 = vadd.f32 %v10556_v29, %v4963_v48 }
 0x42a   :  { %v5318_v52 = vmax.f32 %v5316_v36, %v5317_v47  ;;  %v5325_v9 = vmax.f32 %v5323_v32, %v5324_v35  ;;  %v5331_v63 = vrot.slane %v5330_v45, 2  ;;  %v5016_v37 = vmax.f32 %v5005_v13, %v5006_v60  ;;  %v4948_v36 = vpop.f32.mrf.mxu1 }
 0x42b   :  { %v5313_v26 = vmax.f32 %v5311_v7, %v5312_v15  ;;  %v5007_v1 = vmax.f32 %v4991_v16, 0.0  ;;  %v4964_v31 = vadd.f32 %v4944_v28, %v10653_v21  ;;  %v4965_v41 = vadd.f32 %v4946_v58, %v10655_v54 }
 0x42c   :  { %v5319_v19 = vrot.slane %v5318_v52, 1  ;;  %v5326_v12 = vrot.slane %v5325_v9, 1  ;;  %v5332_v42 = vmax.f32 %v5330_v45, %v5331_v63  ;;  %v5112_v59 = vcombine.high %v5016_v37, %v5016_v37 }
 0x42d   :  { %v5435_v27 = vpack.c.bf16 %v5313_v26, %v5313_v26  ;;  %v5119_v17 = vrot.slane %v5016_v37, %v11476_v55  ;;  %v4992_v48 = vadd.f32 %v10573_v50, %v4964_v31  ;;  %v10755_v11 = vadd.f32 %v10556_v29, %v4965_v41 }
 0x42e   :  { %v5320_v25 = vmax.f32 %v5318_v52, %v5319_v19  ;;  %v5327_v13 = vmax.f32 %v5325_v9, %v5326_v12  ;;  %v5333_v49 = vrot.slane %v5332_v42, 1  ;;  %v5126_v10 = vrot.slane %v5112_v59, %v11476_v55 }
 0x42f   :  { %v5609_v21 = vunpack.c.l.b16 %v5435_v27  ;;  %v5127_v53 = vcombine.high %v5119_v17, %v5119_v17  ;;  %v5335_v54 = vsel %vm1737_vm11, %v5119_v17, -inf  ;;  %v5008_v5 = vmax.f32 %v4992_v48, 0.0 }
 0x430   :  { %v5334_v33 = vmax.f32 %v5332_v42, %v5333_v49  ;;  %v5436_v14 = vpack.c.bf16 %v5320_v25, %v5320_v25  ;;  %v5437_v22 = vpack.c.bf16 %v5327_v13, %v5327_v13  ;;  %v5128_v56 = vcombine.high %v5126_v10, %v5126_v10 }
 0x431   :  { %v10760_v40 = vsel %vm3718_vm1, %v5609_v21, %v5615_v0  ;;  %v5336_v43 = vrot.slane %v5335_v54, 4  ;;  %v5342_v29 = vsel %vm1737_vm11, %v5127_v53, -inf  ;;  %v5349_v8 = vsel %vm1737_vm11, %v5126_v10, -inf }
 0x432   :  { %v5438_v2 = vpack.c.bf16 %v5334_v33, %v5334_v33  ;;  %v5496_v39 = vunpack.c.l.b16 %v5436_v14  ;;  %v10764_v44 = vunpack.c.l.b16 %v5437_v22  ;;  %v5343_v28 = vrot.slane %v5342_v29, 4 }
 0x433   :  { %v5337_v18 = vmax.f32 %v5335_v54, %v5336_v43  ;;  %v5350_v30 = vrot.slane %v5349_v8, 4  ;;  %v5356_v46 = vsel %vm1737_vm11, %v5128_v56, -inf  ;;  %v5017_v3 = vmax.f32 %v5007_v1, %v5008_v5 }
 0x434   :  { %v5503_v32 = vsel %vm3718_vm1, %v5496_v39, %v5502_v38  ;;  %v10768_v0 = vunpack.c.l.b16 %v5438_v2  ;;  %v5344_v61 = vmax.f32 %v5342_v29, %v5343_v28  ;;  %v5357_v20 = vrot.slane %v5356_v46, 4 }
 0x435   :  { %v5338_v57 = vrot.slane %v5337_v18, 2  ;;  %v5351_v7 = vmax.f32 %v5349_v8, %v5350_v30  ;;  %v5129_v47 = vcombine.high %v5017_v3, %v5017_v3  ;;  %v5136_v35 = vrot.slane %v5017_v3, %v11476_v55 }
 0x436   :  { %v5345_v45 = vrot.slane %v5344_v61, 2  ;;  %v5358_v60 = vmax.f32 %v5356_v46, %v5357_v20  ;;  %v5009_v58 = vmax.f32 %v10755_v11, 0.0  ;;  %v4966_v15 = vadd.f32 %v4948_v36, %v10657_v62 }
 0x437   :  { %v5339_v16 = vmax.f32 %v5337_v18, %v5338_v57  ;;  %v5352_v52 = vrot.slane %v5351_v7, 2  ;;  %v5143_v9 = vrot.slane %v5129_v47, %v11476_v55  ;;  %v5144_v38 = vcombine.high %v5136_v35, %v5136_v35 }
 0x438   :  { %v5346_v63 = vmax.f32 %v5344_v61, %v5345_v45  ;;  %v5359_v37 = vrot.slane %v5358_v60, 2  ;;  %v5363_v26 = vsel %vm1737_vm11, %v5136_v35, -inf  ;;  %v4994_v1 = vadd.f32 %v10573_v50, %v4966_v15 }
 0x439   :  { %v5340_v31 = vrot.slane %v5339_v16, 1  ;;  %v5353_v41 = vmax.f32 %v5351_v7, %v5352_v52  ;;  %v5145_v19 = vcombine.high %v5143_v9, %v5143_v9  ;;  %v5364_v12 = vrot.slane %v5363_v26, 4 }
 0x43a   :  { %v5347_v42 = vrot.slane %v5346_v63, 1  ;;  %v5360_v59 = vmax.f32 %v5358_v60, %v5359_v37  ;;  %v5370_v27 = vsel %vm1737_vm11, %v5144_v38, -inf  ;;  %v5377_v62 = vsel %vm1737_vm11, %v5143_v9, -inf }
 0x43b   :  { %v5341_v17 = vmax.f32 %v5339_v16, %v5340_v31  ;;  %v5354_v48 = vrot.slane %v5353_v41, 1  ;;  %v5365_v11 = vmax.f32 %v5363_v26, %v5364_v12  ;;  %v5371_v25 = vrot.slane %v5370_v27, 4 }
 0x43c   :  { %v5348_v13 = vmax.f32 %v5346_v63, %v5347_v42  ;;  %v5361_v49 = vrot.slane %v5360_v59, 1  ;;  %v5378_v10 = vrot.slane %v5377_v62, 4  ;;  %v5384_v21 = vsel %vm1737_vm11, %v5145_v19, -inf }
 0x43d   :  { %v5355_v50 = vmax.f32 %v5353_v41, %v5354_v48  ;;  %v5439_v53 = vpack.c.bf16 %v5341_v17, %v5341_v17  ;;  %v5366_v54 = vrot.slane %v5365_v11, 2  ;;  %v5372_v5 = vmax.f32 %v5370_v27, %v5371_v25 }
 0x43e   :  { %v5362_v33 = vmax.f32 %v5360_v59, %v5361_v49  ;;  %v5440_v14 = vpack.c.bf16 %v5348_v13, %v5348_v13  ;;  %v5379_v22 = vmax.f32 %v5377_v62, %v5378_v10  ;;  %v5385_v56 = vrot.slane %v5384_v21, 4 }
 0x43f   :  { %v5441_v43 = vpack.c.bf16 %v5355_v50, %v5355_v50  ;;  %v5610_v29 = vunpack.c.l.b16 %v5439_v53  ;;  %v5367_v8 = vmax.f32 %v5365_v11, %v5366_v54  ;;  %v5373_v2 = vrot.slane %v5372_v5, 2 }
 0x440   :  { %v5442_v39 = vpack.c.bf16 %v5362_v33, %v5362_v33  ;;  %v5497_v28 = vunpack.c.l.b16 %v5440_v14  ;;  %v5380_v18 = vrot.slane %v5379_v22, 2  ;;  %v5386_v30 = vmax.f32 %v5384_v21, %v5385_v56 }
 0x441   :  { %v5617_v46 = vsel %vm3720_vm2, %v5610_v29, %v10760_v40  ;;  %v5740_v3 = vunpack.c.l.b16 %v5441_v43  ;;  %v5368_v36 = vrot.slane %v5367_v8, 1  ;;  %v5374_v61 = vmax.f32 %v5372_v5, %v5373_v2 }
 0x442   :  { %v5504_v20 = vsel %vm3720_vm2, %v5497_v28, %v5503_v32  ;;  %v5871_v57 = vunpack.c.l.b16 %v5442_v39  ;;  %v5381_v7 = vmax.f32 %v5379_v22, %v5380_v18  ;;  %v5387_v47 = vrot.slane %v5386_v30, 2 }
 0x443   :  { %v5369_v35 = vmax.f32 %v5367_v8, %v5368_v36  ;;  %v5375_v45 = vrot.slane %v5374_v61, 1  ;;  %v5010_v60 = vmax.f32 %v4994_v1, 0.0  ;;  %v5875_v15 = vsel %vm3714_vm15, %v10724_v4, %v10704_v6 }
 0x444   :  { %v5382_v16 = vrot.slane %v5381_v7, 1  ;;  %v5388_v52 = vmax.f32 %v5386_v30, %v5387_v47  ;;  %v5876_v40 = vsel %vm3716_vm0, %v10745_v23, %v5875_v15  ;;  %v5745_v9 = vsel %vm3716_vm0, %v10742_v51, %v10730_v24 }
 0x445   :  { %v5376_v32 = vmax.f32 %v5374_v61, %v5375_v45  ;;  %v5443_v38 = vpack.c.bf16 %v5369_v35, %v5369_v35  ;;  %v5018_v63 = vmax.f32 %v5009_v58, %v5010_v60  ;;  %v5877_v37 = vsel %vm3718_vm1, %v10768_v0, %v5876_v40 }
 0x446   :  { %v5383_v26 = vmax.f32 %v5381_v7, %v5382_v16  ;;  %v5389_v1 = vrot.slane %v5388_v52, 1  ;;  %v5878_v31 = vsel %vm3720_vm2, %v5871_v57, %v5877_v37  ;;  %v5746_v6 = vsel %vm3718_vm1, %v10764_v44, %v5745_v9  ;;  %v6987_v9 = vld [vmem:[%s10960_s5 + $0xf8] sm:$0xff]  }
 0x447   :  { %v5444_v4 = vpack.c.bf16 %v5376_v32, %v5376_v32  ;;  %v5611_v41 = vunpack.c.l.b16 %v5443_v38  ;;  %v5146_v23 = vcombine.high %v5018_v63, %v5018_v63  ;;  %v5153_v19 = vrot.slane %v5018_v63, %v11476_v55  ;;  %v6988_v63 = vld [vmem:[%s10960_s5 + $0xb8] sm:$0xff]  }
 0x448   :  { %v5390_v12 = vmax.f32 %v5388_v52, %v5389_v1  ;;  %v5445_v24 = vpack.c.bf16 %v5383_v26, %v5383_v26  ;;  %v5747_v51 = vsel %vm3720_vm2, %v5740_v3, %v5746_v6  ;;  %v6989_v6 = vld [vmem:[%s10960_s5 + $0xf0] sm:$0xff]  }
 0x449   :  { %v5498_v58 = vunpack.c.l.b16 %v5444_v4  ;;  %v5618_v42 = vsel %vm3722_vm3, %v5611_v41, %v5617_v46  ;;  %v5160_v0 = vrot.slane %v5146_v23, %v11476_v55  ;;  %v5161_v59 = vcombine.high %v5153_v19, %v5153_v19  ;;  %v6990_v4 = vld [vmem:[%s10960_s5 + $0xb0] sm:$0xff]   ;;  %v6991_v41 = vld [vmem:[%s10960_s5 + $0xe8] sm:$0xff]  }
 0x44a   :  { %v5446_v27 = vpack.c.bf16 %v5390_v12, %v5390_v12  ;;  %v5741_v62 = vunpack.c.l.b16 %v5445_v24  ;;  %v5391_v17 = vsel %vm1737_vm11, %v5153_v19, -inf  ;;  %v6992_v23 = vld [vmem:[%s10960_s5 + $0xa8] sm:$0xff]   ;;  %v6993_v19 = vld [vmem:[%s10960_s5 + $0xe0] sm:$0xff]   ;;  %v6995_v24 = vld [vmem:[%s10960_s5 + $0xd8] sm:$0xff]  }
 0x44b   :  { %v5162_v44 = vcombine.high %v5160_v0, %v5160_v0  ;;  %v5392_v48 = vrot.slane %v5391_v17, 4  ;;  %v5398_v11 = vsel %vm1737_vm11, %v5161_v59, -inf  ;;  %v5405_v25 = vsel %vm1737_vm11, %v5160_v0, -inf  ;;  %v6994_v12 = vld [vmem:[%s10960_s5 + $0xa0] sm:$0xff]   ;;  %v6999_v0 = vld [vmem:[%s10960_s5 + $0xc8] sm:$0xff]  }
 0x44c   :  { %v5399_v13 = vrot.slane %v5398_v11, 4  ;;  %v5406_v49 = vrot.slane %v5405_v25, 4  ;;  %v5505_v10 = vsel %vm3722_vm3, %v5498_v58, %v5504_v20  ;;  %v5872_v21 = vunpack.c.l.b16 %v5446_v27  ;;  %v6997_v58 = vld [vmem:[%s10960_s5 + $0xd0] sm:$0xff]   ;;  %v7000_v59 = vld [vmem:[%s10960_s5 + $0x88] sm:$0xff]   ;;  %v7001_v27 = vld [vmem:[%s10960_s5 + $0xc0] sm:$0xff]  }
 0x44d   :  { %v5393_v50 = vmax.f32 %v5391_v17, %v5392_v48  ;;  %v5412_v53 = vsel %vm1737_vm11, %v5162_v44, -inf  ;;  %v5748_v55 = vsel %vm3722_vm3, %v5741_v62, %v5747_v51  ;;  %v6996_v51 = vld [vmem:[%s10960_s5 + $0x98] sm:$0xff]   ;;  %v7002_v62 = vld [vmem:[%s10960_s5 + $0x80] sm:$0xff]  }
 0x44e   :  { %v5400_v54 = vmax.f32 %v5398_v11, %v5399_v13  ;;  %v5407_v5 = vmax.f32 %v5405_v25, %v5406_v49  ;;  %v5413_v33 = vrot.slane %v5412_v53, 4  ;;  %v5879_v14 = vsel %vm3722_vm3, %v5872_v21, %v5878_v31  ;;  %v7003_v48 = vld [vmem:[%s10962_s7 + $0x38] sm:$0xff]   ;;  %v7004_v11 = vld [vmem:[%s10962_s7 + $0x30] sm:$0xff]   ;;  %v7005_v25 = vld [vmem:[%s10962_s7 + $0x28] sm:$0xff]  }
 0x44f   :  { %v5394_v22 = vrot.slane %v5393_v50, 2  ;;  %v7006_v13 = vld [vmem:[%s10962_s7 + $0x20] sm:$0xff]   ;;  %v7007_v49 = vld [vmem:[%s10962_s7 + $0x18] sm:$0xff]   ;;  %v7009_v21 = vld [vmem:[%s10962_s7 + $0x8] sm:$0xff]  }
 0x450   :  { %v5401_v56 = vrot.slane %v5400_v54, 2  ;;  %v5408_v43 = vrot.slane %v5407_v5, 2  ;;  %v5414_v29 = vmax.f32 %v5412_v53, %v5413_v33  ;;  %v7012_v53 = vld [vmem:[%s10963_s9 + $0x30] sm:$0xff]   ;;  %v7015_v33 = vld [vmem:[%s10963_s9 + $0x18] sm:$0xff]  }
 0x451   :  { %v5395_v8 = vmax.f32 %v5393_v50, %v5394_v22  ;;  %v7011_v50 = vld [vmem:[%s10963_s9 + $0x38] sm:$0xff]  }
 0x452   :  { %v5402_v2 = vmax.f32 %v5400_v54, %v5401_v56  ;;  %v5409_v39 = vmax.f32 %v5407_v5, %v5408_v43  ;;  %v5415_v28 = vrot.slane %v5414_v29, 2  ;;  %v7013_v54 = vld [vmem:[%s10963_s9 + $0x28] sm:$0xff]   ;;  %v7014_v5 = vld [vmem:[%s10963_s9 + $0x20] sm:$0xff]  }
 0x453   :  { %v5396_v18 = vrot.slane %v5395_v8, 1 }
 0x454   :  { %v5403_v30 = vrot.slane %v5402_v2, 1  ;;  %v5410_v46 = vrot.slane %v5409_v39, 1  ;;  %v5416_v3 = vmax.f32 %v5414_v29, %v5415_v28 }
 0x455   :  { %v5397_v36 = vmax.f32 %v5395_v8, %v5396_v18 }
 0x456   :  { %v5404_v61 = vmax.f32 %v5402_v2, %v5403_v30  ;;  %v5411_v20 = vmax.f32 %v5409_v39, %v5410_v46  ;;  %v5417_v57 = vrot.slane %v5416_v3, 1 }
 0x457   :  { %v5447_v7 = vpack.c.bf16 %v5397_v36, %v5397_v36 }
 0x458   :  { %v5448_v47 = vpack.c.bf16 %v5404_v61, %v5404_v61  ;;  %v5449_v35 = vpack.c.bf16 %v5411_v20, %v5411_v20  ;;  %v5418_v45 = vmax.f32 %v5416_v3, %v5417_v57  ;;  %v6612_v61 = vld [vmem:[%s10964_s6] ss:$0 sm:$0xff] }
 0x459   :  { %v5612_v60 = vunpack.c.l.b16 %v5447_v7 }
 0x45a   :  { %v5499_v15 = vunpack.c.l.b16 %v5448_v47  ;;  %v5450_v16 = vpack.c.bf16 %v5418_v45, %v5418_v45  ;;  %v5742_v52 = vunpack.c.l.b16 %v5449_v35 }
 0x45b   :  { %v5619_v40 = vsel %vm3724_vm4, %v5612_v60, %v5618_v42  ;;  %v6998_v42 = vld [vmem:[%s10960_s5 + $0x90] sm:$0xff]  }
 0x45c   :  { %v5620_v32 = vpack.c.b16 %v5619_v40, %v5619_v40  ;;  %v5506_v38 = vsel %vm3724_vm4, %v5499_v15, %v5505_v10  ;;  %v5873_v37 = vunpack.c.l.b16 %v5450_v16  ;;  %v5749_v26 = vsel %vm3724_vm4, %v5742_v52, %v5748_v55  ;;  %v7008_v10 = vld [vmem:[%s10962_s7 + $0x10] sm:$0xff]   ;;  %v7010_v55 = vld [vmem:[%s10962_s7] sm:$0xff]   ;;  %v7017_v52 = vld [vmem:[%s10963_s9 + $0x8] sm:$0xff]  }
 0x45d   :  { %v5507_v1 = vpack.c.b16 %v5506_v38, %v5506_v38  ;;  %v5750_v44 = vpack.c.b16 %v5749_v26, %v5749_v26  ;;  %v7018_v40 = vld [vmem:[%s10963_s9] sm:$0xff]  }
 0x45e   :  { %6722 = vmatmul.mubr.bf16.vlgmr.msra.gmra.mxu1 %v5620_v32  ;;  %v5880_v31 = vsel %vm3724_vm4, %v5873_v37, %v5879_v14  ;;  %v7016_v14 = vld [vmem:[%s10963_s9 + $0x10] sm:$0xff]  }
 0x45f   :  { %6746 = vmatpush3.bf16.msra.mxu1 %v6987_v9  ;;  %6702 = vmatmul.mubr.bf16.vlgmr.msra.gmra.mxu0 %v5507_v1  ;;  %v5881_v17 = vpack.c.b16 %v5880_v31, %v5880_v31  ;;  %v6613_v9 = vld [vmem:[%s10965_s8] ss:$0 sm:$0xff] }
 0x460   :  { %6726 = vmatpush3.bf16.msra.mxu0 %v6988_v63  ;;  %6747 = vmatprep.subr.bf16.mxu1 %v7051_v34 }
 0x461   :  { %6727 = vmatprep.subr.bf16.mxu0 %v7051_v34  ;;  %6761 = vmatprep.mubr.msk.bf16.mxu1 %vm7052_vm5, %v7051_v34 }
 0x462   :  { %6741 = vmatprep.mubr.msk.bf16.mxu0 %vm7052_vm5, %v7051_v34 }
 0x463   :  { %6748 = vmatpush3.bf16.msra.mxu1 %v6989_v6  ;;  %v6622_v6 = vld [vmem:[%s10966_s10] ss:$0 sm:$0xff] }
 0x464   :  { %6728 = vmatpush3.bf16.msra.mxu0 %v6990_v4  ;;  %6749 = vmatprep.subr.bf16.mxu1 %v7051_v34 }
 0x465   :  { %6729 = vmatprep.subr.bf16.mxu0 %v7051_v34 }
 0x467   :  { %6750 = vmatpush3.bf16.msra.mxu1 %v6991_v41 }
 0x468   :  { %6730 = vmatpush3.bf16.msra.mxu0 %v6992_v23  ;;  %6751 = vmatprep.subr.bf16.mxu1 %v7051_v34 }
 0x469   :  { %6731 = vmatprep.subr.bf16.mxu0 %v7051_v34 }
 0x46b   :  { %6752 = vmatpush3.bf16.msra.mxu1 %v6993_v19 }
 0x46c   :  { %6732 = vmatpush3.bf16.msra.mxu0 %v6994_v12  ;;  %6753 = vmatprep.subr.bf16.mxu1 %v7051_v34 }
 0x46d   :  { %6733 = vmatprep.subr.bf16.mxu0 %v7051_v34 }
 0x46f   :  { %6754 = vmatpush3.bf16.msra.mxu1 %v6995_v24 }
 0x470   :  { %6734 = vmatpush3.bf16.msra.mxu0 %v6996_v51  ;;  %6755 = vmatprep.subr.bf16.mxu1 %v7051_v34 }
 0x471   :  { %6735 = vmatprep.subr.bf16.mxu0 %v7051_v34 }
 0x473   :  { %6756 = vmatpush3.bf16.msra.mxu1 %v6997_v58 }
 0x474   :  { %6736 = vmatpush3.bf16.msra.mxu0 %v6998_v42  ;;  %6757 = vmatprep.subr.bf16.mxu1 %v7051_v34 }
 0x475   :  { %6737 = vmatprep.subr.bf16.mxu0 %v7051_v34 }
 0x477   :  { %6758 = vmatpush3.bf16.msra.mxu1 %v6999_v0 }
 0x478   :  { %6738 = vmatpush3.bf16.msra.mxu0 %v7000_v59  ;;  %6759 = vmatprep.subr.bf16.mxu1 %v7051_v34 }
 0x479   :  { %6739 = vmatprep.subr.bf16.mxu0 %v7051_v34 }
 0x47b   :  { %6760 = vmatpush3.bf16.msra.mxu1 %v7001_v27 }
 0x47c   :  { %6740 = vmatpush3.bf16.msra.mxu0 %v7002_v62  ;;  %6785 = vmatprep.subr.bf16.mxu1 %v7051_v34 }
 0x47d   :  { %6765 = vmatprep.subr.bf16.mxu0 %v7051_v34 }
 0x47e   :  { %6762 = vmatmul.mubr.bf16.vlgmr.msra.gmra.mxu1 %v5881_v17 }
 0x47f   :  { %6742 = vmatmul.mubr.bf16.vlgmr.msra.gmra.mxu0 %v5750_v44  ;;  %6801 = vmatprep.mubr.msk.bf16.mxu1 %vm7052_vm5, %v7051_v34 }
 0x480   :  { %6781 = vmatprep.mubr.msk.bf16.mxu0 %vm7052_vm5, %v7051_v34  ;;  %6766 = vmatpush3.bf16.msra.mxu0 %v7003_v48 }
 0x481   :  { %6767 = vmatprep.subr.bf16.mxu0 %v7051_v34  ;;  %6786 = vmatpush3.bf16.msra.mxu1 %v7011_v50 }
 0x482   :  { %6787 = vmatprep.subr.bf16.mxu1 %v7051_v34 }
 0x484   :  { %6768 = vmatpush3.bf16.msra.mxu0 %v7004_v11 }
 0x485   :  { %6769 = vmatprep.subr.bf16.mxu0 %v7051_v34  ;;  %6788 = vmatpush3.bf16.msra.mxu1 %v7012_v53 }
 0x486   :  { %6789 = vmatprep.subr.bf16.mxu1 %v7051_v34 }
 0x488   :  { %6770 = vmatpush3.bf16.msra.mxu0 %v7005_v25 }
 0x489   :  { %6771 = vmatprep.subr.bf16.mxu0 %v7051_v34  ;;  %6790 = vmatpush3.bf16.msra.mxu1 %v7013_v54 }
 0x48a   :  { %6791 = vmatprep.subr.bf16.mxu1 %v7051_v34 }
 0x48c   :  { %6772 = vmatpush3.bf16.msra.mxu0 %v7006_v13 }
 0x48d   :  { %6773 = vmatprep.subr.bf16.mxu0 %v7051_v34  ;;  %6792 = vmatpush3.bf16.msra.mxu1 %v7014_v5 }
 0x48e   :  { %6793 = vmatprep.subr.bf16.mxu1 %v7051_v34 }
 0x490   :  { %6774 = vmatpush3.bf16.msra.mxu0 %v7007_v49 }
 0x491   :  { %6775 = vmatprep.subr.bf16.mxu0 %v7051_v34  ;;  %6794 = vmatpush3.bf16.msra.mxu1 %v7015_v33 }
 0x492   :  { %6795 = vmatprep.subr.bf16.mxu1 %v7051_v34 }
 0x494   :  { %6776 = vmatpush3.bf16.msra.mxu0 %v7008_v10 }
 0x495   :  { %6777 = vmatprep.subr.bf16.mxu0 %v7051_v34  ;;  %6796 = vmatpush3.bf16.msra.mxu1 %v7016_v14 }
 0x496   :  { %6797 = vmatprep.subr.bf16.mxu1 %v7051_v34 }
 0x498   :  { %6778 = vmatpush3.bf16.msra.mxu0 %v7009_v21 }
 0x499   :  { %6779 = vmatprep.subr.bf16.mxu0 %v7051_v34  ;;  %6798 = vmatpush3.bf16.msra.mxu1 %v7017_v52 }
 0x49a   :  { %6799 = vmatprep.subr.bf16.mxu1 %v7051_v34 }
 0x49c   :  { %6780 = vmatpush3.bf16.msra.mxu0 %v7010_v55 }
 0x49d   :  { %6800 = vmatpush3.bf16.msra.mxu1 %v7018_v40 }
 0x51e   :  { %v5704_v22 = vpop.f32.mrf.mxu1 }
 0x51f   :  { %v5591_v56 = vpop.f32.mrf.mxu0 }
 0x520   :  { %v6723_v43 = vpop.f32.mrf.mxu1  ;;  %v5705_v18 = vadd.f32 %v5704_v22, %v5591_v56 }
 0x521   :  { %v6703_v29 = vpop.f32.mrf.mxu0 }
 0x522   :  { %v5707_v8 = vpop.f32.mrf.mxu1 }
 0x523   :  { %v5594_v2 = vpop.f32.mrf.mxu0 }
 0x524   :  { %v6724_v39 = vpop.f32.mrf.mxu1 }
 0x525   :  { %v6704_v28 = vpop.f32.mrf.mxu0 }
 0x53e   :  { %v5965_v30 = vpop.f32.mrf.mxu1 }
 0x53f   :  { %v5834_v46 = vpop.f32.mrf.mxu0 }
 0x540   :  { %v5840_v3 = vadd.f32 %v5834_v46, %v5705_v18  ;;  %v6763_v36 = vpop.f32.mrf.mxu1 }
 0x541   :  { %v6743_v20 = vpop.f32.mrf.mxu0 }
 0x542   :  { %v5971_v57 = vadd.f32 %v5965_v30, %v5840_v3  ;;  %v5968_v7 = vpop.f32.mrf.mxu1 }
 0x543   :  { %v5837_v47 = vpop.f32.mrf.mxu0 }
 0x544   :  { %v5979_v35 = vadd.f32 %v6612_v61, %v5971_v57  ;;  %v6764_v45 = vpop.f32.mrf.mxu1 }
 0x545   :  { %v6744_v60 = vpop.f32.mrf.mxu0 }
 0x546   :  { %v5980_v15 = vmax.f32 %v5979_v35, 0.0 }
 0x548   :  { %v5981_v16 = vpack.c.bf16 %v5980_v15, %v5980_v15 }
 0x54a   :  { %6782 = vmatmul.mubr.bf16.vlgmr.msra.gmra.mxu0 %v5981_v16 }
 0x60a   :  { %v6087_v32 = vpop.f32.mrf.mxu0 }
 0x60b   :  { %v6088_v38 = vadd.f32 %v6613_v9, %v6087_v32 }
 0x60c   :  { %v6783_v63 = vpop.f32.mrf.mxu0 }
 0x60d   :  { %v6093_v37 = vmax.f32 %v6088_v38, 0.0 }
 0x60e   :  { %v6090_v26 = vpop.f32.mrf.mxu0 }
 0x60f   :  { %v6094_v1 = vpack.c.bf16 %v6093_v37, %v6093_v37 }
 0x610   :  { %v6784_v31 = vpop.f32.mrf.mxu0 }
 0x611   :  { %6802 = vmatmul.mubr.bf16.vlgmr.msra.gmra.mxu1 %v6094_v1 }
 0x6d1   :  { %v6200_v4 = vpop.f32.mrf.mxu1 }
 0x6d2   :  { %v6201_v41 = vadd.f32 %v6622_v6, %v6200_v4 }
 0x6d3   :  { %v6803_v34 = vpop.f32.mrf.mxu1 }
 0x6d4   :  { %6206 = vst [vmem:[%s10967_s11] sm:$0xff] %v6201_v41 }
 0x6d5   :  { %v6203_v23 = vpop.f32.mrf.mxu1 }
 0x6d7   :  { %v6804_v19 = vpop.f32.mrf.mxu1 }

</bundles_post_ra>
